<compile_context>
chip_gen: v7x
topology: tpu7x:2x2x1
jax: 0.10.0
libtpu: 0.0.40
codegen_flags: <defaults>
</compile_context>

<pallas_src>
import math

import jax
import jax.numpy as jnp
from jax import lax
from jax.experimental import pallas as pl
from jax.experimental.pallas import tpu as pltpu


def conv_relu_pool_packed(xp, wp, b, *, K, block_rows, rc):
  """Fused Conv2d(VALID, stride 1) + bias + ReLU + MaxPool2d(2).

  The kernel-width (kw) taps are pre-packed into the channel dim, so the
  in-kernel conv loops over kh only, one MXU matmul per kh with contraction
  K*Cin:
    xp: (N, H, OW, K*Cin) bf16   xp[n,h,ow,kw*Cin+ci] == x[n,h,ow+kw,ci]
    wp: (K, K*Cin, Cout)  bf16   wp[kh,kw*Cin+ci,co]  == w[kh,kw,ci,co]
    b : (Cout,) f32
  Returns (N, PH*PW, Cout) bf16, flattened row-major over (ph, pw),
  PH = (H-K+1)//2, PW = OW//2.
  """
  N, H, OW, KC = xp.shape
  K_, KC_, Cout = wp.shape
  assert K_ == K and KC_ == KC
  OH = H - K + 1
  PH, PW = OH // 2, OW // 2
  # pooling index tricks below rely on these
  assert OH % 2 == 0 and OW % 2 == 0 and OW % 8 == 0
  assert OH % block_rows == 0 and block_rows % rc == 0 and rc % 2 == 0
  n_rb = OH // block_rows
  assert K == 1 or n_rb == 1     # grid-level row blocks only when rows don't overlap
  Hb = block_rows + K - 1        # input rows needed per grid step
  PHb = block_rows // 2          # pooled rows per grid step
  n_chunks = block_rows // rc    # in-kernel row chunks per grid step
  M = rc * OW                    # matmul M per chunk (accumulator rows)
  R2 = rc // 2                   # pooled rows per chunk
  b2d = b.reshape(1, Cout).astype(jnp.float32)

  def kernel(x_ref, w_ref, b_ref, o_ref, pool_ref):
    bias = b_ref[...]                                   # (1, Cout) f32

    def chunk(ci, carry):
      r0 = ci * rc
      # direct conv: K matmuls (contraction K*Cin) accumulated in vregs
      acc = jnp.zeros((M, Cout), jnp.float32)
      for kh in range(K):
        patch = x_ref[0, pl.ds(r0 + kh, rc), :, :].reshape(M, KC)
        acc = acc + jnp.dot(patch, w_ref[kh],
                            preferred_element_type=jnp.float32)
      a = jnp.maximum(acc + bias, 0.0)                  # bias + ReLU (f32)
      # 2x2 max pool, step 1: row-pair max via an aligned sublane reshape
      t = a.reshape(R2, 2 * OW, Cout)
      rmax = jnp.maximum(t[:, :OW, :], t[:, OW:, :])    # (R2, OW, Cout)
      # step 2: column-pair max via strided sublane loads from a tiny
      # per-chunk scratch (proven-robust path; traffic is negligible now)
      pool_ref[...] = rmax.reshape(R2 * OW, Cout)
      ev = pool_ref[pl.ds(0, R2 * PW, stride=2), :]
      od = pool_ref[pl.ds(1, R2 * PW, stride=2), :]
      out = jnp.maximum(ev, od)                         # (R2*PW, Cout)
      off = pl.multiple_of(ci * (R2 * PW), 8)
      o_ref[0, pl.ds(off, R2 * PW), :] = out.astype(o_ref.dtype)
      return carry

    lax.fori_loop(0, n_chunks, chunk, 0)

  return pl.pallas_call(
      kernel,
      out_shape=jax.ShapeDtypeStruct((N, PH * PW, Cout), jnp.bfloat16),
      grid_spec=pltpu.PrefetchScalarGridSpec(
          num_scalar_prefetch=0,
          grid=(N, n_rb),
          in_specs=[
              pl.BlockSpec((1, Hb, OW, KC), lambda n, r: (n, r, 0, 0)),
              pl.BlockSpec((K, KC, Cout), lambda n, r: (0, 0, 0)),
              pl.BlockSpec((1, Cout), lambda n, r: (0, 0)),
          ],
          out_specs=pl.BlockSpec((1, PHb * PW, Cout), lambda n, r: (n, r, 0)),
          scratch_shapes=[pltpu.VMEM((R2 * OW, Cout), jnp.float32)],
      ),
      compiler_params=pltpu.CompilerParams(
          dimension_semantics=("parallel", "parallel"),
          vmem_limit_bytes=16 * 1024 * 1024,
      ),
  )(xp, wp, b2d)


def mlp_head(x, w1, b1, w2, b2):
  """Linear(512->64) + ReLU + Linear(64->1) + Sigmoid.  x: (N, 512)."""
  N, D = x.shape
  Hd = w1.shape[1]
  w1b = w1.astype(jnp.bfloat16)
  b1r = b1.reshape(1, Hd).astype(jnp.float32)
  w2r = w2.reshape(1, Hd).astype(jnp.float32)
  b2r = b2.reshape(1, 1).astype(jnp.float32)

  def kernel(x_ref, w1_ref, b1_ref, w2_ref, b2_ref, o_ref):
    h = jnp.dot(x_ref[...], w1_ref[...],
                preferred_element_type=jnp.float32) + b1_ref[...]
    h = jnp.maximum(h, 0.0)
    z = jnp.sum(h * w2_ref[...], axis=1, keepdims=True) + b2_ref[...]
    o_ref[...] = 1.0 / (1.0 + jnp.exp(-z))

  return pl.pallas_call(
      kernel,
      out_shape=jax.ShapeDtypeStruct((N, 1), jnp.float32),
      grid_spec=pltpu.PrefetchScalarGridSpec(
          num_scalar_prefetch=0,
          grid=(1,),
          in_specs=[
              pl.BlockSpec((N, D), lambda i: (0, 0)),
              pl.BlockSpec((D, Hd), lambda i: (0, 0)),
              pl.BlockSpec((1, Hd), lambda i: (0, 0)),
              pl.BlockSpec((1, Hd), lambda i: (0, 0)),
              pl.BlockSpec((1, 1), lambda i: (0, 0)),
          ],
          out_specs=pl.BlockSpec((N, 1), lambda i: (0, 0)),
      ),
      compiler_params=pltpu.CompilerParams(
          dimension_semantics=("arbitrary",),
          vmem_limit_bytes=16 * 1024 * 1024,
      ),
  )(x.astype(jnp.bfloat16), w1b, b1r, w2r, b2r)


def _pack_kw(y, K):
  """(N, H, W, C) -> (N, H, OW, K*C) with [..., kw*C+ci] = y[..., ow+kw, ci]."""
  OW = y.shape[2] - K + 1
  return jnp.concatenate([y[:, :, kw:kw + OW, :] for kw in range(K)], axis=-1)


def forward(x_nchw, p):
  N, _, H0, W0 = x_nchw.shape
  x = jnp.transpose(x_nchw, (0, 2, 3, 1)).astype(jnp.bfloat16)   # NCHW -> NHWC

  # --- block 1: Cin = 1, so lower the 5x5 conv to a 1x1 conv over the 25
  #     im2col channels (padded to 32 for cleaner lane packing).
  K1 = p["w1"].shape[0]
  OH1, OW1 = H0 - K1 + 1, W0 - K1 + 1
  cols = jnp.concatenate(
      [x[:, kh:kh + OH1, kw:kw + OW1, :]
       for kh in range(K1) for kw in range(K1)],
      axis=-1)                                                   # (N,144,144,25)
  cols = jnp.pad(cols, ((0, 0), (0, 0), (0, 0), (0, 32 - K1 * K1)))
  w1p = jnp.pad(p["w1"].reshape(K1 * K1, -1), ((0, 32 - K1 * K1), (0, 0)))
  w1p = w1p[None].astype(jnp.bfloat16)                           # (1, 32, 16)
  y = conv_relu_pool_packed(cols, w1p, p["b1"], K=1, block_rows=48, rc=2)
  y = y.reshape(N, OH1 // 2, OW1 // 2, 16)                       # (N,72,72,16) bf16

  # --- blocks 2..4: kw-packed direct conv, one matmul per kh inside the kernel
  for wk, bk, rc in (("w2", "b2", 2), ("w3", "b3", 4), ("w4", "b4", 8)):
    w = p[wk]
    K, _, Cin, Cout = w.shape
    Hc, Wc = y.shape[1], y.shape[2]
    OHc, OWc = Hc - K + 1, Wc - K + 1
    xp = _pack_kw(y, K)                                          # (N,Hc,OWc,K*Cin)
    wp = w.reshape(K, K * Cin, Cout).astype(jnp.bfloat16)
    y = conv_relu_pool_packed(xp, wp, p[bk], K=K, block_rows=OHc, rc=rc)
    y = y.reshape(N, OHc // 2, OWc // 2, Cout)

  # match torch.reshape(x, (-1, 512)) on NCHW: flatten in (C, H, W) order
  feat = jnp.transpose(y, (0, 3, 1, 2)).reshape(N, -1)           # (N, 512)
  return mlp_head(feat, p["lw1"], p["lb1"], p["lw2"], p["lb2"])


def reference(x_nchw, p):
  """Pure-JAX reference matching the PyTorch forward (HIGHEST precision)."""
  y = x_nchw
  for wk, bk in (("w1", "b1"), ("w2", "b2"), ("w3", "b3"), ("w4", "b4")):
    w, b = p[wk], p[bk]
    y = lax.conv_general_dilated(
        y, w, window_strides=(1, 1), padding="VALID",
        dimension_numbers=("NCHW", "HWIO", "NCHW"),
        precision=lax.Precision.HIGHEST)
    y = jnp.maximum(y + b.reshape(1, -1, 1, 1), 0.0)
    y = lax.reduce_window(y, -jnp.inf, lax.max,
                          (1, 1, 2, 2), (1, 1, 2, 2), "VALID")
  feat = y.reshape(y.shape[0], -1)
  h = jnp.maximum(
      jnp.dot(feat, p["lw1"], precision=lax.Precision.HIGHEST) + p["lb1"], 0.0)
  z = jnp.dot(h, p["lw2"], precision=lax.Precision.HIGHEST) + p["lb2"]
  return 1.0 / (1.0 + jnp.exp(-z))


def init_params(key):
  ks = jax.random.split(key, 12)

  def u(k, shape, fan_in):
    bound = 1.0 / math.sqrt(fan_in)
    return jax.random.uniform(k, shape, jnp.float32, -bound, bound)

  p = {}
  p["w1"] = u(ks[0], (5, 5, 1, 16), 5 * 5 * 1)
  p["b1"] = u(ks[1], (16,), 5 * 5 * 1)
  p["w2"] = u(ks[2], (9, 9, 16, 48), 9 * 9 * 16)
  p["b2"] = u(ks[3], (48,), 9 * 9 * 16)
  p["w3"] = u(ks[4], (9, 9, 48, 48), 9 * 9 * 48)
  p["b3"] = u(ks[5], (48,), 9 * 9 * 48)
  p["w4"] = u(ks[6], (5, 5, 48, 32), 5 * 5 * 48)
  p["b4"] = u(ks[7], (32,), 5 * 5 * 48)
  p["lw1"] = u(ks[8], (512, 64), 512)
  p["lb1"] = u(ks[9], (64,), 512)
  p["lw2"] = u(ks[10], (64, 1), 64)
  p["lb2"] = u(ks[11], (1,), 64)
  return p


if __name__ == "__main__":
  key = jax.random.PRNGKey(0)
  pkey, xkey = jax.random.split(key)
  params = init_params(pkey)

  # 148x148 is the smallest spatial size consistent with torch.reshape(-1, 512):
  # 148 ->(c1) 72 ->(c2) 32 ->(c3) 12 ->(c4) 4, and 32 * 4 * 4 = 512.
  x = jax.random.normal(xkey, (2, 1, 148, 148), dtype=jnp.float32)

  fwd = jax.jit(forward)
  y = fwd(x, params)
  y = jax.block_until_ready(y)
  assert y.shape == (2, 1) and bool(jnp.all(jnp.isfinite(y)))

  y_ref = reference(x, params)
  err = float(jnp.max(jnp.abs(y - y_ref)))
  # bf16 matmul operands (f32 accumulation) vs a HIGHEST-precision reference
  assert err < 2e-3, f"mismatch vs pure-JAX reference: {err}"

  print("KERNEL_OK")
</pallas_src>

<mosaic_0001>
module attributes {stable_mosaic.version = 11 : i64} {
  func.func @kernel(%arg0: i32, %arg1: i32, %arg2: memref<1x48x144x32xbf16, #tpu.memory_space<vmem>>, %arg3: memref<1x32x16xbf16, #tpu.memory_space<vmem>>, %arg4: memref<1x16xf32, #tpu.memory_space<vmem>>, %arg5: memref<1x1728x16xbf16, #tpu.memory_space<vmem>>, %arg6: memref<144x16xf32, #tpu.memory_space<vmem>>) attributes {dimension_semantics = [#tpu.dimension_semantics<parallel>, #tpu.dimension_semantics<parallel>], iteration_bounds = array<i64: 2, 3>, scalar_prefetch = 0 : i64, scratch_operands = 1 : i64, tpu.core_type = #tpu.core_type<tc>, window_params = [{transform_indices = @transform_0, window_bounds = array<i64: 1, 48, 144, 32>}, {pipeline_mode = #tpu.pipeline_mode<synchronous>, transform_indices = @transform_1, window_bounds = array<i64: 1, 32, 16>}, {pipeline_mode = #tpu.pipeline_mode<synchronous>, transform_indices = @transform_2, window_bounds = array<i64: 1, 16>}, {transform_indices = @transform_3, window_bounds = array<i64: 1, 1728, 16>}]} {
    %c0 = arith.constant 0 : index
    %c0_0 = arith.constant 0 : index
    %0 = vector.load %arg4[%c0, %c0_0] : memref<1x16xf32, #tpu.memory_space<vmem>>, vector<1x16xf32>
    %c0_i32 = arith.constant 0 : i32
    %c24_i32 = arith.constant 24 : i32
    %1 = arith.addi %c0_i32, %c24_i32 : i32
    %c1_i32 = arith.constant 1 : i32
    scf.for %arg7 = %c0_i32 to %1 step %c1_i32  : i32 {
      %c2_i32 = arith.constant 2 : i32
      %2 = arith.muli %arg7, %c2_i32 : i32
      %cst = arith.constant 0.000000e+00 : f32
      %3 = vector.broadcast %cst : f32 to vector<288x16xf32>
      %c0_i32_2 = arith.constant 0 : i32
      %4 = arith.addi %2, %c0_i32_2 : i32
      %c0_3 = arith.constant 0 : index
      %5 = arith.index_cast %4 : i32 to index
      %c0_4 = arith.constant 0 : index
      %c0_5 = arith.constant 0 : index
      %6 = vector.load %arg2[%c0_3, %5, %c0_4, %c0_5] : memref<1x48x144x32xbf16, #tpu.memory_space<vmem>>, vector<1x2x144x32xbf16>
      %7 = vector.shape_cast %6 : vector<1x2x144x32xbf16> to vector<2x144x32xbf16>
      %8 = vector.shape_cast %7 : vector<2x144x32xbf16> to vector<288x32xbf16>
      %c0_6 = arith.constant 0 : index
      %c0_7 = arith.constant 0 : index
      %c0_8 = arith.constant 0 : index
      %9 = vector.load %arg3[%c0_6, %c0_7, %c0_8] : memref<1x32x16xbf16, #tpu.memory_space<vmem>>, vector<1x32x16xbf16>
      %10 = vector.shape_cast %9 : vector<1x32x16xbf16> to vector<32x16xbf16>
      %cst_9 = arith.constant dense<0.000000e+00> : vector<288x16xf32>
      %11 = tpu.matmul %8, %10, %cst_9 {dimension_numbers = #tpu.dot_dimension_numbers<[1], [0], [0], [1], [0, 0, 1, 1], [], []>} : vector<288x32xbf16>, vector<32x16xbf16>, vector<288x16xf32> -> vector<288x16xf32>
      %12 = arith.addf %3, %11 : vector<288x16xf32>
      %13 = vector.broadcast %0 : vector<1x16xf32> to vector<288x16xf32>
      %14 = arith.addf %12, %13 : vector<288x16xf32>
      %cst_10 = arith.constant 0.000000e+00 : f32
      %15 = vector.broadcast %cst_10 : f32 to vector<288x16xf32>
      %16 = arith.maximumf %14, %15 : vector<288x16xf32>
      %17 = vector.shape_cast %16 : vector<288x16xf32> to vector<1x288x16xf32>
      %18 = vector.extract_strided_slice %17 {offsets = [0, 0, 0], sizes = [1, 144, 16], strides = [1, 1, 1]} : vector<1x288x16xf32> to vector<1x144x16xf32>
      %19 = vector.extract_strided_slice %17 {offsets = [0, 144, 0], sizes = [1, 144, 16], strides = [1, 1, 1]} : vector<1x288x16xf32> to vector<1x144x16xf32>
      %20 = arith.maximumf %18, %19 : vector<1x144x16xf32>
      %21 = vector.shape_cast %20 : vector<1x144x16xf32> to vector<144x16xf32>
      %c0_11 = arith.constant 0 : index
      %c0_12 = arith.constant 0 : index
      %22 = vector.load %arg6[%c0_11, %c0_12] : memref<144x16xf32, #tpu.memory_space<vmem>>, vector<144x16xf32>
      tpu.vector_store %arg6[%c0_11, %c0_12], %21 {strides = array<i32>} : memref<144x16xf32, #tpu.memory_space<vmem>>, vector<144x16xf32>,
      %c0_13 = arith.constant 0 : index
      %c0_14 = arith.constant 0 : index
      %23 = tpu.strided_load %arg6[%c0_13, %c0_14] {strides = array<i32: 2, 1>} : memref<144x16xf32, #tpu.memory_space<vmem>>, vector<72x16xf32>
      %c1 = arith.constant 1 : index
      %c0_15 = arith.constant 0 : index
      %24 = tpu.strided_load %arg6[%c1, %c0_15] {strides = array<i32: 2, 1>} : memref<144x16xf32, #tpu.memory_space<vmem>>, vector<72x16xf32>
      %25 = arith.maximumf %23, %24 : vector<72x16xf32>
      %c72_i32 = arith.constant 72 : i32
      %26 = arith.muli %arg7, %c72_i32 : i32
      %27 = tpu.assume_multiple %26, 8 : i32
      %28 = arith.truncf %25 : vector<72x16xf32> to vector<72x16xbf16>
      %c0_16 = arith.constant 0 : index
      %29 = arith.index_cast %27 : i32 to index
      %c0_17 = arith.constant 0 : index
      %30 = vector.load %arg5[%c0_16, %29, %c0_17] : memref<1x1728x16xbf16, #tpu.memory_space<vmem>>, vector<1x72x16xbf16>
      %31 = vector.shape_cast %30 : vector<1x72x16xbf16> to vector<72x16xbf16>
      %32 = vector.shape_cast %28 : vector<72x16xbf16> to vector<1x72x16xbf16>
      tpu.vector_store %arg5[%c0_16, %29, %c0_17], %32 {strides = array<i32>} : memref<1x1728x16xbf16, #tpu.memory_space<vmem>>, vector<1x72x16xbf16>,
    }
    %c24_i32_1 = arith.constant 24 : i32
    return
  }
  func.func @transform_0(%arg0: i32, %arg1: i32) -> (i32, i32, i32, i32) {
    %c0_i32 = arith.constant 0 : i32
    %c0_i32_0 = arith.constant 0 : i32
    %c0_i32_1 = arith.constant 0 : i32
    return %arg0, %arg1, %c0_i32, %c0_i32_0 : i32, i32, i32, i32
  }
  func.func @transform_1(%arg0: i32, %arg1: i32) -> (i32, i32, i32) {
    %c0_i32 = arith.constant 0 : i32
    %c0_i32_0 = arith.constant 0 : i32
    %c0_i32_1 = arith.constant 0 : i32
    %c0_i32_2 = arith.constant 0 : i32
    return %c0_i32, %c0_i32_0, %c0_i32_1 : i32, i32, i32
  }
  func.func @transform_2(%arg0: i32, %arg1: i32) -> (i32, i32) {
    %c0_i32 = arith.constant 0 : i32
    %c0_i32_0 = arith.constant 0 : i32
    %c0_i32_1 = arith.constant 0 : i32
    return %c0_i32, %c0_i32_0 : i32, i32
  }
  func.func @transform_3(%arg0: i32, %arg1: i32) -> (i32, i32, i32) {
    %c0_i32 = arith.constant 0 : i32
    %c0_i32_0 = arith.constant 0 : i32
    return %arg0, %arg1, %c0_i32 : i32, i32, i32
  }
}

module attributes {stable_mosaic.version = 11 : i64} {
  func.func @kernel(%arg0: i32, %arg1: i32, %arg2: memref<1x72x64x144xbf16, #tpu.memory_space<vmem>>, %arg3: memref<9x144x48xbf16, #tpu.memory_space<vmem>>, %arg4: memref<1x48xf32, #tpu.memory_space<vmem>>, %arg5: memref<1x1024x48xbf16, #tpu.memory_space<vmem>>, %arg6: memref<64x48xf32, #tpu.memory_space<vmem>>) attributes {dimension_semantics = [#tpu.dimension_semantics<parallel>, #tpu.dimension_semantics<parallel>], iteration_bounds = array<i64: 2, 1>, scalar_prefetch = 0 : i64, scratch_operands = 1 : i64, tpu.core_type = #tpu.core_type<tc>, window_params = [{transform_indices = @transform_0, window_bounds = array<i64: 1, 72, 64, 144>}, {pipeline_mode = #tpu.pipeline_mode<synchronous>, transform_indices = @transform_1, window_bounds = array<i64: 9, 144, 48>}, {pipeline_mode = #tpu.pipeline_mode<synchronous>, transform_indices = @transform_2, window_bounds = array<i64: 1, 48>}, {transform_indices = @transform_3, window_bounds = array<i64: 1, 1024, 48>}]} {
    %c0 = arith.constant 0 : index
    %c0_0 = arith.constant 0 : index
    %0 = vector.load %arg4[%c0, %c0_0] : memref<1x48xf32, #tpu.memory_space<vmem>>, vector<1x48xf32>
    %c0_i32 = arith.constant 0 : i32
    %c32_i32 = arith.constant 32 : i32
    %1 = arith.addi %c0_i32, %c32_i32 : i32
    %c1_i32 = arith.constant 1 : i32
    scf.for %arg7 = %c0_i32 to %1 step %c1_i32  : i32 {
      %c2_i32 = arith.constant 2 : i32
      %2 = arith.muli %arg7, %c2_i32 : i32
      %cst = arith.constant 0.000000e+00 : f32
      %3 = vector.broadcast %cst : f32 to vector<128x48xf32>
      %c0_i32_2 = arith.constant 0 : i32
      %4 = arith.addi %2, %c0_i32_2 : i32
      %c0_3 = arith.constant 0 : index
      %5 = arith.index_cast %4 : i32 to index
      %c0_4 = arith.constant 0 : index
      %c0_5 = arith.constant 0 : index
      %6 = vector.load %arg2[%c0_3, %5, %c0_4, %c0_5] : memref<1x72x64x144xbf16, #tpu.memory_space<vmem>>, vector<1x2x64x144xbf16>
      %7 = vector.shape_cast %6 : vector<1x2x64x144xbf16> to vector<2x64x144xbf16>
      %8 = vector.shape_cast %7 : vector<2x64x144xbf16> to vector<128x144xbf16>
      %c0_6 = arith.constant 0 : index
      %c0_7 = arith.constant 0 : index
      %c0_8 = arith.constant 0 : index
      %9 = vector.load %arg3[%c0_6, %c0_7, %c0_8] : memref<9x144x48xbf16, #tpu.memory_space<vmem>>, vector<1x144x48xbf16>
      %10 = vector.shape_cast %9 : vector<1x144x48xbf16> to vector<144x48xbf16>
      %cst_9 = arith.constant dense<0.000000e+00> : vector<128x48xf32>
      %11 = tpu.matmul %8, %10, %cst_9 {dimension_numbers = #tpu.dot_dimension_numbers<[1], [0], [0], [1], [0, 0, 1, 1], [], []>} : vector<128x144xbf16>, vector<144x48xbf16>, vector<128x48xf32> -> vector<128x48xf32>
      %12 = arith.addf %3, %11 : vector<128x48xf32>
      %c1_i32_10 = arith.constant 1 : i32
      %13 = arith.addi %2, %c1_i32_10 : i32
      %c0_11 = arith.constant 0 : index
      %14 = arith.index_cast %13 : i32 to index
      %c0_12 = arith.constant 0 : index
      %c0_13 = arith.constant 0 : index
      %15 = vector.load %arg2[%c0_11, %14, %c0_12, %c0_13] : memref<1x72x64x144xbf16, #tpu.memory_space<vmem>>, vector<1x2x64x144xbf16>
      %16 = vector.shape_cast %15 : vector<1x2x64x144xbf16> to vector<2x64x144xbf16>
      %17 = vector.shape_cast %16 : vector<2x64x144xbf16> to vector<128x144xbf16>
      %c1 = arith.constant 1 : index
      %c0_14 = arith.constant 0 : index
      %c0_15 = arith.constant 0 : index
      %18 = vector.load %arg3[%c1, %c0_14, %c0_15] : memref<9x144x48xbf16, #tpu.memory_space<vmem>>, vector<1x144x48xbf16>
      %19 = vector.shape_cast %18 : vector<1x144x48xbf16> to vector<144x48xbf16>
      %cst_16 = arith.constant dense<0.000000e+00> : vector<128x48xf32>
      %20 = tpu.matmul %17, %19, %cst_16 {dimension_numbers = #tpu.dot_dimension_numbers<[1], [0], [0], [1], [0, 0, 1, 1], [], []>} : vector<128x144xbf16>, vector<144x48xbf16>, vector<128x48xf32> -> vector<128x48xf32>
      %21 = arith.addf %12, %20 : vector<128x48xf32>
      %c2_i32_17 = arith.constant 2 : i32
      %22 = arith.addi %2, %c2_i32_17 : i32
      %c0_18 = arith.constant 0 : index
      %23 = arith.index_cast %22 : i32 to index
      %c0_19 = arith.constant 0 : index
      %c0_20 = arith.constant 0 : index
      %24 = vector.load %arg2[%c0_18, %23, %c0_19, %c0_20] : memref<1x72x64x144xbf16, #tpu.memory_space<vmem>>, vector<1x2x64x144xbf16>
      %25 = vector.shape_cast %24 : vector<1x2x64x144xbf16> to vector<2x64x144xbf16>
      %26 = vector.shape_cast %25 : vector<2x64x144xbf16> to vector<128x144xbf16>
      %c2 = arith.constant 2 : index
      %c0_21 = arith.constant 0 : index
      %c0_22 = arith.constant 0 : index
      %27 = vector.load %arg3[%c2, %c0_21, %c0_22] : memref<9x144x48xbf16, #tpu.memory_space<vmem>>, vector<1x144x48xbf16>
      %28 = vector.shape_cast %27 : vector<1x144x48xbf16> to vector<144x48xbf16>
      %cst_23 = arith.constant dense<0.000000e+00> : vector<128x48xf32>
      %29 = tpu.matmul %26, %28, %cst_23 {dimension_numbers = #tpu.dot_dimension_numbers<[1], [0], [0], [1], [0, 0, 1, 1], [], []>} : vector<128x144xbf16>, vector<144x48xbf16>, vector<128x48xf32> -> vector<128x48xf32>
      %30 = arith.addf %21, %29 : vector<128x48xf32>
      %c3_i32 = arith.constant 3 : i32
      %31 = arith.addi %2, %c3_i32 : i32
      %c0_24 = arith.constant 0 : index
      %32 = arith.index_cast %31 : i32 to index
      %c0_25 = arith.constant 0 : index
      %c0_26 = arith.constant 0 : index
      %33 = vector.load %arg2[%c0_24, %32, %c0_25, %c0_26] : memref<1x72x64x144xbf16, #tpu.memory_space<vmem>>, vector<1x2x64x144xbf16>
      %34 = vector.shape_cast %33 : vector<1x2x64x144xbf16> to vector<2x64x144xbf16>
      %35 = vector.shape_cast %34 : vector<2x64x144xbf16> to vector<128x144xbf16>
      %c3 = arith.constant 3 : index
      %c0_27 = arith.constant 0 : index
      %c0_28 = arith.constant 0 : index
      %36 = vector.load %arg3[%c3, %c0_27, %c0_28] : memref<9x144x48xbf16, #tpu.memory_space<vmem>>, vector<1x144x48xbf16>
      %37 = vector.shape_cast %36 : vector<1x144x48xbf16> to vector<144x48xbf16>
      %cst_29 = arith.constant dense<0.000000e+00> : vector<128x48xf32>
      %38 = tpu.matmul %35, %37, %cst_29 {dimension_numbers = #tpu.dot_dimension_numbers<[1], [0], [0], [1], [0, 0, 1, 1], [], []>} : vector<128x144xbf16>, vector<144x48xbf16>, vector<128x48xf32> -> vector<128x48xf32>
      %39 = arith.addf %30, %38 : vector<128x48xf32>
      %c4_i32 = arith.constant 4 : i32
      %40 = arith.addi %2, %c4_i32 : i32
      %c0_30 = arith.constant 0 : index
      %41 = arith.index_cast %40 : i32 to index
      %c0_31 = arith.constant 0 : index
      %c0_32 = arith.constant 0 : index
      %42 = vector.load %arg2[%c0_30, %41, %c0_31, %c0_32] : memref<1x72x64x144xbf16, #tpu.memory_space<vmem>>, vector<1x2x64x144xbf16>
      %43 = vector.shape_cast %42 : vector<1x2x64x144xbf16> to vector<2x64x144xbf16>
      %44 = vector.shape_cast %43 : vector<2x64x144xbf16> to vector<128x144xbf16>
      %c4 = arith.constant 4 : index
      %c0_33 = arith.constant 0 : index
      %c0_34 = arith.constant 0 : index
      %45 = vector.load %arg3[%c4, %c0_33, %c0_34] : memref<9x144x48xbf16, #tpu.memory_space<vmem>>, vector<1x144x48xbf16>
      %46 = vector.shape_cast %45 : vector<1x144x48xbf16> to vector<144x48xbf16>
      %cst_35 = arith.constant dense<0.000000e+00> : vector<128x48xf32>
      %47 = tpu.matmul %44, %46, %cst_35 {dimension_numbers = #tpu.dot_dimension_numbers<[1], [0], [0], [1], [0, 0, 1, 1], [], []>} : vector<128x144xbf16>, vector<144x48xbf16>, vector<128x48xf32> -> vector<128x48xf32>
      %48 = arith.addf %39, %47 : vector<128x48xf32>
      %c5_i32 = arith.constant 5 : i32
      %49 = arith.addi %2, %c5_i32 : i32
      %c0_36 = arith.constant 0 : index
      %50 = arith.index_cast %49 : i32 to index
      %c0_37 = arith.constant 0 : index
      %c0_38 = arith.constant 0 : index
      %51 = vector.load %arg2[%c0_36, %50, %c0_37, %c0_38] : memref<1x72x64x144xbf16, #tpu.memory_space<vmem>>, vector<1x2x64x144xbf16>
      %52 = vector.shape_cast %51 : vector<1x2x64x144xbf16> to vector<2x64x144xbf16>
      %53 = vector.shape_cast %52 : vector<2x64x144xbf16> to vector<128x144xbf16>
      %c5 = arith.constant 5 : index
      %c0_39 = arith.constant 0 : index
      %c0_40 = arith.constant 0 : index
      %54 = vector.load %arg3[%c5, %c0_39, %c0_40] : memref<9x144x48xbf16, #tpu.memory_space<vmem>>, vector<1x144x48xbf16>
      %55 = vector.shape_cast %54 : vector<1x144x48xbf16> to vector<144x48xbf16>
      %cst_41 = arith.constant dense<0.000000e+00> : vector<128x48xf32>
      %56 = tpu.matmul %53, %55, %cst_41 {dimension_numbers = #tpu.dot_dimension_numbers<[1], [0], [0], [1], [0, 0, 1, 1], [], []>} : vector<128x144xbf16>, vector<144x48xbf16>, vector<128x48xf32> -> vector<128x48xf32>
      %57 = arith.addf %48, %56 : vector<128x48xf32>
      %c6_i32 = arith.constant 6 : i32
      %58 = arith.addi %2, %c6_i32 : i32
      %c0_42 = arith.constant 0 : index
      %59 = arith.index_cast %58 : i32 to index
      %c0_43 = arith.constant 0 : index
      %c0_44 = arith.constant 0 : index
      %60 = vector.load %arg2[%c0_42, %59, %c0_43, %c0_44] : memref<1x72x64x144xbf16, #tpu.memory_space<vmem>>, vector<1x2x64x144xbf16>
      %61 = vector.shape_cast %60 : vector<1x2x64x144xbf16> to vector<2x64x144xbf16>
      %62 = vector.shape_cast %61 : vector<2x64x144xbf16> to vector<128x144xbf16>
      %c6 = arith.constant 6 : index
      %c0_45 = arith.constant 0 : index
      %c0_46 = arith.constant 0 : index
      %63 = vector.load %arg3[%c6, %c0_45, %c0_46] : memref<9x144x48xbf16, #tpu.memory_space<vmem>>, vector<1x144x48xbf16>
      %64 = vector.shape_cast %63 : vector<1x144x48xbf16> to vector<144x48xbf16>
      %cst_47 = arith.constant dense<0.000000e+00> : vector<128x48xf32>
      %65 = tpu.matmul %62, %64, %cst_47 {dimension_numbers = #tpu.dot_dimension_numbers<[1], [0], [0], [1], [0, 0, 1, 1], [], []>} : vector<128x144xbf16>, vector<144x48xbf16>, vector<128x48xf32> -> vector<128x48xf32>
      %66 = arith.addf %57, %65 : vector<128x48xf32>
      %c7_i32 = arith.constant 7 : i32
      %67 = arith.addi %2, %c7_i32 : i32
      %c0_48 = arith.constant 0 : index
      %68 = arith.index_cast %67 : i32 to index
      %c0_49 = arith.constant 0 : index
      %c0_50 = arith.constant 0 : index
      %69 = vector.load %arg2[%c0_48, %68, %c0_49, %c0_50] : memref<1x72x64x144xbf16, #tpu.memory_space<vmem>>, vector<1x2x64x144xbf16>
      %70 = vector.shape_cast %69 : vector<1x2x64x144xbf16> to vector<2x64x144xbf16>
      %71 = vector.shape_cast %70 : vector<2x64x144xbf16> to vector<128x144xbf16>
      %c7 = arith.constant 7 : index
      %c0_51 = arith.constant 0 : index
      %c0_52 = arith.constant 0 : index
      %72 = vector.load %arg3[%c7, %c0_51, %c0_52] : memref<9x144x48xbf16, #tpu.memory_space<vmem>>, vector<1x144x48xbf16>
      %73 = vector.shape_cast %72 : vector<1x144x48xbf16> to vector<144x48xbf16>
      %cst_53 = arith.constant dense<0.000000e+00> : vector<128x48xf32>
      %74 = tpu.matmul %71, %73, %cst_53 {dimension_numbers = #tpu.dot_dimension_numbers<[1], [0], [0], [1], [0, 0, 1, 1], [], []>} : vector<128x144xbf16>, vector<144x48xbf16>, vector<128x48xf32> -> vector<128x48xf32>
      %75 = arith.addf %66, %74 : vector<128x48xf32>
      %c8_i32 = arith.constant 8 : i32
      %76 = arith.addi %2, %c8_i32 : i32
      %c0_54 = arith.constant 0 : index
      %77 = arith.index_cast %76 : i32 to index
      %c0_55 = arith.constant 0 : index
      %c0_56 = arith.constant 0 : index
      %78 = vector.load %arg2[%c0_54, %77, %c0_55, %c0_56] : memref<1x72x64x144xbf16, #tpu.memory_space<vmem>>, vector<1x2x64x144xbf16>
      %79 = vector.shape_cast %78 : vector<1x2x64x144xbf16> to vector<2x64x144xbf16>
      %80 = vector.shape_cast %79 : vector<2x64x144xbf16> to vector<128x144xbf16>
      %c8 = arith.constant 8 : index
      %c0_57 = arith.constant 0 : index
      %c0_58 = arith.constant 0 : index
      %81 = vector.load %arg3[%c8, %c0_57, %c0_58] : memref<9x144x48xbf16, #tpu.memory_space<vmem>>, vector<1x144x48xbf16>
      %82 = vector.shape_cast %81 : vector<1x144x48xbf16> to vector<144x48xbf16>
      %cst_59 = arith.constant dense<0.000000e+00> : vector<128x48xf32>
      %83 = tpu.matmul %80, %82, %cst_59 {dimension_numbers = #tpu.dot_dimension_numbers<[1], [0], [0], [1], [0, 0, 1, 1], [], []>} : vector<128x144xbf16>, vector<144x48xbf16>, vector<128x48xf32> -> vector<128x48xf32>
      %84 = arith.addf %75, %83 : vector<128x48xf32>
      %85 = vector.broadcast %0 : vector<1x48xf32> to vector<128x48xf32>
      %86 = arith.addf %84, %85 : vector<128x48xf32>
      %cst_60 = arith.constant 0.000000e+00 : f32
      %87 = vector.broadcast %cst_60 : f32 to vector<128x48xf32>
      %88 = arith.maximumf %86, %87 : vector<128x48xf32>
      %89 = vector.shape_cast %88 : vector<128x48xf32> to vector<1x128x48xf32>
      %90 = vector.extract_strided_slice %89 {offsets = [0, 0, 0], sizes = [1, 64, 48], strides = [1, 1, 1]} : vector<1x128x48xf32> to vector<1x64x48xf32>
      %91 = vector.extract_strided_slice %89 {offsets = [0, 64, 0], sizes = [1, 64, 48], strides = [1, 1, 1]} : vector<1x128x48xf32> to vector<1x64x48xf32>
      %92 = arith.maximumf %90, %91 : vector<1x64x48xf32>
      %93 = vector.shape_cast %92 : vector<1x64x48xf32> to vector<64x48xf32>
      %c0_61 = arith.constant 0 : index
      %c0_62 = arith.constant 0 : index
      %94 = vector.load %arg6[%c0_61, %c0_62] : memref<64x48xf32, #tpu.memory_space<vmem>>, vector<64x48xf32>
      tpu.vector_store %arg6[%c0_61, %c0_62], %93 {strides = array<i32>} : memref<64x48xf32, #tpu.memory_space<vmem>>, vector<64x48xf32>,
      %c0_63 = arith.constant 0 : index
      %c0_64 = arith.constant 0 : index
      %95 = tpu.strided_load %arg6[%c0_63, %c0_64] {strides = array<i32: 2, 1>} : memref<64x48xf32, #tpu.memory_space<vmem>>, vector<32x48xf32>
      %c1_65 = arith.constant 1 : index
      %c0_66 = arith.constant 0 : index
      %96 = tpu.strided_load %arg6[%c1_65, %c0_66] {strides = array<i32: 2, 1>} : memref<64x48xf32, #tpu.memory_space<vmem>>, vector<32x48xf32>
      %97 = arith.maximumf %95, %96 : vector<32x48xf32>
      %c32_i32_67 = arith.constant 32 : i32
      %98 = arith.muli %arg7, %c32_i32_67 : i32
      %99 = tpu.assume_multiple %98, 8 : i32
      %100 = arith.truncf %97 : vector<32x48xf32> to vector<32x48xbf16>
      %c0_68 = arith.constant 0 : index
      %101 = arith.index_cast %99 : i32 to index
      %c0_69 = arith.constant 0 : index
      %102 = vector.load %arg5[%c0_68, %101, %c0_69] : memref<1x1024x48xbf16, #tpu.memory_space<vmem>>, vector<1x32x48xbf16>
      %103 = vector.shape_cast %102 : vector<1x32x48xbf16> to vector<32x48xbf16>
      %104 = vector.shape_cast %100 : vector<32x48xbf16> to vector<1x32x48xbf16>
      tpu.vector_store %arg5[%c0_68, %101, %c0_69], %104 {strides = array<i32>} : memref<1x1024x48xbf16, #tpu.memory_space<vmem>>, vector<1x32x48xbf16>,
    }
    %c32_i32_1 = arith.constant 32 : i32
    return
  }
  func.func @transform_0(%arg0: i32, %arg1: i32) -> (i32, i32, i32, i32) {
    %c0_i32 = arith.constant 0 : i32
    %c0_i32_0 = arith.constant 0 : i32
    %c0_i32_1 = arith.constant 0 : i32
    return %arg0, %arg1, %c0_i32, %c0_i32_0 : i32, i32, i32, i32
  }
  func.func @transform_1(%arg0: i32, %arg1: i32) -> (i32, i32, i32) {
    %c0_i32 = arith.constant 0 : i32
    %c0_i32_0 = arith.constant 0 : i32
    %c0_i32_1 = arith.constant 0 : i32
    %c0_i32_2 = arith.constant 0 : i32
    return %c0_i32, %c0_i32_0, %c0_i32_1 : i32, i32, i32
  }
  func.func @transform_2(%arg0: i32, %arg1: i32) -> (i32, i32) {
    %c0_i32 = arith.constant 0 : i32
    %c0_i32_0 = arith.constant 0 : i32
    %c0_i32_1 = arith.constant 0 : i32
    return %c0_i32, %c0_i32_0 : i32, i32
  }
  func.func @transform_3(%arg0: i32, %arg1: i32) -> (i32, i32, i32) {
    %c0_i32 = arith.constant 0 : i32
    %c0_i32_0 = arith.constant 0 : i32
    return %arg0, %arg1, %c0_i32 : i32, i32, i32
  }
}

module attributes {stable_mosaic.version = 11 : i64} {
  func.func @kernel(%arg0: i32, %arg1: i32, %arg2: memref<1x32x24x432xbf16, #tpu.memory_space<vmem>>, %arg3: memref<9x432x48xbf16, #tpu.memory_space<vmem>>, %arg4: memref<1x48xf32, #tpu.memory_space<vmem>>, %arg5: memref<1x144x48xbf16, #tpu.memory_space<vmem>>, %arg6: memref<48x48xf32, #tpu.memory_space<vmem>>) attributes {dimension_semantics = [#tpu.dimension_semantics<parallel>, #tpu.dimension_semantics<parallel>], iteration_bounds = array<i64: 2, 1>, scalar_prefetch = 0 : i64, scratch_operands = 1 : i64, tpu.core_type = #tpu.core_type<tc>, window_params = [{transform_indices = @transform_0, window_bounds = array<i64: 1, 32, 24, 432>}, {pipeline_mode = #tpu.pipeline_mode<synchronous>, transform_indices = @transform_1, window_bounds = array<i64: 9, 432, 48>}, {pipeline_mode = #tpu.pipeline_mode<synchronous>, transform_indices = @transform_2, window_bounds = array<i64: 1, 48>}, {transform_indices = @transform_3, window_bounds = array<i64: 1, 144, 48>}]} {
    %c0 = arith.constant 0 : index
    %c0_0 = arith.constant 0 : index
    %0 = vector.load %arg4[%c0, %c0_0] : memref<1x48xf32, #tpu.memory_space<vmem>>, vector<1x48xf32>
    %c0_i32 = arith.constant 0 : i32
    %c6_i32 = arith.constant 6 : i32
    %1 = arith.addi %c0_i32, %c6_i32 : i32
    %c1_i32 = arith.constant 1 : i32
    scf.for %arg7 = %c0_i32 to %1 step %c1_i32  : i32 {
      %c4_i32 = arith.constant 4 : i32
      %2 = arith.muli %arg7, %c4_i32 : i32
      %cst = arith.constant 0.000000e+00 : f32
      %3 = vector.broadcast %cst : f32 to vector<96x48xf32>
      %c0_i32_2 = arith.constant 0 : i32
      %4 = arith.addi %2, %c0_i32_2 : i32
      %c0_3 = arith.constant 0 : index
      %5 = arith.index_cast %4 : i32 to index
      %c0_4 = arith.constant 0 : index
      %c0_5 = arith.constant 0 : index
      %6 = vector.load %arg2[%c0_3, %5, %c0_4, %c0_5] : memref<1x32x24x432xbf16, #tpu.memory_space<vmem>>, vector<1x4x24x432xbf16>
      %7 = vector.shape_cast %6 : vector<1x4x24x432xbf16> to vector<4x24x432xbf16>
      %8 = vector.shape_cast %7 : vector<4x24x432xbf16> to vector<96x432xbf16>
      %c0_6 = arith.constant 0 : index
      %c0_7 = arith.constant 0 : index
      %c0_8 = arith.constant 0 : index
      %9 = vector.load %arg3[%c0_6, %c0_7, %c0_8] : memref<9x432x48xbf16, #tpu.memory_space<vmem>>, vector<1x432x48xbf16>
      %10 = vector.shape_cast %9 : vector<1x432x48xbf16> to vector<432x48xbf16>
      %cst_9 = arith.constant dense<0.000000e+00> : vector<96x48xf32>
      %11 = tpu.matmul %8, %10, %cst_9 {dimension_numbers = #tpu.dot_dimension_numbers<[1], [0], [0], [1], [0, 0, 1, 1], [], []>} : vector<96x432xbf16>, vector<432x48xbf16>, vector<96x48xf32> -> vector<96x48xf32>
      %12 = arith.addf %3, %11 : vector<96x48xf32>
      %c1_i32_10 = arith.constant 1 : i32
      %13 = arith.addi %2, %c1_i32_10 : i32
      %c0_11 = arith.constant 0 : index
      %14 = arith.index_cast %13 : i32 to index
      %c0_12 = arith.constant 0 : index
      %c0_13 = arith.constant 0 : index
      %15 = vector.load %arg2[%c0_11, %14, %c0_12, %c0_13] : memref<1x32x24x432xbf16, #tpu.memory_space<vmem>>, vector<1x4x24x432xbf16>
      %16 = vector.shape_cast %15 : vector<1x4x24x432xbf16> to vector<4x24x432xbf16>
      %17 = vector.shape_cast %16 : vector<4x24x432xbf16> to vector<96x432xbf16>
      %c1 = arith.constant 1 : index
      %c0_14 = arith.constant 0 : index
      %c0_15 = arith.constant 0 : index
      %18 = vector.load %arg3[%c1, %c0_14, %c0_15] : memref<9x432x48xbf16, #tpu.memory_space<vmem>>, vector<1x432x48xbf16>
      %19 = vector.shape_cast %18 : vector<1x432x48xbf16> to vector<432x48xbf16>
      %cst_16 = arith.constant dense<0.000000e+00> : vector<96x48xf32>
      %20 = tpu.matmul %17, %19, %cst_16 {dimension_numbers = #tpu.dot_dimension_numbers<[1], [0], [0], [1], [0, 0, 1, 1], [], []>} : vector<96x432xbf16>, vector<432x48xbf16>, vector<96x48xf32> -> vector<96x48xf32>
      %21 = arith.addf %12, %20 : vector<96x48xf32>
      %c2_i32 = arith.constant 2 : i32
      %22 = arith.addi %2, %c2_i32 : i32
      %c0_17 = arith.constant 0 : index
      %23 = arith.index_cast %22 : i32 to index
      %c0_18 = arith.constant 0 : index
      %c0_19 = arith.constant 0 : index
      %24 = vector.load %arg2[%c0_17, %23, %c0_18, %c0_19] : memref<1x32x24x432xbf16, #tpu.memory_space<vmem>>, vector<1x4x24x432xbf16>
      %25 = vector.shape_cast %24 : vector<1x4x24x432xbf16> to vector<4x24x432xbf16>
      %26 = vector.shape_cast %25 : vector<4x24x432xbf16> to vector<96x432xbf16>
      %c2 = arith.constant 2 : index
      %c0_20 = arith.constant 0 : index
      %c0_21 = arith.constant 0 : index
      %27 = vector.load %arg3[%c2, %c0_20, %c0_21] : memref<9x432x48xbf16, #tpu.memory_space<vmem>>, vector<1x432x48xbf16>
      %28 = vector.shape_cast %27 : vector<1x432x48xbf16> to vector<432x48xbf16>
      %cst_22 = arith.constant dense<0.000000e+00> : vector<96x48xf32>
      %29 = tpu.matmul %26, %28, %cst_22 {dimension_numbers = #tpu.dot_dimension_numbers<[1], [0], [0], [1], [0, 0, 1, 1], [], []>} : vector<96x432xbf16>, vector<432x48xbf16>, vector<96x48xf32> -> vector<96x48xf32>
      %30 = arith.addf %21, %29 : vector<96x48xf32>
      %c3_i32 = arith.constant 3 : i32
      %31 = arith.addi %2, %c3_i32 : i32
      %c0_23 = arith.constant 0 : index
      %32 = arith.index_cast %31 : i32 to index
      %c0_24 = arith.constant 0 : index
      %c0_25 = arith.constant 0 : index
      %33 = vector.load %arg2[%c0_23, %32, %c0_24, %c0_25] : memref<1x32x24x432xbf16, #tpu.memory_space<vmem>>, vector<1x4x24x432xbf16>
      %34 = vector.shape_cast %33 : vector<1x4x24x432xbf16> to vector<4x24x432xbf16>
      %35 = vector.shape_cast %34 : vector<4x24x432xbf16> to vector<96x432xbf16>
      %c3 = arith.constant 3 : index
      %c0_26 = arith.constant 0 : index
      %c0_27 = arith.constant 0 : index
      %36 = vector.load %arg3[%c3, %c0_26, %c0_27] : memref<9x432x48xbf16, #tpu.memory_space<vmem>>, vector<1x432x48xbf16>
      %37 = vector.shape_cast %36 : vector<1x432x48xbf16> to vector<432x48xbf16>
      %cst_28 = arith.constant dense<0.000000e+00> : vector<96x48xf32>
      %38 = tpu.matmul %35, %37, %cst_28 {dimension_numbers = #tpu.dot_dimension_numbers<[1], [0], [0], [1], [0, 0, 1, 1], [], []>} : vector<96x432xbf16>, vector<432x48xbf16>, vector<96x48xf32> -> vector<96x48xf32>
      %39 = arith.addf %30, %38 : vector<96x48xf32>
      %c4_i32_29 = arith.constant 4 : i32
      %40 = arith.addi %2, %c4_i32_29 : i32
      %c0_30 = arith.constant 0 : index
      %41 = arith.index_cast %40 : i32 to index
      %c0_31 = arith.constant 0 : index
      %c0_32 = arith.constant 0 : index
      %42 = vector.load %arg2[%c0_30, %41, %c0_31, %c0_32] : memref<1x32x24x432xbf16, #tpu.memory_space<vmem>>, vector<1x4x24x432xbf16>
      %43 = vector.shape_cast %42 : vector<1x4x24x432xbf16> to vector<4x24x432xbf16>
      %44 = vector.shape_cast %43 : vector<4x24x432xbf16> to vector<96x432xbf16>
      %c4 = arith.constant 4 : index
      %c0_33 = arith.constant 0 : index
      %c0_34 = arith.constant 0 : index
      %45 = vector.load %arg3[%c4, %c0_33, %c0_34] : memref<9x432x48xbf16, #tpu.memory_space<vmem>>, vector<1x432x48xbf16>
      %46 = vector.shape_cast %45 : vector<1x432x48xbf16> to vector<432x48xbf16>
      %cst_35 = arith.constant dense<0.000000e+00> : vector<96x48xf32>
      %47 = tpu.matmul %44, %46, %cst_35 {dimension_numbers = #tpu.dot_dimension_numbers<[1], [0], [0], [1], [0, 0, 1, 1], [], []>} : vector<96x432xbf16>, vector<432x48xbf16>, vector<96x48xf32> -> vector<96x48xf32>
      %48 = arith.addf %39, %47 : vector<96x48xf32>
      %c5_i32 = arith.constant 5 : i32
      %49 = arith.addi %2, %c5_i32 : i32
      %c0_36 = arith.constant 0 : index
      %50 = arith.index_cast %49 : i32 to index
      %c0_37 = arith.constant 0 : index
      %c0_38 = arith.constant 0 : index
      %51 = vector.load %arg2[%c0_36, %50, %c0_37, %c0_38] : memref<1x32x24x432xbf16, #tpu.memory_space<vmem>>, vector<1x4x24x432xbf16>
      %52 = vector.shape_cast %51 : vector<1x4x24x432xbf16> to vector<4x24x432xbf16>
      %53 = vector.shape_cast %52 : vector<4x24x432xbf16> to vector<96x432xbf16>
      %c5 = arith.constant 5 : index
      %c0_39 = arith.constant 0 : index
      %c0_40 = arith.constant 0 : index
      %54 = vector.load %arg3[%c5, %c0_39, %c0_40] : memref<9x432x48xbf16, #tpu.memory_space<vmem>>, vector<1x432x48xbf16>
      %55 = vector.shape_cast %54 : vector<1x432x48xbf16> to vector<432x48xbf16>
      %cst_41 = arith.constant dense<0.000000e+00> : vector<96x48xf32>
      %56 = tpu.matmul %53, %55, %cst_41 {dimension_numbers = #tpu.dot_dimension_numbers<[1], [0], [0], [1], [0, 0, 1, 1], [], []>} : vector<96x432xbf16>, vector<432x48xbf16>, vector<96x48xf32> -> vector<96x48xf32>
      %57 = arith.addf %48, %56 : vector<96x48xf32>
      %c6_i32_42 = arith.constant 6 : i32
      %58 = arith.addi %2, %c6_i32_42 : i32
      %c0_43 = arith.constant 0 : index
      %59 = arith.index_cast %58 : i32 to index
      %c0_44 = arith.constant 0 : index
      %c0_45 = arith.constant 0 : index
      %60 = vector.load %arg2[%c0_43, %59, %c0_44, %c0_45] : memref<1x32x24x432xbf16, #tpu.memory_space<vmem>>, vector<1x4x24x432xbf16>
      %61 = vector.shape_cast %60 : vector<1x4x24x432xbf16> to vector<4x24x432xbf16>
      %62 = vector.shape_cast %61 : vector<4x24x432xbf16> to vector<96x432xbf16>
      %c6 = arith.constant 6 : index
      %c0_46 = arith.constant 0 : index
      %c0_47 = arith.constant 0 : index
      %63 = vector.load %arg3[%c6, %c0_46, %c0_47] : memref<9x432x48xbf16, #tpu.memory_space<vmem>>, vector<1x432x48xbf16>
      %64 = vector.shape_cast %63 : vector<1x432x48xbf16> to vector<432x48xbf16>
      %cst_48 = arith.constant dense<0.000000e+00> : vector<96x48xf32>
      %65 = tpu.matmul %62, %64, %cst_48 {dimension_numbers = #tpu.dot_dimension_numbers<[1], [0], [0], [1], [0, 0, 1, 1], [], []>} : vector<96x432xbf16>, vector<432x48xbf16>, vector<96x48xf32> -> vector<96x48xf32>
      %66 = arith.addf %57, %65 : vector<96x48xf32>
      %c7_i32 = arith.constant 7 : i32
      %67 = arith.addi %2, %c7_i32 : i32
      %c0_49 = arith.constant 0 : index
      %68 = arith.index_cast %67 : i32 to index
      %c0_50 = arith.constant 0 : index
      %c0_51 = arith.constant 0 : index
      %69 = vector.load %arg2[%c0_49, %68, %c0_50, %c0_51] : memref<1x32x24x432xbf16, #tpu.memory_space<vmem>>, vector<1x4x24x432xbf16>
      %70 = vector.shape_cast %69 : vector<1x4x24x432xbf16> to vector<4x24x432xbf16>
      %71 = vector.shape_cast %70 : vector<4x24x432xbf16> to vector<96x432xbf16>
      %c7 = arith.constant 7 : index
      %c0_52 = arith.constant 0 : index
      %c0_53 = arith.constant 0 : index
      %72 = vector.load %arg3[%c7, %c0_52, %c0_53] : memref<9x432x48xbf16, #tpu.memory_space<vmem>>, vector<1x432x48xbf16>
      %73 = vector.shape_cast %72 : vector<1x432x48xbf16> to vector<432x48xbf16>
      %cst_54 = arith.constant dense<0.000000e+00> : vector<96x48xf32>
      %74 = tpu.matmul %71, %73, %cst_54 {dimension_numbers = #tpu.dot_dimension_numbers<[1], [0], [0], [1], [0, 0, 1, 1], [], []>} : vector<96x432xbf16>, vector<432x48xbf16>, vector<96x48xf32> -> vector<96x48xf32>
      %75 = arith.addf %66, %74 : vector<96x48xf32>
      %c8_i32 = arith.constant 8 : i32
      %76 = arith.addi %2, %c8_i32 : i32
      %c0_55 = arith.constant 0 : index
      %77 = arith.index_cast %76 : i32 to index
      %c0_56 = arith.constant 0 : index
      %c0_57 = arith.constant 0 : index
      %78 = vector.load %arg2[%c0_55, %77, %c0_56, %c0_57] : memref<1x32x24x432xbf16, #tpu.memory_space<vmem>>, vector<1x4x24x432xbf16>
      %79 = vector.shape_cast %78 : vector<1x4x24x432xbf16> to vector<4x24x432xbf16>
      %80 = vector.shape_cast %79 : vector<4x24x432xbf16> to vector<96x432xbf16>
      %c8 = arith.constant 8 : index
      %c0_58 = arith.constant 0 : index
      %c0_59 = arith.constant 0 : index
      %81 = vector.load %arg3[%c8, %c0_58, %c0_59] : memref<9x432x48xbf16, #tpu.memory_space<vmem>>, vector<1x432x48xbf16>
      %82 = vector.shape_cast %81 : vector<1x432x48xbf16> to vector<432x48xbf16>
      %cst_60 = arith.constant dense<0.000000e+00> : vector<96x48xf32>
      %83 = tpu.matmul %80, %82, %cst_60 {dimension_numbers = #tpu.dot_dimension_numbers<[1], [0], [0], [1], [0, 0, 1, 1], [], []>} : vector<96x432xbf16>, vector<432x48xbf16>, vector<96x48xf32> -> vector<96x48xf32>
      %84 = arith.addf %75, %83 : vector<96x48xf32>
      %85 = vector.broadcast %0 : vector<1x48xf32> to vector<96x48xf32>
      %86 = arith.addf %84, %85 : vector<96x48xf32>
      %cst_61 = arith.constant 0.000000e+00 : f32
      %87 = vector.broadcast %cst_61 : f32 to vector<96x48xf32>
      %88 = arith.maximumf %86, %87 : vector<96x48xf32>
      %89 = vector.shape_cast %88 : vector<96x48xf32> to vector<2x48x48xf32>
      %90 = vector.extract_strided_slice %89 {offsets = [0, 0, 0], sizes = [2, 24, 48], strides = [1, 1, 1]} : vector<2x48x48xf32> to vector<2x24x48xf32>
      %91 = vector.extract_strided_slice %89 {offsets = [0, 24, 0], sizes = [2, 24, 48], strides = [1, 1, 1]} : vector<2x48x48xf32> to vector<2x24x48xf32>
      %92 = arith.maximumf %90, %91 : vector<2x24x48xf32>
      %93 = vector.shape_cast %92 : vector<2x24x48xf32> to vector<48x48xf32>
      %c0_62 = arith.constant 0 : index
      %c0_63 = arith.constant 0 : index
      %94 = vector.load %arg6[%c0_62, %c0_63] : memref<48x48xf32, #tpu.memory_space<vmem>>, vector<48x48xf32>
      tpu.vector_store %arg6[%c0_62, %c0_63], %93 {strides = array<i32>} : memref<48x48xf32, #tpu.memory_space<vmem>>, vector<48x48xf32>,
      %c0_64 = arith.constant 0 : index
      %c0_65 = arith.constant 0 : index
      %95 = tpu.strided_load %arg6[%c0_64, %c0_65] {strides = array<i32: 2, 1>} : memref<48x48xf32, #tpu.memory_space<vmem>>, vector<24x48xf32>
      %c1_66 = arith.constant 1 : index
      %c0_67 = arith.constant 0 : index
      %96 = tpu.strided_load %arg6[%c1_66, %c0_67] {strides = array<i32: 2, 1>} : memref<48x48xf32, #tpu.memory_space<vmem>>, vector<24x48xf32>
      %97 = arith.maximumf %95, %96 : vector<24x48xf32>
      %c24_i32 = arith.constant 24 : i32
      %98 = arith.muli %arg7, %c24_i32 : i32
      %99 = tpu.assume_multiple %98, 8 : i32
      %100 = arith.truncf %97 : vector<24x48xf32> to vector<24x48xbf16>
      %c0_68 = arith.constant 0 : index
      %101 = arith.index_cast %99 : i32 to index
      %c0_69 = arith.constant 0 : index
      %102 = vector.load %arg5[%c0_68, %101, %c0_69] : memref<1x144x48xbf16, #tpu.memory_space<vmem>>, vector<1x24x48xbf16>
      %103 = vector.shape_cast %102 : vector<1x24x48xbf16> to vector<24x48xbf16>
      %104 = vector.shape_cast %100 : vector<24x48xbf16> to vector<1x24x48xbf16>
      tpu.vector_store %arg5[%c0_68, %101, %c0_69], %104 {strides = array<i32>} : memref<1x144x48xbf16, #tpu.memory_space<vmem>>, vector<1x24x48xbf16>,
    }
    %c6_i32_1 = arith.constant 6 : i32
    return
  }
  func.func @transform_0(%arg0: i32, %arg1: i32) -> (i32, i32, i32, i32) {
    %c0_i32 = arith.constant 0 : i32
    %c0_i32_0 = arith.constant 0 : i32
    %c0_i32_1 = arith.constant 0 : i32
    return %arg0, %arg1, %c0_i32, %c0_i32_0 : i32, i32, i32, i32
  }
  func.func @transform_1(%arg0: i32, %arg1: i32) -> (i32, i32, i32) {
    %c0_i32 = arith.constant 0 : i32
    %c0_i32_0 = arith.constant 0 : i32
    %c0_i32_1 = arith.constant 0 : i32
    %c0_i32_2 = arith.constant 0 : i32
    return %c0_i32, %c0_i32_0, %c0_i32_1 : i32, i32, i32
  }
  func.func @transform_2(%arg0: i32, %arg1: i32) -> (i32, i32) {
    %c0_i32 = arith.constant 0 : i32
    %c0_i32_0 = arith.constant 0 : i32
    %c0_i32_1 = arith.constant 0 : i32
    return %c0_i32, %c0_i32_0 : i32, i32
  }
  func.func @transform_3(%arg0: i32, %arg1: i32) -> (i32, i32, i32) {
    %c0_i32 = arith.constant 0 : i32
    %c0_i32_0 = arith.constant 0 : i32
    return %arg0, %arg1, %c0_i32 : i32, i32, i32
  }
}

module attributes {stable_mosaic.version = 11 : i64} {
  func.func @kernel(%arg0: i32, %arg1: i32, %arg2: memref<1x12x8x240xbf16, #tpu.memory_space<vmem>>, %arg3: memref<5x240x32xbf16, #tpu.memory_space<vmem>>, %arg4: memref<1x32xf32, #tpu.memory_space<vmem>>, %arg5: memref<1x16x32xbf16, #tpu.memory_space<vmem>>, %arg6: memref<32x32xf32, #tpu.memory_space<vmem>>) attributes {dimension_semantics = [#tpu.dimension_semantics<parallel>, #tpu.dimension_semantics<parallel>], iteration_bounds = array<i64: 2, 1>, scalar_prefetch = 0 : i64, scratch_operands = 1 : i64, tpu.core_type = #tpu.core_type<tc>, window_params = [{transform_indices = @transform_0, window_bounds = array<i64: 1, 12, 8, 240>}, {pipeline_mode = #tpu.pipeline_mode<synchronous>, transform_indices = @transform_1, window_bounds = array<i64: 5, 240, 32>}, {pipeline_mode = #tpu.pipeline_mode<synchronous>, transform_indices = @transform_2, window_bounds = array<i64: 1, 32>}, {transform_indices = @transform_3, window_bounds = array<i64: 1, 16, 32>}]} {
    %c0 = arith.constant 0 : index
    %c0_0 = arith.constant 0 : index
    %0 = vector.load %arg4[%c0, %c0_0] : memref<1x32xf32, #tpu.memory_space<vmem>>, vector<1x32xf32>
    %c0_i32 = arith.constant 0 : i32
    %c8_i32 = arith.constant 8 : i32
    %1 = arith.muli %c0_i32, %c8_i32 : i32
    %cst = arith.constant 0.000000e+00 : f32
    %2 = vector.broadcast %cst : f32 to vector<64x32xf32>
    %c0_i32_1 = arith.constant 0 : i32
    %3 = arith.addi %1, %c0_i32_1 : i32
    %c0_2 = arith.constant 0 : index
    %4 = arith.index_cast %3 : i32 to index
    %c0_3 = arith.constant 0 : index
    %c0_4 = arith.constant 0 : index
    %5 = vector.load %arg2[%c0_2, %4, %c0_3, %c0_4] : memref<1x12x8x240xbf16, #tpu.memory_space<vmem>>, vector<1x8x8x240xbf16>
    %6 = vector.shape_cast %5 : vector<1x8x8x240xbf16> to vector<8x8x240xbf16>
    %7 = vector.shape_cast %6 : vector<8x8x240xbf16> to vector<64x240xbf16>
    %c0_5 = arith.constant 0 : index
    %c0_6 = arith.constant 0 : index
    %c0_7 = arith.constant 0 : index
    %8 = vector.load %arg3[%c0_5, %c0_6, %c0_7] : memref<5x240x32xbf16, #tpu.memory_space<vmem>>, vector<1x240x32xbf16>
    %9 = vector.shape_cast %8 : vector<1x240x32xbf16> to vector<240x32xbf16>
    %cst_8 = arith.constant dense<0.000000e+00> : vector<64x32xf32>
    %10 = tpu.matmul %7, %9, %cst_8 {dimension_numbers = #tpu.dot_dimension_numbers<[1], [0], [0], [1], [0, 0, 1, 1], [], []>} : vector<64x240xbf16>, vector<240x32xbf16>, vector<64x32xf32> -> vector<64x32xf32>
    %11 = arith.addf %2, %10 : vector<64x32xf32>
    %c1_i32 = arith.constant 1 : i32
    %12 = arith.addi %1, %c1_i32 : i32
    %c0_9 = arith.constant 0 : index
    %13 = arith.index_cast %12 : i32 to index
    %c0_10 = arith.constant 0 : index
    %c0_11 = arith.constant 0 : index
    %14 = vector.load %arg2[%c0_9, %13, %c0_10, %c0_11] : memref<1x12x8x240xbf16, #tpu.memory_space<vmem>>, vector<1x8x8x240xbf16>
    %15 = vector.shape_cast %14 : vector<1x8x8x240xbf16> to vector<8x8x240xbf16>
    %16 = vector.shape_cast %15 : vector<8x8x240xbf16> to vector<64x240xbf16>
    %c1 = arith.constant 1 : index
    %c0_12 = arith.constant 0 : index
    %c0_13 = arith.constant 0 : index
    %17 = vector.load %arg3[%c1, %c0_12, %c0_13] : memref<5x240x32xbf16, #tpu.memory_space<vmem>>, vector<1x240x32xbf16>
    %18 = vector.shape_cast %17 : vector<1x240x32xbf16> to vector<240x32xbf16>
    %cst_14 = arith.constant dense<0.000000e+00> : vector<64x32xf32>
    %19 = tpu.matmul %16, %18, %cst_14 {dimension_numbers = #tpu.dot_dimension_numbers<[1], [0], [0], [1], [0, 0, 1, 1], [], []>} : vector<64x240xbf16>, vector<240x32xbf16>, vector<64x32xf32> -> vector<64x32xf32>
    %20 = arith.addf %11, %19 : vector<64x32xf32>
    %c2_i32 = arith.constant 2 : i32
    %21 = arith.addi %1, %c2_i32 : i32
    %c0_15 = arith.constant 0 : index
    %22 = arith.index_cast %21 : i32 to index
    %c0_16 = arith.constant 0 : index
    %c0_17 = arith.constant 0 : index
    %23 = vector.load %arg2[%c0_15, %22, %c0_16, %c0_17] : memref<1x12x8x240xbf16, #tpu.memory_space<vmem>>, vector<1x8x8x240xbf16>
    %24 = vector.shape_cast %23 : vector<1x8x8x240xbf16> to vector<8x8x240xbf16>
    %25 = vector.shape_cast %24 : vector<8x8x240xbf16> to vector<64x240xbf16>
    %c2 = arith.constant 2 : index
    %c0_18 = arith.constant 0 : index
    %c0_19 = arith.constant 0 : index
    %26 = vector.load %arg3[%c2, %c0_18, %c0_19] : memref<5x240x32xbf16, #tpu.memory_space<vmem>>, vector<1x240x32xbf16>
    %27 = vector.shape_cast %26 : vector<1x240x32xbf16> to vector<240x32xbf16>
    %cst_20 = arith.constant dense<0.000000e+00> : vector<64x32xf32>
    %28 = tpu.matmul %25, %27, %cst_20 {dimension_numbers = #tpu.dot_dimension_numbers<[1], [0], [0], [1], [0, 0, 1, 1], [], []>} : vector<64x240xbf16>, vector<240x32xbf16>, vector<64x32xf32> -> vector<64x32xf32>
    %29 = arith.addf %20, %28 : vector<64x32xf32>
    %c3_i32 = arith.constant 3 : i32
    %30 = arith.addi %1, %c3_i32 : i32
    %c0_21 = arith.constant 0 : index
    %31 = arith.index_cast %30 : i32 to index
    %c0_22 = arith.constant 0 : index
    %c0_23 = arith.constant 0 : index
    %32 = vector.load %arg2[%c0_21, %31, %c0_22, %c0_23] : memref<1x12x8x240xbf16, #tpu.memory_space<vmem>>, vector<1x8x8x240xbf16>
    %33 = vector.shape_cast %32 : vector<1x8x8x240xbf16> to vector<8x8x240xbf16>
    %34 = vector.shape_cast %33 : vector<8x8x240xbf16> to vector<64x240xbf16>
    %c3 = arith.constant 3 : index
    %c0_24 = arith.constant 0 : index
    %c0_25 = arith.constant 0 : index
    %35 = vector.load %arg3[%c3, %c0_24, %c0_25] : memref<5x240x32xbf16, #tpu.memory_space<vmem>>, vector<1x240x32xbf16>
    %36 = vector.shape_cast %35 : vector<1x240x32xbf16> to vector<240x32xbf16>
    %cst_26 = arith.constant dense<0.000000e+00> : vector<64x32xf32>
    %37 = tpu.matmul %34, %36, %cst_26 {dimension_numbers = #tpu.dot_dimension_numbers<[1], [0], [0], [1], [0, 0, 1, 1], [], []>} : vector<64x240xbf16>, vector<240x32xbf16>, vector<64x32xf32> -> vector<64x32xf32>
    %38 = arith.addf %29, %37 : vector<64x32xf32>
    %c4_i32 = arith.constant 4 : i32
    %39 = arith.addi %1, %c4_i32 : i32
    %c0_27 = arith.constant 0 : index
    %40 = arith.index_cast %39 : i32 to index
    %c0_28 = arith.constant 0 : index
    %c0_29 = arith.constant 0 : index
    %41 = vector.load %arg2[%c0_27, %40, %c0_28, %c0_29] : memref<1x12x8x240xbf16, #tpu.memory_space<vmem>>, vector<1x8x8x240xbf16>
    %42 = vector.shape_cast %41 : vector<1x8x8x240xbf16> to vector<8x8x240xbf16>
    %43 = vector.shape_cast %42 : vector<8x8x240xbf16> to vector<64x240xbf16>
    %c4 = arith.constant 4 : index
    %c0_30 = arith.constant 0 : index
    %c0_31 = arith.constant 0 : index
    %44 = vector.load %arg3[%c4, %c0_30, %c0_31] : memref<5x240x32xbf16, #tpu.memory_space<vmem>>, vector<1x240x32xbf16>
    %45 = vector.shape_cast %44 : vector<1x240x32xbf16> to vector<240x32xbf16>
    %cst_32 = arith.constant dense<0.000000e+00> : vector<64x32xf32>
    %46 = tpu.matmul %43, %45, %cst_32 {dimension_numbers = #tpu.dot_dimension_numbers<[1], [0], [0], [1], [0, 0, 1, 1], [], []>} : vector<64x240xbf16>, vector<240x32xbf16>, vector<64x32xf32> -> vector<64x32xf32>
    %47 = arith.addf %38, %46 : vector<64x32xf32>
    %48 = vector.broadcast %0 : vector<1x32xf32> to vector<64x32xf32>
    %49 = arith.addf %47, %48 : vector<64x32xf32>
    %cst_33 = arith.constant 0.000000e+00 : f32
    %50 = vector.broadcast %cst_33 : f32 to vector<64x32xf32>
    %51 = arith.maximumf %49, %50 : vector<64x32xf32>
    %52 = vector.shape_cast %51 : vector<64x32xf32> to vector<4x16x32xf32>
    %53 = vector.extract_strided_slice %52 {offsets = [0, 0, 0], sizes = [4, 8, 32], strides = [1, 1, 1]} : vector<4x16x32xf32> to vector<4x8x32xf32>
    %54 = vector.extract_strided_slice %52 {offsets = [0, 8, 0], sizes = [4, 8, 32], strides = [1, 1, 1]} : vector<4x16x32xf32> to vector<4x8x32xf32>
    %55 = arith.maximumf %53, %54 : vector<4x8x32xf32>
    %56 = vector.shape_cast %55 : vector<4x8x32xf32> to vector<32x32xf32>
    %c0_34 = arith.constant 0 : index
    %c0_35 = arith.constant 0 : index
    %57 = vector.load %arg6[%c0_34, %c0_35] : memref<32x32xf32, #tpu.memory_space<vmem>>, vector<32x32xf32>
    tpu.vector_store %arg6[%c0_34, %c0_35], %56 {strides = array<i32>} : memref<32x32xf32, #tpu.memory_space<vmem>>, vector<32x32xf32>,
    %c0_36 = arith.constant 0 : index
    %c0_37 = arith.constant 0 : index
    %58 = tpu.strided_load %arg6[%c0_36, %c0_37] {strides = array<i32: 2, 1>} : memref<32x32xf32, #tpu.memory_space<vmem>>, vector<16x32xf32>
    %c1_38 = arith.constant 1 : index
    %c0_39 = arith.constant 0 : index
    %59 = tpu.strided_load %arg6[%c1_38, %c0_39] {strides = array<i32: 2, 1>} : memref<32x32xf32, #tpu.memory_space<vmem>>, vector<16x32xf32>
    %60 = arith.maximumf %58, %59 : vector<16x32xf32>
    %c16_i32 = arith.constant 16 : i32
    %61 = arith.muli %c0_i32, %c16_i32 : i32
    %62 = tpu.assume_multiple %61, 8 : i32
    %63 = arith.truncf %60 : vector<16x32xf32> to vector<16x32xbf16>
    %c0_40 = arith.constant 0 : index
    %64 = arith.index_cast %62 : i32 to index
    %c0_41 = arith.constant 0 : index
    %65 = vector.load %arg5[%c0_40, %64, %c0_41] : memref<1x16x32xbf16, #tpu.memory_space<vmem>>, vector<1x16x32xbf16>
    %66 = vector.shape_cast %65 : vector<1x16x32xbf16> to vector<16x32xbf16>
    %67 = vector.shape_cast %63 : vector<16x32xbf16> to vector<1x16x32xbf16>
    tpu.vector_store %arg5[%c0_40, %64, %c0_41], %67 {strides = array<i32>} : memref<1x16x32xbf16, #tpu.memory_space<vmem>>, vector<1x16x32xbf16>,
    %c1_i32_42 = arith.constant 1 : i32
    return
  }
  func.func @transform_0(%arg0: i32, %arg1: i32) -> (i32, i32, i32, i32) {
    %c0_i32 = arith.constant 0 : i32
    %c0_i32_0 = arith.constant 0 : i32
    %c0_i32_1 = arith.constant 0 : i32
    return %arg0, %arg1, %c0_i32, %c0_i32_0 : i32, i32, i32, i32
  }
  func.func @transform_1(%arg0: i32, %arg1: i32) -> (i32, i32, i32) {
    %c0_i32 = arith.constant 0 : i32
    %c0_i32_0 = arith.constant 0 : i32
    %c0_i32_1 = arith.constant 0 : i32
    %c0_i32_2 = arith.constant 0 : i32
    return %c0_i32, %c0_i32_0, %c0_i32_1 : i32, i32, i32
  }
  func.func @transform_2(%arg0: i32, %arg1: i32) -> (i32, i32) {
    %c0_i32 = arith.constant 0 : i32
    %c0_i32_0 = arith.constant 0 : i32
    %c0_i32_1 = arith.constant 0 : i32
    return %c0_i32, %c0_i32_0 : i32, i32
  }
  func.func @transform_3(%arg0: i32, %arg1: i32) -> (i32, i32, i32) {
    %c0_i32 = arith.constant 0 : i32
    %c0_i32_0 = arith.constant 0 : i32
    return %arg0, %arg1, %c0_i32 : i32, i32, i32
  }
}

module attributes {stable_mosaic.version = 11 : i64} {
  func.func @kernel(%arg0: i32, %arg1: memref<2x512xbf16, #tpu.memory_space<vmem>>, %arg2: memref<512x64xbf16, #tpu.memory_space<vmem>>, %arg3: memref<1x64xf32, #tpu.memory_space<vmem>>, %arg4: memref<1x64xf32, #tpu.memory_space<vmem>>, %arg5: memref<1x1xf32, #tpu.memory_space<vmem>>, %arg6: memref<2x1xf32, #tpu.memory_space<vmem>>) attributes {dimension_semantics = [#tpu.dimension_semantics<arbitrary>], iteration_bounds = array<i64: 1>, scalar_prefetch = 0 : i64, scratch_operands = 0 : i64, tpu.core_type = #tpu.core_type<tc>, window_params = [{pipeline_mode = #tpu.pipeline_mode<synchronous>, transform_indices = @transform_0, window_bounds = array<i64: 2, 512>}, {pipeline_mode = #tpu.pipeline_mode<synchronous>, transform_indices = @transform_1, window_bounds = array<i64: 512, 64>}, {pipeline_mode = #tpu.pipeline_mode<synchronous>, transform_indices = @transform_2, window_bounds = array<i64: 1, 64>}, {pipeline_mode = #tpu.pipeline_mode<synchronous>, transform_indices = @transform_3, window_bounds = array<i64: 1, 64>}, {pipeline_mode = #tpu.pipeline_mode<synchronous>, transform_indices = @transform_4, window_bounds = array<i64: 1, 1>}, {pipeline_mode = #tpu.pipeline_mode<synchronous>, transform_indices = @transform_5, window_bounds = array<i64: 2, 1>}]} {
    %c0 = arith.constant 0 : index
    %c0_0 = arith.constant 0 : index
    %0 = vector.load %arg1[%c0, %c0_0] : memref<2x512xbf16, #tpu.memory_space<vmem>>, vector<2x512xbf16>
    %c0_1 = arith.constant 0 : index
    %c0_2 = arith.constant 0 : index
    %1 = vector.load %arg2[%c0_1, %c0_2] : memref<512x64xbf16, #tpu.memory_space<vmem>>, vector<512x64xbf16>
    %cst = arith.constant dense<0.000000e+00> : vector<2x64xf32>
    %2 = tpu.matmul %0, %1, %cst {dimension_numbers = #tpu.dot_dimension_numbers<[1], [0], [0], [1], [0, 0, 1, 1], [], []>} : vector<2x512xbf16>, vector<512x64xbf16>, vector<2x64xf32> -> vector<2x64xf32>
    %c0_3 = arith.constant 0 : index
    %c0_4 = arith.constant 0 : index
    %3 = vector.load %arg3[%c0_3, %c0_4] : memref<1x64xf32, #tpu.memory_space<vmem>>, vector<1x64xf32>
    %4 = vector.broadcast %3 : vector<1x64xf32> to vector<2x64xf32>
    %5 = arith.addf %2, %4 : vector<2x64xf32>
    %cst_5 = arith.constant 0.000000e+00 : f32
    %6 = vector.broadcast %cst_5 : f32 to vector<2x64xf32>
    %7 = arith.maximumf %5, %6 : vector<2x64xf32>
    %c0_6 = arith.constant 0 : index
    %c0_7 = arith.constant 0 : index
    %8 = vector.load %arg4[%c0_6, %c0_7] : memref<1x64xf32, #tpu.memory_space<vmem>>, vector<1x64xf32>
    %9 = vector.broadcast %8 : vector<1x64xf32> to vector<2x64xf32>
    %10 = arith.mulf %7, %9 : vector<2x64xf32>
    %cst_8 = arith.constant dense<0.000000e+00> : vector<2xf32>
    %11 = vector.multi_reduction <add>, %10, %cst_8 [1] : vector<2x64xf32> to vector<2xf32>
    %12 = vector.shape_cast %11 : vector<2xf32> to vector<2x1xf32>
    %c0_9 = arith.constant 0 : index
    %c0_10 = arith.constant 0 : index
    %13 = vector.load %arg5[%c0_9, %c0_10] : memref<1x1xf32, #tpu.memory_space<vmem>>, vector<1x1xf32>
    %14 = vector.broadcast %13 : vector<1x1xf32> to vector<2x1xf32>
    %15 = arith.addf %12, %14 : vector<2x1xf32>
    %cst_11 = arith.constant 0.000000e+00 : f32
    %16 = vector.broadcast %cst_11 : f32 to vector<2x1xf32>
    %17 = arith.subf %16, %15 : vector<2x1xf32>
    %18 = math.exp %17 : vector<2x1xf32>
    %cst_12 = arith.constant 1.000000e+00 : f32
    %19 = vector.broadcast %cst_12 : f32 to vector<2x1xf32>
    %20 = arith.addf %19, %18 : vector<2x1xf32>
    %cst_13 = arith.constant 1.000000e+00 : f32
    %21 = vector.broadcast %cst_13 : f32 to vector<2x1xf32>
    %22 = arith.divf %21, %20 : vector<2x1xf32>
    %c0_14 = arith.constant 0 : index
    %c0_15 = arith.constant 0 : index
    %23 = vector.load %arg6[%c0_14, %c0_15] : memref<2x1xf32, #tpu.memory_space<vmem>>, vector<2x1xf32>
    tpu.vector_store %arg6[%c0_14, %c0_15], %22 {strides = array<i32>} : memref<2x1xf32, #tpu.memory_space<vmem>>, vector<2x1xf32>,
    return
  }
  func.func @transform_0(%arg0: i32) -> (i32, i32) {
    %c0_i32 = arith.constant 0 : i32
    %c0_i32_0 = arith.constant 0 : i32
    %c0_i32_1 = arith.constant 0 : i32
    return %c0_i32, %c0_i32_0 : i32, i32
  }
  func.func @transform_1(%arg0: i32) -> (i32, i32) {
    %c0_i32 = arith.constant 0 : i32
    %c0_i32_0 = arith.constant 0 : i32
    %c0_i32_1 = arith.constant 0 : i32
    return %c0_i32, %c0_i32_0 : i32, i32
  }
  func.func @transform_2(%arg0: i32) -> (i32, i32) {
    %c0_i32 = arith.constant 0 : i32
    %c0_i32_0 = arith.constant 0 : i32
    %c0_i32_1 = arith.constant 0 : i32
    return %c0_i32, %c0_i32_0 : i32, i32
  }
  func.func @transform_3(%arg0: i32) -> (i32, i32) {
    %c0_i32 = arith.constant 0 : i32
    %c0_i32_0 = arith.constant 0 : i32
    %c0_i32_1 = arith.constant 0 : i32
    return %c0_i32, %c0_i32_0 : i32, i32
  }
  func.func @transform_4(%arg0: i32) -> (i32, i32) {
    %c0_i32 = arith.constant 0 : i32
    %c0_i32_0 = arith.constant 0 : i32
    %c0_i32_1 = arith.constant 0 : i32
    return %c0_i32, %c0_i32_0 : i32, i32
  }
  func.func @transform_5(%arg0: i32) -> (i32, i32) {
    %c0_i32 = arith.constant 0 : i32
    %c0_i32_0 = arith.constant 0 : i32
    %c0_i32_1 = arith.constant 0 : i32
    return %c0_i32, %c0_i32_0 : i32, i32
  }
}

</mosaic_0001>

<bundles_post_ra>
// kernel: forward.5
= control target key start
LH: loop header
LB: loop body
LE: loop exit
PB: predicated region body
PF: predicated region fallthrough
CT: control target
= control target key end

     0   :  { %s1150_s12 = smov 0   ;;  %s1152_s13 = smov 0   ;;  %s1346_s0 = inlined_call_operand.vmem [shape: bf16[2,144,144,32], index: 0, kind: input, shape index: {}]   ;;  %s1347_s1 = inlined_call_operand.vmem [shape: bf16[1,32,16], index: 1, kind: input, shape index: {}]   ;;  %s1348_s2 = inlined_call_operand.vmem [shape: f32[1,16], index: 2, kind: input, shape index: {}]   ;;  %s1349_s3 = inlined_call_operand.vmem [shape: bf16[2,5184,16], index: 3, kind: output, shape index: {}]  }
   0x1   :  { %s1154_s14 = smov 0   ;;  %s1156_s15 = smov 0  }
   0x2   :  { %s1158_s16 = smov 0  }
   0x3 LB: > { %s22_s17 = sadd.s32 1, %s1116_s14  ;;  %s25_s18 = sadd.s32 1, %s1120_s15  ;;  %s1124_s16 = sphi %s1158_s16, %s13_s16   ;;  %s1120_s15 = sphi %s1156_s15, %s1353_s15   ;;  %s1116_s14 = sphi %s1154_s14, %s1352_s14   ;;  %s1112_s13 = sphi %s1152_s13, %s1351_s13   ;;  %s1108_s12 = sphi %s1150_s12, %s1350_s12  }
   0x4   : > { %p23_p0 = scmp.ge.s32.totalorder %s22_s17, 3  ;;  %p880_p1 = scmp.ge.s32.totalorder %s1124_s16, 1 }
   0x5   : > { %p159_p2 = scmp.lt.s32.totalorder %s1124_s16, 7 }
   0x6   : > { %s1355_s17 = smov (%p23_p0, %s22_s17), 0  ;;  %s1357_s18 = smov (!%p23_p0, %s25_s18), %s1120_s15 }
   0x7   : > { %p160_p3 = pnand %p880_p1, %p159_p2  ;;  %p27_p4 = scmp.ge.s32.totalorder %s1357_s18, 2 }
   0x8   : > { %s192_s19 = smul.u32 (!%p160_p3), 48, %s1108_s12  ;;  %p193_p5 = scmp.lt.s32.totalorder (!%p160_p3), %s1112_s13, 1  ;;  %v1183_v0 = vld [vmem:[%s1348_s2] ss:$0 sm:$0xff] (!%p160_p3) }
   0x9   : > { %s1359_s18 = smov (%p27_p4, %s1357_s18), 0  ;;  %163 = sbr.rel (%p160_p3) target bundleno = 300 (0x12c), region = 32 }
   0xa   : > { %s203_s22 = smul.u32 (!%p160_p3), 216, %s1108_s12  ;;  %p195_p6 = scmp.lt.s32.totalorder (!%p160_p3), %s192_s19, 143 }
   0xb   : > { %s1195_s9 = smov (!%p160_p3), 0  }
   0xc   : > { %p206_p7 = scmp.lt.s32.totalorder (!%p160_p3), %s203_s22, 647 }
  0x10   : > { %s1361_s13 = smov (!%p193_p5, %s1112_s13), 1  ;;  %s1363_s19 = smov (!%p195_p6, %s192_s19), 143 }
  0x11   : > { %s1012_s23 = smul.u32 2592, %s1361_s13  ;;  %s1365_s22 = smov (!%p206_p7, %s203_s22), 647 }
  0x12   : > { %s1011_s24 = smul.u32 18, %s1363_s19 }
  0x13   : > { %s1013_s25 = smul.u32 648, %s1361_s13 }
  0x14   : > { %s199_s26 = sadd.s32 %s1012_s23, %s1011_s24 }
  0x15   : > { %s881_s27 = sshll.u32 %s199_s26, 2  ;;  %s209_s28 = sadd.s32 %s1013_s25, %s1365_s22 }
  0x16   : > { %s1188_s4 = scalar_lea.vmem %s1346_s0, %s881_s27  ;;  %s882_s5 = sshll.u32 %s209_s28, 2 }
  0x17   : > { %s1193_s8 = scalar_lea.vmem %s1349_s3, %s882_s5 }
  0x18 LB: >> { %v1062_v1 = vld [vmem:[%s1347_s1] sm:$0xff]   ;;  %v1063_v2 = vld [vmem:[%s1347_s1 + $0x8] sm:$0xff]   ;;  %s937_s19 = smul.u32 144, %s1128_s9  ;;  %vm373_vm0 = vcmask 261120   ;;  %vm659_vm1 = vcmask 130048   ;;  %vm764_vm2 = vcmask 125952   ;;  %s1128_s9 = sphi %s1195_s9, %s220_s9  }
  0x19   : >> { %967 = vmatprep.subr.bf16.mxu0 %v1062_v1  ;;  %1007 = vmatprep.subr.bf16.mxu1 %v1062_v1  ;;  %s722_s21 = smul.u32 72, %s1128_s9  ;;  %s220_s9 = sadd.s32 1, %s1128_s9  }
  0x1a   : >> { %968 = vmatpush3.bf16.msra.mxu0 %v1062_v1  ;;  %1009 = vmatpush3.bf16.msra.mxu1 %v1062_v1  ;;  %s1208_s20 = scalar_lea.vmem %s1188_s4, %s937_s19  ;;  %p217_p8 = scmp.ge.s32.totalorder %s220_s9, 24  }
  0x1b   : >> { %969 = vmatprep.subr.bf16.mxu0 %v1063_v2  ;;  %1008 = vmatprep.subr.bf16.mxu1 %v1063_v2  ;;  %v1064_v3 = vld [vmem:[%s1208_s20] sm:$0xff]   ;;  %v1065_v4 = vld [vmem:[%s1208_s20 + $0x50] sm:$0xff]   ;;  %v1066_v5 = vld [vmem:[%s1208_s20 + $0x8] sm:$0xff]   ;;  %s760_s22 = sshra.s32 %s722_s21, 3 }
  0x1c   : >> { %971 = vmatprep.mubr.msk.bf16.mxu0 %vm373_vm0, %v1064_v3  ;;  %991 = vmatprep.mubr.msk.bf16.mxu1 %vm373_vm0, %v1065_v4  ;;  %v1067_v6 = vld [vmem:[%s1208_s20 + $0x58] sm:$0xff]   ;;  %v1068_v7 = vld [vmem:[%s1208_s20 + $0x10] sm:$0xff]   ;;  %v1069_v8 = vld [vmem:[%s1208_s20 + $0x60] sm:$0xff]   ;;  %s934_s23 = sshll.u32 %s760_s22, 2 }
  0x1d   : >> { %v1070_v9 = vld [vmem:[%s1208_s20 + $0x18] sm:$0xff]   ;;  %v1071_v10 = vld [vmem:[%s1208_s20 + $0x68] sm:$0xff]   ;;  %v1072_v11 = vld [vmem:[%s1208_s20 + $0x20] sm:$0xff]   ;;  %s1275_s24 = scalar_lea.vmem %s1193_s8, %s934_s23 }
  0x1e   : >> { %970 = vmatpush3.bf16.msra.mxu0 %v1063_v2  ;;  %1010 = vmatpush3.bf16.msra.mxu1 %v1063_v2  ;;  %v1073_v12 = vld [vmem:[%s1208_s20 + $0x70] sm:$0xff]   ;;  %v1074_v13 = vld [vmem:[%s1208_s20 + $0x28] sm:$0xff]   ;;  %v1075_v14 = vld [vmem:[%s1208_s20 + $0x78] sm:$0xff]  }
  0x1f   : >> { %v1076_v15 = vld [vmem:[%s1208_s20 + $0x30] sm:$0xff]   ;;  %v1077_v16 = vld [vmem:[%s1208_s20 + $0x80] sm:$0xff]   ;;  %v1078_v17 = vld [vmem:[%s1208_s20 + $0x38] sm:$0xff]  }
  0x20   : >> { %v1079_v18 = vld [vmem:[%s1208_s20 + $0x88] sm:$0xff]   ;;  %v1080_v19 = vld [vmem:[%s1208_s20 + $0x40] sm:$0xff]  }
  0x21   : >> { %972 = vmatmul.mubr.msk.bf16.vlgmr.msra.gmra.mrb[0].mxu0 %vm373_vm0, %v1066_v5  ;;  %992 = vmatmul.mubr.msk.bf16.vlgmr.msra.gmra.mrb[0].mxu1 %vm373_vm0, %v1067_v6  ;;  %v1081_v20 = vld [vmem:[%s1208_s20 + $0x48] sm:$0xff]  }
  0x22   : >> { %975 = vmatprep.mubr.msk.bf16.mxu0 %vm373_vm0, %v1068_v7  ;;  %995 = vmatprep.mubr.msk.bf16.mxu1 %vm373_vm0, %v1069_v8 }
  0x29   : >> { %976 = vmatmul.mubr.msk.bf16.gmra.mrb[4].mxu0 %vm373_vm0, %v1070_v9  ;;  %996 = vmatmul.mubr.msk.bf16.gmra.mrb[4].mxu1 %vm373_vm0, %v1071_v10 }
  0x2a   : >> { %979 = vmatprep.mubr.msk.bf16.mxu0 %vm373_vm0, %v1072_v11  ;;  %999 = vmatprep.mubr.msk.bf16.mxu1 %vm373_vm0, %v1073_v12 }
  0x31   : >> { %980 = vmatmul.mubr.msk.bf16.gmra.mrb[8].mxu0 %vm373_vm0, %v1074_v13  ;;  %1000 = vmatmul.mubr.msk.bf16.gmra.mrb[8].mxu1 %vm373_vm0, %v1075_v14 }
  0x32   : >> { %983 = vmatprep.mubr.msk.bf16.mxu0 %vm373_vm0, %v1076_v15  ;;  %1003 = vmatprep.mubr.msk.bf16.mxu1 %vm373_vm0, %v1077_v16 }
  0x39   : >> { %984 = vmatmul.mubr.msk.bf16.gmra.mrb[12].mxu0 %vm373_vm0, %v1078_v17  ;;  %1004 = vmatmul.mubr.msk.bf16.gmra.mrb[12].mxu1 %vm373_vm0, %v1079_v18 }
  0x3a   : >> { %987 = vmatprep.mubr.msk.bf16.mxu0 %vm373_vm0, %v1080_v19 }
  0x41   : >> { %988 = vmatmul.mubr.msk.bf16.gmra.mrb[16].mxu0 %vm373_vm0, %v1081_v20 }
  0xf4   : >> { %v973_v21 = vpop.f32.mrb[0].mxu0  ;;  %v993_v22 = vpop.f32.mrb[0].mxu1 }
  0xf5   : >> { %v471_v23 = vadd.f32 %v973_v21, %v1183_v0  ;;  %v1247_v24 = vpop.f32.mrb[1].mxu0  ;;  %v542_v25 = vpop.f32.mrb[1].mxu1  ;;  %v551_v36 = vadd.f32 %v993_v22, %v1183_v0 }
  0xf6   : >> { %v543_v26 = vadd.f32 %v1183_v0, %v542_v25  ;;  %v974_v27 = vpop.f32.mrb[2].mxu0  ;;  %v994_v28 = vpop.f32.mrb[2].mxu1 }
  0xf7   : >> { %v607_v29 = vmax.f32 %v471_v23, 0.0  ;;  %v474_v30 = vadd.f32 %v974_v27, %v1183_v0  ;;  %v1251_v31 = vpop.f32.mrb[3].mxu0  ;;  %v545_v32 = vpop.f32.mrb[3].mxu1  ;;  %v554_v42 = vadd.f32 %v994_v28, %v1183_v0  ;;  %v627_v46 = vmax.f32 %v551_v36, 0.0 }
  0xf8   : >> { %v625_v33 = vmax.f32 %v543_v26, 0.0  ;;  %v546_v34 = vadd.f32 %v1183_v0, %v545_v32 }
  0xf9   : >> { %v608_v35 = vmax.f32 %v474_v30, 0.0  ;;  %v628_v60 = vmax.f32 %v554_v42, 0.0 }
  0xfa   : >> { %v643_v37 = vmax.f32 %v607_v29, %v625_v33  ;;  %v626_v38 = vmax.f32 %v546_v34, 0.0 }
  0xfc   : >> { %662 = vst.msk [vmem:[#allocation2 + $0x10] sm:$0xff] %vm659_vm1, %v643_v37  ;;  %v644_v39 = vmax.f32 %v608_v35, %v626_v38  ;;  %v977_v40 = vpop.f32.mrb[4].mxu0  ;;  %v997_v41 = vpop.f32.mrb[4].mxu1 }
  0xfd   : >> { %v487_v43 = vadd.f32 %v977_v40, %v1183_v0  ;;  %v478_v44 = vpop.f32.mrb[5].mxu0  ;;  %v558_v45 = vpop.f32.mrb[5].mxu1  ;;  %v567_v52 = vadd.f32 %v997_v41, %v1183_v0 }
  0xfe   : >> { %663 = vst.msk [vmem:[#allocation2 + $0x18] sm:$0xff] %vm659_vm1, %v644_v39  ;;  %v479_v47 = vadd.f32 %v1183_v0, %v478_v44  ;;  %v559_v48 = vadd.f32 %v1183_v0, %v558_v45  ;;  %v978_v49 = vpop.f32.mrb[6].mxu0  ;;  %v998_v50 = vpop.f32.mrb[6].mxu1 }
  0xff   : >> { %v611_v51 = vmax.f32 %v487_v43, 0.0  ;;  %v490_v53 = vadd.f32 %v978_v49, %v1183_v0  ;;  %v481_v54 = vpop.f32.mrb[7].mxu0  ;;  %v561_v55 = vpop.f32.mrb[7].mxu1  ;;  %v631_v3 = vmax.f32 %v567_v52, 0.0  ;;  %v570_v14 = vadd.f32 %v998_v50, %v1183_v0 }
 0x100   : >> { %v609_v56 = vmax.f32 %v479_v47, 0.0  ;;  %v629_v57 = vmax.f32 %v559_v48, 0.0  ;;  %v482_v58 = vadd.f32 %v1183_v0, %v481_v54  ;;  %v562_v59 = vadd.f32 %v1183_v0, %v561_v55 }
 0x101   : >> { %v612_v61 = vmax.f32 %v490_v53, 0.0  ;;  %v632_v30 = vmax.f32 %v570_v14, 0.0 }
 0x102   : >> { %v645_v62 = vmax.f32 %v609_v56, %v627_v46  ;;  %v647_v63 = vmax.f32 %v611_v51, %v629_v57  ;;  %v610_v1 = vmax.f32 %v482_v58, 0.0  ;;  %v630_v2 = vmax.f32 %v562_v59, 0.0 }
 0x104   : >> { %664 = vst.msk [vmem:[#allocation2 + $0x20] sm:$0xff] %vm659_vm1, %v645_v62  ;;  %666 = vst.msk [vmem:[#allocation2 + $0x30] sm:$0xff] %vm659_vm1, %v647_v63  ;;  %v646_v4 = vmax.f32 %v610_v1, %v628_v60  ;;  %v648_v5 = vmax.f32 %v612_v61, %v630_v2  ;;  %v981_v6 = vpop.f32.mrb[8].mxu0  ;;  %v1001_v7 = vpop.f32.mrb[8].mxu1  ;;  %v463_v2 = vadd.f32 %v1183_v0, %v1247_v24 }
 0x105   : >> { %v680_v8 = vld [vmem:[#allocation2 + $0x10] ss:$2 sm:$0xff]  ;;  %v698_v9 = vld [vmem:[#allocation2 + $0x11] ss:$2 sm:$0xff]  ;;  %v503_v10 = vadd.f32 %v981_v6, %v1183_v0  ;;  %v494_v11 = vpop.f32.mrb[9].mxu0  ;;  %v574_v12 = vpop.f32.mrb[9].mxu1  ;;  %v583_v35 = vadd.f32 %v1001_v7, %v1183_v0 }
 0x106   : >> { %v714_v13 = vmax.f32 %v680_v8, %v698_v9  ;;  %665 = vst.msk [vmem:[#allocation2 + $0x28] sm:$0xff] %vm659_vm1, %v646_v4  ;;  %667 = vst.msk [vmem:[#allocation2 + $0x38] sm:$0xff] %vm659_vm1, %v648_v5  ;;  %v495_v15 = vadd.f32 %v1183_v0, %v494_v11  ;;  %v575_v16 = vadd.f32 %v1183_v0, %v574_v12  ;;  %v982_v17 = vpop.f32.mrb[10].mxu0  ;;  %v1002_v18 = vpop.f32.mrb[10].mxu1 }
 0x107   : >> { %v615_v19 = vmax.f32 %v503_v10, 0.0  ;;  %v506_v20 = vadd.f32 %v982_v17, %v1183_v0  ;;  %v497_v21 = vpop.f32.mrb[11].mxu0  ;;  %v577_v22 = vpop.f32.mrb[11].mxu1  ;;  %v635_v50 = vmax.f32 %v583_v35, 0.0  ;;  %v586_v51 = vadd.f32 %v1002_v18, %v1183_v0 }
 0x108   : >> { %v939_v23 = vpack.c.bf16 %v714_v13, %v714_v13  ;;  %v613_v25 = vmax.f32 %v495_v15, 0.0  ;;  %v633_v26 = vmax.f32 %v575_v16, 0.0  ;;  %v498_v27 = vadd.f32 %v1183_v0, %v497_v21 }
 0x109   : >> { %v616_v28 = vmax.f32 %v506_v20, 0.0  ;;  %v578_v29 = vadd.f32 %v1183_v0, %v577_v22  ;;  %v636_v6 = vmax.f32 %v586_v51, 0.0  ;;  %v466_v12 = vadd.f32 %v1183_v0, %v1251_v31 }
 0x10a   : >> { %766 = vst.msk [vmem:[%s1275_s24 + $0x4] sm:$0xf] %vm764_vm2, %v939_v23  ;;  %v649_v32 = vmax.f32 %v613_v25, %v631_v3  ;;  %v651_v33 = vmax.f32 %v615_v19, %v633_v26  ;;  %v614_v34 = vmax.f32 %v498_v27, 0.0  ;;  %v605_v25 = vmax.f32 %v463_v2, 0.0 }
 0x10b   : >> { %v634_v36 = vmax.f32 %v578_v29, 0.0 }
 0x10c   : >> { %668 = vst.msk [vmem:[#allocation2 + $0x40] sm:$0xff] %vm659_vm1, %v649_v32  ;;  %670 = vst.msk [vmem:[#allocation2 + $0x50] sm:$0xff] %vm659_vm1, %v651_v33  ;;  %v650_v37 = vmax.f32 %v614_v34, %v632_v30  ;;  %v985_v38 = vpop.f32.mrb[12].mxu0  ;;  %v1005_v39 = vpop.f32.mrb[12].mxu1  ;;  %v606_v34 = vmax.f32 %v466_v12, 0.0 }
 0x10d   : >> { %v682_v40 = vld [vmem:[#allocation2 + $0x20] ss:$2 sm:$0xff]  ;;  %v700_v41 = vld [vmem:[#allocation2 + $0x21] ss:$2 sm:$0xff]  ;;  %v684_v42 = vld [vmem:[#allocation2 + $0x30] ss:$2 sm:$0xff]  ;;  %v652_v43 = vmax.f32 %v616_v28, %v634_v36  ;;  %v519_v44 = vadd.f32 %v985_v38, %v1183_v0  ;;  %v599_v3 = vadd.f32 %v1005_v39, %v1183_v0 }
 0x10e   : >> { %v715_v45 = vmax.f32 %v682_v40, %v700_v41  ;;  %v702_v46 = vld [vmem:[#allocation2 + $0x31] ss:$2 sm:$0xff]  ;;  %669 = vst.msk [vmem:[#allocation2 + $0x48] sm:$0xff] %vm659_vm1, %v650_v37  ;;  %v510_v47 = vpop.f32.mrb[13].mxu0  ;;  %v590_v48 = vpop.f32.mrb[13].mxu1 }
 0x10f   : >> { %v716_v49 = vmax.f32 %v684_v42, %v702_v46  ;;  %671 = vst.msk [vmem:[#allocation2 + $0x58] sm:$0xff] %vm659_vm1, %v652_v43  ;;  %v511_v52 = vadd.f32 %v1183_v0, %v510_v47  ;;  %v986_v53 = vpop.f32.mrb[14].mxu0  ;;  %v1006_v54 = vpop.f32.mrb[14].mxu1  ;;  %v619_v56 = vmax.f32 %v519_v44, 0.0  ;;  %v591_v57 = vadd.f32 %v1183_v0, %v590_v48 }
 0x110   : >> { %v940_v55 = vpack.c.bf16 %v715_v45, %v715_v45  ;;  %v522_v58 = vadd.f32 %v986_v53, %v1183_v0  ;;  %v513_v59 = vpop.f32.mrb[15].mxu0  ;;  %v593_v60 = vpop.f32.mrb[15].mxu1  ;;  %v639_v21 = vmax.f32 %v599_v3, 0.0  ;;  %v602_v22 = vadd.f32 %v1006_v54, %v1183_v0 }
 0x111   : >> { %v941_v61 = vpack.c.bf16 %v716_v49, %v716_v49  ;;  %v617_v62 = vmax.f32 %v511_v52, 0.0  ;;  %v514_v63 = vadd.f32 %v1183_v0, %v513_v59  ;;  %v594_v1 = vadd.f32 %v1183_v0, %v593_v60 }
 0x112   : >> { %767 = vst.msk [vmem:[%s1275_s24 + $0x8] sm:$0xf] %vm764_vm2, %v940_v55  ;;  %v637_v4 = vmax.f32 %v591_v57, 0.0  ;;  %v620_v5 = vmax.f32 %v522_v58, 0.0  ;;  %v640_v38 = vmax.f32 %v602_v22, 0.0 }
 0x113   : >> { %768 = vst.msk [vmem:[%s1275_s24 + $0xc] sm:$0xf] %vm764_vm2, %v941_v61  ;;  %v653_v7 = vmax.f32 %v617_v62, %v635_v50  ;;  %v618_v8 = vmax.f32 %v514_v63, 0.0  ;;  %v638_v9 = vmax.f32 %v594_v1, 0.0 }
 0x114   : >> { %v655_v10 = vmax.f32 %v619_v56, %v637_v4  ;;  %v989_v11 = vpop.f32.mrb[16].mxu0 }
 0x115   : >> { %v686_v13 = vld [vmem:[#allocation2 + $0x40] ss:$2 sm:$0xff]  ;;  %v704_v14 = vld [vmem:[#allocation2 + $0x41] ss:$2 sm:$0xff]  ;;  %672 = vst.msk [vmem:[#allocation2 + $0x60] sm:$0xff] %vm659_vm1, %v653_v7  ;;  %v654_v24 = vmax.f32 %v618_v8, %v636_v6  ;;  %v656_v15 = vmax.f32 %v620_v5, %v638_v9  ;;  %v535_v16 = vadd.f32 %v989_v11, %v1183_v0  ;;  %v526_v17 = vpop.f32.mrb[17].mxu0 }
 0x116   : >> { %v717_v18 = vmax.f32 %v686_v13, %v704_v14  ;;  %v688_v19 = vld [vmem:[#allocation2 + $0x50] ss:$2 sm:$0xff]  ;;  %v706_v20 = vld [vmem:[#allocation2 + $0x51] ss:$2 sm:$0xff]  ;;  %674 = vst.msk [vmem:[#allocation2 + $0x70] sm:$0xff] %vm659_vm1, %v655_v10  ;;  %v527_v23 = vadd.f32 %v1183_v0, %v526_v17  ;;  %v990_v31 = vpop.f32.mrb[18].mxu0 }
 0x117   : >> { %v718_v26 = vmax.f32 %v688_v19, %v706_v20  ;;  %673 = vst.msk [vmem:[#allocation2 + $0x68] sm:$0xff] %vm659_vm1, %v654_v24  ;;  %675 = vst.msk [vmem:[#allocation2 + $0x78] sm:$0xff] %vm659_vm1, %v656_v15  ;;  %v623_v27 = vmax.f32 %v535_v16, 0.0  ;;  %v538_v28 = vadd.f32 %v990_v31, %v1183_v0  ;;  %v529_v29 = vpop.f32.mrb[19].mxu0 }
 0x118   : >> { %v942_v30 = vpack.c.bf16 %v717_v18, %v717_v18  ;;  %v621_v32 = vmax.f32 %v527_v23, 0.0  ;;  %v530_v33 = vadd.f32 %v1183_v0, %v529_v29 }
 0x119   : >> { %v943_v35 = vpack.c.bf16 %v718_v26, %v718_v26  ;;  %v641_v36 = vmax.f32 %v605_v25, %v623_v27  ;;  %v624_v37 = vmax.f32 %v538_v28, 0.0 }
 0x11a   : >> { %769 = vst.msk [vmem:[%s1275_s24 + $0x10] sm:$0xf] %vm764_vm2, %v942_v30  ;;  %v657_v39 = vmax.f32 %v621_v32, %v639_v21  ;;  %v622_v40 = vmax.f32 %v530_v33, 0.0 }
 0x11b   : >> { %770 = vst.msk [vmem:[%s1275_s24 + $0x14] sm:$0xf] %vm764_vm2, %v943_v35  ;;  %v642_v41 = vmax.f32 %v606_v34, %v624_v37 }
 0x11c   : >> { %660 = vst.msk [vmem:[#allocation2] sm:$0xff] %vm659_vm1, %v641_v36  ;;  %676 = vst.msk [vmem:[#allocation2 + $0x80] sm:$0xff] %vm659_vm1, %v657_v39  ;;  %v658_v42 = vmax.f32 %v622_v40, %v640_v38 }
 0x11d   : >> { %661 = vst.msk [vmem:[#allocation2 + $0x8] sm:$0xff] %vm659_vm1, %v642_v41 }
 0x11e   : >> { %v690_v43 = vld [vmem:[#allocation2 + $0x60] ss:$2 sm:$0xff]  ;;  %v708_v44 = vld [vmem:[#allocation2 + $0x61] ss:$2 sm:$0xff]  ;;  %v692_v45 = vld [vmem:[#allocation2 + $0x70] ss:$2 sm:$0xff] }
 0x11f   : >> { %677 = vst.msk [vmem:[#allocation2 + $0x88] sm:$0xff] %vm659_vm1, %v658_v42  ;;  %v719_v46 = vmax.f32 %v690_v43, %v708_v44  ;;  %v710_v47 = vld [vmem:[#allocation2 + $0x71] ss:$2 sm:$0xff] }
 0x120   : >> { %v720_v48 = vmax.f32 %v692_v45, %v710_v47 }
 0x121   : >> { %v944_v49 = vpack.c.bf16 %v719_v46, %v719_v46 }
 0x122   : >> { %v945_v50 = vpack.c.bf16 %v720_v48, %v720_v48 }
 0x123   : >> { %771 = vst.msk [vmem:[%s1275_s24 + $0x18] sm:$0xf] %vm764_vm2, %v944_v49 }
 0x124   : >> { %772 = vst.msk [vmem:[%s1275_s24 + $0x1c] sm:$0xf] %vm764_vm2, %v945_v50  ;;  %v678_v51 = vld [vmem:[#allocation2] ss:$2 sm:$0xff]  ;;  %v696_v52 = vld [vmem:[#allocation2 + $0x1] ss:$2 sm:$0xff] }
 0x125   : >> { %v713_v53 = vmax.f32 %v678_v51, %v696_v52  ;;  %219 = sbr.rel (!%p217_p8) target bundleno = 24 (0x18), region = 88 }
 0x126   : >> { %v694_v54 = vld [vmem:[#allocation2 + $0x80] ss:$2 sm:$0xff]  ;;  %v712_v55 = vld [vmem:[#allocation2 + $0x81] ss:$2 sm:$0xff] }
 0x127   : >> { %v721_v56 = vmax.f32 %v694_v54, %v712_v55  ;;  %v938_v57 = vpack.c.bf16 %v713_v53, %v713_v53 }
 0x129   : >> { %v946_v58 = vpack.c.bf16 %v721_v56, %v721_v56  ;;  %765 = vst.msk [vmem:[%s1275_s24] sm:$0xf] %vm764_vm2, %v938_v57 }
 0x12b   : >> { %773 = vst.msk [vmem:[%s1275_s24 + $0x20] sm:$0xf] %vm764_vm2, %v946_v58 }
 0x12c PF: > { %s13_s16 = sadd.s32 1, %s1124_s16   ;;  %s1350_s12 = smov %s1116_s14 }
 0x12d   : > { %p10_p9 = scmp.ge.s32.totalorder %s13_s16, 8   ;;  %s1351_s13 = smov %s1120_s15 }
 0x12e   : > { %s1352_s14 = smov %s1355_s17  ;;  %s1353_s15 = smov %s1359_s18 }
 0x12f   :  { %12 = sbr.rel (!%p10_p9) target bundleno = 3 (0x3), region = 99 }

// kernel: forward.6
= control target key start
LH: loop header
LB: loop body
LE: loop exit
PB: predicated region body
PF: predicated region fallthrough
CT: control target
= control target key end

     0   :  { %s4064_s12 = smov 0   ;;  %s4066_s13 = smov 0   ;;  %s4962_s0 = inlined_call_operand.vmem [shape: bf16[2,72,64,144], index: 0, kind: input, shape index: {}]   ;;  %s4963_s1 = inlined_call_operand.vmem [shape: bf16[9,144,48], index: 1, kind: input, shape index: {}]   ;;  %s4964_s2 = inlined_call_operand.vmem [shape: f32[1,48], index: 2, kind: input, shape index: {}]   ;;  %s4965_s3 = inlined_call_operand.vmem [shape: bf16[2,1024,48], index: 3, kind: output, shape index: {}]  }
   0x1   :  { %s4068_s14 = smov 0  }
   0x2 LB: > { %s25_s15 = sadd.s32 1, %s4033_s13  ;;  %p3142_p0 = scmp.ge.s32.totalorder %s4037_s14, 1  ;;  %s4037_s14 = sphi %s4068_s14, %s13_s14   ;;  %s4033_s13 = sphi %s4066_s13, %s4967_s13   ;;  %s4029_s12 = sphi %s4064_s12, %s4966_s12  }
   0x3   : > { %p27_p1 = scmp.ge.s32.totalorder %s25_s15, 2  ;;  %p159_p2 = scmp.lt.s32.totalorder %s4037_s14, 3 }
   0x5   : > { %s4969_s15 = smov (%p27_p1, %s25_s15), 0  ;;  %p160_p3 = pnand %p3142_p0, %p159_p2 }
   0x6   : > { %p193_p4 = scmp.lt.s32.totalorder (!%p160_p3), %s4029_s12, 1  ;;  %v4085_v0 = vld [vmem:[%s4964_s2] ss:$0 sm:$0xff] (!%p160_p3)  ;;  %s4097_s26 = smov (!%p160_p3), 0  }
   0x7   : > { %163 = sbr.rel (%p160_p3) target bundleno = 571 (0x23b), region = 32 }
   0xe   : > { %s4971_s12 = smov (!%p193_p4, %s4029_s12), 1 }
   0xf   : > { %s3776_s18 = smul.u32 4608, %s4971_s12  ;;  %s3743_s19 = sshll.u32 %s4971_s12, 9 }
  0x10   : > { %s4090_s22 = scalar_lea.vmem %s4965_s3, %s3743_s19 }
  0x11   : > { %s4095_s25 = scalar_lea.vmem %s4962_s0, %s3776_s18 }
  0x12 LB: >> { %v3810_v1 = vld [vmem:[%s4963_s1 + $0x48] sm:$0xff]   ;;  %v4043_v2 = vmov 0   ;;  %v3811_v3 = vld [vmem:[%s4963_s1] sm:$0xff]   ;;  %v3812_v4 = vld [vmem:[%s4963_s1 + $0x50] sm:$0xff]   ;;  %s3745_s19 = sshll.u32 %s4041_s26, 7  ;;  %vm424_vm0 = vcmask 130048   ;;  %s4041_s26 = sphi %s4097_s26, %s220_s26  }
  0x13   : >> { %449 = vmatprep.subr.bf16.mxu0 %v4043_v2  ;;  %696 = vmatprep.subr.bf16.mxu1 %v4043_v2  ;;  %v3813_v5 = vld [vmem:[%s4963_s1 + $0x8] sm:$0xff]   ;;  %v3814_v6 = vld [vmem:[%s4963_s1 + $0x58] sm:$0xff]   ;;  %v3815_v7 = vld [vmem:[%s4963_s1 + $0x10] sm:$0xff]   ;;  %s4144_s27 = scalar_lea.vmem %s4095_s25, %s3745_s19  ;;  %vm2953_vm1 = vcmask 392192   ;;  %vm3002_vm2 = vcmask 388096  }
  0x14   : >> { %450 = vmatpush1.bf16.msra.mxu0 %v3810_v1  ;;  %697 = vmatpush1.bf16.msra.mxu1 %v3811_v3  ;;  %v3816_v8 = vld [vmem:[%s4963_s1 + $0x60] sm:$0xff]   ;;  %v3817_v9 = vld [vmem:[%s4963_s1 + $0x18] sm:$0xff]   ;;  %v3818_v10 = vld [vmem:[%s4963_s1 + $0x68] sm:$0xff]  }
  0x15   : >> { %451 = vmatprep.subr.bf16.mxu0 %v4043_v2  ;;  %698 = vmatprep.subr.bf16.mxu1 %v4043_v2  ;;  %v3819_v11 = vld [vmem:[%s4963_s1 + $0x20] sm:$0xff]   ;;  %v3820_v12 = vld [vmem:[%s4963_s1 + $0x70] sm:$0xff]   ;;  %v3821_v13 = vld [vmem:[%s4963_s1 + $0x28] sm:$0xff]  }
  0x16   : >> { %v4154_v14 = vld [vmem:[%s4144_s27 + $0x44] ss:$8 sps:$4 sm:$0xff]   ;;  %v3822_v16 = vld [vmem:[%s4963_s1 + $0x78] sm:$0xff]   ;;  %v3823_v17 = vld [vmem:[%s4963_s1 + $0x30] sm:$0xff]  }
  0x17   : >> { %v3833_v15 = vld [vmem:[%s4144_s27 + $0x4] ss:$8 sps:$4 sm:$0xff]   ;;  %3210 = vmatprep.mubr.msk.bf16.mxu0 %vm424_vm0, %v4154_v14  ;;  %v3825_v19 = vld [vmem:[%s4963_s1 + $0x38] sm:$0xff]   ;;  %v4185_v22 = vld [vmem:[%s4144_s27 + $0x40] ss:$8 sps:$4 sm:$0xff]  }
  0x18   : >> { %452 = vmatpush1.bf16.msra.mxu0 %v3812_v4  ;;  %699 = vmatpush1.bf16.msra.mxu1 %v3813_v5  ;;  %v3824_v18 = vld [vmem:[%s4963_s1 + $0x80] sm:$0xff]   ;;  %v3826_v20 = vld [vmem:[%s4963_s1 + $0x88] sm:$0xff]   ;;  %v3834_v24 = vld [vmem:[%s4963_s1 + $0x90] sm:$0xff]  }
  0x19   : >> { %453 = vmatprep.subr.bf16.mxu0 %v4043_v2  ;;  %700 = vmatprep.subr.bf16.mxu1 %v4043_v2  ;;  %v3827_v21 = vld [vmem:[%s4963_s1 + $0x40] sm:$0xff]   ;;  %v3835_v25 = vld [vmem:[%s4963_s1 + $0xd8] sm:$0xff]   ;;  %v3851_v35 = vld [vmem:[%s4963_s1 + $0xe8] sm:$0xff]  }
  0x1a   : >> { %3243 = vmatprep.mubr.msk.bf16.mxu1 %vm424_vm0, %v3833_v15  ;;  %v3831_v23 = vld [vmem:[%s4144_s27] ss:$8 sps:$4 sm:$0xff]   ;;  %v4197_v26 = vld [vmem:[%s4144_s27 + $0x54] ss:$8 sps:$4 sm:$0xff]   ;;  %v4208_v29 = vld [vmem:[%s4144_s27 + $0x50] ss:$8 sps:$4 sm:$0xff]  }
  0x1b   : >> { %v3838_v27 = vld [vmem:[%s4144_s27 + $0x14] ss:$8 sps:$4 sm:$0xff]   ;;  %v3843_v30 = vld [vmem:[%s4963_s1 + $0xe0] sm:$0xff]   ;;  %v3841_v31 = vld [vmem:[%s4144_s27 + $0x10] ss:$8 sps:$4 sm:$0xff]  }
  0x1c   : >> { %454 = vmatpush1.bf16.msra.mxu0 %v3814_v6  ;;  %701 = vmatpush1.bf16.msra.mxu1 %v3815_v7  ;;  %v3842_v28 = vld [vmem:[%s4963_s1 + $0x98] sm:$0xff]   ;;  %v4218_v32 = vld [vmem:[%s4144_s27 + $0x64] ss:$8 sps:$4 sm:$0xff]   ;;  %v4234_v36 = vld [vmem:[%s4144_s27 + $0x60] ss:$8 sps:$4 sm:$0xff]  }
  0x1d   : >> { %455 = vmatprep.subr.bf16.mxu0 %v4043_v2  ;;  %702 = vmatprep.subr.bf16.mxu1 %v4043_v2  ;;  %v3846_v33 = vld [vmem:[%s4144_s27 + $0x24] ss:$8 sps:$4 sm:$0xff]   ;;  %v3857_v38 = vld [vmem:[%s4963_s1 + $0xf0] sm:$0xff]   ;;  %v3849_v39 = vld [vmem:[%s4144_s27 + $0x20] ss:$8 sps:$4 sm:$0xff]  }
  0x1e   : >> { %v3850_v34 = vld [vmem:[%s4963_s1 + $0xa0] sm:$0xff]   ;;  %v3856_v37 = vld [vmem:[%s4963_s1 + $0xa8] sm:$0xff]   ;;  %v4246_v40 = vld [vmem:[%s4144_s27 + $0x74] ss:$8 sps:$4 sm:$0xff]  }
  0x1f   : >> { %v3854_v41 = vld [vmem:[%s4144_s27 + $0x34] ss:$8 sps:$4 sm:$0xff]   ;;  %v3858_v45 = vld [vmem:[%s4144_s27 + $0x70] ss:$8 sps:$4 sm:$0xff]   ;;  %v3866_v46 = vld [vmem:[%s4963_s1 + $0x100] sm:$0xff]  }
  0x20   : >> { %456 = vmatpush1.bf16.msra.mxu0 %v3816_v8  ;;  %703 = vmatpush1.bf16.msra.mxu1 %v3817_v9  ;;  %v3860_v42 = vld [vmem:[%s4963_s1 + $0xb0] sm:$0xff]   ;;  %v3861_v43 = vld [vmem:[%s4963_s1 + $0xf8] sm:$0xff]   ;;  %v3862_v48 = vld [vmem:[%s4144_s27 + $0x84] ss:$8 sps:$4 sm:$0xff]  }
  0x21   : >> { %457 = vmatprep.subr.bf16.mxu0 %v4043_v2  ;;  %704 = vmatprep.subr.bf16.mxu1 %v4043_v2  ;;  %v3865_v44 = vld [vmem:[%s4963_s1 + $0xb8] sm:$0xff]   ;;  %v3870_v49 = vld [vmem:[%s4963_s1 + $0xc0] sm:$0xff]   ;;  %v3871_v50 = vld [vmem:[%s4963_s1 + $0x108] sm:$0xff]  }
  0x22   : >> { %v3859_v47 = vld [vmem:[%s4144_s27 + $0x30] ss:$8 sps:$4 sm:$0xff]   ;;  %v3875_v51 = vld [vmem:[%s4963_s1 + $0xc8] sm:$0xff]   ;;  %v3867_v54 = vld [vmem:[%s4144_s27 + $0x94] ss:$8 sps:$4 sm:$0xff]  }
  0x23   : >> { %v3876_v52 = vld [vmem:[%s4963_s1 + $0x110] sm:$0xff]   ;;  %v3864_v53 = vld [vmem:[%s4144_s27 + $0x80] ss:$8 sps:$4 sm:$0xff]   ;;  %v3881_v56 = vld [vmem:[%s4963_s1 + $0x118] sm:$0xff]  }
  0x24   : >> { %458 = vmatpush1.bf16.msra.mxu0 %v3818_v10  ;;  %705 = vmatpush1.bf16.msra.mxu1 %v3819_v11  ;;  %v3880_v55 = vld [vmem:[%s4963_s1 + $0xd0] sm:$0xff]   ;;  %v3872_v58 = vld [vmem:[%s4144_s27 + $0xa4] ss:$8 sps:$4 sm:$0xff]   ;;  %v3874_v59 = vld [vmem:[%s4144_s27 + $0xa0] ss:$8 sps:$4 sm:$0xff]  }
  0x25   : >> { %459 = vmatprep.subr.bf16.mxu0 %v4043_v2  ;;  %706 = vmatprep.subr.bf16.mxu1 %v4043_v2  ;;  %v3869_v57 = vld [vmem:[%s4144_s27 + $0x90] ss:$8 sps:$4 sm:$0xff]   ;;  %v3877_v60 = vld [vmem:[%s4144_s27 + $0xb4] ss:$8 sps:$4 sm:$0xff]   ;;  %v4321_v62 = vld [vmem:[%s4144_s27 + $0xc4] ss:$8 sps:$4 sm:$0xff]  }
  0x26   : >> { %v3879_v61 = vld [vmem:[%s4144_s27 + $0xb0] ss:$8 sps:$4 sm:$0xff]   ;;  %v4327_v63 = vld [vmem:[%s4144_s27 + $0xc0] ss:$8 sps:$4 sm:$0xff]   ;;  %v4336_v4 = vld [vmem:[%s4144_s27 + $0xd4] ss:$8 sps:$4 sm:$0xff]  }
  0x27   : >> { %v3885_v1 = vld [vmem:[%s4963_s1 + $0x120] sm:$0xff]   ;;  %v3886_v3 = vld [vmem:[%s4963_s1 + $0x168] sm:$0xff]   ;;  %v3891_v6 = vld [vmem:[%s4963_s1 + $0x170] sm:$0xff]  }
  0x28   : >> { %460 = vmatpush1.bf16.msra.mxu0 %v3820_v12  ;;  %707 = vmatpush1.bf16.msra.mxu1 %v3821_v13  ;;  %v3890_v5 = vld [vmem:[%s4963_s1 + $0x128] sm:$0xff]   ;;  %v4350_v7 = vld [vmem:[%s4144_s27 + $0xd0] ss:$8 sps:$4 sm:$0xff]   ;;  %v3900_v13 = vld [vmem:[%s4963_s1 + $0x180] sm:$0xff]  }
  0x29   : >> { %461 = vmatprep.subr.bf16.mxu0 %v4043_v2  ;;  %708 = vmatprep.subr.bf16.mxu1 %v4043_v2  ;;  %v4354_v8 = vld [vmem:[%s4144_s27 + $0xe4] ss:$8 sps:$4 sm:$0xff]   ;;  %v3895_v9 = vld [vmem:[%s4963_s1 + $0x130] sm:$0xff]   ;;  %v3896_v10 = vld [vmem:[%s4963_s1 + $0x178] sm:$0xff]  }
  0x2a   : >> { %v3899_v11 = vld [vmem:[%s4963_s1 + $0x138] sm:$0xff]   ;;  %v4372_v12 = vld [vmem:[%s4144_s27 + $0xe0] ss:$8 sps:$4 sm:$0xff]  }
  0x2b   : >> { %v3902_v15 = vld [vmem:[%s4963_s1 + $0x140] sm:$0xff]  }
  0x2c   : >> { %462 = vmatpush1.bf16.msra.mxu0 %v3822_v16  ;;  %709 = vmatpush1.bf16.msra.mxu1 %v3823_v17  ;;  %v3903_v16 = vld [vmem:[%s4963_s1 + $0x188] sm:$0xff]  }
  0x2d   : >> { %463 = vmatprep.subr.bf16.mxu0 %v4043_v2  ;;  %710 = vmatprep.subr.bf16.mxu1 %v4043_v2  ;;  %v3907_v17 = vld [vmem:[%s4963_s1 + $0x148] sm:$0xff]  }
  0x30   : >> { %464 = vmatpush1.bf16.msra.mxu0 %v3824_v18  ;;  %711 = vmatpush1.bf16.msra.mxu1 %v3825_v19  ;;  %v3908_v18 = vld [vmem:[%s4963_s1 + $0x190] sm:$0xff]  }
  0x31   : >> { %465 = vmatprep.subr.bf16.mxu0 %v4043_v2  ;;  %712 = vmatprep.subr.bf16.mxu1 %v4043_v2  ;;  %v3901_v19 = vld [vmem:[%s4144_s27 + $0xf0] ss:$8 sps:$4 sm:$0xff]  }
  0x34   : >> { %466 = vmatpush1.bf16.msra.mxu0 %v3826_v20  ;;  %713 = vmatpush1.bf16.msra.mxu1 %v3827_v21  ;;  %v3904_v20 = vld [vmem:[%s4144_s27 + $0x104] ss:$8 sps:$4 sm:$0xff]   ;;  %v3912_v21 = vld [vmem:[%s4963_s1 + $0x150] sm:$0xff]  }
  0x35   : >> { %982 = vmatprep.subr.bf16.mxu0 %v4043_v2  ;;  %1284 = vmatprep.subr.bf16.mxu1 %v4043_v2 }
  0x37   : >> { %482 = vmatmul.mubr.bf16.vlgmr.msra.gmra.mrb[0].mxu0 %v4185_v22  ;;  %729 = vmatmul.mubr.bf16.vlgmr.msra.gmra.mrb[0].mxu1 %v3831_v23  ;;  %v3917_v23 = vld [vmem:[%s4963_s1 + $0x158] sm:$0xff]  }
  0x38   : >> { %983 = vmatpush1.bf16.msra.mxu0 %v3834_v24  ;;  %1285 = vmatpush1.bf16.msra.mxu1 %v3835_v25  ;;  %v3918_v24 = vld [vmem:[%s4963_s1 + $0x1a0] sm:$0xff]  }
  0x39   : >> { %3211 = vmatprep.mubr.msk.bf16.mxu0 %vm424_vm0, %v4197_v26  ;;  %3244 = vmatprep.mubr.msk.bf16.mxu1 %vm424_vm0, %v3838_v27  ;;  %v3906_v25 = vld [vmem:[%s4144_s27 + $0x100] ss:$8 sps:$4 sm:$0xff]  }
  0x3a   : >> { %984 = vmatprep.subr.bf16.mxu0 %v4043_v2  ;;  %1286 = vmatprep.subr.bf16.mxu1 %v4043_v2  ;;  %v3922_v27 = vld [vmem:[%s4963_s1 + $0x160] sm:$0xff]  }
  0x3c   : >> { %985 = vmatpush1.bf16.msra.mxu0 %v3842_v28  ;;  %1287 = vmatpush1.bf16.msra.mxu1 %v3843_v30  ;;  %v3923_v28 = vld [vmem:[%s4963_s1 + $0x1a8] sm:$0xff]  }
  0x3d   : >> { %986 = vmatprep.subr.bf16.mxu0 %v4043_v2  ;;  %1288 = vmatprep.subr.bf16.mxu1 %v4043_v2  ;;  %v3914_v30 = vld [vmem:[%s4144_s27 + $0x124] ss:$8 sps:$4 sm:$0xff]  }
  0x3f   : >> { %490 = vmatmul.mubr.bf16.gmra.mrb[4].mxu0 %v4208_v29  ;;  %737 = vmatmul.mubr.bf16.gmra.mrb[4].mxu1 %v3841_v31  ;;  %v3916_v31 = vld [vmem:[%s4144_s27 + $0x120] ss:$8 sps:$4 sm:$0xff]  }
  0x40   : >> { %3212 = vmatprep.mubr.msk.bf16.mxu0 %vm424_vm0, %v4218_v32  ;;  %3245 = vmatprep.mubr.msk.bf16.mxu1 %vm424_vm0, %v3846_v33  ;;  %v3921_v33 = vld [vmem:[%s4144_s27 + $0x130] ss:$8 sps:$4 sm:$0xff]  }
  0x41   : >> { %987 = vmatpush1.bf16.msra.mxu0 %v3850_v34  ;;  %1289 = vmatpush1.bf16.msra.mxu1 %v3851_v35  ;;  %v4449_v34 = vld [vmem:[%s4144_s27 + $0x144] ss:$8 sps:$4 sm:$0xff]   ;;  %v4455_v35 = vld [vmem:[%s4144_s27 + $0x140] ss:$8 sps:$4 sm:$0xff]  }
  0x42   : >> { %988 = vmatprep.subr.bf16.mxu0 %v4043_v2  ;;  %1290 = vmatprep.subr.bf16.mxu1 %v4043_v2 }
  0x45   : >> { %989 = vmatpush1.bf16.msra.mxu0 %v3856_v37  ;;  %1291 = vmatpush1.bf16.msra.mxu1 %v3857_v38  ;;  %v3928_v37 = vld [vmem:[%s4963_s1 + $0x1f8] sm:$0xff]  }
  0x46   : >> { %990 = vmatprep.subr.bf16.mxu0 %v4043_v2  ;;  %1292 = vmatprep.subr.bf16.mxu1 %v4043_v2  ;;  %v4464_v38 = vld [vmem:[%s4144_s27 + $0x154] ss:$8 sps:$4 sm:$0xff]  }
  0x47   : >> { %498 = vmatmul.mubr.bf16.gmra.mrb[8].mxu0 %v4234_v36  ;;  %745 = vmatmul.mubr.bf16.gmra.mrb[8].mxu1 %v3849_v39  ;;  %v3932_v39 = vld [vmem:[%s4963_s1 + $0x1b8] sm:$0xff]  }
  0x48   : >> { %3213 = vmatprep.mubr.msk.bf16.mxu0 %vm424_vm0, %v4246_v40  ;;  %3246 = vmatprep.mubr.msk.bf16.mxu1 %vm424_vm0, %v3854_v41  ;;  %v4479_v41 = vld [vmem:[%s4144_s27 + $0x150] ss:$8 sps:$4 sm:$0xff]  }
  0x49   : >> { %991 = vmatpush1.bf16.msra.mxu0 %v3860_v42  ;;  %1293 = vmatpush1.bf16.msra.mxu1 %v3861_v43  ;;  %v4482_v42 = vld [vmem:[%s4144_s27 + $0x164] ss:$8 sps:$4 sm:$0xff]  }
  0x4a   : >> { %992 = vmatprep.subr.bf16.mxu0 %v4043_v2  ;;  %1294 = vmatprep.subr.bf16.mxu1 %v4043_v2  ;;  %v3937_v43 = vld [vmem:[%s4963_s1 + $0x1c0] sm:$0xff]  }
  0x4d   : >> { %993 = vmatpush1.bf16.msra.mxu0 %v3865_v44  ;;  %1295 = vmatpush1.bf16.msra.mxu1 %v3866_v46  ;;  %v3938_v44 = vld [vmem:[%s4963_s1 + $0x208] sm:$0xff]   ;;  %v3942_v46 = vld [vmem:[%s4963_s1 + $0x210] sm:$0xff]  }
  0x4e   : >> { %994 = vmatprep.subr.bf16.mxu0 %v4043_v2  ;;  %1296 = vmatprep.subr.bf16.mxu1 %v4043_v2 }
  0x4f   : >> { %506 = vmatmul.mubr.bf16.gmra.mrb[12].mxu0 %v3858_v45  ;;  %753 = vmatmul.mubr.bf16.gmra.mrb[12].mxu1 %v3859_v47  ;;  %v3936_v47 = vld [vmem:[%s4144_s27 + $0x160] ss:$8 sps:$4 sm:$0xff]  }
  0x50   : >> { %3214 = vmatprep.mubr.msk.bf16.mxu0 %vm424_vm0, %v3862_v48  ;;  %3247 = vmatprep.mubr.msk.bf16.mxu1 %vm424_vm0, %v4154_v14  ;;  %v3897_v14 = vld [vmem:[%s4144_s27 + $0xf4] ss:$8 sps:$4 sm:$0xff]  }
  0x51   : >> { %995 = vmatpush1.bf16.msra.mxu0 %v3870_v49  ;;  %1297 = vmatpush1.bf16.msra.mxu1 %v3871_v50  ;;  %v3944_v49 = vld [vmem:[%s4963_s1 + $0x1d0] sm:$0xff]   ;;  %v3945_v50 = vld [vmem:[%s4963_s1 + $0x218] sm:$0xff]  }
  0x52   : >> { %996 = vmatprep.subr.bf16.mxu0 %v4043_v2  ;;  %1298 = vmatprep.subr.bf16.mxu1 %v4043_v2 }
  0x55   : >> { %997 = vmatpush1.bf16.msra.mxu0 %v3875_v51  ;;  %1299 = vmatpush1.bf16.msra.mxu1 %v3876_v52  ;;  %v3949_v51 = vld [vmem:[%s4963_s1 + $0x1d8] sm:$0xff]   ;;  %v3950_v52 = vld [vmem:[%s4963_s1 + $0x220] sm:$0xff]  }
  0x56   : >> { %998 = vmatprep.subr.bf16.mxu0 %v4043_v2  ;;  %1300 = vmatprep.subr.bf16.mxu1 %v4043_v2 }
  0x57   : >> { %514 = vmatmul.mubr.bf16.gmra.mrb[16].mxu0 %v3864_v53  ;;  %761 = vmatmul.mubr.bf16.gmra.mrb[16].mxu1 %v4185_v22  ;;  %v3913_v22 = vld [vmem:[%s4963_s1 + $0x198] sm:$0xff]  }
  0x58   : >> { %3215 = vmatprep.mubr.msk.bf16.mxu0 %vm424_vm0, %v3867_v54  ;;  %3248 = vmatprep.mubr.msk.bf16.mxu1 %vm424_vm0, %v4197_v26  ;;  %v3909_v26 = vld [vmem:[%s4144_s27 + $0x114] ss:$8 sps:$4 sm:$0xff]  }
  0x59   : >> { %999 = vmatpush1.bf16.msra.mxu0 %v3880_v55  ;;  %1301 = vmatpush1.bf16.msra.mxu1 %v3881_v56  ;;  %v3954_v55 = vld [vmem:[%s4963_s1 + $0x1e0] sm:$0xff]   ;;  %v3955_v56 = vld [vmem:[%s4963_s1 + $0x228] sm:$0xff]  }
  0x5a   : >> { %1586 = vmatprep.subr.bf16.mxu0 %v4043_v2  ;;  %1888 = vmatprep.subr.bf16.mxu1 %v4043_v2 }
  0x5f   : >> { %522 = vmatmul.mubr.bf16.gmra.mrb[20].mxu0 %v3869_v57  ;;  %769 = vmatmul.mubr.bf16.gmra.mrb[20].mxu1 %v4208_v29  ;;  %v3911_v29 = vld [vmem:[%s4144_s27 + $0x110] ss:$8 sps:$4 sm:$0xff]  }
  0x60   : >> { %3216 = vmatprep.mubr.msk.bf16.mxu0 %vm424_vm0, %v3872_v58  ;;  %3249 = vmatprep.mubr.msk.bf16.mxu1 %vm424_vm0, %v4218_v32  ;;  %v3919_v32 = vld [vmem:[%s4144_s27 + $0x134] ss:$8 sps:$4 sm:$0xff]  }
  0x67   : >> { %530 = vmatmul.mubr.bf16.gmra.mrb[24].mxu0 %v3874_v59  ;;  %777 = vmatmul.mubr.bf16.gmra.mrb[24].mxu1 %v4234_v36  ;;  %v3927_v36 = vld [vmem:[%s4963_s1 + $0x1b0] sm:$0xff]  }
  0x68   : >> { %3217 = vmatprep.mubr.msk.bf16.mxu0 %vm424_vm0, %v3877_v60  ;;  %3250 = vmatprep.mubr.msk.bf16.mxu1 %vm424_vm0, %v4246_v40  ;;  %v3933_v40 = vld [vmem:[%s4963_s1 + $0x200] sm:$0xff]  }
  0x6f   : >> { %538 = vmatmul.mubr.bf16.gmra.mrb[28].mxu0 %v3879_v61  ;;  %785 = vmatmul.mubr.bf16.gmra.mrb[28].mxu1 %v3858_v45  ;;  %v3941_v45 = vld [vmem:[%s4963_s1 + $0x1c8] sm:$0xff]  }
  0x70   : >> { %3312 = vmatprep.mubr.msk.bf16.mxu0 %vm424_vm0, %v3862_v48  ;;  %3381 = vmatprep.mubr.msk.bf16.mxu1 %vm424_vm0, %v4321_v62  ;;  %v3939_v48 = vld [vmem:[%s4144_s27 + $0x174] ss:$8 sps:$4 sm:$0xff]  }
  0x77   : >> { %1015 = vmatmul.mubr.bf16.vlgmr.msra.gmra.mrb[32].mxu0 %v3864_v53  ;;  %1317 = vmatmul.mubr.bf16.vlgmr.msra.gmra.mrb[32].mxu1 %v4327_v63  ;;  %v3943_v53 = vld [vmem:[%s4144_s27 + $0x170] ss:$8 sps:$4 sm:$0xff]  }
  0x78   : >> { %1587 = vmatpush1.bf16.msra.mxu0 %v3885_v1  ;;  %1889 = vmatpush1.bf16.msra.mxu1 %v3886_v3  ;;  %v3956_v1 = vld [vmem:[%s4144_s27 + $0x1a4] ss:$8 sps:$4 sm:$0xff]   ;;  %v3958_v3 = vld [vmem:[%s4144_s27 + $0x1a0] ss:$8 sps:$4 sm:$0xff]  }
  0x79   : >> { %3313 = vmatprep.mubr.msk.bf16.mxu0 %vm424_vm0, %v3867_v54  ;;  %3382 = vmatprep.mubr.msk.bf16.mxu1 %vm424_vm0, %v4336_v4  ;;  %v3946_v54 = vld [vmem:[%s4144_s27 + $0x184] ss:$8 sps:$4 sm:$0xff]  }
  0x7a   : >> { %1588 = vmatprep.subr.bf16.mxu0 %v4043_v2  ;;  %1890 = vmatprep.subr.bf16.mxu1 %v4043_v2 }
  0x7c   : >> { %1589 = vmatpush1.bf16.msra.mxu0 %v3890_v5  ;;  %1891 = vmatpush1.bf16.msra.mxu1 %v3891_v6  ;;  %v4572_v5 = vld [vmem:[%s4144_s27 + $0x1b0] ss:$8 sps:$4 sm:$0xff]   ;;  %v4575_v6 = vld [vmem:[%s4144_s27 + $0x1c4] ss:$8 sps:$4 sm:$0xff]  }
  0x7d   : >> { %1590 = vmatprep.subr.bf16.mxu0 %v4043_v2  ;;  %1892 = vmatprep.subr.bf16.mxu1 %v4043_v2 }
  0x7f   : >> { %1023 = vmatmul.mubr.bf16.gmra.mrb[36].mxu0 %v3869_v57  ;;  %1325 = vmatmul.mubr.bf16.gmra.mrb[36].mxu1 %v4350_v7  ;;  %v3959_v57 = vld [vmem:[%s4963_s1 + $0x1e8] sm:$0xff]  }
  0x80   : >> { %3314 = vmatprep.mubr.msk.bf16.mxu0 %vm424_vm0, %v3872_v58  ;;  %3383 = vmatprep.mubr.msk.bf16.mxu1 %vm424_vm0, %v4354_v8  ;;  %v3960_v58 = vld [vmem:[%s4963_s1 + $0x230] sm:$0xff]  }
  0x81   : >> { %1591 = vmatpush1.bf16.msra.mxu0 %v3895_v9  ;;  %1893 = vmatpush1.bf16.msra.mxu1 %v3896_v10  ;;  %v4588_v9 = vld [vmem:[%s4144_s27 + $0x1d4] ss:$8 sps:$4 sm:$0xff]   ;;  %v3973_v10 = vld [vmem:[%s4963_s1 + $0x248] sm:$0xff]  }
  0x82   : >> { %1592 = vmatprep.subr.bf16.mxu0 %v4043_v2  ;;  %1894 = vmatprep.subr.bf16.mxu1 %v4043_v2 }
  0x85   : >> { %1593 = vmatpush1.bf16.msra.mxu0 %v3899_v11  ;;  %1895 = vmatpush1.bf16.msra.mxu1 %v3900_v13  ;;  %v4600_v11 = vld [vmem:[%s4144_s27 + $0x1d0] ss:$8 sps:$4 sm:$0xff]  }
  0x86   : >> { %1594 = vmatprep.subr.bf16.mxu0 %v4043_v2  ;;  %1896 = vmatprep.subr.bf16.mxu1 %v4043_v2  ;;  %v3977_v13 = vld [vmem:[%s4963_s1 + $0x250] sm:$0xff]  }
  0x87   : >> { %1031 = vmatmul.mubr.bf16.gmra.mrb[40].mxu0 %v3874_v59  ;;  %1333 = vmatmul.mubr.bf16.gmra.mrb[40].mxu1 %v4372_v12  ;;  %v3948_v59 = vld [vmem:[%s4144_s27 + $0x180] ss:$8 sps:$4 sm:$0xff]  }
  0x88   : >> { %3315 = vmatprep.mubr.msk.bf16.mxu0 %vm424_vm0, %v3877_v60  ;;  %3384 = vmatprep.mubr.msk.bf16.mxu1 %vm424_vm0, %v3897_v14  ;;  %v3951_v60 = vld [vmem:[%s4144_s27 + $0x194] ss:$8 sps:$4 sm:$0xff]  }
  0x89   : >> { %1595 = vmatpush1.bf16.msra.mxu0 %v3902_v15  ;;  %1897 = vmatpush1.bf16.msra.mxu1 %v3903_v16  ;;  %v4620_v15 = vld [vmem:[%s4144_s27 + $0x1e0] ss:$8 sps:$4 sm:$0xff]   ;;  %v4623_v16 = vld [vmem:[%s4144_s27 + $0x1f4] ss:$8 sps:$4 sm:$0xff]  }
  0x8a   : >> { %1596 = vmatprep.subr.bf16.mxu0 %v4043_v2  ;;  %1898 = vmatprep.subr.bf16.mxu1 %v4043_v2 }
  0x8d   : >> { %1597 = vmatpush1.bf16.msra.mxu0 %v3907_v17  ;;  %1899 = vmatpush1.bf16.msra.mxu1 %v3908_v18  ;;  %v3982_v17 = vld [vmem:[%s4963_s1 + $0x260] sm:$0xff]   ;;  %v3986_v18 = vld [vmem:[%s4963_s1 + $0x268] sm:$0xff]  }
  0x8e   : >> { %1598 = vmatprep.subr.bf16.mxu0 %v4043_v2  ;;  %1900 = vmatprep.subr.bf16.mxu1 %v4043_v2 }
  0x8f   : >> { %1039 = vmatmul.mubr.bf16.gmra.mrb[44].mxu0 %v3879_v61  ;;  %1341 = vmatmul.mubr.bf16.gmra.mrb[44].mxu1 %v3901_v19  ;;  %v3964_v61 = vld [vmem:[%s4963_s1 + $0x1f0] sm:$0xff]  }
  0x90   : >> { %3316 = vmatprep.mubr.msk.bf16.mxu0 %vm424_vm0, %v4321_v62  ;;  %3385 = vmatprep.mubr.msk.bf16.mxu1 %vm424_vm0, %v3904_v20  ;;  %v3965_v62 = vld [vmem:[%s4963_s1 + $0x238] sm:$0xff]  }
  0x91   : >> { %1599 = vmatpush1.bf16.msra.mxu0 %v3912_v21  ;;  %1901 = vmatpush1.bf16.msra.mxu1 %v3913_v22 }
  0x92   : >> { %1600 = vmatprep.subr.bf16.mxu0 %v4043_v2  ;;  %1902 = vmatprep.subr.bf16.mxu1 %v4043_v2 }
  0x95   : >> { %1601 = vmatpush1.bf16.msra.mxu0 %v3917_v23  ;;  %1903 = vmatpush1.bf16.msra.mxu1 %v3918_v24 }
  0x96   : >> { %1602 = vmatprep.subr.bf16.mxu0 %v4043_v2  ;;  %1904 = vmatprep.subr.bf16.mxu1 %v4043_v2 }
  0x97   : >> { %1047 = vmatmul.mubr.bf16.gmra.mrb[48].mxu0 %v4327_v63  ;;  %1349 = vmatmul.mubr.bf16.gmra.mrb[48].mxu1 %v3906_v25  ;;  %v3953_v63 = vld [vmem:[%s4144_s27 + $0x190] ss:$8 sps:$4 sm:$0xff]  }
  0x98   : >> { %3317 = vmatprep.mubr.msk.bf16.mxu0 %vm424_vm0, %v4336_v4  ;;  %3386 = vmatprep.mubr.msk.bf16.mxu1 %vm424_vm0, %v3909_v26  ;;  %v3961_v4 = vld [vmem:[%s4144_s27 + $0x1b4] ss:$8 sps:$4 sm:$0xff]  }
  0x99   : >> { %1603 = vmatpush1.bf16.msra.mxu0 %v3922_v27  ;;  %1905 = vmatpush1.bf16.msra.mxu1 %v3923_v28  ;;  %v4645_v28 = vld [vmem:[%s4144_s27 + $0x204] ss:$8 sps:$4 sm:$0xff]  }
  0x9a   : >> { %2190 = vmatprep.subr.bf16.mxu0 %v4043_v2  ;;  %2492 = vmatprep.subr.bf16.mxu1 %v4043_v2 }
  0x9f   : >> { %1055 = vmatmul.mubr.bf16.gmra.mrb[52].mxu0 %v4350_v7  ;;  %1357 = vmatmul.mubr.bf16.gmra.mrb[52].mxu1 %v3911_v29  ;;  %v4582_v7 = vld [vmem:[%s4144_s27 + $0x1c0] ss:$8 sps:$4 sm:$0xff]  }
  0xa0   : >> { %3318 = vmatprep.mubr.msk.bf16.mxu0 %vm424_vm0, %v4354_v8  ;;  %3387 = vmatprep.mubr.msk.bf16.mxu1 %vm424_vm0, %v3914_v30  ;;  %v3969_v8 = vld [vmem:[%s4963_s1 + $0x240] sm:$0xff]  }
  0xa7   : >> { %1063 = vmatmul.mubr.bf16.gmra.mrb[56].mxu0 %v4372_v12  ;;  %1365 = vmatmul.mubr.bf16.gmra.mrb[56].mxu1 %v3916_v31  ;;  %v4603_v12 = vld [vmem:[%s4144_s27 + $0x1e4] ss:$8 sps:$4 sm:$0xff]  }
  0xa8   : >> { %3319 = vmatprep.mubr.msk.bf16.mxu0 %vm424_vm0, %v3897_v14  ;;  %3388 = vmatprep.mubr.msk.bf16.mxu1 %vm424_vm0, %v3919_v32  ;;  %v3980_v14 = vld [vmem:[%s4963_s1 + $0x258] sm:$0xff]  }
  0xaf   : >> { %1071 = vmatmul.mubr.bf16.gmra.mrb[60].mxu0 %v3901_v19  ;;  %1373 = vmatmul.mubr.bf16.gmra.mrb[60].mxu1 %v3921_v33 }
  0xb0   : >> { %3450 = vmatprep.mubr.msk.bf16.mxu0 %vm424_vm0, %v3904_v20  ;;  %3519 = vmatprep.mubr.msk.bf16.mxu1 %vm424_vm0, %v4449_v34 }
  0xb7   : >> { %1619 = vmatmul.mubr.bf16.vlgmr.msra.gmra.mrb[64].mxu0 %v3906_v25  ;;  %1921 = vmatmul.mubr.bf16.vlgmr.msra.gmra.mrb[64].mxu1 %v4455_v35  ;;  %v4642_v25 = vld [vmem:[%s4144_s27 + $0x1f0] ss:$8 sps:$4 sm:$0xff]  }
  0xb8   : >> { %2191 = vmatpush1.bf16.msra.mxu0 %v3927_v36  ;;  %2493 = vmatpush1.bf16.msra.mxu1 %v3928_v37 }
  0xb9   : >> { %3451 = vmatprep.mubr.msk.bf16.mxu0 %vm424_vm0, %v3909_v26  ;;  %3520 = vmatprep.mubr.msk.bf16.mxu1 %vm424_vm0, %v4464_v38 }
  0xba   : >> { %2192 = vmatprep.subr.bf16.mxu0 %v4043_v2  ;;  %2494 = vmatprep.subr.bf16.mxu1 %v4043_v2 }
  0xbc   : >> { %2193 = vmatpush1.bf16.msra.mxu0 %v3932_v39  ;;  %2495 = vmatpush1.bf16.msra.mxu1 %v3933_v40  ;;  %v4668_v39 = vld [vmem:[%s4144_s27 + $0x200] ss:$8 sps:$4 sm:$0xff]  }
  0xbd   : >> { %2194 = vmatprep.subr.bf16.mxu0 %v4043_v2  ;;  %2496 = vmatprep.subr.bf16.mxu1 %v4043_v2 }
  0xbf   : >> { %1627 = vmatmul.mubr.bf16.gmra.mrb[68].mxu0 %v3911_v29  ;;  %1929 = vmatmul.mubr.bf16.gmra.mrb[68].mxu1 %v4479_v41  ;;  %v3990_v29 = vld [vmem:[%s4963_s1 + $0x270] sm:$0xff]  }
  0xc0   : >> { %3452 = vmatprep.mubr.msk.bf16.mxu0 %vm424_vm0, %v3914_v30  ;;  %3521 = vmatprep.mubr.msk.bf16.mxu1 %vm424_vm0, %v4482_v42 }
  0xc1   : >> { %2195 = vmatpush1.bf16.msra.mxu0 %v3937_v43  ;;  %2497 = vmatpush1.bf16.msra.mxu1 %v3938_v44  ;;  %v3998_v43 = vld [vmem:[%s4963_s1 + $0x280] sm:$0xff]  }
  0xc2   : >> { %2196 = vmatprep.subr.bf16.mxu0 %v4043_v2  ;;  %2498 = vmatprep.subr.bf16.mxu1 %v4043_v2 }
  0xc5   : >> { %2197 = vmatpush1.bf16.msra.mxu0 %v3941_v45  ;;  %2499 = vmatpush1.bf16.msra.mxu1 %v3942_v46 }
  0xc6   : >> { %2198 = vmatprep.subr.bf16.mxu0 %v4043_v2  ;;  %2500 = vmatprep.subr.bf16.mxu1 %v4043_v2 }
  0xc7   : >> { %1635 = vmatmul.mubr.bf16.gmra.mrb[72].mxu0 %v3916_v31  ;;  %1937 = vmatmul.mubr.bf16.gmra.mrb[72].mxu1 %v3936_v47 }
  0xc8   : >> { %3453 = vmatprep.mubr.msk.bf16.mxu0 %vm424_vm0, %v3919_v32  ;;  %3522 = vmatprep.mubr.msk.bf16.mxu1 %vm424_vm0, %v3939_v48  ;;  %v3994_v32 = vld [vmem:[%s4963_s1 + $0x278] sm:$0xff]  }
  0xc9   : >> { %2199 = vmatpush1.bf16.msra.mxu0 %v3944_v49  ;;  %2501 = vmatpush1.bf16.msra.mxu1 %v3945_v50 }
  0xca   : >> { %2200 = vmatprep.subr.bf16.mxu0 %v4043_v2  ;;  %2502 = vmatprep.subr.bf16.mxu1 %v4043_v2 }
  0xcd   : >> { %2201 = vmatpush1.bf16.msra.mxu0 %v3949_v51  ;;  %2503 = vmatpush1.bf16.msra.mxu1 %v3950_v52  ;;  %v4689_v52 = vld [vmem:[%s4144_s27 + $0x210] ss:$8 sps:$4 sm:$0xff]  }
  0xce   : >> { %2202 = vmatprep.subr.bf16.mxu0 %v4043_v2  ;;  %2504 = vmatprep.subr.bf16.mxu1 %v4043_v2 }
  0xcf   : >> { %1643 = vmatmul.mubr.bf16.gmra.mrb[76].mxu0 %v3921_v33  ;;  %1945 = vmatmul.mubr.bf16.gmra.mrb[76].mxu1 %v3943_v53 }
  0xd0   : >> { %3454 = vmatprep.mubr.msk.bf16.mxu0 %vm424_vm0, %v4449_v34  ;;  %3523 = vmatprep.mubr.msk.bf16.mxu1 %vm424_vm0, %v3946_v54 }
  0xd1   : >> { %2203 = vmatpush1.bf16.msra.mxu0 %v3954_v55  ;;  %2505 = vmatpush1.bf16.msra.mxu1 %v3955_v56 }
  0xd2   : >> { %2204 = vmatprep.subr.bf16.mxu0 %v4043_v2  ;;  %2506 = vmatprep.subr.bf16.mxu1 %v4043_v2 }
  0xd5   : >> { %2205 = vmatpush1.bf16.msra.mxu0 %v3959_v57  ;;  %2507 = vmatpush1.bf16.msra.mxu1 %v3960_v58 }
  0xd6   : >> { %2206 = vmatprep.subr.bf16.mxu0 %v4043_v2  ;;  %2508 = vmatprep.subr.bf16.mxu1 %v4043_v2 }
  0xd7   : >> { %1651 = vmatmul.mubr.bf16.gmra.mrb[80].mxu0 %v4455_v35  ;;  %1953 = vmatmul.mubr.bf16.gmra.mrb[80].mxu1 %v3948_v59 }
  0xd8   : >> { %3455 = vmatprep.mubr.msk.bf16.mxu0 %vm424_vm0, %v4464_v38  ;;  %3524 = vmatprep.mubr.msk.bf16.mxu1 %vm424_vm0, %v3951_v60 }
  0xd9   : >> { %2207 = vmatpush1.bf16.msra.mxu0 %v3964_v61  ;;  %2509 = vmatpush1.bf16.msra.mxu1 %v3965_v62 }
  0xda   : >> { %2794 = vmatprep.subr.bf16.mxu0 %v4043_v2  ;;  %3758 = vmatprep.subr.bf16.mxu1 %v4043_v2 }
  0xdf   : >> { %1659 = vmatmul.mubr.bf16.gmra.mrb[84].mxu0 %v4479_v41  ;;  %1961 = vmatmul.mubr.bf16.gmra.mrb[84].mxu1 %v3953_v63 }
  0xe0   : >> { %3456 = vmatprep.mubr.msk.bf16.mxu0 %vm424_vm0, %v4482_v42  ;;  %3525 = vmatprep.mubr.msk.bf16.mxu1 %vm424_vm0, %v3956_v1  ;;  %v4671_v42 = vld [vmem:[%s4144_s27 + $0x214] ss:$8 sps:$4 sm:$0xff]  }
  0xe7   : >> { %1667 = vmatmul.mubr.bf16.gmra.mrb[88].mxu0 %v3936_v47  ;;  %1969 = vmatmul.mubr.bf16.gmra.mrb[88].mxu1 %v3958_v3 }
  0xe8   : >> { %3457 = vmatprep.mubr.msk.bf16.mxu0 %vm424_vm0, %v3939_v48  ;;  %3526 = vmatprep.mubr.msk.bf16.mxu1 %vm424_vm0, %v3961_v4 }
  0xef   : >> { %1675 = vmatmul.mubr.bf16.gmra.mrb[92].mxu0 %v3943_v53  ;;  %1977 = vmatmul.mubr.bf16.gmra.mrb[92].mxu1 %v4572_v5 }
  0xf0   : >> { %3588 = vmatprep.mubr.msk.bf16.mxu0 %vm424_vm0, %v3946_v54  ;;  %3657 = vmatprep.mubr.msk.bf16.mxu1 %vm424_vm0, %v4575_v6  ;;  %v4692_v54 = vld [vmem:[%s4144_s27 + $0x224] ss:$8 sps:$4 sm:$0xff]  }
  0xf7   : >> { %2223 = vmatmul.mubr.bf16.vlgmr.msra.gmra.mrb[96].mxu0 %v3948_v59  ;;  %2525 = vmatmul.mubr.bf16.vlgmr.msra.gmra.mrb[96].mxu1 %v4582_v7 }
  0xf8   : >> { %2795 = vmatpush1.bf16.msra.mxu0 %v3969_v8  ;;  %3767 = vmatpush1.bf16.msra.mxu1 %v3969_v8 }
  0xf9   : >> { %3589 = vmatprep.mubr.msk.bf16.mxu0 %vm424_vm0, %v3951_v60  ;;  %3658 = vmatprep.mubr.msk.bf16.mxu1 %vm424_vm0, %v4588_v9 }
  0xfa   : >> { %2796 = vmatprep.subr.bf16.mxu0 %v4043_v2  ;;  %3759 = vmatprep.subr.bf16.mxu1 %v4043_v2 }
  0xfc   : >> { %2797 = vmatpush1.bf16.msra.mxu0 %v3973_v10  ;;  %3768 = vmatpush1.bf16.msra.mxu1 %v3973_v10 }
  0xfd   : >> { %2798 = vmatprep.subr.bf16.mxu0 %v4043_v2  ;;  %3760 = vmatprep.subr.bf16.mxu1 %v4043_v2 }
  0xff   : >> { %2231 = vmatmul.mubr.bf16.gmra.mrb[100].mxu0 %v3953_v63  ;;  %2533 = vmatmul.mubr.bf16.gmra.mrb[100].mxu1 %v4600_v11  ;;  %v4705_v63 = vld [vmem:[%s4144_s27 + $0x220] ss:$8 sps:$4 sm:$0xff]  }
 0x100   : >> { %3590 = vmatprep.mubr.msk.bf16.mxu0 %vm424_vm0, %v3956_v1  ;;  %3659 = vmatprep.mubr.msk.bf16.mxu1 %vm424_vm0, %v4603_v12 }
 0x101   : >> { %2799 = vmatpush1.bf16.msra.mxu0 %v3977_v13  ;;  %3769 = vmatpush1.bf16.msra.mxu1 %v3977_v13  ;;  %v4721_v13 = vld [vmem:[%s4144_s27 + $0x230] ss:$8 sps:$4 sm:$0xff]  }
 0x102   : >> { %2800 = vmatprep.subr.bf16.mxu0 %v4043_v2  ;;  %3761 = vmatprep.subr.bf16.mxu1 %v4043_v2 }
 0x105   : >> { %2801 = vmatpush1.bf16.msra.mxu0 %v3980_v14  ;;  %3770 = vmatpush1.bf16.msra.mxu1 %v3980_v14 }
 0x106   : >> { %2802 = vmatprep.subr.bf16.mxu0 %v4043_v2  ;;  %3762 = vmatprep.subr.bf16.mxu1 %v4043_v2 }
 0x107   : >> { %2239 = vmatmul.mubr.bf16.gmra.mrb[104].mxu0 %v3958_v3  ;;  %2541 = vmatmul.mubr.bf16.gmra.mrb[104].mxu1 %v4620_v15 }
 0x108   : >> { %3591 = vmatprep.mubr.msk.bf16.mxu0 %vm424_vm0, %v3961_v4  ;;  %3660 = vmatprep.mubr.msk.bf16.mxu1 %vm424_vm0, %v4623_v16  ;;  %v4708_v4 = vld [vmem:[%s4144_s27 + $0x234] ss:$8 sps:$4 sm:$0xff]  }
 0x109   : >> { %2803 = vmatpush1.bf16.msra.mxu0 %v3982_v17  ;;  %3771 = vmatpush1.bf16.msra.mxu1 %v3982_v17  ;;  %v4001_v17 = vld [vmem:[%s4144_s27 + $0x244] ss:$8 sps:$4 sm:$0xff]  }
 0x10a   : >> { %v483_v19 = vpop.f32.mrb[0].mxu0  ;;  %2804 = vmatprep.subr.bf16.mxu0 %v4043_v2  ;;  %v730_v20 = vpop.f32.mrb[0].mxu1  ;;  %3763 = vmatprep.subr.bf16.mxu1 %v4043_v2 }
 0x10b   : >> { %v485_v21 = vpop.f32.mrb[1].mxu0  ;;  %v4639_v22 = vadd.f32 %v730_v20, %v483_v19  ;;  %v732_v23 = vpop.f32.mrb[1].mxu1 }
 0x10c   : >> { %v486_v24 = vpop.f32.mrb[2].mxu0  ;;  %v733_v26 = vpop.f32.mrb[2].mxu1 }
 0x10d   : >> { %v488_v27 = vpop.f32.mrb[3].mxu0  ;;  %2805 = vmatpush1.bf16.msra.mxu0 %v3986_v18  ;;  %v4650_v30 = vadd.f32 %v733_v26, %v486_v24  ;;  %v735_v31 = vpop.f32.mrb[3].mxu1  ;;  %3772 = vmatpush1.bf16.msra.mxu1 %v3986_v18 }
 0x10e   : >> { %2806 = vmatprep.subr.bf16.mxu0 %v4043_v2  ;;  %3764 = vmatprep.subr.bf16.mxu1 %v4043_v2  ;;  %v3999_v27 = vld [vmem:[%s4144_s27 + $0x240] ss:$8 sps:$4 sm:$0xff]  }
 0x10f   : >> { %2247 = vmatmul.mubr.bf16.gmra.mrb[108].mxu0 %v4572_v5  ;;  %2549 = vmatmul.mubr.bf16.gmra.mrb[108].mxu1 %v4642_v25 }
 0x110   : >> { %3592 = vmatprep.mubr.msk.bf16.mxu0 %vm424_vm0, %v4575_v6  ;;  %3661 = vmatprep.mubr.msk.bf16.mxu1 %vm424_vm0, %v4645_v28 }
 0x111   : >> { %2807 = vmatpush1.bf16.msra.mxu0 %v3990_v29  ;;  %3773 = vmatpush1.bf16.msra.mxu1 %v3990_v29 }
 0x112   : >> { %v491_v33 = vpop.f32.mrb[4].mxu0  ;;  %2808 = vmatprep.subr.bf16.mxu0 %v4043_v2  ;;  %v738_v34 = vpop.f32.mrb[4].mxu1  ;;  %3765 = vmatprep.subr.bf16.mxu1 %v4043_v2 }
 0x113   : >> { %v493_v35 = vpop.f32.mrb[5].mxu0  ;;  %v4665_v36 = vadd.f32 %v738_v34, %v491_v33  ;;  %v740_v37 = vpop.f32.mrb[5].mxu1 }
 0x114   : >> { %v494_v38 = vpop.f32.mrb[6].mxu0  ;;  %v741_v40 = vpop.f32.mrb[6].mxu1 }
 0x115   : >> { %v496_v41 = vpop.f32.mrb[7].mxu0  ;;  %2809 = vmatpush1.bf16.msra.mxu0 %v3994_v32  ;;  %v4676_v44 = vadd.f32 %v741_v40, %v494_v38  ;;  %v743_v45 = vpop.f32.mrb[7].mxu1  ;;  %3774 = vmatpush1.bf16.msra.mxu1 %v3994_v32  ;;  %v4002_v32 = vld [vmem:[%s4144_s27 + $0x254] ss:$8 sps:$4 sm:$0xff]  }
 0x116   : >> { %2810 = vmatprep.subr.bf16.mxu0 %v4043_v2  ;;  %3766 = vmatprep.subr.bf16.mxu1 %v4043_v2  ;;  %v4004_v41 = vld [vmem:[%s4144_s27 + $0x250] ss:$8 sps:$4 sm:$0xff]  }
 0x117   : >> { %2255 = vmatmul.mubr.bf16.gmra.mrb[112].mxu0 %v4582_v7  ;;  %2557 = vmatmul.mubr.bf16.gmra.mrb[112].mxu1 %v4668_v39 }
 0x118   : >> { %3593 = vmatprep.mubr.msk.bf16.mxu0 %vm424_vm0, %v4588_v9  ;;  %3662 = vmatprep.mubr.msk.bf16.mxu1 %vm424_vm0, %v4671_v42 }
 0x119   : >> { %2811 = vmatpush1.bf16.msra.mxu0 %v3998_v43  ;;  %3775 = vmatpush1.bf16.msra.mxu1 %v3998_v43 }
 0x11a   : >> { %v499_v46 = vpop.f32.mrb[8].mxu0  ;;  %v746_v47 = vpop.f32.mrb[8].mxu1 }
 0x11b   : >> { %v501_v48 = vpop.f32.mrb[9].mxu0  ;;  %v4686_v49 = vadd.f32 %v746_v47, %v499_v46  ;;  %v748_v50 = vpop.f32.mrb[9].mxu1  ;;  %v4005_v46 = vld [vmem:[%s4144_s27 + $0x264] ss:$8 sps:$4 sm:$0xff]  }
 0x11c   : >> { %v502_v51 = vpop.f32.mrb[10].mxu0  ;;  %v749_v2 = vpop.f32.mrb[10].mxu1 }
 0x11d   : >> { %v504_v53 = vpop.f32.mrb[11].mxu0  ;;  %v4694_v55 = vadd.f32 %v749_v2, %v502_v51  ;;  %v751_v56 = vpop.f32.mrb[11].mxu1 }
 0x11e   : >> { %v4007_v56 = vld [vmem:[%s4144_s27 + $0x260] ss:$8 sps:$4 sm:$0xff]  }
 0x11f   : >> { %2263 = vmatmul.mubr.bf16.gmra.mrb[116].mxu0 %v4600_v11  ;;  %2565 = vmatmul.mubr.bf16.gmra.mrb[116].mxu1 %v4689_v52 }
 0x120   : >> { %3594 = vmatprep.mubr.msk.bf16.mxu0 %vm424_vm0, %v4603_v12  ;;  %3663 = vmatprep.mubr.msk.bf16.mxu1 %vm424_vm0, %v4692_v54 }
 0x122   : >> { %v507_v57 = vpop.f32.mrb[12].mxu0  ;;  %v754_v58 = vpop.f32.mrb[12].mxu1 }
 0x123   : >> { %v509_v59 = vpop.f32.mrb[13].mxu0  ;;  %v4702_v60 = vadd.f32 %v754_v58, %v507_v57  ;;  %v756_v61 = vpop.f32.mrb[13].mxu1 }
 0x124   : >> { %v510_v62 = vpop.f32.mrb[14].mxu0  ;;  %v757_v1 = vpop.f32.mrb[14].mxu1  ;;  %v4008_v59 = vld [vmem:[%s4144_s27 + $0x274] ss:$8 sps:$4 sm:$0xff]  }
 0x125   : >> { %v512_v3 = vpop.f32.mrb[15].mxu0  ;;  %v4710_v5 = vadd.f32 %v757_v1, %v510_v62  ;;  %v759_v6 = vpop.f32.mrb[15].mxu1 }
 0x127   : >> { %2271 = vmatmul.mubr.bf16.gmra.mrb[120].mxu0 %v4620_v15  ;;  %2573 = vmatmul.mubr.bf16.gmra.mrb[120].mxu1 %v4705_v63 }
 0x128   : >> { %3595 = vmatprep.mubr.msk.bf16.mxu0 %vm424_vm0, %v4623_v16  ;;  %3664 = vmatprep.mubr.msk.bf16.mxu1 %vm424_vm0, %v4708_v4 }
 0x12a   : >> { %v515_v7 = vpop.f32.mrb[16].mxu0  ;;  %v762_v8 = vpop.f32.mrb[16].mxu1 }
 0x12b   : >> { %v517_v9 = vpop.f32.mrb[17].mxu0  ;;  %v4718_v10 = vadd.f32 %v762_v8, %v515_v7  ;;  %v764_v11 = vpop.f32.mrb[17].mxu1  ;;  %v4010_v8 = vld [vmem:[%s4144_s27 + $0x270] ss:$8 sps:$4 sm:$0xff]   ;;  %s3735_s27 = sshll.u32 %s4041_s26, 5  ;;  %s220_s26 = sadd.s32 1, %s4041_s26  }
 0x12c   : >> { %v518_v12 = vpop.f32.mrb[18].mxu0  ;;  %v765_v14 = vpop.f32.mrb[18].mxu1  ;;  %s2998_s30 = sshra.s32 %s3735_s27, 3  ;;  %p217_p5 = scmp.ge.s32.totalorder %s220_s26, 32  }
 0x12d   : >> { %v520_v15 = vpop.f32.mrb[19].mxu0  ;;  %v4724_v18 = vadd.f32 %v765_v14, %v518_v12  ;;  %v767_v16 = vpop.f32.mrb[19].mxu1  ;;  %s3740_s4 = sshll.u32 %s2998_s30, 2 }
 0x12e   : >> { %s4926_s5 = scalar_lea.vmem %s4090_s22, %s3740_s4 }
 0x12f   : >> { %2279 = vmatmul.mubr.bf16.gmra.mrb[124].mxu0 %v4642_v25  ;;  %2581 = vmatmul.mubr.bf16.gmra.mrb[124].mxu1 %v4721_v13 }
 0x130   : >> { %3726 = vmatprep.mubr.msk.bf16.mxu0 %vm424_vm0, %v4645_v28  ;;  %3730 = vmatprep.mubr.msk.bf16.mxu1 %vm424_vm0, %v4001_v17 }
 0x132   : >> { %v523_v19 = vpop.f32.mrb[20].mxu0  ;;  %v770_v20 = vpop.f32.mrb[20].mxu1 }
 0x133   : >> { %v525_v21 = vpop.f32.mrb[21].mxu0  ;;  %v4731_v23 = vadd.f32 %v770_v20, %v523_v19  ;;  %v772_v24 = vpop.f32.mrb[21].mxu1 }
 0x134   : >> { %v526_v26 = vpop.f32.mrb[22].mxu0  ;;  %v773_v29 = vpop.f32.mrb[22].mxu1 }
 0x135   : >> { %v528_v31 = vpop.f32.mrb[23].mxu0  ;;  %v4735_v25 = vadd.f32 %v773_v29, %v526_v26  ;;  %v775_v33 = vpop.f32.mrb[23].mxu1 }
 0x137   : >> { %2827 = vmatmul.mubr.bf16.vlgmr.msra.gmra.mrb[128].mxu0 %v4668_v39  ;;  %2859 = vmatmul.mubr.bf16.vlgmr.msra.gmra.mrb[128].mxu1 %v3999_v27 }
 0x138   : >> { %3727 = vmatprep.mubr.msk.bf16.mxu0 %vm424_vm0, %v4671_v42  ;;  %3731 = vmatprep.mubr.msk.bf16.mxu1 %vm424_vm0, %v4002_v32 }
 0x13a   : >> { %v531_v28 = vpop.f32.mrb[24].mxu0  ;;  %v778_v34 = vpop.f32.mrb[24].mxu1 }
 0x13b   : >> { %v533_v35 = vpop.f32.mrb[25].mxu0  ;;  %v4741_v37 = vadd.f32 %v778_v34, %v531_v28  ;;  %v780_v38 = vpop.f32.mrb[25].mxu1 }
 0x13c   : >> { %v534_v40 = vpop.f32.mrb[26].mxu0  ;;  %v781_v43 = vpop.f32.mrb[26].mxu1 }
 0x13d   : >> { %v536_v45 = vpop.f32.mrb[27].mxu0  ;;  %v4745_v39 = vadd.f32 %v781_v43, %v534_v40  ;;  %v783_v47 = vpop.f32.mrb[27].mxu1 }
 0x13f   : >> { %2835 = vmatmul.mubr.bf16.gmra.mrb[132].mxu0 %v4689_v52  ;;  %2867 = vmatmul.mubr.bf16.gmra.mrb[132].mxu1 %v4004_v41 }
 0x140   : >> { %3728 = vmatprep.mubr.msk.bf16.mxu0 %vm424_vm0, %v4692_v54  ;;  %3732 = vmatprep.mubr.msk.bf16.mxu1 %vm424_vm0, %v4005_v46 }
 0x142   : >> { %v539_v42 = vpop.f32.mrb[28].mxu0  ;;  %v786_v48 = vpop.f32.mrb[28].mxu1 }
 0x143   : >> { %v541_v50 = vpop.f32.mrb[29].mxu0  ;;  %v4751_v51 = vadd.f32 %v786_v48, %v539_v42  ;;  %v788_v2 = vpop.f32.mrb[29].mxu1 }
 0x144   : >> { %v542_v53 = vpop.f32.mrb[30].mxu0  ;;  %v789_v57 = vpop.f32.mrb[30].mxu1 }
 0x145   : >> { %v544_v58 = vpop.f32.mrb[31].mxu0  ;;  %v4755_v61 = vadd.f32 %v789_v57, %v542_v53  ;;  %v791_v52 = vpop.f32.mrb[31].mxu1 }
 0x147   : >> { %2843 = vmatmul.mubr.bf16.gmra.mrb[136].mxu0 %v4705_v63  ;;  %2875 = vmatmul.mubr.bf16.gmra.mrb[136].mxu1 %v4007_v56 }
 0x148   : >> { %3729 = vmatprep.mubr.msk.bf16.mxu0 %vm424_vm0, %v4708_v4  ;;  %3733 = vmatprep.mubr.msk.bf16.mxu1 %vm424_vm0, %v4008_v59 }
 0x14a   : >> { %v1016_v54 = vpop.f32.mrb[32].mxu0  ;;  %v1318_v1 = vpop.f32.mrb[32].mxu1 }
 0x14b   : >> { %v1079_v62 = vadd.f32 %v1016_v54, %v4639_v22  ;;  %v1018_v3 = vpop.f32.mrb[33].mxu0  ;;  %v1320_v6 = vpop.f32.mrb[33].mxu1 }
 0x14c   : >> { %v1019_v7 = vpop.f32.mrb[34].mxu0  ;;  %v1321_v12 = vpop.f32.mrb[34].mxu1 }
 0x14d   : >> { %v4763_v9 = vadd.f32 %v1318_v1, %v1079_v62  ;;  %v1080_v11 = vadd.f32 %v1019_v7, %v4650_v30  ;;  %v1021_v63 = vpop.f32.mrb[35].mxu0  ;;  %v1323_v14 = vpop.f32.mrb[35].mxu1 }
 0x14f   : >> { %v4766_v15 = vadd.f32 %v1321_v12, %v1080_v11  ;;  %2851 = vmatmul.mubr.bf16.gmra.mrb[140].mxu0 %v4721_v13  ;;  %2883 = vmatmul.mubr.bf16.gmra.mrb[140].mxu1 %v4010_v8 }
 0x152   : >> { %v1024_v4 = vpop.f32.mrb[36].mxu0  ;;  %v1326_v17 = vpop.f32.mrb[36].mxu1 }
 0x153   : >> { %v1081_v22 = vadd.f32 %v1024_v4, %v4665_v36  ;;  %v1026_v16 = vpop.f32.mrb[37].mxu0  ;;  %v1328_v19 = vpop.f32.mrb[37].mxu1 }
 0x154   : >> { %v1027_v20 = vpop.f32.mrb[38].mxu0  ;;  %v1329_v30 = vpop.f32.mrb[38].mxu1 }
 0x155   : >> { %v4770_v21 = vadd.f32 %v1326_v17, %v1081_v22  ;;  %v1082_v24 = vadd.f32 %v1027_v20, %v4676_v44  ;;  %v1029_v26 = vpop.f32.mrb[39].mxu0  ;;  %v1331_v27 = vpop.f32.mrb[39].mxu1 }
 0x157   : >> { %v4773_v29 = vadd.f32 %v1329_v30, %v1082_v24 }
 0x15a   : >> { %v1032_v31 = vpop.f32.mrb[40].mxu0  ;;  %v1334_v32 = vpop.f32.mrb[40].mxu1 }
 0x15b   : >> { %v1083_v13 = vadd.f32 %v1032_v31, %v4686_v49  ;;  %v1034_v33 = vpop.f32.mrb[41].mxu0  ;;  %v1336_v28 = vpop.f32.mrb[41].mxu1 }
 0x15c   : >> { %v1035_v36 = vpop.f32.mrb[42].mxu0  ;;  %v1337_v38 = vpop.f32.mrb[42].mxu1 }
 0x15d   : >> { %v4776_v34 = vadd.f32 %v1334_v32, %v1083_v13  ;;  %v1084_v35 = vadd.f32 %v1035_v36, %v4694_v55  ;;  %v1037_v40 = vpop.f32.mrb[43].mxu0  ;;  %v1339_v41 = vpop.f32.mrb[43].mxu1 }
 0x15f   : >> { %v4779_v44 = vadd.f32 %v1337_v38, %v1084_v35 }
 0x162   : >> { %v1040_v43 = vpop.f32.mrb[44].mxu0  ;;  %v1342_v46 = vpop.f32.mrb[44].mxu1 }
 0x163   : >> { %v1085_v45 = vadd.f32 %v1040_v43, %v4702_v60  ;;  %v1042_v47 = vpop.f32.mrb[45].mxu0  ;;  %v1344_v42 = vpop.f32.mrb[45].mxu1 }
 0x164   : >> { %v1043_v49 = vpop.f32.mrb[46].mxu0  ;;  %v1345_v2 = vpop.f32.mrb[46].mxu1 }
 0x165   : >> { %v4782_v48 = vadd.f32 %v1342_v46, %v1085_v45  ;;  %v1086_v50 = vadd.f32 %v1043_v49, %v4710_v5  ;;  %v1045_v53 = vpop.f32.mrb[47].mxu0  ;;  %v1347_v56 = vpop.f32.mrb[47].mxu1 }
 0x167   : >> { %v4785_v55 = vadd.f32 %v1345_v2, %v1086_v50 }
 0x16a   : >> { %v1048_v57 = vpop.f32.mrb[48].mxu0  ;;  %v1350_v59 = vpop.f32.mrb[48].mxu1 }
 0x16b   : >> { %v1087_v58 = vadd.f32 %v1048_v57, %v4718_v10  ;;  %v1050_v52 = vpop.f32.mrb[49].mxu0  ;;  %v1352_v54 = vpop.f32.mrb[49].mxu1 }
 0x16c   : >> { %v1051_v60 = vpop.f32.mrb[50].mxu0  ;;  %v1353_v3 = vpop.f32.mrb[50].mxu1 }
 0x16d   : >> { %v4788_v62 = vadd.f32 %v1350_v59, %v1087_v58  ;;  %v1088_v1 = vadd.f32 %v1051_v60, %v4724_v18  ;;  %v1053_v6 = vpop.f32.mrb[51].mxu0  ;;  %v1355_v7 = vpop.f32.mrb[51].mxu1 }
 0x16f   : >> { %v4791_v5 = vadd.f32 %v1353_v3, %v1088_v1 }
 0x172   : >> { %v1056_v8 = vpop.f32.mrb[52].mxu0  ;;  %v1358_v12 = vpop.f32.mrb[52].mxu1 }
 0x173   : >> { %v1089_v11 = vadd.f32 %v1056_v8, %v4731_v23  ;;  %v1058_v63 = vpop.f32.mrb[53].mxu0  ;;  %v1360_v14 = vpop.f32.mrb[53].mxu1 }
 0x174   : >> { %v1059_v10 = vpop.f32.mrb[54].mxu0  ;;  %v1361_v17 = vpop.f32.mrb[54].mxu1 }
 0x175   : >> { %v4794_v4 = vadd.f32 %v1358_v12, %v1089_v11  ;;  %v1090_v22 = vadd.f32 %v1059_v10, %v4735_v25  ;;  %v1061_v16 = vpop.f32.mrb[55].mxu0  ;;  %v1363_v19 = vpop.f32.mrb[55].mxu1 }
 0x177   : >> { %v4797_v18 = vadd.f32 %v1361_v17, %v1090_v22 }
 0x17a   : >> { %v1064_v20 = vpop.f32.mrb[56].mxu0  ;;  %v1366_v30 = vpop.f32.mrb[56].mxu1 }
 0x17b   : >> { %v1091_v24 = vadd.f32 %v1064_v20, %v4741_v37  ;;  %v1066_v26 = vpop.f32.mrb[57].mxu0  ;;  %v1368_v27 = vpop.f32.mrb[57].mxu1 }
 0x17c   : >> { %v1067_v23 = vpop.f32.mrb[58].mxu0  ;;  %v1369_v32 = vpop.f32.mrb[58].mxu1 }
 0x17d   : >> { %v4800_v31 = vadd.f32 %v1366_v30, %v1091_v24  ;;  %v1092_v13 = vadd.f32 %v1067_v23, %v4745_v39  ;;  %v1069_v33 = vpop.f32.mrb[59].mxu0  ;;  %v1371_v28 = vpop.f32.mrb[59].mxu1 }
 0x17f   : >> { %v4803_v25 = vadd.f32 %v1369_v32, %v1092_v13 }
 0x182   : >> { %v1072_v36 = vpop.f32.mrb[60].mxu0  ;;  %v1374_v38 = vpop.f32.mrb[60].mxu1 }
 0x183   : >> { %v1093_v35 = vadd.f32 %v1072_v36, %v4751_v51  ;;  %v1074_v40 = vpop.f32.mrb[61].mxu0  ;;  %v1376_v41 = vpop.f32.mrb[61].mxu1 }
 0x184   : >> { %v1075_v37 = vpop.f32.mrb[62].mxu0  ;;  %v1377_v46 = vpop.f32.mrb[62].mxu1 }
 0x185   : >> { %v4806_v43 = vadd.f32 %v1374_v38, %v1093_v35  ;;  %v1094_v45 = vadd.f32 %v1075_v37, %v4755_v61  ;;  %v1077_v47 = vpop.f32.mrb[63].mxu0  ;;  %v1379_v42 = vpop.f32.mrb[63].mxu1 }
 0x187   : >> { %v4809_v39 = vadd.f32 %v1377_v46, %v1094_v45 }
 0x18a   : >> { %v1620_v49 = vpop.f32.mrb[64].mxu0  ;;  %v1922_v2 = vpop.f32.mrb[64].mxu1 }
 0x18b   : >> { %v1683_v50 = vadd.f32 %v1620_v49, %v4763_v9  ;;  %v1622_v53 = vpop.f32.mrb[65].mxu0  ;;  %v1924_v56 = vpop.f32.mrb[65].mxu1 }
 0x18c   : >> { %v1623_v51 = vpop.f32.mrb[66].mxu0  ;;  %v1925_v59 = vpop.f32.mrb[66].mxu1 }
 0x18d   : >> { %v4812_v57 = vadd.f32 %v1922_v2, %v1683_v50  ;;  %v1684_v58 = vadd.f32 %v1623_v51, %v4766_v15  ;;  %v1625_v52 = vpop.f32.mrb[67].mxu0  ;;  %v1927_v54 = vpop.f32.mrb[67].mxu1 }
 0x18f   : >> { %v4815_v61 = vadd.f32 %v1925_v59, %v1684_v58 }
 0x192   : >> { %v1628_v60 = vpop.f32.mrb[68].mxu0  ;;  %v1930_v3 = vpop.f32.mrb[68].mxu1 }
 0x193   : >> { %v1685_v1 = vadd.f32 %v1628_v60, %v4770_v21  ;;  %v1630_v6 = vpop.f32.mrb[69].mxu0  ;;  %v1932_v7 = vpop.f32.mrb[69].mxu1 }
 0x194   : >> { %v1631_v9 = vpop.f32.mrb[70].mxu0  ;;  %v1933_v12 = vpop.f32.mrb[70].mxu1 }
 0x195   : >> { %v4818_v8 = vadd.f32 %v1930_v3, %v1685_v1  ;;  %v1686_v11 = vadd.f32 %v1631_v9, %v4773_v29  ;;  %v1633_v63 = vpop.f32.mrb[71].mxu0  ;;  %v1935_v14 = vpop.f32.mrb[71].mxu1 }
 0x197   : >> { %v4821_v15 = vadd.f32 %v1933_v12, %v1686_v11 }
 0x19a   : >> { %v1636_v10 = vpop.f32.mrb[72].mxu0  ;;  %v1938_v17 = vpop.f32.mrb[72].mxu1 }
 0x19b   : >> { %v1687_v22 = vadd.f32 %v1636_v10, %v4776_v34  ;;  %v1638_v16 = vpop.f32.mrb[73].mxu0  ;;  %v1940_v19 = vpop.f32.mrb[73].mxu1 }
 0x19c   : >> { %v1639_v21 = vpop.f32.mrb[74].mxu0  ;;  %v1941_v30 = vpop.f32.mrb[74].mxu1 }
 0x19d   : >> { %v4824_v20 = vadd.f32 %v1938_v17, %v1687_v22  ;;  %v1688_v24 = vadd.f32 %v1639_v21, %v4779_v44  ;;  %v1641_v26 = vpop.f32.mrb[75].mxu0  ;;  %v1943_v27 = vpop.f32.mrb[75].mxu1 }
 0x19f   : >> { %v4827_v29 = vadd.f32 %v1941_v30, %v1688_v24 }
 0x1a2   : >> { %v1644_v23 = vpop.f32.mrb[76].mxu0  ;;  %v1946_v32 = vpop.f32.mrb[76].mxu1 }
 0x1a3   : >> { %v1689_v13 = vadd.f32 %v1644_v23, %v4782_v48  ;;  %v1646_v33 = vpop.f32.mrb[77].mxu0  ;;  %v1948_v28 = vpop.f32.mrb[77].mxu1 }
 0x1a4   : >> { %v1647_v34 = vpop.f32.mrb[78].mxu0  ;;  %v1949_v38 = vpop.f32.mrb[78].mxu1 }
 0x1a5   : >> { %v4830_v36 = vadd.f32 %v1946_v32, %v1689_v13  ;;  %v1690_v35 = vadd.f32 %v1647_v34, %v4785_v55  ;;  %v1649_v40 = vpop.f32.mrb[79].mxu0  ;;  %v1951_v41 = vpop.f32.mrb[79].mxu1 }
 0x1a7   : >> { %v4833_v44 = vadd.f32 %v1949_v38, %v1690_v35 }
 0x1aa   : >> { %v1652_v37 = vpop.f32.mrb[80].mxu0  ;;  %v1954_v46 = vpop.f32.mrb[80].mxu1 }
 0x1ab   : >> { %v1691_v45 = vadd.f32 %v1652_v37, %v4788_v62  ;;  %v1654_v47 = vpop.f32.mrb[81].mxu0  ;;  %v1956_v42 = vpop.f32.mrb[81].mxu1 }
 0x1ac   : >> { %v1655_v48 = vpop.f32.mrb[82].mxu0  ;;  %v1957_v2 = vpop.f32.mrb[82].mxu1 }
 0x1ad   : >> { %v4836_v49 = vadd.f32 %v1954_v46, %v1691_v45  ;;  %v1692_v50 = vadd.f32 %v1655_v48, %v4791_v5  ;;  %v1657_v53 = vpop.f32.mrb[83].mxu0  ;;  %v1959_v56 = vpop.f32.mrb[83].mxu1 }
 0x1af   : >> { %v4839_v55 = vadd.f32 %v1957_v2, %v1692_v50 }
 0x1b2   : >> { %v1660_v51 = vpop.f32.mrb[84].mxu0  ;;  %v1962_v59 = vpop.f32.mrb[84].mxu1 }
 0x1b3   : >> { %v1693_v58 = vadd.f32 %v1660_v51, %v4794_v4  ;;  %v1662_v52 = vpop.f32.mrb[85].mxu0  ;;  %v1964_v54 = vpop.f32.mrb[85].mxu1 }
 0x1b4   : >> { %v1663_v62 = vpop.f32.mrb[86].mxu0  ;;  %v1965_v3 = vpop.f32.mrb[86].mxu1 }
 0x1b5   : >> { %v4842_v60 = vadd.f32 %v1962_v59, %v1693_v58  ;;  %v1694_v1 = vadd.f32 %v1663_v62, %v4797_v18  ;;  %v1665_v6 = vpop.f32.mrb[87].mxu0  ;;  %v1967_v7 = vpop.f32.mrb[87].mxu1 }
 0x1b7   : >> { %v4845_v5 = vadd.f32 %v1965_v3, %v1694_v1 }
 0x1ba   : >> { %v1668_v9 = vpop.f32.mrb[88].mxu0  ;;  %v1970_v12 = vpop.f32.mrb[88].mxu1 }
 0x1bb   : >> { %v1695_v11 = vadd.f32 %v1668_v9, %v4800_v31  ;;  %v1670_v63 = vpop.f32.mrb[89].mxu0  ;;  %v1972_v14 = vpop.f32.mrb[89].mxu1 }
 0x1bc   : >> { %v1671_v4 = vpop.f32.mrb[90].mxu0  ;;  %v1973_v17 = vpop.f32.mrb[90].mxu1 }
 0x1bd   : >> { %v4848_v10 = vadd.f32 %v1970_v12, %v1695_v11  ;;  %v1696_v22 = vadd.f32 %v1671_v4, %v4803_v25  ;;  %v1673_v16 = vpop.f32.mrb[91].mxu0  ;;  %v1975_v19 = vpop.f32.mrb[91].mxu1 }
 0x1bf   : >> { %v4851_v18 = vadd.f32 %v1973_v17, %v1696_v22 }
 0x1c2   : >> { %v1676_v21 = vpop.f32.mrb[92].mxu0  ;;  %v1978_v30 = vpop.f32.mrb[92].mxu1 }
 0x1c3   : >> { %v1697_v24 = vadd.f32 %v1676_v21, %v4806_v43  ;;  %v1678_v26 = vpop.f32.mrb[93].mxu0  ;;  %v1980_v27 = vpop.f32.mrb[93].mxu1 }
 0x1c4   : >> { %v1679_v31 = vpop.f32.mrb[94].mxu0  ;;  %v1981_v32 = vpop.f32.mrb[94].mxu1 }
 0x1c5   : >> { %v4854_v23 = vadd.f32 %v1978_v30, %v1697_v24  ;;  %v1698_v13 = vadd.f32 %v1679_v31, %v4809_v39  ;;  %v1681_v33 = vpop.f32.mrb[95].mxu0  ;;  %v1983_v28 = vpop.f32.mrb[95].mxu1 }
 0x1c7   : >> { %v4857_v25 = vadd.f32 %v1981_v32, %v1698_v13 }
 0x1ca   : >> { %v2224_v34 = vpop.f32.mrb[96].mxu0  ;;  %v2526_v38 = vpop.f32.mrb[96].mxu1 }
 0x1cb   : >> { %v2287_v35 = vadd.f32 %v2224_v34, %v4812_v57  ;;  %v2226_v40 = vpop.f32.mrb[97].mxu0  ;;  %v2528_v41 = vpop.f32.mrb[97].mxu1 }
 0x1cc   : >> { %v2227_v43 = vpop.f32.mrb[98].mxu0  ;;  %v2529_v46 = vpop.f32.mrb[98].mxu1 }
 0x1cd   : >> { %v4860_v37 = vadd.f32 %v2526_v38, %v2287_v35  ;;  %v2288_v45 = vadd.f32 %v2227_v43, %v4815_v61  ;;  %v2229_v47 = vpop.f32.mrb[99].mxu0  ;;  %v2531_v42 = vpop.f32.mrb[99].mxu1 }
 0x1cf   : >> { %v4863_v39 = vadd.f32 %v2529_v46, %v2288_v45 }
 0x1d2   : >> { %v2232_v48 = vpop.f32.mrb[100].mxu0  ;;  %v2534_v2 = vpop.f32.mrb[100].mxu1 }
 0x1d3   : >> { %v2289_v50 = vadd.f32 %v2232_v48, %v4818_v8  ;;  %v2234_v53 = vpop.f32.mrb[101].mxu0  ;;  %v2536_v56 = vpop.f32.mrb[101].mxu1 }
 0x1d4   : >> { %v2235_v57 = vpop.f32.mrb[102].mxu0  ;;  %v2537_v59 = vpop.f32.mrb[102].mxu1 }
 0x1d5   : >> { %v4866_v51 = vadd.f32 %v2534_v2, %v2289_v50  ;;  %v2290_v58 = vadd.f32 %v2235_v57, %v4821_v15  ;;  %v2237_v52 = vpop.f32.mrb[103].mxu0  ;;  %v2539_v54 = vpop.f32.mrb[103].mxu1 }
 0x1d7   : >> { %v4869_v61 = vadd.f32 %v2537_v59, %v2290_v58 }
 0x1da   : >> { %v2240_v62 = vpop.f32.mrb[104].mxu0  ;;  %v2542_v3 = vpop.f32.mrb[104].mxu1 }
 0x1db   : >> { %v2291_v1 = vadd.f32 %v2240_v62, %v4824_v20  ;;  %v2242_v6 = vpop.f32.mrb[105].mxu0  ;;  %v2544_v7 = vpop.f32.mrb[105].mxu1 }
 0x1dc   : >> { %v2243_v8 = vpop.f32.mrb[106].mxu0  ;;  %v2545_v12 = vpop.f32.mrb[106].mxu1 }
 0x1dd   : >> { %v4872_v9 = vadd.f32 %v2542_v3, %v2291_v1  ;;  %v2292_v11 = vadd.f32 %v2243_v8, %v4827_v29  ;;  %v2245_v63 = vpop.f32.mrb[107].mxu0  ;;  %v2547_v14 = vpop.f32.mrb[107].mxu1 }
 0x1df   : >> { %v4875_v15 = vadd.f32 %v2545_v12, %v2292_v11 }
 0x1e2   : >> { %v2248_v4 = vpop.f32.mrb[108].mxu0  ;;  %v2550_v17 = vpop.f32.mrb[108].mxu1 }
 0x1e3   : >> { %v2293_v22 = vadd.f32 %v2248_v4, %v4830_v36  ;;  %v2250_v16 = vpop.f32.mrb[109].mxu0  ;;  %v2552_v19 = vpop.f32.mrb[109].mxu1 }
 0x1e4   : >> { %v2251_v20 = vpop.f32.mrb[110].mxu0  ;;  %v2553_v30 = vpop.f32.mrb[110].mxu1 }
 0x1e5   : >> { %v4878_v21 = vadd.f32 %v2550_v17, %v2293_v22  ;;  %v2294_v24 = vadd.f32 %v2251_v20, %v4833_v44  ;;  %v2253_v26 = vpop.f32.mrb[111].mxu0  ;;  %v2555_v27 = vpop.f32.mrb[111].mxu1 }
 0x1e7   : >> { %v4881_v29 = vadd.f32 %v2553_v30, %v2294_v24 }
 0x1ea   : >> { %v2256_v31 = vpop.f32.mrb[112].mxu0  ;;  %v2558_v32 = vpop.f32.mrb[112].mxu1 }
 0x1eb   : >> { %v2295_v13 = vadd.f32 %v2256_v31, %v4836_v49  ;;  %v2258_v33 = vpop.f32.mrb[113].mxu0  ;;  %v2560_v28 = vpop.f32.mrb[113].mxu1 }
 0x1ec   : >> { %v2259_v36 = vpop.f32.mrb[114].mxu0  ;;  %v2561_v38 = vpop.f32.mrb[114].mxu1 }
 0x1ed   : >> { %v2597_v34 = vadd.f32 %v2558_v32, %v2295_v13  ;;  %v2296_v35 = vadd.f32 %v2259_v36, %v4839_v55  ;;  %v2261_v40 = vpop.f32.mrb[115].mxu0  ;;  %v2563_v41 = vpop.f32.mrb[115].mxu1 }
 0x1ef   : >> { %v2598_v43 = vadd.f32 %v2561_v38, %v2296_v35 }
 0x1f2   : >> { %v2264_v44 = vpop.f32.mrb[116].mxu0  ;;  %v2566_v46 = vpop.f32.mrb[116].mxu1 }
 0x1f3   : >> { %v2297_v45 = vadd.f32 %v2264_v44, %v4842_v60  ;;  %v2266_v47 = vpop.f32.mrb[117].mxu0  ;;  %v2568_v42 = vpop.f32.mrb[117].mxu1 }
 0x1f4   : >> { %v2267_v48 = vpop.f32.mrb[118].mxu0  ;;  %v2569_v2 = vpop.f32.mrb[118].mxu1 }
 0x1f5   : >> { %v2599_v50 = vadd.f32 %v2566_v46, %v2297_v45  ;;  %v2298_v49 = vadd.f32 %v2267_v48, %v4845_v5  ;;  %v2269_v53 = vpop.f32.mrb[119].mxu0  ;;  %v2571_v56 = vpop.f32.mrb[119].mxu1 }
 0x1f7   : >> { %v4887_v57 = vadd.f32 %v2569_v2, %v2298_v49 }
 0x1fa   : >> { %v2272_v55 = vpop.f32.mrb[120].mxu0  ;;  %v2574_v59 = vpop.f32.mrb[120].mxu1 }
 0x1fb   : >> { %v2299_v58 = vadd.f32 %v2272_v55, %v4848_v10  ;;  %v2274_v52 = vpop.f32.mrb[121].mxu0  ;;  %v2576_v54 = vpop.f32.mrb[121].mxu1 }
 0x1fc   : >> { %v2275_v62 = vpop.f32.mrb[122].mxu0  ;;  %v2577_v3 = vpop.f32.mrb[122].mxu1 }
 0x1fd   : >> { %v4890_v60 = vadd.f32 %v2574_v59, %v2299_v58  ;;  %v2300_v1 = vadd.f32 %v2275_v62, %v4851_v18  ;;  %v2277_v6 = vpop.f32.mrb[123].mxu0  ;;  %v2579_v7 = vpop.f32.mrb[123].mxu1 }
 0x1ff   : >> { %v4893_v5 = vadd.f32 %v2577_v3, %v2300_v1 }
 0x202   : >> { %v2280_v8 = vpop.f32.mrb[124].mxu0  ;;  %v2582_v12 = vpop.f32.mrb[124].mxu1 }
 0x203   : >> { %v2301_v11 = vadd.f32 %v2280_v8, %v4854_v23  ;;  %v2282_v63 = vpop.f32.mrb[125].mxu0  ;;  %v2584_v14 = vpop.f32.mrb[125].mxu1 }
 0x204   : >> { %v2283_v10 = vpop.f32.mrb[126].mxu0  ;;  %v2585_v17 = vpop.f32.mrb[126].mxu1 }
 0x205   : >> { %v4896_v4 = vadd.f32 %v2582_v12, %v2301_v11  ;;  %v2302_v22 = vadd.f32 %v2283_v10, %v4857_v25  ;;  %v2285_v16 = vpop.f32.mrb[127].mxu0  ;;  %v2587_v19 = vpop.f32.mrb[127].mxu1 }
 0x207   : >> { %v4899_v18 = vadd.f32 %v2585_v17, %v2302_v22 }
 0x20a   : >> { %v2828_v20 = vpop.f32.mrb[128].mxu0  ;;  %v2860_v30 = vpop.f32.mrb[128].mxu1 }
 0x20b   : >> { %v2891_v24 = vadd.f32 %v2828_v20, %v4860_v37  ;;  %v2830_v26 = vpop.f32.mrb[129].mxu0  ;;  %v2899_v27 = vadd.f32 %v2860_v30, %v2597_v34  ;;  %v2862_v23 = vpop.f32.mrb[129].mxu1 }
 0x20c   : >> { %v2831_v31 = vpop.f32.mrb[130].mxu0  ;;  %v2863_v33 = vpop.f32.mrb[130].mxu1 }
 0x20d   : >> { %v2913_v13 = vadd.f32 %v4085_v0, %v2891_v24  ;;  %v2892_v32 = vadd.f32 %v2831_v31, %v4863_v39  ;;  %v2833_v28 = vpop.f32.mrb[131].mxu0  ;;  %v2921_v25 = vadd.f32 %v4085_v0, %v2899_v27  ;;  %v2900_v36 = vadd.f32 %v2863_v33, %v2598_v43  ;;  %v2865_v35 = vpop.f32.mrb[131].mxu1 }
 0x20f   : >> { %v2929_v38 = vmax.f32 %v2913_v13, 0.0  ;;  %v2914_v40 = vadd.f32 %v4085_v0, %v2892_v32  ;;  %v2937_v41 = vmax.f32 %v2921_v25, 0.0  ;;  %v2922_v37 = vadd.f32 %v4085_v0, %v2900_v36 }
 0x211   : >> { %v2930_v34 = vmax.f32 %v2914_v40, 0.0  ;;  %v2945_v44 = vmax.f32 %v2929_v38, %v2937_v41  ;;  %v2938_v45 = vmax.f32 %v2922_v37, 0.0 }
 0x212   : >> { %v2836_v46 = vpop.f32.mrb[132].mxu0  ;;  %v2868_v47 = vpop.f32.mrb[132].mxu1 }
 0x213   : >> { %v2893_v39 = vadd.f32 %v2836_v46, %v4866_v51  ;;  %v2838_v42 = vpop.f32.mrb[133].mxu0  ;;  %2954 = vst.msk [vmem:[#allocation2] sm:$0xff] %vm2953_vm1, %v2945_v44  ;;  %v2946_v43 = vmax.f32 %v2930_v34, %v2938_v45  ;;  %v2901_v48 = vadd.f32 %v2868_v47, %v2599_v50  ;;  %v2870_v49 = vpop.f32.mrb[133].mxu1 }
 0x214   : >> { %v2839_v2 = vpop.f32.mrb[134].mxu0  ;;  %v2871_v55 = vpop.f32.mrb[134].mxu1 }
 0x215   : >> { %v2915_v53 = vadd.f32 %v4085_v0, %v2893_v39  ;;  %v2894_v56 = vadd.f32 %v2839_v2, %v4869_v61  ;;  %v2841_v58 = vpop.f32.mrb[135].mxu0  ;;  %2955 = vst.msk [vmem:[#allocation2 + $0x8] sm:$0xff] %vm2953_vm1, %v2946_v43  ;;  %v2923_v59 = vadd.f32 %v4085_v0, %v2901_v48  ;;  %v2902_v51 = vadd.f32 %v2871_v55, %v4887_v57  ;;  %v2873_v52 = vpop.f32.mrb[135].mxu1 }
 0x217   : >> { %v2931_v54 = vmax.f32 %v2915_v53, 0.0  ;;  %v2916_v62 = vadd.f32 %v4085_v0, %v2894_v56  ;;  %v2939_v50 = vmax.f32 %v2923_v59, 0.0  ;;  %v2924_v1 = vadd.f32 %v4085_v0, %v2902_v51 }
 0x219   : >> { %v2932_v3 = vmax.f32 %v2916_v62, 0.0  ;;  %v2947_v6 = vmax.f32 %v2931_v54, %v2939_v50  ;;  %v2940_v61 = vmax.f32 %v2924_v1, 0.0 }
 0x21a   : >> { %v2844_v7 = vpop.f32.mrb[136].mxu0  ;;  %v2876_v11 = vpop.f32.mrb[136].mxu1 }
 0x21b   : >> { %v2895_v8 = vadd.f32 %v2844_v7, %v4872_v9  ;;  %v2846_v12 = vpop.f32.mrb[137].mxu0  ;;  %2956 = vst.msk [vmem:[#allocation2 + $0x10] sm:$0xff] %vm2953_vm1, %v2947_v6  ;;  %v2948_v57 = vmax.f32 %v2932_v3, %v2940_v61  ;;  %v2903_v63 = vadd.f32 %v2876_v11, %v4890_v60  ;;  %v2878_v14 = vpop.f32.mrb[137].mxu1 }
 0x21c   : >> { %v2847_v10 = vpop.f32.mrb[138].mxu0  ;;  %v2962_v22 = vld [vmem:[#allocation2] ss:$2 sm:$0xff]  ;;  %v2970_v17 = vld [vmem:[#allocation2 + $0x1] ss:$2 sm:$0xff]  ;;  %v2879_v20 = vpop.f32.mrb[138].mxu1 }
 0x21d   : >> { %v2917_v16 = vadd.f32 %v4085_v0, %v2895_v8  ;;  %v2896_v19 = vadd.f32 %v2847_v10, %v4875_v15  ;;  %v2849_v24 = vpop.f32.mrb[139].mxu0  ;;  %v2977_v9 = vmax.f32 %v2962_v22, %v2970_v17  ;;  %2957 = vst.msk [vmem:[#allocation2 + $0x18] sm:$0xff] %vm2953_vm1, %v2948_v57  ;;  %v2925_v30 = vadd.f32 %v4085_v0, %v2903_v63  ;;  %v2881_v27 = vpop.f32.mrb[139].mxu1 }
 0x21e   : >> { %v2904_v26 = vadd.f32 %v2879_v20, %v4893_v5 }
 0x21f   : >> { %v2933_v60 = vmax.f32 %v2917_v16, 0.0  ;;  %v2918_v23 = vadd.f32 %v4085_v0, %v2896_v19  ;;  %v3754_v31 = vpack.c.bf16 %v2977_v9, %v2977_v9  ;;  %v2941_v13 = vmax.f32 %v2925_v30, 0.0 }
 0x220   : >> { %v2926_v15 = vadd.f32 %v4085_v0, %v2904_v26 }
 0x221   : >> { %v2934_v32 = vmax.f32 %v2918_v23, 0.0  ;;  %3003 = vst.msk [vmem:[%s4926_s5] sm:$0xf] %vm3002_vm2, %v3754_v31  ;;  %v2949_v33 = vmax.f32 %v2933_v60, %v2941_v13 }
 0x222   : >> { %v2942_v28 = vmax.f32 %v2926_v15, 0.0  ;;  %v2852_v25 = vpop.f32.mrb[140].mxu0  ;;  %v2884_v36 = vpop.f32.mrb[140].mxu1 }
 0x223   : >> { %v2897_v5 = vadd.f32 %v2852_v25, %v4878_v21  ;;  %v2854_v35 = vpop.f32.mrb[141].mxu0  ;;  %2958 = vst.msk [vmem:[#allocation2 + $0x20] sm:$0xff] %vm2953_vm1, %v2949_v33  ;;  %v2905_v40 = vadd.f32 %v2884_v36, %v4896_v4  ;;  %v2886_v41 = vpop.f32.mrb[141].mxu1 }
 0x224   : >> { %v2950_v38 = vmax.f32 %v2934_v32, %v2942_v28  ;;  %v2855_v37 = vpop.f32.mrb[142].mxu0  ;;  %v2964_v34 = vld [vmem:[#allocation2 + $0x10] ss:$2 sm:$0xff]  ;;  %v2972_v44 = vld [vmem:[#allocation2 + $0x11] ss:$2 sm:$0xff]  ;;  %v2887_v39 = vpop.f32.mrb[142].mxu1 }
 0x225   : >> { %v2919_v45 = vadd.f32 %v4085_v0, %v2897_v5  ;;  %v2898_v46 = vadd.f32 %v2855_v37, %v4881_v29  ;;  %v2857_v47 = vpop.f32.mrb[143].mxu0  ;;  %v2978_v42 = vmax.f32 %v2964_v34, %v2972_v44  ;;  %v2927_v21 = vadd.f32 %v4085_v0, %v2905_v40  ;;  %v2889_v48 = vpop.f32.mrb[143].mxu1 }
 0x226   : >> { %2959 = vst.msk [vmem:[#allocation2 + $0x28] sm:$0xff] %vm2953_vm1, %v2950_v38  ;;  %v2906_v43 = vadd.f32 %v2887_v39, %v4899_v18 }
 0x227   : >> { %v2935_v4 = vmax.f32 %v2919_v45, 0.0  ;;  %v2920_v49 = vadd.f32 %v4085_v0, %v2898_v46  ;;  %v3755_v2 = vpack.c.bf16 %v2978_v42, %v2978_v42  ;;  %v2943_v53 = vmax.f32 %v2927_v21, 0.0 }
 0x228   : >> { %v2928_v56 = vadd.f32 %v4085_v0, %v2906_v43 }
 0x229   : >> { %v2936_v55 = vmax.f32 %v2920_v49, 0.0  ;;  %3004 = vst.msk [vmem:[%s4926_s5 + $0x4] sm:$0xf] %vm3002_vm2, %v3755_v2  ;;  %v2951_v29 = vmax.f32 %v2935_v4, %v2943_v53 }
 0x22a   : >> { %v2944_v58 = vmax.f32 %v2928_v56, 0.0 }
 0x22b   : >> { %2960 = vst.msk [vmem:[#allocation2 + $0x30] sm:$0xff] %vm2953_vm1, %v2951_v29 }
 0x22c   : >> { %v2952_v59 = vmax.f32 %v2936_v55, %v2944_v58 }
 0x22d   : >> { %v2966_v51 = vld [vmem:[#allocation2 + $0x20] ss:$2 sm:$0xff]  ;;  %v2974_v18 = vld [vmem:[#allocation2 + $0x21] ss:$2 sm:$0xff] }
 0x22e   : >> { %v2979_v52 = vmax.f32 %v2966_v51, %v2974_v18  ;;  %2961 = vst.msk [vmem:[#allocation2 + $0x38] sm:$0xff] %vm2953_vm1, %v2952_v59 }
 0x230   : >> { %v3756_v54 = vpack.c.bf16 %v2979_v52, %v2979_v52 }
 0x232   : >> { %3005 = vst.msk [vmem:[%s4926_s5 + $0x8] sm:$0xf] %vm3002_vm2, %v3756_v54 }
 0x234   : > { %219 = sbr.rel (!%p217_p5) target bundleno = 18 (0x12), region = 94 }
 0x235   : >> { %v2968_v62 = vld [vmem:[#allocation2 + $0x30] ss:$2 sm:$0xff]  ;;  %v2976_v50 = vld [vmem:[#allocation2 + $0x31] ss:$2 sm:$0xff] }
 0x236   : >> { %v2980_v1 = vmax.f32 %v2968_v62, %v2976_v50 }
 0x238   : >> { %v3757_v3 = vpack.c.bf16 %v2980_v1, %v2980_v1 }
 0x23a   : >> { %3006 = vst.msk [vmem:[%s4926_s5 + $0xc] sm:$0xf] %vm3002_vm2, %v3757_v3 }
 0x23b PF: > { %s13_s14 = sadd.s32 1, %s4037_s14   ;;  %s4966_s12 = smov %s4033_s13 }
 0x23c   : > { %p10_p6 = scmp.ge.s32.totalorder %s13_s14, 4   ;;  %s4967_s13 = smov %s4969_s15 }
 0x23e   :  { %12 = sbr.rel (!%p10_p6) target bundleno = 2 (0x2), region = 105 }

// kernel: forward.7
= control target key start
LH: loop header
LB: loop body
LE: loop exit
PB: predicated region body
PF: predicated region fallthrough
CT: control target
= control target key end

     0   :  { %s7516_s12 = smov 0   ;;  %s7518_s13 = smov 0   ;;  %s9411_s0 = inlined_call_operand.vmem [shape: bf16[2,32,24,432], index: 0, kind: input, shape index: {}]   ;;  %s9412_s1 = inlined_call_operand.vmem [shape: bf16[9,432,48], index: 1, kind: input, shape index: {}]   ;;  %s9413_s2 = inlined_call_operand.vmem [shape: f32[1,48], index: 2, kind: input, shape index: {}]   ;;  %s9414_s3 = inlined_call_operand.vmem [shape: bf16[2,144,48], index: 3, kind: output, shape index: {}]  }
   0x1   :  { %s7520_s14 = smov 0  }
   0x2 LB: > { %s25_s15 = sadd.s32 1, %s7485_s13  ;;  %p5369_p0 = scmp.ge.s32.totalorder %s7489_s14, 1  ;;  %s7489_s14 = sphi %s7520_s14, %s13_s14   ;;  %s7485_s13 = sphi %s7518_s13, %s9416_s13   ;;  %s7481_s12 = sphi %s7516_s12, %s9415_s12  }
   0x3   : > { %p27_p1 = scmp.ge.s32.totalorder %s25_s15, 2  ;;  %p159_p2 = scmp.lt.s32.totalorder %s7489_s14, 3 }
   0x5   : > { %s9418_s15 = smov (%p27_p1, %s25_s15), 0  ;;  %p160_p3 = pnand %p5369_p0, %p159_p2 }
   0x6   : > { %p193_p4 = scmp.lt.s32.totalorder (!%p160_p3), %s7481_s12, 1  ;;  %v7537_v0 = vld [vmem:[%s9413_s2] ss:$0 sm:$0xff] (!%p160_p3)  ;;  %s7549_s26 = smov (!%p160_p3), 0  }
   0x7   : > { %163 = sbr.rel (%p160_p3) target bundleno = 725 (0x2d5), region = 32 }
   0xe   : > { %s9420_s12 = smov (!%p193_p4, %s7481_s12), 1 }
   0xf   : > { %s7007_s18 = smul.u32 1536, %s9420_s12 }
  0x10   : > { %s7008_s19 = smul.u32 72, %s9420_s12 }
  0x11   : > { %s7542_s22 = scalar_lea.vmem %s9411_s0, %s7007_s18 }
  0x12   : > { %s7547_s25 = scalar_lea.vmem %s9414_s3, %s7008_s19 }
  0x13 LB: >> { %v7042_v1 = vld [vmem:[%s9412_s1 + $0x118] sm:$0xff]   ;;  %v7495_v2 = vmov 0   ;;  %v7045_v5 = vld [vmem:[%s9412_s1 + $0x120] sm:$0xff]   ;;  %v7048_v8 = vld [vmem:[%s9412_s1 + $0x128] sm:$0xff]   ;;  %s6535_s11 = smul.u32 192, %s7493_s26  ;;  %vm662_vm0 = vcmask 392192   ;;  %s7493_s26 = sphi %s7549_s26, %s220_s26  }
  0x14   : >> { %762 = vmatprep.subr.bf16.mxu1 %v7495_v2  ;;  %v7043_v3 = vld [vmem:[%s9412_s1 + $0x158] sm:$0xff]   ;;  %6539 = vmatprep.subr.bf16.mxu0 %v7042_v1  ;;  %v7046_v6 = vld [vmem:[%s9412_s1 + $0x160] sm:$0xff]   ;;  %v7049_v9 = vld [vmem:[%s9412_s1 + $0x168] sm:$0xff]   ;;  %vm5230_vm1 = vcmask 388096  }
  0x15   : >> { %v7044_v4 = vld [vmem:[%s9412_s1 + $0xd8] sm:$0xff]   ;;  %763 = vmatpush1.bf16.msra.mxu1 %v7043_v3  ;;  %v7047_v7 = vld [vmem:[%s9412_s1 + $0xe0] sm:$0xff]   ;;  %v7050_v10 = vld [vmem:[%s9412_s1 + $0xe8] sm:$0xff]   ;;  %s7619_s21 = scalar_lea.vmem %s7542_s22, %s6535_s11 }
  0x16   : >> { %6540 = vmatpush3.bf16.msra.mxu0 %v7044_v4  ;;  %764 = vmatprep.subr.bf16.mxu1 %v7495_v2  ;;  %v7051_v11 = vld [vmem:[%s9412_s1 + $0x130] sm:$0xff]   ;;  %v7054_v14 = vld [vmem:[%s9412_s1 + $0x138] sm:$0xff]   ;;  %v7057_v17 = vld [vmem:[%s9412_s1 + $0x140] sm:$0xff]  }
  0x17   : >> { %6541 = vmatprep.subr.bf16.mxu0 %v7045_v5  ;;  %v7052_v12 = vld [vmem:[%s9412_s1 + $0x170] sm:$0xff]   ;;  %v7055_v15 = vld [vmem:[%s9412_s1 + $0x178] sm:$0xff]   ;;  %v7058_v18 = vld [vmem:[%s9412_s1 + $0x180] sm:$0xff]  }
  0x18   : >> { %v7053_v13 = vld [vmem:[%s9412_s1 + $0xf0] sm:$0xff]   ;;  %v7056_v16 = vld [vmem:[%s9412_s1 + $0xf8] sm:$0xff]   ;;  %v7059_v19 = vld [vmem:[%s9412_s1 + $0x100] sm:$0xff]  }
  0x19   : >> { %765 = vmatpush1.bf16.msra.mxu1 %v7046_v6  ;;  %v7060_v20 = vld [vmem:[%s9412_s1 + $0x148] sm:$0xff]   ;;  %v7629_v23 = vld [vmem:[%s7619_s21 + $0x30] sm:$0xff]  ;;  %v7632_v24 = vld [vmem:[%s7619_s21 + $0x40] sm:$0xff] }
  0x1a   : >> { %6542 = vmatpush3.bf16.msra.mxu0 %v7047_v7  ;;  %766 = vmatprep.subr.bf16.mxu1 %v7495_v2  ;;  %v7061_v21 = vld [vmem:[%s9412_s1 + $0x188] sm:$0xff]   ;;  %v7063_v25 = vld [vmem:[%s9412_s1 + $0x150] sm:$0xff]   ;;  %v5456_v26 = vcombine.high %v7629_v23, %v7632_v24  ;;  %v7650_v30 = vld [vmem:[%s7619_s21 + $0x60] sm:$0xff]  ;;  %v5455_v34 = vcombine.low %v7629_v23, %v7632_v24 }
  0x1b   : >> { %6543 = vmatprep.subr.bf16.mxu0 %v7048_v8  ;;  %v7062_v22 = vld [vmem:[%s9412_s1 + $0x108] sm:$0xff]   ;;  %v7064_v27 = vld [vmem:[%s9412_s1 + $0x190] sm:$0xff]   ;;  %v7073_v31 = vld [vmem:[%s9412_s1 + $0x40] sm:$0xff]  }
  0x1c   : >> { %v7065_v28 = vld [vmem:[%s9412_s1 + $0x110] sm:$0xff]   ;;  %713 = vmatprep.mubr.bf16.mxu0 %v5456_v26  ;;  %v7656_v32 = vld [vmem:[%s7619_s21 + $0x38] sm:$0xff]  ;;  %v7659_v33 = vld [vmem:[%s7619_s21 + $0x48] sm:$0xff] }
  0x1d   : >> { %767 = vmatpush1.bf16.msra.mxu1 %v7049_v9  ;;  %v7646_v29 = vld [vmem:[%s7619_s21 + $0x50] sm:$0xff]  ;;  %v7068_v35 = vld [vmem:[%s9412_s1 + $0x198] sm:$0xff]   ;;  %v5458_v36 = vcombine.high %v7656_v32, %v7659_v33  ;;  %v7074_v38 = vld [vmem:[%s9412_s1] sm:$0xff]   ;;  %v5457_v51 = vcombine.low %v7656_v32, %v7659_v33 }
  0x1e   : >> { %6544 = vmatpush3.bf16.msra.mxu0 %v7050_v10  ;;  %768 = vmatprep.subr.bf16.mxu1 %v7495_v2  ;;  %v5460_v37 = vcombine.high %v7646_v29, %v7650_v30  ;;  %v7078_v39 = vld [vmem:[%s9412_s1 + $0x48] sm:$0xff]   ;;  %v7069_v40 = vld [vmem:[%s9412_s1 + $0x1a0] sm:$0xff]   ;;  %v7682_v41 = vld [vmem:[%s7619_s21 + $0x70] sm:$0xff]  ;;  %v5459_v45 = vcombine.low %v7646_v29, %v7650_v30 }
  0x1f   : >> { %6545 = vmatprep.subr.bf16.mxu0 %v7051_v11  ;;  %5506 = vmatprep.mubr.msk.bf16.mxu1 %vm662_vm0, %v5458_v36  ;;  %v7686_v42 = vld [vmem:[%s7619_s21 + $0x80] sm:$0xff]  ;;  %v7080_v43 = vld [vmem:[%s9412_s1 + $0x8] sm:$0xff]   ;;  %v7085_v44 = vld [vmem:[%s9412_s1 + $0x50] sm:$0xff]  }
  0x20   : >> { %v7072_v46 = vld [vmem:[%s9412_s1 + $0x1a8] sm:$0xff]   ;;  %v5464_v47 = vcombine.high %v7682_v41, %v7686_v42  ;;  %v7703_v48 = vld [vmem:[%s7619_s21 + $0x58] sm:$0xff]  ;;  %v7086_v50 = vld [vmem:[%s9412_s1 + $0x10] sm:$0xff]   ;;  %v5463_v59 = vcombine.low %v7682_v41, %v7686_v42 }
  0x21   : >> { %769 = vmatpush1.bf16.msra.mxu1 %v7052_v12  ;;  %v7706_v49 = vld [vmem:[%s7619_s21 + $0x68] sm:$0xff]  ;;  %v7091_v52 = vld [vmem:[%s9412_s1 + $0x58] sm:$0xff]   ;;  %v7077_v53 = vld [vmem:[%s9412_s1 + $0x80] sm:$0xff]  }
  0x22   : >> { %6546 = vmatpush3.bf16.msra.mxu0 %v7053_v13  ;;  %770 = vmatprep.subr.bf16.mxu1 %v7495_v2  ;;  %v5462_v54 = vcombine.high %v7703_v48, %v7706_v49  ;;  %v7723_v55 = vld [vmem:[%s7619_s21 + $0x90] sm:$0xff]  ;;  %v7726_v56 = vld [vmem:[%s7619_s21 + $0xa0] sm:$0xff]  ;;  %v7094_v57 = vld [vmem:[%s9412_s1 + $0x18] sm:$0xff]   ;;  %v5461_v4 = vcombine.low %v7703_v48, %v7706_v49 }
  0x23   : >> { %6547 = vmatprep.subr.bf16.mxu0 %v7054_v14  ;;  %v7098_v58 = vld [vmem:[%s9412_s1 + $0x60] sm:$0xff]   ;;  %v7082_v60 = vld [vmem:[%s9412_s1 + $0x88] sm:$0xff]   ;;  %v7741_v61 = vld [vmem:[%s7619_s21 + $0x78] sm:$0xff]  ;;  %v7746_v62 = vcombine.high %v7723_v55, %v7726_v56 }
  0x24   : >> { %v7749_v63 = vld [vmem:[%s7619_s21 + $0x88] sm:$0xff]  ;;  %v7087_v1 = vld [vmem:[%s9412_s1 + $0x90] sm:$0xff]   ;;  %v7099_v3 = vld [vmem:[%s9412_s1 + $0x20] sm:$0xff]  }
  0x25   : >> { %771 = vmatpush1.bf16.msra.mxu1 %v7055_v15  ;;  %v7103_v5 = vld [vmem:[%s9412_s1 + $0x68] sm:$0xff]   ;;  %v5466_v6 = vcombine.high %v7741_v61, %v7749_v63  ;;  %v7765_v7 = vld [vmem:[%s7619_s21 + $0xc0] sm:$0xff]  ;;  %v7768_v8 = vld [vmem:[%s7619_s21 + $0xd0] sm:$0xff]  ;;  %v7790_v15 = vcombine.low %v7723_v55, %v7726_v56 }
  0x26   : >> { %6548 = vmatpush3.bf16.msra.mxu0 %v7056_v16  ;;  %772 = vmatprep.subr.bf16.mxu1 %v7495_v2  ;;  %v7773_v9 = vld [vmem:[%s7619_s21 + $0xb0] sm:$0xff]  ;;  %v5662_v10 = vcombine.high %v7765_v7, %v7768_v8  ;;  %v7104_v11 = vld [vmem:[%s9412_s1 + $0x28] sm:$0xff]   ;;  %v5661_v12 = vcombine.low %v7765_v7, %v7768_v8  ;;  %v7092_v13 = vld [vmem:[%s9412_s1 + $0x98] sm:$0xff]  }
  0x27   : >> { %6549 = vmatprep.subr.bf16.mxu0 %v7057_v17  ;;  %v7108_v14 = vld [vmem:[%s9412_s1 + $0x70] sm:$0xff]   ;;  %v7794_v16 = vld [vmem:[%s7619_s21 + $0x98] sm:$0xff]  ;;  %v7799_v17 = vcombine.high %v7773_v9, %v7765_v7  ;;  %v7821_v26 = vld [vmem:[%s7619_s21 + $0xe0] sm:$0xff] }
  0x28   : >> { %v7101_v36 = vld [vmem:[%s9412_s1 + $0xa8] sm:$0xff]  }
  0x29   : >> { %773 = vmatpush1.bf16.msra.mxu1 %v7058_v18  ;;  %v7802_v18 = vld [vmem:[%s7619_s21 + $0xa8] sm:$0xff] }
  0x2a   : >> { %6550 = vmatpush3.bf16.msra.mxu0 %v7059_v19  ;;  %774 = vmatprep.subr.bf16.mxu1 %v7495_v2  ;;  %v7109_v19 = vld [vmem:[%s9412_s1 + $0x30] sm:$0xff]  }
  0x2b   : >> { %6551 = vmatprep.subr.bf16.mxu0 %v7060_v20  ;;  %v5465_v20 = vcombine.low %v7741_v61, %v7749_v63 }
  0x2d   : >> { %775 = vmatpush1.bf16.msra.mxu1 %v7061_v21  ;;  %v7113_v21 = vld [vmem:[%s9412_s1 + $0x78] sm:$0xff]  }
  0x2e   : >> { %6552 = vmatpush3.bf16.msra.mxu0 %v7062_v22  ;;  %776 = vmatprep.subr.bf16.mxu1 %v7495_v2  ;;  %v7095_v22 = vld [vmem:[%s9412_s1 + $0xa0] sm:$0xff]  }
  0x2f   : >> { %6553 = vmatprep.subr.bf16.mxu0 %v7063_v25  ;;  %v7818_v25 = vcombine.high %v7794_v16, %v7802_v18 }
  0x31   : >> { %777 = vmatpush1.bf16.msra.mxu1 %v7064_v27  ;;  %v7826_v27 = vld [vmem:[%s7619_s21 + $0xc8] sm:$0xff] }
  0x32   : >> { %6554 = vmatpush3.bf16.msra.mxu0 %v7065_v28  ;;  %778 = vmatprep.subr.bf16.mxu1 %v7495_v2  ;;  %v7829_v28 = vld [vmem:[%s7619_s21 + $0xd8] sm:$0xff] }
  0x33   : >> { %6591 = vmatprep.subr.bf16.mxu0 %v7073_v31  ;;  %v7114_v31 = vld [vmem:[%s9412_s1 + $0x38] sm:$0xff]  }
  0x35   : >> { %714 = vmatmul.mubr.bf16.vlgmr.msra.gmra.mrb[0].mxu0 %v5455_v34  ;;  %779 = vmatpush1.bf16.msra.mxu1 %v7068_v35  ;;  %v5664_v34 = vcombine.high %v7826_v27, %v7829_v28  ;;  %v5663_v35 = vcombine.low %v7826_v27, %v7829_v28 }
  0x36   : >> { %780 = vmatprep.subr.bf16.mxu1 %v7495_v2  ;;  %721 = vmatprep.mubr.bf16.mxu0 %v5460_v37  ;;  %v7843_v37 = vcombine.low %v7773_v9, %v7765_v7  ;;  %v7212_v7 = vld [vmem:[%s9412_s1 + $0x3a0] sm:$0xff]  }
  0x37   : >> { %6592 = vmatpush3.bf16.msra.mxu0 %v7074_v38  ;;  %v7848_v38 = vld [vmem:[%s7619_s21 + $0xb8] sm:$0xff] }
  0x38   : >> { %6593 = vmatprep.subr.bf16.mxu0 %v7078_v39  ;;  %v7853_v39 = vcombine.high %v7768_v8, %v7821_v26 }
  0x39   : >> { %781 = vmatpush1.bf16.msra.mxu1 %v7069_v40  ;;  %v7125_v40 = vld [vmem:[%s9412_s1 + $0x1f0] sm:$0xff]  }
  0x3a   : >> { %782 = vmatprep.subr.bf16.mxu1 %v7495_v2 }
  0x3b   : >> { %6594 = vmatpush3.bf16.msra.mxu0 %v7080_v43  ;;  %v7860_v43 = vcombine.low %v7794_v16, %v7802_v18 }
  0x3c   : >> { %6595 = vmatprep.subr.bf16.mxu0 %v7085_v44  ;;  %v7106_v44 = vld [vmem:[%s9412_s1 + $0xb0] sm:$0xff]  }
  0x3d   : >> { %722 = vmatmul.mubr.bf16.gmra.mrb[4].mxu0 %v5459_v45  ;;  %783 = vmatpush1.bf16.msra.mxu1 %v7072_v46  ;;  %v7868_v45 = vcombine.high %v7848_v38, %v7826_v27  ;;  %v7112_v46 = vld [vmem:[%s9412_s1 + $0xb8] sm:$0xff]  }
  0x3e   : >> { %1218 = vmatprep.subr.bf16.mxu1 %v7495_v2  ;;  %729 = vmatprep.mubr.bf16.mxu0 %v5464_v47  ;;  %v7878_v47 = vcombine.low %v7768_v8, %v7821_v26  ;;  %v7191_v8 = vld [vmem:[%s9412_s1 + $0x330] sm:$0xff]  }
  0x3f   : >> { %6596 = vmatpush3.bf16.msra.mxu0 %v7086_v50  ;;  %v7117_v50 = vld [vmem:[%s7619_s21 + $0x4] ss:$16 sps:$4 sm:$0xff]  }
  0x40   : >> { %795 = vmatmul.mubr.bf16.vlgmr.msra.gmra.mrb[0].mxu1 %v5457_v51  ;;  %6597 = vmatprep.subr.bf16.mxu0 %v7091_v52  ;;  %v7885_v51 = vld [vmem:[%s7619_s21 + $0xe8] sm:$0xff]  ;;  %v7889_v52 = vcombine.low %v7848_v38, %v7826_v27 }
  0x41   : >> { %1219 = vmatpush1.bf16.msra.mxu1 %v7077_v53  ;;  %5507 = vmatprep.mubr.msk.bf16.mxu1 %vm662_vm0, %v5462_v54  ;;  %v7118_v53 = vld [vmem:[%s9412_s1 + $0xc0] sm:$0xff]   ;;  %v7897_v54 = vcombine.high %v7829_v28, %v7885_v51 }
  0x42   : >> { %1220 = vmatprep.subr.bf16.mxu1 %v7495_v2 }
  0x43   : >> { %6598 = vmatpush3.bf16.msra.mxu0 %v7094_v57  ;;  %v229_v57 = vld [vmem:[%s7619_s21 + $0x20] sm:$0xff] }
  0x44   : >> { %6599 = vmatprep.subr.bf16.mxu0 %v7098_v58  ;;  %v7115_v58 = vld [vmem:[%s7619_s21] ss:$16 sps:$4 sm:$0xff]  }
  0x45   : >> { %730 = vmatmul.mubr.bf16.gmra.mrb[8].mxu0 %v5463_v59  ;;  %1221 = vmatpush1.bf16.msra.mxu1 %v7082_v60  ;;  %v7121_v59 = vld [vmem:[%s9412_s1 + $0xc8] sm:$0xff]   ;;  %v5517_v60 = vcombine.high %v229_v57, %v7629_v23 }
  0x46   : >> { %1222 = vmatprep.subr.bf16.mxu1 %v7495_v2  ;;  %737 = vmatprep.mubr.bf16.mxu0 %v7746_v62 }
  0x47   : >> { %6600 = vmatpush3.bf16.msra.mxu0 %v7099_v3  ;;  %v7126_v3 = vld [vmem:[%s9412_s1 + $0x1b0] sm:$0xff]  }
  0x48   : >> { %803 = vmatmul.mubr.bf16.gmra.mrb[4].mxu1 %v5461_v4  ;;  %6601 = vmatprep.subr.bf16.mxu0 %v7103_v5  ;;  %v7918_v4 = vcombine.low %v7829_v28, %v7885_v51  ;;  %v7131_v5 = vld [vmem:[%s9412_s1 + $0x1f8] sm:$0xff]   ;;  %v7205_v28 = vld [vmem:[%s9412_s1 + $0x348] sm:$0xff]  }
  0x49   : >> { %1223 = vmatpush1.bf16.msra.mxu1 %v7087_v1  ;;  %5508 = vmatprep.mubr.msk.bf16.mxu1 %vm662_vm0, %v5466_v6  ;;  %v7124_v1 = vld [vmem:[%s9412_s1 + $0xd0] sm:$0xff]   ;;  %v7129_v6 = vld [vmem:[%s7619_s21 + $0xc] ss:$16 sps:$4 sm:$0xff]  }
  0x4a   : >> { %1224 = vmatprep.subr.bf16.mxu1 %v7495_v2 }
  0x4b   : >> { %6602 = vmatpush3.bf16.msra.mxu0 %v7104_v11  ;;  %v7133_v11 = vld [vmem:[%s9412_s1 + $0x1b8] sm:$0xff]  }
  0x4c   : >> { %6603 = vmatprep.subr.bf16.mxu0 %v7108_v14  ;;  %v5516_v14 = vcombine.low %v229_v57, %v7629_v23  ;;  %v7144_v23 = vld [vmem:[%s9412_s1 + $0x208] sm:$0xff]   ;;  %v7152_v57 = vld [vmem:[%s9412_s1 + $0x1d0] sm:$0xff]  }
  0x4d   : >> { %738 = vmatmul.mubr.bf16.gmra.mrb[12].mxu0 %v7790_v15  ;;  %1225 = vmatpush1.bf16.msra.mxu1 %v7092_v13  ;;  %v7138_v13 = vld [vmem:[%s9412_s1 + $0x200] sm:$0xff]  }
  0x4e   : >> { %1226 = vmatprep.subr.bf16.mxu1 %v7495_v2  ;;  %745 = vmatprep.mubr.bf16.mxu0 %v7799_v17 }
  0x4f   : >> { %6604 = vmatpush3.bf16.msra.mxu0 %v7109_v19  ;;  %v7127_v19 = vld [vmem:[%s7619_s21 + $0x8] ss:$16 sps:$4 sm:$0xff]  }
  0x50   : >> { %811 = vmatmul.mubr.bf16.gmra.mrb[8].mxu1 %v5465_v20  ;;  %6605 = vmatprep.subr.bf16.mxu0 %v7113_v21  ;;  %v5521_v20 = vcombine.high %v7632_v24, %v7646_v29  ;;  %v230_v21 = vld [vmem:[%s7619_s21 + $0x28] sm:$0xff] }
  0x51   : >> { %1227 = vmatpush1.bf16.msra.mxu1 %v7095_v22  ;;  %5509 = vmatprep.mubr.msk.bf16.mxu1 %vm662_vm0, %v7818_v25  ;;  %v7139_v22 = vld [vmem:[%s9412_s1 + $0x1c0] sm:$0xff]  }
  0x52   : >> { %1228 = vmatprep.subr.bf16.mxu1 %v7495_v2 }
  0x53   : >> { %6606 = vmatpush3.bf16.msra.mxu0 %v7114_v31  ;;  %v7130_v31 = vld [vmem:[%s9412_s1 + $0x230] sm:$0xff]  }
  0x54   : >> { %6643 = vmatprep.subr.bf16.mxu0 %v7125_v40  ;;  %v7147_v40 = vld [vmem:[%s9412_s1 + $0x1c8] sm:$0xff]  }
  0x55   : >> { %746 = vmatmul.mubr.bf16.gmra.mrb[16].mxu0 %v7843_v37  ;;  %1229 = vmatpush1.bf16.msra.mxu1 %v7101_v36  ;;  %v5519_v36 = vcombine.high %v230_v21, %v7656_v32 }
  0x56   : >> { %1230 = vmatprep.subr.bf16.mxu1 %v7495_v2  ;;  %753 = vmatprep.mubr.bf16.mxu0 %v7853_v39 }
  0x58   : >> { %819 = vmatmul.mubr.bf16.gmra.mrb[12].mxu1 %v7860_v43 }
  0x59   : >> { %1231 = vmatpush1.bf16.msra.mxu1 %v7106_v44  ;;  %5510 = vmatprep.mubr.msk.bf16.mxu1 %vm662_vm0, %v7868_v45  ;;  %v7151_v44 = vld [vmem:[%s9412_s1 + $0x210] sm:$0xff]  }
  0x5a   : >> { %1232 = vmatprep.subr.bf16.mxu1 %v7495_v2 }
  0x5d   : >> { %754 = vmatmul.mubr.bf16.gmra.mrb[20].mxu0 %v7878_v47  ;;  %1233 = vmatpush1.bf16.msra.mxu1 %v7112_v46  ;;  %v5520_v46 = vcombine.low %v7632_v24, %v7646_v29  ;;  %v7156_v24 = vld [vmem:[%s9412_s1 + $0x218] sm:$0xff]   ;;  %v7140_v29 = vld [vmem:[%s9412_s1 + $0x240] sm:$0xff]  }
  0x5e   : >> { %1234 = vmatprep.subr.bf16.mxu1 %v7495_v2  ;;  %1169 = vmatprep.mubr.bf16.mxu0 %v7117_v50  ;;  %v7135_v50 = vld [vmem:[%s9412_s1 + $0x238] sm:$0xff]  }
  0x60   : >> { %827 = vmatmul.mubr.bf16.gmra.mrb[16].mxu1 %v7889_v52 }
  0x61   : >> { %1235 = vmatpush1.bf16.msra.mxu1 %v7118_v53  ;;  %5511 = vmatprep.mubr.msk.bf16.mxu1 %vm662_vm0, %v7897_v54  ;;  %v7964_v53 = vcombine.high %v7650_v30, %v7682_v41 }
  0x62   : >> { %1236 = vmatprep.subr.bf16.mxu1 %v7495_v2 }
  0x65   : >> { %1170 = vmatmul.mubr.bf16.vlgmr.msra.gmra.mrb[24].mxu0 %v7115_v58  ;;  %1237 = vmatpush1.bf16.msra.mxu1 %v7121_v59  ;;  %v5518_v58 = vcombine.low %v230_v21, %v7656_v32  ;;  %v5523_v59 = vcombine.high %v7659_v33, %v7703_v48  ;;  %v7158_v32 = vld [vmem:[%s9412_s1 + $0x1d8] sm:$0xff]   ;;  %v5526_v21 = vcombine.low %v7706_v49, %v7741_v61 }
  0x66   : >> { %1177 = vmatprep.mubr.bf16.mxu0 %v5517_v60  ;;  %1238 = vmatprep.subr.bf16.mxu1 %v7495_v2  ;;  %v7164_v60 = vld [vmem:[%s9412_s1 + $0x220] sm:$0xff]  }
  0x67   : >> { %6644 = vmatpush3.bf16.msra.mxu0 %v7126_v3  ;;  %v7145_v3 = vld [vmem:[%s9412_s1 + $0x248] sm:$0xff]  }
  0x68   : >> { %835 = vmatmul.mubr.bf16.gmra.mrb[20].mxu1 %v7918_v4  ;;  %6645 = vmatprep.subr.bf16.mxu0 %v7131_v5  ;;  %v5529_v5 = vcombine.high %v7686_v42, %v7723_v55 }
  0x69   : >> { %1239 = vmatpush1.bf16.msra.mxu1 %v7124_v1  ;;  %5563 = vmatprep.mubr.msk.bf16.mxu1 %vm662_vm0, %v7129_v6  ;;  %v5524_v1 = vcombine.low %v7650_v30, %v7682_v41  ;;  %v7165_v6 = vld [vmem:[%s9412_s1 + $0x1e0] sm:$0xff]   ;;  %v7168_v30 = vld [vmem:[%s9412_s1 + $0x228] sm:$0xff]   ;;  %v7148_v41 = vld [vmem:[%s9412_s1 + $0x250] sm:$0xff]  }
  0x6a   : >> { %1757 = vmatprep.subr.bf16.mxu1 %v7495_v2 }
  0x6b   : >> { %6646 = vmatpush3.bf16.msra.mxu0 %v7133_v11  ;;  %v5522_v11 = vcombine.low %v7659_v33, %v7703_v48  ;;  %v7170_v33 = vld [vmem:[%s9412_s1 + $0x1e8] sm:$0xff]  }
  0x6c   : >> { %6647 = vmatprep.subr.bf16.mxu0 %v7138_v13  ;;  %v5527_v13 = vcombine.high %v7706_v49, %v7741_v61  ;;  %v7173_v48 = vld [vmem:[%s9412_s1 + $0x2c8] sm:$0xff]   ;;  %v5530_v61 = vcombine.low %v7749_v63, %v7794_v16 }
  0x6d   : >> { %1178 = vmatmul.mubr.bf16.gmra.mrb[28].mxu0 %v5516_v14  ;;  %v5528_v14 = vcombine.low %v7686_v42, %v7723_v55  ;;  %v7159_v42 = vld [vmem:[%s9412_s1 + $0x260] sm:$0xff]   ;;  %v5531_v55 = vcombine.high %v7749_v63, %v7794_v16  ;;  %v7163_v49 = vld [vmem:[%s9412_s1 + $0x268] sm:$0xff]   ;;  %v7171_v63 = vld [vmem:[%s9412_s1 + $0x278] sm:$0xff]  }
  0x6e   : >> { %1185 = vmatprep.mubr.bf16.mxu0 %v5521_v20  ;;  %v5533_v20 = vcombine.high %v7726_v56, %v7773_v9  ;;  %v7176_v16 = vld [vmem:[%s9412_s1 + $0x2d0] sm:$0xff]  }
  0x6f   : >> { %6648 = vmatpush3.bf16.msra.mxu0 %v7139_v22  ;;  %v5532_v22 = vcombine.low %v7726_v56, %v7773_v9  ;;  %v5535_v56 = vcombine.high %v7802_v18, %v7848_v38  ;;  %v7174_v9 = vld [vmem:[%s9412_s1 + $0x288] sm:$0xff]  }
  0x70   : >> { %1251 = vmatmul.mubr.bf16.vlgmr.msra.gmra.mrb[24].mxu1 %v7127_v19  ;;  %6649 = vmatprep.subr.bf16.mxu0 %v7144_v23  ;;  %v7154_v19 = vld [vmem:[%s9412_s1 + $0x258] sm:$0xff]   ;;  %v7166_v23 = vld [vmem:[%s9412_s1 + $0x270] sm:$0xff]  }
  0x71   : >> { %1758 = vmatpush1.bf16.msra.mxu1 %v7130_v31  ;;  %5564 = vmatprep.mubr.msk.bf16.mxu1 %vm662_vm0, %v5519_v36  ;;  %v5534_v31 = vcombine.low %v7802_v18, %v7848_v38  ;;  %v7172_v36 = vld [vmem:[%s9412_s1 + $0x280] sm:$0xff]   ;;  %v7180_v18 = vld [vmem:[%s9412_s1 + $0x298] sm:$0xff]  }
  0x72   : >> { %1759 = vmatprep.subr.bf16.mxu1 %v7495_v2  ;;  %v7182_v38 = vld [vmem:[%s9412_s1 + $0x2e0] sm:$0xff]  }
  0x73   : >> { %6650 = vmatpush3.bf16.msra.mxu0 %v7147_v40  ;;  %v7177_v40 = vld [vmem:[%s9412_s1 + $0x290] sm:$0xff]  }
  0x74   : >> { %6651 = vmatprep.subr.bf16.mxu0 %v7151_v44  ;;  %v7179_v44 = vld [vmem:[%s9412_s1 + $0x2d8] sm:$0xff]  }
  0x75   : >> { %1186 = vmatmul.mubr.bf16.gmra.mrb[32].mxu0 %v5520_v46  ;;  %1760 = vmatpush1.bf16.msra.mxu1 %v7135_v50  ;;  %v7175_v46 = vld [vmem:[%s9412_s1 + $0x308] sm:$0xff]   ;;  %v7184_v50 = vld [vmem:[%s9412_s1 + $0x2a0] sm:$0xff]  }
  0x76   : >> { %1761 = vmatprep.subr.bf16.mxu1 %v7495_v2  ;;  %1193 = vmatprep.mubr.bf16.mxu0 %v7964_v53 }
  0x77   : >> { %6652 = vmatpush3.bf16.msra.mxu0 %v7152_v57  ;;  %v7178_v57 = vld [vmem:[%s9412_s1 + $0x310] sm:$0xff]  }
  0x78   : >> { %1259 = vmatmul.mubr.bf16.gmra.mrb[28].mxu1 %v5518_v58  ;;  %6653 = vmatprep.subr.bf16.mxu0 %v7156_v24  ;;  %v7189_v58 = vld [vmem:[%s9412_s1 + $0x2a8] sm:$0xff]   ;;  %v7195_v24 = vld [vmem:[%s9412_s1 + $0x2f0] sm:$0xff]  }
  0x79   : >> { %1762 = vmatpush1.bf16.msra.mxu1 %v7140_v29  ;;  %5565 = vmatprep.mubr.msk.bf16.mxu1 %vm662_vm0, %v5523_v59  ;;  %v7181_v29 = vld [vmem:[%s9412_s1 + $0x318] sm:$0xff]   ;;  %v8107_v59 = vld [vmem:[%s7619_s21 + $0xf0] sm:$0xff] }
  0x7a   : >> { %1763 = vmatprep.subr.bf16.mxu1 %v7495_v2 }
  0x7b   : >> { %6654 = vmatpush3.bf16.msra.mxu0 %v7158_v32  ;;  %v7196_v32 = vld [vmem:[%s9412_s1 + $0x2b0] sm:$0xff]  }
  0x7c   : >> { %6655 = vmatprep.subr.bf16.mxu0 %v7164_v60  ;;  %v7201_v60 = vld [vmem:[%s9412_s1 + $0x2f8] sm:$0xff]  }
  0x7d   : >> { %1194 = vmatmul.mubr.bf16.gmra.mrb[36].mxu0 %v5524_v1  ;;  %1764 = vmatpush1.bf16.msra.mxu1 %v7145_v3  ;;  %v7203_v3 = vld [vmem:[%s9412_s1 + $0x2b8] sm:$0xff]  }
  0x7e   : >> { %1765 = vmatprep.subr.bf16.mxu1 %v7495_v2  ;;  %1201 = vmatprep.mubr.bf16.mxu0 %v5529_v5 }
  0x7f   : >> { %6656 = vmatpush3.bf16.msra.mxu0 %v7165_v6  ;;  %v7207_v6 = vld [vmem:[%s9412_s1 + $0x300] sm:$0xff]  }
  0x80   : >> { %1267 = vmatmul.mubr.bf16.gmra.mrb[32].mxu1 %v5522_v11  ;;  %6657 = vmatprep.subr.bf16.mxu0 %v7168_v30  ;;  %v8135_v11 = vld [vmem:[%s7619_s21 + $0x100] sm:$0xff]  ;;  %v8139_v30 = vld [vmem:[%s7619_s21 + $0x110] sm:$0xff] }
  0x81   : >> { %1766 = vmatpush1.bf16.msra.mxu1 %v7148_v41  ;;  %5566 = vmatprep.mubr.msk.bf16.mxu1 %vm662_vm0, %v5527_v13  ;;  %v7209_v41 = vld [vmem:[%s9412_s1 + $0x2c0] sm:$0xff]  }
  0x82   : >> { %1767 = vmatprep.subr.bf16.mxu1 %v7495_v2 }
  0x83   : >> { %6658 = vmatpush3.bf16.msra.mxu0 %v7170_v33  ;;  %v8162_v33 = vcombine.high %v8135_v11, %v8139_v30 }
  0x84   : >> { %6695 = vmatprep.subr.bf16.mxu0 %v7173_v48  ;;  %v7200_v48 = vld [vmem:[%s9412_s1 + $0x340] sm:$0xff]  }
  0x85   : >> { %1202 = vmatmul.mubr.bf16.gmra.mrb[40].mxu0 %v5528_v14  ;;  %1768 = vmatpush1.bf16.msra.mxu1 %v7154_v19  ;;  %v8183_v19 = vld [vmem:[%s7619_s21 + $0x108] sm:$0xff] }
  0x86   : >> { %1769 = vmatprep.subr.bf16.mxu1 %v7495_v2  ;;  %1209 = vmatprep.mubr.bf16.mxu0 %v5533_v20 }
  0x88   : >> { %1275 = vmatmul.mubr.bf16.gmra.mrb[36].mxu1 %v5526_v21 }
  0x89   : >> { %1770 = vmatpush1.bf16.msra.mxu1 %v7159_v42  ;;  %5567 = vmatprep.mubr.msk.bf16.mxu1 %vm662_vm0, %v5531_v55  ;;  %v7215_v42 = vld [vmem:[%s9412_s1 + $0x3a8] sm:$0xff]  }
  0x8a   : >> { %1771 = vmatprep.subr.bf16.mxu1 %v7495_v2 }
  0x8d   : >> { %1210 = vmatmul.mubr.bf16.gmra.mrb[44].mxu0 %v5532_v22  ;;  %1772 = vmatpush1.bf16.msra.mxu1 %v7163_v49  ;;  %v7218_v49 = vld [vmem:[%s9412_s1 + $0x3b0] sm:$0xff]  }
  0x8e   : >> { %1773 = vmatprep.subr.bf16.mxu1 %v7495_v2  ;;  %1708 = vmatprep.mubr.bf16.mxu0 %v7964_v53  ;;  %v7188_v53 = vld [vmem:[%s9412_s1 + $0x2e8] sm:$0xff]  }
  0x90   : >> { %1283 = vmatmul.mubr.bf16.gmra.mrb[40].mxu1 %v5530_v61 }
  0x91   : >> { %1774 = vmatpush1.bf16.msra.mxu1 %v7166_v23  ;;  %5568 = vmatprep.mubr.msk.bf16.mxu1 %vm662_vm0, %v5535_v56  ;;  %v7227_v23 = vld [vmem:[%s9412_s1 + $0x3c0] sm:$0xff]  }
  0x92   : >> { %1775 = vmatprep.subr.bf16.mxu1 %v7495_v2 }
  0x95   : >> { %1776 = vmatpush1.bf16.msra.mxu1 %v7171_v63  ;;  %1709 = vmatmul.mubr.bf16.vlgmr.msra.gmra.mrb[48].mxu0 %v5524_v1  ;;  %v5666_v1 = vcombine.high %v7821_v26, %v8107_v59  ;;  %v8274_v63 = vld [vmem:[%s7619_s21 + $0x120] sm:$0xff] }
  0x96   : >> { %1777 = vmatprep.subr.bf16.mxu1 %v7495_v2  ;;  %6696 = vmatpush3.bf16.msra.mxu0 %v7174_v9  ;;  %v7235_v9 = vld [vmem:[%s9412_s1 + $0x388] sm:$0xff]  }
  0x97   : >> { %1716 = vmatprep.mubr.bf16.mxu0 %v5529_v5  ;;  %6697 = vmatprep.subr.bf16.mxu0 %v7176_v16  ;;  %v7187_v5 = vld [vmem:[%s9412_s1 + $0x328] sm:$0xff]   ;;  %v7240_v16 = vld [vmem:[%s9412_s1 + $0x3d0] sm:$0xff]  }
  0x98   : >> { %1291 = vmatmul.mubr.bf16.gmra.mrb[44].mxu1 %v5534_v31 }
  0x99   : >> { %1778 = vmatpush1.bf16.msra.mxu1 %v7172_v36  ;;  %5700 = vmatprep.mubr.msk.bf16.mxu1 %vm662_vm0, %v5527_v13  ;;  %v8158_v13 = vld [vmem:[%s7619_s21 + $0xf8] sm:$0xff] }
  0x9a   : >> { %2308 = vmatprep.subr.bf16.mxu1 %v7495_v2  ;;  %6698 = vmatpush3.bf16.msra.mxu0 %v7177_v40  ;;  %v5667_v27 = vcombine.low %v7885_v51, %v8158_v13  ;;  %v7246_v36 = vld [vmem:[%s9412_s1 + $0x3d8] sm:$0xff]   ;;  %v7226_v40 = vld [vmem:[%s9412_s1 + $0x400] sm:$0xff]  }
  0x9b   : >> { %6699 = vmatprep.subr.bf16.mxu0 %v7179_v44  ;;  %v8309_v44 = vcombine.high %v8158_v13, %v8183_v19 }
  0x9d   : >> { %1717 = vmatmul.mubr.bf16.gmra.mrb[52].mxu0 %v5528_v14  ;;  %v8180_v14 = vcombine.low %v8135_v11, %v8139_v30 }
  0x9e   : >> { %1724 = vmatprep.mubr.bf16.mxu0 %v5533_v20  ;;  %6700 = vmatpush3.bf16.msra.mxu0 %v7180_v18  ;;  %v8187_v20 = vld [vmem:[%s7619_s21 + $0x118] sm:$0xff]  ;;  %v8314_v18 = vld [vmem:[%s7619_s21 + $0x130] sm:$0xff] }
  0x9f   : >> { %6701 = vmatprep.subr.bf16.mxu0 %v7182_v38  ;;  %v8317_v38 = vld [vmem:[%s7619_s21 + $0x140] sm:$0xff] }
  0xa0   : >> { %1790 = vmatmul.mubr.bf16.vlgmr.msra.gmra.mrb[48].mxu1 %v5526_v21  ;;  %v7213_v21 = vld [vmem:[%s9412_s1 + $0x360] sm:$0xff]  }
  0xa1   : >> { %2309 = vmatpush1.bf16.msra.mxu1 %v7175_v46  ;;  %5701 = vmatprep.mubr.msk.bf16.mxu1 %vm662_vm0, %v5531_v55  ;;  %v7211_v55 = vld [vmem:[%s9412_s1 + $0x358] sm:$0xff]  }
  0xa2   : >> { %2310 = vmatprep.subr.bf16.mxu1 %v7495_v2  ;;  %6702 = vmatpush3.bf16.msra.mxu0 %v7184_v50  ;;  %v7248_v46 = vld [vmem:[%s9412_s1 + $0x398] sm:$0xff]  }
  0xa3   : >> { %6703 = vmatprep.subr.bf16.mxu0 %v7188_v53  ;;  %v7254_v50 = vld [vmem:[%s9412_s1 + $0x478] sm:$0xff]   ;;  %v7230_v53 = vld [vmem:[%s9412_s1 + $0x408] sm:$0xff]  }
  0xa5   : >> { %2311 = vmatpush1.bf16.msra.mxu1 %v7178_v57  ;;  %1725 = vmatmul.mubr.bf16.gmra.mrb[56].mxu0 %v5532_v22  ;;  %v7216_v22 = vld [vmem:[%s9412_s1 + $0x368] sm:$0xff]   ;;  %v8333_v57 = vcombine.low %v8139_v30, %v8274_v63 }
  0xa6   : >> { %2312 = vmatprep.subr.bf16.mxu1 %v7495_v2  ;;  %1732 = vmatprep.mubr.bf16.mxu0 %v5662_v10  ;;  %v7183_v10 = vld [vmem:[%s9412_s1 + $0x320] sm:$0xff]  }
  0xa7   : >> { %6704 = vmatpush3.bf16.msra.mxu0 %v7189_v58  ;;  %v8341_v58 = vcombine.high %v8314_v18, %v8317_v38 }
  0xa8   : >> { %1798 = vmatmul.mubr.bf16.gmra.mrb[52].mxu1 %v5530_v61  ;;  %6705 = vmatprep.subr.bf16.mxu0 %v7195_v24  ;;  %v7214_v61 = vld [vmem:[%s9412_s1 + $0x3e0] sm:$0xff]   ;;  %v8345_v24 = vcombine.low %v8158_v13, %v8183_v19 }
  0xa9   : >> { %2313 = vmatpush1.bf16.msra.mxu1 %v7181_v29  ;;  %5702 = vmatprep.mubr.msk.bf16.mxu1 %vm662_vm0, %v5535_v56  ;;  %v7234_v56 = vld [vmem:[%s9412_s1 + $0x3c8] sm:$0xff]   ;;  %v7236_v29 = vld [vmem:[%s9412_s1 + $0x410] sm:$0xff]  }
  0xaa   : >> { %2314 = vmatprep.subr.bf16.mxu1 %v7495_v2 }
  0xab   : >> { %6706 = vmatpush3.bf16.msra.mxu0 %v7196_v32 }
  0xac   : >> { %6707 = vmatprep.subr.bf16.mxu0 %v7201_v60  ;;  %v7239_v60 = vld [vmem:[%s9412_s1 + $0x418] sm:$0xff]  }
  0xad   : >> { %2315 = vmatpush1.bf16.msra.mxu1 %v7183_v10  ;;  %1733 = vmatmul.mubr.bf16.gmra.mrb[60].mxu0 %v5661_v12  ;;  %v5665_v12 = vcombine.low %v7821_v26, %v8107_v59  ;;  %v5668_v26 = vcombine.high %v7885_v51, %v8158_v13  ;;  %v7210_v51 = vld [vmem:[%s9412_s1 + $0x350] sm:$0xff]   ;;  %v8362_v10 = vcombine.low %v8314_v18, %v8317_v38 }
  0xae   : >> { %2316 = vmatprep.subr.bf16.mxu1 %v7495_v2  ;;  %1740 = vmatprep.mubr.bf16.mxu0 %v5666_v1  ;;  %v8365_v1 = vld [vmem:[%s7619_s21 + $0x138] sm:$0xff] }
  0xaf   : >> { %6708 = vmatpush3.bf16.msra.mxu0 %v7203_v3  ;;  %v8369_v3 = vld [vmem:[%s7619_s21 + $0x148] sm:$0xff] }
  0xb0   : >> { %1806 = vmatmul.mubr.bf16.gmra.mrb[56].mxu1 %v5534_v31  ;;  %6709 = vmatprep.subr.bf16.mxu0 %v7207_v6  ;;  %v8290_v31 = vcombine.low %v8107_v59, %v8135_v11 }
  0xb1   : >> { %2317 = vmatpush1.bf16.msra.mxu1 %v7187_v5  ;;  %5703 = vmatprep.mubr.msk.bf16.mxu1 %vm662_vm0, %v5664_v34  ;;  %v7197_v34 = vld [vmem:[%s9412_s1 + $0x338] sm:$0xff]   ;;  %v7252_v5 = vld [vmem:[%s7619_s21 + $0xc4] ss:$16 sps:$4 sm:$0xff]  }
  0xb2   : >> { %2318 = vmatprep.subr.bf16.mxu1 %v7495_v2 }
  0xb3   : >> { %6710 = vmatpush3.bf16.msra.mxu0 %v7209_v41  ;;  %v7249_v41 = vld [vmem:[%s9412_s1 + $0x428] sm:$0xff]  }
  0xb4   : >> { %6747 = vmatprep.subr.bf16.mxu0 %v7212_v7  ;;  %v5849_v7 = vld [vmem:[%s7619_s21 + $0xe0] sm:$0xff] }
  0xb5   : >> { %2319 = vmatpush1.bf16.msra.mxu1 %v7191_v8  ;;  %1741 = vmatmul.mubr.bf16.gmra.mrb[64].mxu0 %v5665_v12  ;;  %v7250_v8 = vld [vmem:[%s7619_s21 + $0xc0] ss:$16 sps:$4 sm:$0xff]   ;;  %v7255_v12 = vld [vmem:[%s9412_s1 + $0x438] sm:$0xff]  }
  0xb6   : >> { %2320 = vmatprep.subr.bf16.mxu1 %v7495_v2  ;;  %1748 = vmatprep.mubr.bf16.mxu0 %v8162_v33 }
  0xb8   : >> { %1814 = vmatmul.mubr.bf16.gmra.mrb[60].mxu1 %v5663_v35  ;;  %v8197_v35 = vcombine.high %v8183_v19, %v8187_v20 }
  0xb9   : >> { %2321 = vmatpush1.bf16.msra.mxu1 %v7197_v34  ;;  %5704 = vmatprep.mubr.msk.bf16.mxu1 %vm662_vm0, %v5668_v26  ;;  %v7253_v34 = vld [vmem:[%s9412_s1 + $0x430] sm:$0xff]   ;;  %v5928_v26 = vcombine.high %v5849_v7, %v8107_v59 }
  0xba   : >> { %2322 = vmatprep.subr.bf16.mxu1 %v7495_v2 }
  0xbd   : >> { %2323 = vmatpush1.bf16.msra.mxu1 %v7200_v48  ;;  %1749 = vmatmul.mubr.bf16.gmra.mrb[68].mxu0 %v8180_v14  ;;  %v7262_v48 = vld [vmem:[%s9412_s1 + $0x480] sm:$0xff]  }
  0xbe   : >> { %2324 = vmatprep.subr.bf16.mxu1 %v7495_v2  ;;  %2259 = vmatprep.mubr.bf16.mxu0 %v7746_v62  ;;  %v8215_v62 = vcombine.low %v8183_v19, %v8187_v20  ;;  %v8403_v19 = vcombine.low %v8365_v1, %v8369_v3 }
  0xc0   : >> { %1822 = vmatmul.mubr.bf16.gmra.mrb[64].mxu1 %v5667_v27  ;;  %v7263_v27 = vld [vmem:[%s9412_s1 + $0x440] sm:$0xff]  }
  0xc1   : >> { %2325 = vmatpush1.bf16.msra.mxu1 %v7205_v28  ;;  %5705 = vmatprep.mubr.msk.bf16.mxu1 %vm662_vm0, %v8197_v35  ;;  %v7267_v28 = vld [vmem:[%s9412_s1 + $0x488] sm:$0xff]  }
  0xc2   : >> { %2326 = vmatprep.subr.bf16.mxu1 %v7495_v2 }
  0xc5   : >> { %2327 = vmatpush1.bf16.msra.mxu1 %v7210_v51  ;;  %2260 = vmatmul.mubr.bf16.vlgmr.msra.gmra.mrb[72].mxu0 %v7790_v15  ;;  %v7219_v15 = vld [vmem:[%s9412_s1 + $0x370] sm:$0xff]   ;;  %v5927_v51 = vcombine.low %v5849_v7, %v8107_v59 }
  0xc6   : >> { %2328 = vmatprep.subr.bf16.mxu1 %v7495_v2  ;;  %6748 = vmatpush3.bf16.msra.mxu0 %v7213_v21  ;;  %v5850_v21 = vld [vmem:[%s7619_s21 + $0xe8] sm:$0xff] }
  0xc7   : >> { %2267 = vmatprep.mubr.bf16.mxu0 %v7799_v17  ;;  %6749 = vmatprep.subr.bf16.mxu0 %v7215_v42  ;;  %v7221_v17 = vld [vmem:[%s9412_s1 + $0x3b8] sm:$0xff]   ;;  %v7268_v42 = vld [vmem:[%s9412_s1 + $0x448] sm:$0xff]  }
  0xc8   : >> { %1830 = vmatmul.mubr.bf16.gmra.mrb[68].mxu1 %v8215_v62 }
  0xc9   : >> { %2329 = vmatpush1.bf16.msra.mxu1 %v7211_v55  ;;  %5837 = vmatprep.mubr.msk.bf16.mxu1 %vm662_vm0, %v7818_v25  ;;  %v7223_v25 = vld [vmem:[%s9412_s1 + $0x378] sm:$0xff]   ;;  %v7270_v55 = vld [vmem:[%s9412_s1 + $0x490] sm:$0xff]  }
  0xca   : >> { %2859 = vmatprep.subr.bf16.mxu1 %v7495_v2  ;;  %6750 = vmatpush3.bf16.msra.mxu0 %v7216_v22  ;;  %v7256_v22 = vld [vmem:[%s7619_s21 + $0xc8] ss:$16 sps:$4 sm:$0xff]  }
  0xcb   : >> { %6751 = vmatprep.subr.bf16.mxu0 %v7218_v49  ;;  %v7259_v49 = vld [vmem:[%s9412_s1 + $0x4b8] sm:$0xff]  }
  0xcd   : >> { %2268 = vmatmul.mubr.bf16.gmra.mrb[76].mxu0 %v7843_v37  ;;  %v7217_v37 = vld [vmem:[%s9412_s1 + $0x3e8] sm:$0xff]  }
  0xce   : >> { %2275 = vmatprep.mubr.bf16.mxu0 %v7853_v39  ;;  %6752 = vmatpush3.bf16.msra.mxu0 %v7219_v15  ;;  %v8259_v39 = vcombine.high %v8107_v59, %v8135_v11  ;;  %v7244_v11 = vld [vmem:[%s9412_s1 + $0x420] sm:$0xff]   ;;  %v5930_v59 = vcombine.high %v5850_v21, %v8158_v13  ;;  %v7272_v15 = vld [vmem:[%s9412_s1 + $0x450] sm:$0xff]  }
  0xcf   : >> { %6753 = vmatprep.subr.bf16.mxu0 %v7221_v17  ;;  %v7276_v17 = vld [vmem:[%s9412_s1 + $0x498] sm:$0xff]  }
  0xd0   : >> { %2341 = vmatmul.mubr.bf16.vlgmr.msra.gmra.mrb[72].mxu1 %v7860_v43  ;;  %v7228_v43 = vld [vmem:[%s9412_s1 + $0x380] sm:$0xff]  }
  0xd1   : >> { %2860 = vmatpush1.bf16.msra.mxu1 %v7214_v61  ;;  %5838 = vmatprep.mubr.msk.bf16.mxu1 %vm662_vm0, %v7868_v45  ;;  %v7220_v45 = vld [vmem:[%s9412_s1 + $0x3f0] sm:$0xff]   ;;  %v7264_v61 = vld [vmem:[%s9412_s1 + $0x4c0] sm:$0xff]  }
  0xd2   : >> { %2861 = vmatprep.subr.bf16.mxu1 %v7495_v2  ;;  %6754 = vmatpush3.bf16.msra.mxu0 %v7223_v25  ;;  %v7277_v25 = vld [vmem:[%s9412_s1 + $0x458] sm:$0xff]  }
  0xd3   : >> { %6755 = vmatprep.subr.bf16.mxu0 %v7227_v23  ;;  %v5929_v23 = vcombine.low %v5850_v21, %v8158_v13  ;;  %v8459_v13 = vld [vmem:[%s7619_s21 + $0x150] sm:$0xff] }
  0xd5   : >> { %2862 = vmatpush1.bf16.msra.mxu1 %v7217_v37  ;;  %2276 = vmatmul.mubr.bf16.gmra.mrb[80].mxu0 %v7878_v47  ;;  %v7222_v47 = vld [vmem:[%s9412_s1 + $0x3f8] sm:$0xff]   ;;  %v7283_v37 = vld [vmem:[%s9412_s1 + $0x4a0] sm:$0xff]  }
  0xd6   : >> { %2863 = vmatprep.subr.bf16.mxu1 %v7495_v2  ;;  %2283 = vmatprep.mubr.bf16.mxu0 %v8259_v39 }
  0xd7   : >> { %6756 = vmatpush3.bf16.msra.mxu0 %v7228_v43  ;;  %v7269_v43 = vld [vmem:[%s9412_s1 + $0x4c8] sm:$0xff]  }
  0xd8   : >> { %2349 = vmatmul.mubr.bf16.gmra.mrb[76].mxu1 %v7889_v52  ;;  %6757 = vmatprep.subr.bf16.mxu0 %v7234_v56  ;;  %v8295_v52 = vcombine.high %v8139_v30, %v8274_v63  ;;  %v8380_v30 = vcombine.high %v8365_v1, %v8369_v3  ;;  %v7271_v56 = vld [vmem:[%s9412_s1 + $0x4d0] sm:$0xff]  }
  0xd9   : >> { %2864 = vmatpush1.bf16.msra.mxu1 %v7220_v45  ;;  %5839 = vmatprep.mubr.msk.bf16.mxu1 %vm662_vm0, %v7897_v54  ;;  %v7242_v54 = vld [vmem:[%s9412_s1 + $0x390] sm:$0xff]   ;;  %v7284_v45 = vld [vmem:[%s9412_s1 + $0x460] sm:$0xff]  }
  0xda   : >> { %2865 = vmatprep.subr.bf16.mxu1 %v7495_v2 }
  0xdb   : >> { %6758 = vmatpush3.bf16.msra.mxu0 %v7235_v9 }
  0xdc   : >> { %6759 = vmatprep.subr.bf16.mxu0 %v7240_v16 }
  0xdd   : >> { %2866 = vmatpush1.bf16.msra.mxu1 %v7222_v47  ;;  %2284 = vmatmul.mubr.bf16.gmra.mrb[84].mxu0 %v8290_v31  ;;  %v5935_v47 = vcombine.low %v8274_v63, %v8314_v18 }
  0xde   : >> { %2867 = vmatprep.subr.bf16.mxu1 %v7495_v2  ;;  %2291 = vmatprep.mubr.bf16.mxu0 %v8295_v52 }
  0xdf   : >> { %6760 = vmatpush3.bf16.msra.mxu0 %v7242_v54  ;;  %v7291_v54 = vld [vmem:[%s9412_s1 + $0x468] sm:$0xff]  }
  0xe0   : >> { %2357 = vmatmul.mubr.bf16.gmra.mrb[80].mxu1 %v7918_v4  ;;  %6761 = vmatprep.subr.bf16.mxu0 %v7246_v36  ;;  %v8337_v4 = vld [vmem:[%s7619_s21 + $0x128] sm:$0xff] }
  0xe1   : >> { %2868 = vmatpush1.bf16.msra.mxu1 %v7226_v40  ;;  %5840 = vmatprep.mubr.msk.bf16.mxu1 %vm662_vm0, %v8309_v44  ;;  %v5805_v32 = vcombine.high %v8187_v20, %v8337_v4  ;;  %v5804_v6 = vcombine.low %v8187_v20, %v8337_v4  ;;  %v7258_v20 = vld [vmem:[%s7619_s21 + $0xcc] ss:$16 sps:$4 sm:$0xff]  }
  0xe2   : >> { %2869 = vmatprep.subr.bf16.mxu1 %v7495_v2 }
  0xe3   : >> { %6762 = vmatpush3.bf16.msra.mxu0 %v7248_v46  ;;  %v5940_v46 = vcombine.high %v8317_v38, %v8459_v13 }
  0xe4   : >> { %6799 = vmatprep.subr.bf16.mxu0 %v7254_v50 }
  0xe5   : >> { %2870 = vmatpush1.bf16.msra.mxu1 %v7230_v53  ;;  %2292 = vmatmul.mubr.bf16.gmra.mrb[88].mxu0 %v8333_v57  ;;  %v5938_v53 = vcombine.high %v8337_v4, %v8365_v1 }
  0xe6   : >> { %2871 = vmatprep.subr.bf16.mxu1 %v7495_v2  ;;  %2299 = vmatprep.mubr.bf16.mxu0 %v8341_v58 }
  0xe8   : >> { %2365 = vmatmul.mubr.bf16.gmra.mrb[84].mxu1 %v8345_v24 }
  0xe9   : >> { %2872 = vmatpush1.bf16.msra.mxu1 %v7236_v29  ;;  %5841 = vmatprep.mubr.msk.bf16.mxu1 %vm662_vm0, %v5805_v32  ;;  %v8486_v29 = vld [vmem:[%s7619_s21 + $0x160] sm:$0xff]  ;;  %v8490_v32 = vld [vmem:[%s7619_s21 + $0x170] sm:$0xff] }
  0xea   : >> { %2873 = vmatprep.subr.bf16.mxu1 %v7495_v2 }
  0xed   : >> { %2874 = vmatpush1.bf16.msra.mxu1 %v7239_v60  ;;  %2300 = vmatmul.mubr.bf16.gmra.mrb[92].mxu0 %v8362_v10  ;;  %v7297_v60 = vld [vmem:[%s9412_s1 + $0x470] sm:$0xff]  }
  0xee   : >> { %2875 = vmatprep.subr.bf16.mxu1 %v7495_v2  ;;  %2810 = vmatprep.mubr.bf16.mxu0 %v7252_v5 }
  0xf0   : >> { %2373 = vmatmul.mubr.bf16.gmra.mrb[88].mxu1 %v5804_v6  ;;  %v7279_v6 = vld [vmem:[%s9412_s1 + $0x4e0] sm:$0xff]  }
  0xf1   : >> { %2876 = vmatpush1.bf16.msra.mxu1 %v7244_v11  ;;  %5842 = vmatprep.mubr.msk.bf16.mxu1 %vm662_vm0, %v8380_v30  ;;  %v8500_v11 = vld [vmem:[%s7619_s21 + $0x158] sm:$0xff] }
  0xf2   : >> { %2877 = vmatprep.subr.bf16.mxu1 %v7495_v2 }
  0xf5   : >> { %2878 = vmatpush1.bf16.msra.mxu1 %v7249_v41  ;;  %2811 = vmatmul.mubr.bf16.vlgmr.msra.gmra.mrb[96].mxu0 %v7250_v8  ;;  %v7300_v41 = vld [vmem:[%s9412_s1 + $0x550] sm:$0xff]   ;;  %v5939_v8 = vcombine.low %v8317_v38, %v8459_v13 }
  0xf6   : >> { %2879 = vmatprep.subr.bf16.mxu1 %v7495_v2  ;;  %6800 = vmatpush3.bf16.msra.mxu0 %v7255_v12 }
  0xf7   : >> { %2818 = vmatprep.mubr.bf16.mxu0 %v5928_v26  ;;  %6801 = vmatprep.subr.bf16.mxu0 %v7262_v48 }
  0xf8   : >> { %2381 = vmatmul.mubr.bf16.gmra.mrb[92].mxu1 %v8403_v19 }
  0xf9   : >> { %2880 = vmatpush1.bf16.msra.mxu1 %v7253_v34  ;;  %5974 = vmatprep.mubr.msk.bf16.mxu1 %vm662_vm0, %v7258_v20  ;;  %v8511_v34 = vcombine.high %v8486_v29, %v8490_v32 }
  0xfa   : >> { %3410 = vmatprep.subr.bf16.mxu1 %v7495_v2  ;;  %6802 = vmatpush3.bf16.msra.mxu0 %v7263_v27 }
  0xfb   : >> { %6803 = vmatprep.subr.bf16.mxu0 %v7267_v28  ;;  %v5937_v28 = vcombine.low %v8337_v4, %v8365_v1 }
  0xfd   : >> { %2819 = vmatmul.mubr.bf16.gmra.mrb[100].mxu0 %v5927_v51  ;;  %v7285_v51 = vld [vmem:[%s9412_s1 + $0x4e8] sm:$0xff]  }
  0xfe   : >> { %2826 = vmatprep.mubr.bf16.mxu0 %v8162_v33  ;;  %6804 = vmatpush3.bf16.msra.mxu0 %v7268_v42  ;;  %v5936_v33 = vcombine.high %v8274_v63, %v8314_v18  ;;  %v7295_v63 = vld [vmem:[%s9412_s1 + $0x4b0] sm:$0xff]   ;;  %v5942_v42 = vcombine.high %v8369_v3, %v8500_v11 }
  0xff   : >> { %6805 = vmatprep.subr.bf16.mxu0 %v7270_v55 }
 0x100   : >> { %2892 = vmatmul.mubr.bf16.vlgmr.msra.gmra.mrb[96].mxu1 %v7256_v22 }
 0x101   : >> { %3411 = vmatpush1.bf16.msra.mxu1 %v7259_v49  ;;  %5975 = vmatprep.mubr.msk.bf16.mxu1 %vm662_vm0, %v5930_v59  ;;  %v7288_v49 = vld [vmem:[%s9412_s1 + $0x4f0] sm:$0xff]   ;;  %v8530_v59 = vld [vmem:[%s7619_s21 + $0x168] sm:$0xff] }
 0x102   : >> { %3412 = vmatprep.subr.bf16.mxu1 %v7495_v2  ;;  %6806 = vmatpush3.bf16.msra.mxu0 %v7272_v15  ;;  %v8533_v15 = vld [vmem:[%s7619_s21 + $0x178] sm:$0xff] }
 0x103   : >> { %6807 = vmatprep.subr.bf16.mxu0 %v7276_v17 }
 0x105   : >> { %3413 = vmatpush1.bf16.msra.mxu1 %v7264_v61  ;;  %2827 = vmatmul.mubr.bf16.gmra.mrb[104].mxu0 %v8180_v14  ;;  %v7289_v14 = vld [vmem:[%s9412_s1 + $0x4a8] sm:$0xff]   ;;  %v8538_v61 = vcombine.low %v8486_v29, %v8490_v32 }
 0x106   : >> { %3414 = vmatprep.subr.bf16.mxu1 %v7495_v2  ;;  %2834 = vmatprep.mubr.bf16.mxu0 %v5936_v33 }
 0x107   : >> { %6808 = vmatpush3.bf16.msra.mxu0 %v7277_v25 }
 0x108   : >> { %2900 = vmatmul.mubr.bf16.gmra.mrb[100].mxu1 %v5929_v23  ;;  %v6555_v9 = vpop.f32.mrb[0].mxu0  ;;  %6809 = vmatprep.subr.bf16.mxu0 %v7283_v37 }
 0x109   : >> { %3415 = vmatpush1.bf16.msra.mxu1 %v7269_v43  ;;  %v6556_v16 = vpop.f32.mrb[1].mxu0  ;;  %5976 = vmatprep.mubr.msk.bf16.mxu1 %vm662_vm0, %v8197_v35  ;;  %v7275_v35 = vld [vmem:[%s9412_s1 + $0x4d8] sm:$0xff]  }
 0x10a   : >> { %3416 = vmatprep.subr.bf16.mxu1 %v7495_v2  ;;  %v6557_v36 = vadd.f32 %v6556_v16, %v6555_v9  ;;  %v6558_v40 = vpop.f32.mrb[2].mxu0  ;;  %v7293_v43 = vld [vmem:[%s9412_s1 + $0x4f8] sm:$0xff]   ;;  %v5941_v9 = vcombine.low %v8369_v3, %v8500_v11 }
 0x10b   : >> { %v6559_v50 = vpop.f32.mrb[3].mxu0  ;;  %6810 = vmatpush3.bf16.msra.mxu0 %v7284_v45 }
 0x10c   : >> { %v6560_v18 = vadd.f32 %v6559_v50, %v6558_v40  ;;  %6811 = vmatprep.subr.bf16.mxu0 %v7289_v14 }
 0x10d   : >> { %3417 = vmatpush1.bf16.msra.mxu1 %v7271_v56  ;;  %2835 = vmatmul.mubr.bf16.gmra.mrb[108].mxu0 %v5935_v47  ;;  %v8551_v47 = vcombine.high %v8530_v59, %v8533_v15 }
 0x10e   : >> { %3418 = vmatprep.subr.bf16.mxu1 %v7495_v2  ;;  %2842 = vmatprep.mubr.bf16.mxu0 %v5940_v46  ;;  %v7298_v46 = vld [vmem:[%s9412_s1 + $0x500] sm:$0xff]  }
 0x10f   : >> { %6812 = vmatpush3.bf16.msra.mxu0 %v7291_v54 }
 0x110   : >> { %2908 = vmatmul.mubr.bf16.gmra.mrb[104].mxu1 %v8215_v62  ;;  %v6561_v5 = vpop.f32.mrb[4].mxu0  ;;  %6813 = vmatprep.subr.bf16.mxu0 %v7295_v63  ;;  %v7301_v63 = vld [vmem:[%s9412_s1 + $0x510] sm:$0xff]  }
 0x111   : >> { %3419 = vmatpush1.bf16.msra.mxu1 %v7275_v35  ;;  %v6562_v7 = vpop.f32.mrb[5].mxu0  ;;  %5977 = vmatprep.mubr.msk.bf16.mxu1 %vm662_vm0, %v5938_v53  ;;  %v7303_v53 = vld [vmem:[%s9412_s1 + $0x558] sm:$0xff]  }
 0x112   : >> { %3420 = vmatprep.subr.bf16.mxu1 %v7495_v2  ;;  %v6563_v62 = vadd.f32 %v6562_v7, %v6561_v5  ;;  %v6564_v12 = vpop.f32.mrb[6].mxu0 }
 0x113   : >> { %v796_v26 = vpop.f32.mrb[0].mxu1  ;;  %v6565_v48 = vpop.f32.mrb[7].mxu0  ;;  %6814 = vmatpush3.bf16.msra.mxu0 %v7297_v60 }
 0x114   : >> { %v8513_v20 = vadd.f32 %v6557_v36, %v796_v26  ;;  %v798_v27 = vpop.f32.mrb[1].mxu1  ;;  %v6566_v38 = vadd.f32 %v6565_v48, %v6564_v12  ;;  %6851 = vmatprep.subr.bf16.mxu0 %v7300_v41  ;;  %v7304_v26 = vld [vmem:[%s9412_s1 + $0x518] sm:$0xff]  }
 0x115   : >> { %v799_v21 = vpop.f32.mrb[2].mxu1  ;;  %3421 = vmatpush1.bf16.msra.mxu1 %v7279_v6  ;;  %2843 = vmatmul.mubr.bf16.gmra.mrb[112].mxu0 %v5939_v8  ;;  %v8573_v6 = vcombine.low %v8530_v59, %v8533_v15  ;;  %v7299_v8 = vld [vmem:[%s9412_s1 + $0x508] sm:$0xff]  }
 0x116   : >> { %v8522_v55 = vadd.f32 %v6560_v18, %v799_v21  ;;  %v801_v22 = vpop.f32.mrb[3].mxu1  ;;  %3422 = vmatprep.subr.bf16.mxu1 %v7495_v2  ;;  %2850 = vmatprep.mubr.bf16.mxu0 %v8511_v34 }
 0x117   : >> { %v7311_v22 = vld [vmem:[%s9412_s1 + $0x568] sm:$0xff]  }
 0x118   : >> { %2916 = vmatmul.mubr.bf16.gmra.mrb[108].mxu1 %v5937_v28  ;;  %v6567_v1 = vpop.f32.mrb[8].mxu0 }
 0x119   : >> { %3423 = vmatpush1.bf16.msra.mxu1 %v7285_v51  ;;  %v6568_v17 = vpop.f32.mrb[9].mxu0  ;;  %5978 = vmatprep.mubr.msk.bf16.mxu1 %vm662_vm0, %v5942_v42  ;;  %v5987_v51 = vld [vmem:[%s7619_s21 + $0x118] sm:$0xff] }
 0x11a   : >> { %v6569_v33 = vadd.f32 %v6568_v17, %v6567_v1  ;;  %3424 = vmatprep.subr.bf16.mxu1 %v7495_v2  ;;  %v6570_v25 = vpop.f32.mrb[10].mxu0 }
 0x11b   : >> { %v804_v23 = vpop.f32.mrb[4].mxu1  ;;  %v6571_v37 = vpop.f32.mrb[11].mxu0 }
 0x11c   : >> { %v8544_v56 = vadd.f32 %v6563_v62, %v804_v23  ;;  %v806_v45 = vpop.f32.mrb[5].mxu1  ;;  %v6572_v14 = vadd.f32 %v6571_v37, %v6570_v25  ;;  %v6067_v25 = vcombine.high %v5987_v51, %v8337_v4 }
 0x11d   : >> { %v807_v16 = vpop.f32.mrb[6].mxu1  ;;  %3425 = vmatpush1.bf16.msra.mxu1 %v7288_v49  ;;  %2851 = vmatmul.mubr.bf16.gmra.mrb[116].mxu0 %v8538_v61  ;;  %v7317_v45 = vld [vmem:[%s9412_s1 + $0x570] sm:$0xff]  }
 0x11e   : >> { %v8553_v54 = vadd.f32 %v6566_v38, %v807_v16  ;;  %v809_v36 = vpop.f32.mrb[7].mxu1  ;;  %3426 = vmatprep.subr.bf16.mxu1 %v7495_v2  ;;  %3361 = vmatprep.mubr.bf16.mxu0 %v8259_v39 }
 0x11f   : >> { %v6073_v36 = vcombine.high %v8459_v13, %v8486_v29 }
 0x120   : >> { %2924 = vmatmul.mubr.bf16.gmra.mrb[112].mxu1 %v5941_v9  ;;  %v6573_v40 = vpop.f32.mrb[12].mxu0 }
 0x121   : >> { %3427 = vmatpush1.bf16.msra.mxu1 %v7293_v43  ;;  %v6574_v3 = vpop.f32.mrb[13].mxu0  ;;  %5979 = vmatprep.mubr.msk.bf16.mxu1 %vm662_vm0, %v8551_v47  ;;  %v7313_v43 = vld [vmem:[%s9412_s1 + $0x528] sm:$0xff]  }
 0x122   : >> { %v6575_v50 = vadd.f32 %v6574_v3, %v6573_v40  ;;  %v6576_v35 = vpop.f32.mrb[14].mxu0  ;;  %3428 = vmatprep.subr.bf16.mxu1 %v7495_v2 }
 0x123   : >> { %v812_v39 = vpop.f32.mrb[8].mxu1  ;;  %v6577_v18 = vpop.f32.mrb[15].mxu0 }
 0x124   : >> { %v8569_v60 = vadd.f32 %v6569_v33, %v812_v39  ;;  %v814_v5 = vpop.f32.mrb[9].mxu1  ;;  %v6578_v41 = vadd.f32 %v6577_v18, %v6576_v35  ;;  %v7302_v33 = vld [vmem:[%s9412_s1 + $0x590] sm:$0xff]   ;;  %v7324_v39 = vld [vmem:[%s9412_s1 + $0x578] sm:$0xff]  }
 0x125   : >> { %v815_v7 = vpop.f32.mrb[10].mxu1  ;;  %3429 = vmatpush1.bf16.msra.mxu1 %v7298_v46  ;;  %3362 = vmatmul.mubr.bf16.vlgmr.msra.gmra.mrb[120].mxu0 %v8290_v31  ;;  %v7308_v31 = vld [vmem:[%s9412_s1 + $0x560] sm:$0xff]  }
 0x126   : >> { %v8579_v62 = vadd.f32 %v6572_v14, %v815_v7  ;;  %v817_v12 = vpop.f32.mrb[11].mxu1  ;;  %3430 = vmatprep.subr.bf16.mxu1 %v7495_v2  ;;  %6852 = vmatpush3.bf16.msra.mxu0 %v7301_v63  ;;  %v7305_v14 = vld [vmem:[%s9412_s1 + $0x598] sm:$0xff]   ;;  %v6066_v63 = vcombine.low %v5987_v51, %v8337_v4  ;;  %v8641_v4 = vld [vmem:[%s7619_s21 + $0x180] sm:$0xff] }
 0x127   : >> { %3369 = vmatprep.mubr.bf16.mxu0 %v8295_v52  ;;  %6853 = vmatprep.subr.bf16.mxu0 %v7303_v53  ;;  %v7309_v52 = vld [vmem:[%s9412_s1 + $0x520] sm:$0xff]   ;;  %v7325_v7 = vld [vmem:[%s9412_s1 + $0x538] sm:$0xff]  }
 0x128   : >> { %2932 = vmatmul.mubr.bf16.gmra.mrb[116].mxu1 %v8573_v6  ;;  %v6579_v48 = vpop.f32.mrb[16].mxu0  ;;  %v7310_v53 = vld [vmem:[%s9412_s1 + $0x5a0] sm:$0xff]  }
 0x129   : >> { %3431 = vmatpush1.bf16.msra.mxu1 %v7299_v8  ;;  %v6580_v27 = vpop.f32.mrb[17].mxu0  ;;  %6111 = vmatprep.mubr.msk.bf16.mxu1 %vm662_vm0, %v8309_v44 }
 0x12a   : >> { %v6581_v28 = vadd.f32 %v6580_v27, %v6579_v48  ;;  %v6582_v38 = vpop.f32.mrb[18].mxu0  ;;  %3961 = vmatprep.subr.bf16.mxu1 %v7495_v2  ;;  %6854 = vmatpush3.bf16.msra.mxu0 %v7304_v26  ;;  %v7312_v26 = vld [vmem:[%s9412_s1 + $0x5a8] sm:$0xff]  }
 0x12b   : >> { %v820_v21 = vpop.f32.mrb[12].mxu1  ;;  %v6583_v42 = vpop.f32.mrb[19].mxu0  ;;  %6855 = vmatprep.subr.bf16.mxu0 %v7308_v31  ;;  %v6072_v31 = vcombine.low %v8459_v13, %v8486_v29 }
 0x12c   : >> { %v8600_v1 = vadd.f32 %v6575_v50, %v820_v21  ;;  %v822_v44 = vpop.f32.mrb[13].mxu1  ;;  %v6584_v49 = vadd.f32 %v6583_v42, %v6582_v38 }
 0x12d   : >> { %v823_v17 = vpop.f32.mrb[14].mxu1  ;;  %3370 = vmatmul.mubr.bf16.gmra.mrb[124].mxu0 %v8333_v57 }
 0x12e   : >> { %v8607_v23 = vadd.f32 %v6578_v41, %v823_v17  ;;  %v825_v37 = vpop.f32.mrb[15].mxu1  ;;  %3377 = vmatprep.mubr.bf16.mxu0 %v8341_v58  ;;  %6856 = vmatpush3.bf16.msra.mxu0 %v7309_v52  ;;  %v6075_v17 = vcombine.high %v8500_v11, %v8530_v59 }
 0x12f   : >> { %6857 = vmatprep.subr.bf16.mxu0 %v7311_v22  ;;  %v7336_v22 = vld [vmem:[%s9412_s1 + $0x588] sm:$0xff]   ;;  %v8678_v37 = vld [vmem:[%s7619_s21 + $0x190] sm:$0xff] }
 0x130   : >> { %3443 = vmatmul.mubr.bf16.vlgmr.msra.gmra.mrb[120].mxu1 %v8345_v24  ;;  %v6585_v57 = vpop.f32.mrb[20].mxu0  ;;  %v7318_v24 = vld [vmem:[%s9412_s1 + $0x530] sm:$0xff]  }
 0x131   : >> { %3962 = vmatpush1.bf16.msra.mxu1 %v7302_v33  ;;  %v6586_v9 = vpop.f32.mrb[21].mxu0  ;;  %6112 = vmatprep.mubr.msk.bf16.mxu1 %vm662_vm0, %v6067_v25 }
 0x132   : >> { %v6587_v58 = vadd.f32 %v6586_v9, %v6585_v57  ;;  %3963 = vmatprep.subr.bf16.mxu1 %v7495_v2  ;;  %v6588_v16 = vpop.f32.mrb[22].mxu0  ;;  %6858 = vmatpush3.bf16.msra.mxu0 %v7313_v43  ;;  %v8681_v43 = vld [vmem:[%s7619_s21 + $0x1a0] sm:$0xff]  ;;  %v7344_v9 = vld [vmem:[%s9412_s1 + $0x628] sm:$0xff]  }
 0x133   : >> { %v828_v40 = vpop.f32.mrb[16].mxu1  ;;  %v6589_v3 = vpop.f32.mrb[23].mxu0  ;;  %6859 = vmatprep.subr.bf16.mxu0 %v7317_v45  ;;  %v7338_v45 = vld [vmem:[%s9412_s1 + $0x548] sm:$0xff]  }
 0x134   : >> { %v8627_v46 = vadd.f32 %v6581_v28, %v828_v40  ;;  %v830_v50 = vpop.f32.mrb[17].mxu1  ;;  %v6590_v35 = vadd.f32 %v6589_v3, %v6588_v16  ;;  %v6077_v28 = vcombine.high %v8490_v32, %v8641_v4  ;;  %v8702_v40 = vcombine.high %v8678_v37, %v8681_v43 }
 0x135   : >> { %v831_v18 = vpop.f32.mrb[18].mxu1  ;;  %3964 = vmatpush1.bf16.msra.mxu1 %v7305_v14  ;;  %3378 = vmatmul.mubr.bf16.gmra.mrb[128].mxu0 %v8362_v10  ;;  %v7330_v10 = vld [vmem:[%s9412_s1 + $0x580] sm:$0xff]   ;;  %v7320_v14 = vld [vmem:[%s9412_s1 + $0x5b8] sm:$0xff]  }
 0x136   : >> { %v8637_v5 = vadd.f32 %v6584_v49, %v831_v18  ;;  %v833_v41 = vpop.f32.mrb[19].mxu1  ;;  %3965 = vmatprep.subr.bf16.mxu1 %v7495_v2  ;;  %3385 = vmatprep.mubr.bf16.mxu0 %v6073_v36  ;;  %v7316_v49 = vld [vmem:[%s9412_s1 + $0x5b0] sm:$0xff]  }
 0x137   : >> { %6860 = vmatpush3.bf16.msra.mxu0 %v7318_v24 }
 0x138   : >> { %v6607_v8 = vpop.f32.mrb[24].mxu0  ;;  %3451 = vmatmul.mubr.bf16.gmra.mrb[124].mxu1 %v6066_v63  ;;  %6861 = vmatprep.subr.bf16.mxu0 %v7324_v39 }
 0x139   : >> { %v6608_v12 = vpop.f32.mrb[25].mxu0  ;;  %3966 = vmatpush1.bf16.msra.mxu1 %v7310_v53  ;;  %6113 = vmatprep.mubr.msk.bf16.mxu1 %vm662_vm0, %v8380_v30  ;;  %v7332_v30 = vld [vmem:[%s9412_s1 + $0x540] sm:$0xff]  }
 0x13a   : >> { %v6609_v48 = vadd.f32 %v6608_v12, %v6607_v8  ;;  %v6610_v27 = vpop.f32.mrb[26].mxu0  ;;  %3967 = vmatprep.subr.bf16.mxu1 %v7495_v2  ;;  %v7326_v53 = vld [vmem:[%s9412_s1 + $0x5c0] sm:$0xff]   ;;  %v7329_v12 = vld [vmem:[%s9412_s1 + $0x5c8] sm:$0xff]  }
 0x13b   : >> { %v836_v38 = vpop.f32.mrb[20].mxu1  ;;  %v6611_v51 = vpop.f32.mrb[27].mxu0  ;;  %6862 = vmatpush3.bf16.msra.mxu0 %v7325_v7 }
 0x13c   : >> { %v8662_v52 = vadd.f32 %v6587_v58, %v836_v38  ;;  %v6612_v21 = vadd.f32 %v6611_v51, %v6610_v27  ;;  %v838_v29 = vpop.f32.mrb[21].mxu1  ;;  %v1172_v42 = vadd.f32 %v6609_v48, %v8513_v20  ;;  %6863 = vmatprep.subr.bf16.mxu0 %v7330_v10  ;;  %v6076_v58 = vcombine.low %v8490_v32, %v8641_v4  ;;  %v8732_v27 = vld [vmem:[%s7619_s21 + $0x1a8] sm:$0xff] }
 0x13d   : >> { %v839_v44 = vpop.f32.mrb[22].mxu1  ;;  %3968 = vmatpush1.bf16.msra.mxu1 %v7312_v26  ;;  %3386 = vmatmul.mubr.bf16.gmra.mrb[132].mxu0 %v6072_v31  ;;  %v6074_v32 = vcombine.low %v8500_v11, %v8530_v59  ;;  %v8725_v26 = vcombine.low %v8678_v37, %v8681_v43 }
 0x13e   : >> { %v8673_v33 = vadd.f32 %v6590_v35, %v839_v44  ;;  %v841_v25 = vpop.f32.mrb[23].mxu1  ;;  %3969 = vmatprep.subr.bf16.mxu1 %v7495_v2  ;;  %v1175_v20 = vadd.f32 %v6612_v21, %v8522_v55  ;;  %3393 = vmatprep.mubr.bf16.mxu0 %v6077_v28  ;;  %v7342_v28 = vld [vmem:[%s7619_s21 + $0x124] ss:$16 sps:$4 sm:$0xff]  }
 0x13f   : >> { %6864 = vmatpush3.bf16.msra.mxu0 %v7332_v30 }
 0x140   : >> { %v6613_v57 = vpop.f32.mrb[28].mxu0  ;;  %3459 = vmatmul.mubr.bf16.gmra.mrb[128].mxu1 %v8403_v19  ;;  %6865 = vmatprep.subr.bf16.mxu0 %v7336_v22  ;;  %v8698_v19 = vld [vmem:[%s7619_s21 + $0x188] sm:$0xff] }
 0x141   : >> { %v6614_v55 = vpop.f32.mrb[29].mxu0  ;;  %3970 = vmatpush1.bf16.msra.mxu1 %v7316_v49  ;;  %6114 = vmatprep.mubr.msk.bf16.mxu1 %vm662_vm0, %v6075_v17  ;;  %v6079_v41 = vcombine.high %v8533_v15, %v8698_v19  ;;  %v7334_v49 = vld [vmem:[%s9412_s1 + $0x5d0] sm:$0xff]  }
 0x142   : >> { %v6615_v16 = vadd.f32 %v6614_v55, %v6613_v57  ;;  %v6616_v36 = vpop.f32.mrb[30].mxu0  ;;  %3971 = vmatprep.subr.bf16.mxu1 %v7495_v2  ;;  %v7340_v55 = vld [vmem:[%s7619_s21 + $0x120] ss:$16 sps:$4 sm:$0xff]  }
 0x143   : >> { %v6617_v3 = vpop.f32.mrb[31].mxu0  ;;  %v1252_v24 = vpop.f32.mrb[24].mxu1  ;;  %6866 = vmatpush3.bf16.msra.mxu0 %v7338_v45  ;;  %v6123_v45 = vld [vmem:[%s7619_s21 + $0x140] sm:$0xff] }
 0x144   : >> { %v6618_v50 = vadd.f32 %v6617_v3, %v6616_v36  ;;  %v8704_v35 = vadd.f32 %v1252_v24, %v1172_v42  ;;  %v1254_v63 = vpop.f32.mrb[25].mxu1  ;;  %v1180_v39 = vadd.f32 %v6615_v16, %v8544_v56  ;;  %6903 = vmatprep.subr.bf16.mxu0 %v7344_v9  ;;  %v6078_v42 = vcombine.low %v8533_v15, %v8698_v19  ;;  %v7339_v9 = vld [vmem:[%s9412_s1 + $0x5d8] sm:$0xff]   ;;  %v7352_v24 = vld [vmem:[%s9412_s1 + $0x630] sm:$0xff]  }
 0x145   : >> { %v1255_v18 = vpop.f32.mrb[26].mxu1  ;;  %3972 = vmatpush1.bf16.msra.mxu1 %v7320_v14  ;;  %3394 = vmatmul.mubr.bf16.gmra.mrb[136].mxu0 %v6076_v58  ;;  %v6202_v3 = vcombine.high %v6123_v45, %v8459_v13 }
 0x146   : >> { %v8714_v7 = vadd.f32 %v1255_v18, %v1175_v20  ;;  %v1257_v8 = vpop.f32.mrb[27].mxu1  ;;  %3973 = vmatprep.subr.bf16.mxu1 %v7495_v2  ;;  %v1183_v59 = vadd.f32 %v6618_v50, %v8553_v54  ;;  %3401 = vmatprep.mubr.bf16.mxu0 %v8702_v40  ;;  %v8729_v54 = vld [vmem:[%s7619_s21 + $0x198] sm:$0xff] }
 0x147   : >> { %v8746_v17 = vcombine.high %v8729_v54, %v8732_v27  ;;  %v7348_v8 = vld [vmem:[%s7619_s21 + $0x12c] ss:$16 sps:$4 sm:$0xff]  }
 0x148   : >> { %v6619_v56 = vpop.f32.mrb[32].mxu0  ;;  %3467 = vmatmul.mubr.bf16.gmra.mrb[132].mxu1 %v6074_v32 }
 0x149   : >> { %v6620_v10 = vpop.f32.mrb[33].mxu0  ;;  %3974 = vmatpush1.bf16.msra.mxu1 %v7326_v53  ;;  %6115 = vmatprep.mubr.msk.bf16.mxu1 %vm662_vm0, %v6079_v41  ;;  %v7343_v41 = vld [vmem:[%s9412_s1 + $0x5e0] sm:$0xff]  }
 0x14a   : >> { %v6621_v31 = vadd.f32 %v6620_v10, %v6619_v56  ;;  %v6622_v48 = vpop.f32.mrb[34].mxu0  ;;  %3975 = vmatprep.subr.bf16.mxu1 %v7495_v2 }
 0x14b   : >> { %v6623_v38 = vpop.f32.mrb[35].mxu0  ;;  %v1260_v51 = vpop.f32.mrb[28].mxu1 }
 0x14c   : >> { %v6624_v30 = vadd.f32 %v6623_v38, %v6622_v48  ;;  %v8735_v21 = vadd.f32 %v1260_v51, %v1180_v39  ;;  %v1262_v29 = vpop.f32.mrb[29].mxu1  ;;  %v1188_v22 = vadd.f32 %v6621_v31, %v8569_v60  ;;  %v8771_v39 = vcombine.low %v8729_v54, %v8732_v27  ;;  %v6124_v51 = vld [vmem:[%s7619_s21 + $0x148] sm:$0xff] }
 0x14d   : >> { %v1263_v44 = vpop.f32.mrb[30].mxu1  ;;  %3976 = vmatpush1.bf16.msra.mxu1 %v7329_v12  ;;  %3402 = vmatmul.mubr.bf16.gmra.mrb[140].mxu0 %v8725_v26  ;;  %v7357_v12 = vld [vmem:[%s9412_s1 + $0x638] sm:$0xff]  }
 0x14e   : >> { %v8748_v25 = vadd.f32 %v1263_v44, %v1183_v59  ;;  %v1265_v20 = vpop.f32.mrb[31].mxu1  ;;  %3977 = vmatprep.subr.bf16.mxu1 %v7495_v2  ;;  %v1191_v15 = vadd.f32 %v6624_v30, %v8579_v62  ;;  %3912 = vmatprep.mubr.bf16.mxu0 %v7342_v28  ;;  %v7345_v62 = vld [vmem:[%s9412_s1 + $0x5e8] sm:$0xff]   ;;  %v7358_v30 = vld [vmem:[%s9412_s1 + $0x5f8] sm:$0xff]  }
 0x14f   : >> { %v7346_v20 = vld [vmem:[%s7619_s21 + $0x128] ss:$16 sps:$4 sm:$0xff]  }
 0x150   : >> { %v6625_v60 = vpop.f32.mrb[36].mxu0  ;;  %3475 = vmatmul.mubr.bf16.gmra.mrb[136].mxu1 %v6078_v42 }
 0x151   : >> { %v6626_v57 = vpop.f32.mrb[37].mxu0  ;;  %3978 = vmatpush1.bf16.msra.mxu1 %v7334_v49  ;;  %6116 = vmatprep.mubr.msk.bf16.mxu1 %vm662_vm0, %v8746_v17 }
 0x152   : >> { %v6627_v14 = vadd.f32 %v6626_v57, %v6625_v60  ;;  %v6628_v58 = vpop.f32.mrb[38].mxu0  ;;  %3979 = vmatprep.subr.bf16.mxu1 %v7495_v2  ;;  %v6204_v57 = vcombine.high %v6124_v51, %v8500_v11 }
 0x153   : >> { %v6629_v16 = vpop.f32.mrb[39].mxu0  ;;  %v1268_v36 = vpop.f32.mrb[32].mxu1 }
 0x154   : >> { %v6630_v50 = vadd.f32 %v6629_v16, %v6628_v58  ;;  %v8767_v63 = vadd.f32 %v1268_v36, %v1188_v22  ;;  %v1270_v32 = vpop.f32.mrb[33].mxu1  ;;  %v1196_v18 = vadd.f32 %v6627_v14, %v8600_v1  ;;  %v7353_v1 = vld [vmem:[%s9412_s1 + $0x5f0] sm:$0xff]   ;;  %v7360_v22 = vld [vmem:[%s9412_s1 + $0x640] sm:$0xff]   ;;  %v7366_v58 = vld [vmem:[%s9412_s1 + $0x648] sm:$0xff]  }
 0x155   : >> { %v1271_v53 = vpop.f32.mrb[34].mxu1  ;;  %3980 = vmatpush1.bf16.msra.mxu1 %v7339_v9  ;;  %3913 = vmatmul.mubr.bf16.vlgmr.msra.gmra.mrb[144].mxu0 %v7340_v55  ;;  %v7367_v32 = vld [vmem:[%s9412_s1 + $0x608] sm:$0xff]  }
 0x156   : >> { %v8778_v59 = vadd.f32 %v1271_v53, %v1191_v15  ;;  %v1273_v56 = vpop.f32.mrb[35].mxu1  ;;  %3981 = vmatprep.subr.bf16.mxu1 %v7495_v2  ;;  %v1199_v10 = vadd.f32 %v6630_v50, %v8607_v23  ;;  %6904 = vmatpush3.bf16.msra.mxu0 %v7345_v62  ;;  %v6201_v23 = vcombine.low %v6123_v45, %v8459_v13  ;;  %v7349_v45 = vld [vmem:[%s9412_s1 + $0x668] sm:$0xff]  }
 0x157   : >> { %3920 = vmatprep.mubr.bf16.mxu0 %v6202_v3  ;;  %6905 = vmatprep.subr.bf16.mxu0 %v7352_v24  ;;  %v6210_v3 = vcombine.high %v8641_v4, %v8678_v37 }
 0x158   : >> { %v6631_v31 = vpop.f32.mrb[40].mxu0  ;;  %3483 = vmatmul.mubr.bf16.gmra.mrb[140].mxu1 %v8771_v39 }
 0x159   : >> { %v6632_v48 = vpop.f32.mrb[41].mxu0  ;;  %3982 = vmatpush1.bf16.msra.mxu1 %v7343_v41  ;;  %6248 = vmatprep.mubr.msk.bf16.mxu1 %vm662_vm0, %v7348_v8  ;;  %v6203_v8 = vcombine.low %v6124_v51, %v8500_v11  ;;  %v6209_v51 = vcombine.low %v8641_v4, %v8678_v37 }
 0x15a   : >> { %v6633_v28 = vadd.f32 %v6632_v48, %v6631_v31  ;;  %v6634_v38 = vpop.f32.mrb[42].mxu0  ;;  %4512 = vmatprep.subr.bf16.mxu1 %v7495_v2  ;;  %6906 = vmatpush3.bf16.msra.mxu0 %v7353_v1 }
 0x15b   : >> { %v6635_v29 = vpop.f32.mrb[43].mxu0  ;;  %v1276_v42 = vpop.f32.mrb[36].mxu1  ;;  %6907 = vmatprep.subr.bf16.mxu0 %v7357_v12  ;;  %v7359_v12 = vld [vmem:[%s9412_s1 + $0x678] sm:$0xff]  }
 0x15c   : >> { %v6636_v44 = vadd.f32 %v6635_v29, %v6634_v38  ;;  %v8799_v49 = vadd.f32 %v1276_v42, %v1196_v18  ;;  %v1278_v13 = vpop.f32.mrb[37].mxu1  ;;  %v1204_v15 = vadd.f32 %v6633_v28, %v8627_v46  ;;  %v7362_v46 = vld [vmem:[%s9412_s1 + $0x600] sm:$0xff]  }
 0x15d   : >> { %v1279_v60 = vpop.f32.mrb[38].mxu1  ;;  %3921 = vmatmul.mubr.bf16.gmra.mrb[148].mxu0 %v6201_v23  ;;  %v7374_v23 = vld [vmem:[%s9412_s1 + $0x610] sm:$0xff]  }
 0x15e   : >> { %v8807_v9 = vadd.f32 %v1279_v60, %v1199_v10  ;;  %v1281_v55 = vpop.f32.mrb[39].mxu1  ;;  %v1207_v14 = vadd.f32 %v6636_v44, %v8637_v5  ;;  %3928 = vmatprep.mubr.bf16.mxu0 %v8511_v34  ;;  %6908 = vmatpush3.bf16.msra.mxu0 %v7358_v30  ;;  %v7354_v5 = vld [vmem:[%s9412_s1 + $0x670] sm:$0xff]  }
 0x15f   : >> { %6909 = vmatprep.subr.bf16.mxu0 %v7360_v22  ;;  %v7373_v10 = vld [vmem:[%s9412_s1 + $0x650] sm:$0xff]  }
 0x160   : >> { %v6637_v62 = vpop.f32.mrb[44].mxu0  ;;  %3994 = vmatmul.mubr.bf16.vlgmr.msra.gmra.mrb[144].mxu1 %v7346_v20 }
 0x161   : >> { %v6638_v16 = vpop.f32.mrb[45].mxu0  ;;  %4513 = vmatpush1.bf16.msra.mxu1 %v7349_v45  ;;  %6249 = vmatprep.mubr.msk.bf16.mxu1 %vm662_vm0, %v6204_v57  ;;  %v7365_v45 = vld [vmem:[%s9412_s1 + $0x688] sm:$0xff]   ;;  %v6212_v57 = vcombine.high %v8698_v19, %v8729_v54 }
 0x162   : >> { %v6639_v34 = vadd.f32 %v6638_v16, %v6637_v62  ;;  %v6640_v36 = vpop.f32.mrb[46].mxu0  ;;  %4514 = vmatprep.subr.bf16.mxu1 %v7495_v2  ;;  %6910 = vmatpush3.bf16.msra.mxu0 %v7362_v46  ;;  %v8878_v46 = vld [vmem:[%s7619_s21 + $0x1c0] sm:$0xff] }
 0x163   : >> { %v6641_v24 = vpop.f32.mrb[47].mxu0  ;;  %v1284_v50 = vpop.f32.mrb[40].mxu1  ;;  %6911 = vmatprep.subr.bf16.mxu0 %v7366_v58  ;;  %v8881_v58 = vld [vmem:[%s7619_s21 + $0x1d0] sm:$0xff]  ;;  %v7387_v62 = vld [vmem:[%s9412_s1 + $0x620] sm:$0xff]  }
 0x164   : >> { %v6642_v18 = vadd.f32 %v6641_v24, %v6640_v36  ;;  %v8827_v53 = vadd.f32 %v1284_v50, %v1204_v15  ;;  %v1286_v41 = vpop.f32.mrb[41].mxu1  ;;  %v1212_v56 = vadd.f32 %v6639_v34, %v8662_v52  ;;  %v8843_v52 = vld [vmem:[%s7619_s21 + $0x1b0] sm:$0xff]  ;;  %v7385_v15 = vld [vmem:[%s9412_s1 + $0x660] sm:$0xff]   ;;  %v8898_v50 = vld [vmem:[%s7619_s21 + $0x1b8] sm:$0xff] }
 0x165   : >> { %v1287_v1 = vpop.f32.mrb[42].mxu1  ;;  %4515 = vmatpush1.bf16.msra.mxu1 %v7354_v5  ;;  %3929 = vmatmul.mubr.bf16.gmra.mrb[152].mxu0 %v8538_v61  ;;  %v7379_v61 = vld [vmem:[%s9412_s1 + $0x658] sm:$0xff]   ;;  %v6214_v42 = vcombine.high %v8681_v43, %v8843_v52  ;;  %v7393_v5 = vld [vmem:[%s9412_s1 + $0x700] sm:$0xff]   ;;  %v7369_v36 = vld [vmem:[%s9412_s1 + $0x690] sm:$0xff]  }
 0x166   : >> { %v8838_v31 = vadd.f32 %v1287_v1, %v1207_v14  ;;  %v1289_v48 = vpop.f32.mrb[43].mxu1  ;;  %4516 = vmatprep.subr.bf16.mxu1 %v7495_v2  ;;  %v1215_v11 = vadd.f32 %v6642_v18, %v8673_v33  ;;  %3936 = vmatprep.mubr.bf16.mxu0 %v6210_v3  ;;  %v7361_v33 = vld [vmem:[%s9412_s1 + $0x680] sm:$0xff]   ;;  %v6213_v3 = vcombine.low %v8681_v43, %v8843_v52 }
 0x167   : >> { %6912 = vmatpush3.bf16.msra.mxu0 %v7367_v32  ;;  %v8902_v32 = vcombine.high %v8878_v46, %v8881_v58  ;;  %v6216_v48 = vcombine.high %v8732_v27, %v8898_v50 }
 0x168   : >> { %4002 = vmatmul.mubr.bf16.gmra.mrb[148].mxu1 %v6203_v8  ;;  %v6659_v28 = vpop.f32.mrb[48].mxu0  ;;  %6913 = vmatprep.subr.bf16.mxu0 %v7373_v10  ;;  %v6211_v10 = vcombine.low %v8698_v19, %v8729_v54 }
 0x169   : >> { %4517 = vmatpush1.bf16.msra.mxu1 %v7359_v12  ;;  %v6660_v38 = vpop.f32.mrb[49].mxu0  ;;  %6250 = vmatprep.mubr.msk.bf16.mxu1 %vm662_vm0, %v8551_v47  ;;  %v7381_v47 = vld [vmem:[%s9412_s1 + $0x618] sm:$0xff]  }
 0x16a   : >> { %4518 = vmatprep.subr.bf16.mxu1 %v7495_v2  ;;  %v6661_v30 = vadd.f32 %v6660_v38, %v6659_v28  ;;  %v6662_v29 = vpop.f32.mrb[50].mxu0  ;;  %v7375_v12 = vld [vmem:[%s9412_s1 + $0x698] sm:$0xff]  }
 0x16b   : >> { %v1292_v22 = vpop.f32.mrb[44].mxu1  ;;  %v6663_v44 = vpop.f32.mrb[51].mxu0  ;;  %6914 = vmatpush3.bf16.msra.mxu0 %v7374_v23 }
 0x16c   : >> { %v8864_v13 = vadd.f32 %v1292_v22, %v1212_v56  ;;  %v1294_v20 = vpop.f32.mrb[45].mxu1  ;;  %v6664_v37 = vadd.f32 %v6663_v44, %v6662_v29  ;;  %6915 = vmatprep.subr.bf16.mxu0 %v7379_v61  ;;  %v8932_v29 = vld [vmem:[%s7619_s21 + $0x1d8] sm:$0xff] }
 0x16d   : >> { %v1295_v60 = vpop.f32.mrb[46].mxu1  ;;  %4519 = vmatpush1.bf16.msra.mxu1 %v7361_v33  ;;  %3937 = vmatmul.mubr.bf16.gmra.mrb[156].mxu0 %v6209_v51  ;;  %v8925_v33 = vcombine.low %v8878_v46, %v8881_v58 }
 0x16e   : >> { %v8874_v55 = vadd.f32 %v1295_v60, %v1215_v11  ;;  %v1297_v14 = vpop.f32.mrb[47].mxu1  ;;  %4520 = vmatprep.subr.bf16.mxu1 %v7495_v2  ;;  %3944 = vmatprep.mubr.bf16.mxu0 %v6214_v42  ;;  %v7391_v42 = vld [vmem:[%s7619_s21 + $0x154] ss:$16 sps:$4 sm:$0xff]  }
 0x16f   : >> { %6916 = vmatpush3.bf16.msra.mxu0 %v7381_v47 }
 0x170   : >> { %4010 = vmatmul.mubr.bf16.gmra.mrb[152].mxu1 %v8573_v6  ;;  %v6665_v16 = vpop.f32.mrb[52].mxu0  ;;  %6917 = vmatprep.subr.bf16.mxu0 %v7385_v15 }
 0x171   : >> { %4521 = vmatpush1.bf16.msra.mxu1 %v7365_v45  ;;  %v6666_v34 = vpop.f32.mrb[53].mxu0  ;;  %6251 = vmatprep.mubr.msk.bf16.mxu1 %vm662_vm0, %v6212_v57  ;;  %v7383_v45 = vld [vmem:[%s9412_s1 + $0x6a8] sm:$0xff]  }
 0x172   : >> { %4522 = vmatprep.subr.bf16.mxu1 %v7495_v2  ;;  %v6667_v6 = vadd.f32 %v6666_v34, %v6665_v16  ;;  %v6668_v24 = vpop.f32.mrb[54].mxu0  ;;  %v6260_v34 = vld [vmem:[%s7619_s21 + $0x170] sm:$0xff] }
 0x173   : >> { %v1791_v18 = vpop.f32.mrb[48].mxu1  ;;  %v6669_v41 = vpop.f32.mrb[55].mxu0  ;;  %6918 = vmatpush3.bf16.msra.mxu0 %v7387_v62 }
 0x174   : >> { %v1792_v8 = vadd.f32 %v6661_v30, %v1791_v18  ;;  %v1793_v56 = vpop.f32.mrb[49].mxu1  ;;  %v6670_v1 = vadd.f32 %v6669_v41, %v6668_v24  ;;  %6955 = vmatprep.subr.bf16.mxu0 %v7393_v5 }
 0x175   : >> { %v1794_v43 = vpop.f32.mrb[50].mxu1  ;;  %4523 = vmatpush1.bf16.msra.mxu1 %v7369_v36  ;;  %3945 = vmatmul.mubr.bf16.gmra.mrb[160].mxu0 %v6213_v3  ;;  %v7389_v3 = vld [vmem:[%s7619_s21 + $0x150] ss:$16 sps:$4 sm:$0xff]   ;;  %v7401_v56 = vld [vmem:[%s9412_s1 + $0x708] sm:$0xff]  }
 0x176   : >> { %v8912_v11 = vadd.f32 %v1792_v8, %v8704_v35  ;;  %v1795_v23 = vadd.f32 %v6664_v37, %v1794_v43  ;;  %v1796_v28 = vpop.f32.mrb[51].mxu1  ;;  %4524 = vmatprep.subr.bf16.mxu1 %v7495_v2  ;;  %3952 = vmatprep.mubr.bf16.mxu0 %v8902_v32  ;;  %v7378_v35 = vld [vmem:[%s9412_s1 + $0x6a0] sm:$0xff]   ;;  %v6215_v37 = vcombine.low %v8732_v27, %v8898_v50 }
 0x177   : >> { %v6339_v8 = vcombine.high %v6260_v34, %v8641_v4  ;;  %v7397_v28 = vld [vmem:[%s7619_s21 + $0x15c] ss:$16 sps:$4 sm:$0xff]  }
 0x178   : >> { %v8917_v54 = vadd.f32 %v1795_v23, %v8714_v7  ;;  %4018 = vmatmul.mubr.bf16.gmra.mrb[156].mxu1 %v6211_v10  ;;  %v6671_v61 = vpop.f32.mrb[56].mxu0  ;;  %v8929_v7 = vld [vmem:[%s7619_s21 + $0x1c8] sm:$0xff]  ;;  %v7392_v23 = vld [vmem:[%s9412_s1 + $0x6b8] sm:$0xff]  }
 0x179   : >> { %4525 = vmatpush1.bf16.msra.mxu1 %v7375_v12  ;;  %v6672_v38 = vpop.f32.mrb[57].mxu0  ;;  %6252 = vmatprep.mubr.msk.bf16.mxu1 %vm662_vm0, %v6216_v48  ;;  %v8943_v57 = vcombine.high %v8929_v7, %v8932_v29  ;;  %v8969_v43 = vcombine.low %v8929_v7, %v8932_v29 }
 0x17a   : >> { %v6673_v51 = vadd.f32 %v6672_v38, %v6671_v61  ;;  %4526 = vmatprep.subr.bf16.mxu1 %v7495_v2  ;;  %v6674_v30 = vpop.f32.mrb[58].mxu0 }
 0x17b   : >> { %v1799_v22 = vpop.f32.mrb[52].mxu1  ;;  %v6675_v44 = vpop.f32.mrb[59].mxu0 }
 0x17c   : >> { %v1800_v47 = vadd.f32 %v6667_v6, %v1799_v22  ;;  %v1801_v20 = vpop.f32.mrb[53].mxu1  ;;  %v6676_v15 = vadd.f32 %v6675_v44, %v6674_v30  ;;  %v7406_v30 = vld [vmem:[%s9412_s1 + $0x710] sm:$0xff]   ;;  %v6338_v44 = vcombine.low %v6260_v34, %v8641_v4  ;;  %v7395_v4 = vld [vmem:[%s7619_s21 + $0x158] ss:$16 sps:$4 sm:$0xff]  }
 0x17d   : >> { %v1802_v60 = vpop.f32.mrb[54].mxu1  ;;  %4527 = vmatpush1.bf16.msra.mxu1 %v7378_v35  ;;  %3953 = vmatmul.mubr.bf16.gmra.mrb[164].mxu0 %v8925_v33 }
 0x17e   : >> { %v8946_v14 = vadd.f32 %v1800_v47, %v8735_v21  ;;  %v1803_v62 = vadd.f32 %v6670_v1, %v1802_v60  ;;  %v1804_v16 = vpop.f32.mrb[55].mxu1  ;;  %4528 = vmatprep.subr.bf16.mxu1 %v7495_v2  ;;  %4463 = vmatprep.mubr.bf16.mxu0 %v7391_v42  ;;  %v7388_v21 = vld [vmem:[%s9412_s1 + $0x6b0] sm:$0xff]  }
 0x180   : >> { %v8950_v27 = vadd.f32 %v1803_v62, %v8748_v25  ;;  %4026 = vmatmul.mubr.bf16.gmra.mrb[160].mxu1 %v6215_v37  ;;  %v6677_v5 = vpop.f32.mrb[60].mxu0  ;;  %v7394_v25 = vld [vmem:[%s9412_s1 + $0x6c0] sm:$0xff]   ;;  %v6261_v37 = vld [vmem:[%s7619_s21 + $0x178] sm:$0xff] }
 0x181   : >> { %4529 = vmatpush1.bf16.msra.mxu1 %v7383_v45  ;;  %v6678_v36 = vpop.f32.mrb[61].mxu0  ;;  %6253 = vmatprep.mubr.msk.bf16.mxu1 %vm662_vm0, %v8943_v57  ;;  %v7409_v45 = vld [vmem:[%s9412_s1 + $0x718] sm:$0xff]  }
 0x182   : >> { %v6679_v6 = vadd.f32 %v6678_v36, %v6677_v5  ;;  %v6680_v24 = vpop.f32.mrb[62].mxu0  ;;  %4530 = vmatprep.subr.bf16.mxu1 %v7495_v2  ;;  %v7398_v36 = vld [vmem:[%s9412_s1 + $0x740] sm:$0xff]  }
 0x183   : >> { %v1807_v18 = vpop.f32.mrb[56].mxu1  ;;  %v6681_v41 = vpop.f32.mrb[63].mxu0 }
 0x184   : >> { %v1808_v10 = vadd.f32 %v6673_v51, %v1807_v18  ;;  %v1809_v1 = vpop.f32.mrb[57].mxu1  ;;  %v6682_v12 = vadd.f32 %v6681_v41, %v6680_v24  ;;  %v7402_v51 = vld [vmem:[%s9412_s1 + $0x6c8] sm:$0xff]   ;;  %v7415_v18 = vld [vmem:[%s9412_s1 + $0x720] sm:$0xff]  }
 0x185   : >> { %v1810_v48 = vpop.f32.mrb[58].mxu1  ;;  %4531 = vmatpush1.bf16.msra.mxu1 %v7388_v21  ;;  %4464 = vmatmul.mubr.bf16.vlgmr.msra.gmra.mrb[168].mxu0 %v7389_v3  ;;  %v6341_v21 = vcombine.high %v6261_v37, %v8698_v19  ;;  %v6347_v1 = vcombine.high %v8843_v52, %v8878_v46 }
 0x186   : >> { %v8976_v61 = vadd.f32 %v1808_v10, %v8767_v63  ;;  %v1811_v38 = vadd.f32 %v6676_v15, %v1810_v48  ;;  %v1812_v35 = vpop.f32.mrb[59].mxu1  ;;  %4532 = vmatprep.subr.bf16.mxu1 %v7495_v2  ;;  %6956 = vmatpush3.bf16.msra.mxu0 %v7394_v25  ;;  %v7416_v48 = vld [vmem:[%s9412_s1 + $0x6e0] sm:$0xff]  }
 0x187   : >> { %4471 = vmatprep.mubr.bf16.mxu0 %v6339_v8  ;;  %6957 = vmatprep.subr.bf16.mxu0 %v7401_v56 }
 0x188   : >> { %v8986_v42 = vadd.f32 %v1811_v38, %v8778_v59  ;;  %4034 = vmatmul.mubr.bf16.gmra.mrb[164].mxu1 %v8969_v43  ;;  %v6683_v63 = vpop.f32.mrb[64].mxu0  ;;  %v7407_v59 = vld [vmem:[%s9412_s1 + $0x6d0] sm:$0xff]   ;;  %v6340_v38 = vcombine.low %v6261_v37, %v8698_v19  ;;  %v9040_v19 = vld [vmem:[%s7619_s21 + $0x1e0] sm:$0xff] }
 0x189   : >> { %4533 = vmatpush1.bf16.msra.mxu1 %v7392_v23  ;;  %v6684_v22 = vpop.f32.mrb[65].mxu0  ;;  %6385 = vmatprep.mubr.msk.bf16.mxu1 %vm662_vm0, %v7397_v28 }
 0x18a   : >> { %v6685_v47 = vadd.f32 %v6684_v22, %v6683_v63  ;;  %v6686_v20 = vpop.f32.mrb[66].mxu0  ;;  %5063 = vmatprep.subr.bf16.mxu1 %v7495_v2  ;;  %6958 = vmatpush3.bf16.msra.mxu0 %v7402_v51  ;;  %v7422_v51 = vld [vmem:[%s9412_s1 + $0x728] sm:$0xff]   ;;  %v7408_v63 = vld [vmem:[%s9412_s1 + $0x750] sm:$0xff]  }
 0x18b   : >> { %v1815_v15 = vpop.f32.mrb[60].mxu1  ;;  %v6687_v60 = vpop.f32.mrb[67].mxu0  ;;  %6959 = vmatprep.subr.bf16.mxu0 %v7406_v30 }
 0x18c   : >> { %v1816_v62 = vadd.f32 %v6679_v6, %v1815_v15  ;;  %v1817_v16 = vpop.f32.mrb[61].mxu1  ;;  %v6688_v5 = vadd.f32 %v6687_v60, %v6686_v20  ;;  %v7411_v6 = vld [vmem:[%s9412_s1 + $0x6d8] sm:$0xff]   ;;  %v7423_v20 = vld [vmem:[%s9412_s1 + $0x6e8] sm:$0xff]  }
 0x18d   : >> { %v1818_v34 = vpop.f32.mrb[62].mxu1  ;;  %4472 = vmatmul.mubr.bf16.gmra.mrb[172].mxu0 %v6338_v44  ;;  %v7410_v15 = vld [vmem:[%s9412_s1 + $0x758] sm:$0xff]  }
 0x18e   : >> { %v9005_v3 = vadd.f32 %v1816_v62, %v8799_v49  ;;  %v1819_v24 = vadd.f32 %v6682_v12, %v1818_v34  ;;  %v1820_v25 = vpop.f32.mrb[63].mxu1  ;;  %4479 = vmatprep.mubr.bf16.mxu0 %v8702_v40  ;;  %6960 = vmatpush3.bf16.msra.mxu0 %v7407_v59  ;;  %v7403_v40 = vld [vmem:[%s9412_s1 + $0x748] sm:$0xff]   ;;  %v6351_v62 = vcombine.high %v8881_v58, %v9040_v19 }
 0x18f   : >> { %6961 = vmatprep.subr.bf16.mxu0 %v7409_v45  ;;  %v6349_v25 = vcombine.high %v8898_v50, %v8929_v7 }
 0x190   : >> { %v9015_v41 = vadd.f32 %v1819_v24, %v8807_v9  ;;  %4545 = vmatmul.mubr.bf16.vlgmr.msra.gmra.mrb[168].mxu1 %v7395_v4  ;;  %v6689_v49 = vpop.f32.mrb[68].mxu0  ;;  %v7414_v24 = vld [vmem:[%s9412_s1 + $0x760] sm:$0xff]  }
 0x191   : >> { %5064 = vmatpush1.bf16.msra.mxu1 %v7398_v36  ;;  %v6690_v8 = vpop.f32.mrb[69].mxu0  ;;  %6386 = vmatprep.mubr.msk.bf16.mxu1 %vm662_vm0, %v6341_v21 }
 0x192   : >> { %5065 = vmatprep.subr.bf16.mxu1 %v7495_v2  ;;  %v6691_v56 = vadd.f32 %v6690_v8, %v6689_v49  ;;  %v6692_v10 = vpop.f32.mrb[70].mxu0  ;;  %6962 = vmatpush3.bf16.msra.mxu0 %v7411_v6  ;;  %v9080_v8 = vld [vmem:[%s7619_s21 + $0x200] sm:$0xff] }
 0x193   : >> { %v1823_v9 = vpop.f32.mrb[64].mxu1  ;;  %v6693_v12 = vpop.f32.mrb[71].mxu0  ;;  %6963 = vmatprep.subr.bf16.mxu0 %v7415_v18 }
 0x194   : >> { %v1824_v23 = vadd.f32 %v6685_v47, %v1823_v9  ;;  %v1825_v28 = vpop.f32.mrb[65].mxu1  ;;  %v6694_v35 = vadd.f32 %v6693_v12, %v6692_v10  ;;  %v7418_v9 = vld [vmem:[%s9412_s1 + $0x768] sm:$0xff]   ;;  %v6350_v12 = vcombine.low %v8881_v58, %v9040_v19  ;;  %v7424_v58 = vld [vmem:[%s9412_s1 + $0x770] sm:$0xff]  }
 0x195   : >> { %v1826_v30 = vpop.f32.mrb[66].mxu1  ;;  %5066 = vmatpush1.bf16.msra.mxu1 %v7403_v40  ;;  %4480 = vmatmul.mubr.bf16.gmra.mrb[176].mxu0 %v8725_v26  ;;  %v9077_v40 = vld [vmem:[%s7619_s21 + $0x1f0] sm:$0xff] }
 0x196   : >> { %v9036_v22 = vadd.f32 %v1824_v23, %v8827_v53  ;;  %v1827_v44 = vadd.f32 %v6688_v5, %v1826_v30  ;;  %v1828_v47 = vpop.f32.mrb[67].mxu1  ;;  %5067 = vmatprep.subr.bf16.mxu1 %v7495_v2  ;;  %4487 = vmatprep.mubr.bf16.mxu0 %v6347_v1  ;;  %v7428_v53 = vld [vmem:[%s9412_s1 + $0x730] sm:$0xff]   ;;  %v9097_v23 = vld [vmem:[%s7619_s21 + $0x1e8] sm:$0xff]  ;;  %v6348_v30 = vcombine.low %v8898_v50, %v8929_v7 }
 0x197   : >> { %6964 = vmatpush3.bf16.msra.mxu0 %v7416_v48  ;;  %v6353_v47 = vcombine.high %v8932_v29, %v9097_v23 }
 0x198   : >> { %v9046_v37 = vadd.f32 %v1827_v44, %v8838_v31  ;;  %4553 = vmatmul.mubr.bf16.gmra.mrb[172].mxu1 %v6340_v38  ;;  %v6711_v26 = vpop.f32.mrb[72].mxu0  ;;  %6965 = vmatprep.subr.bf16.mxu0 %v7422_v51  ;;  %v6346_v31 = vcombine.low %v8843_v52, %v8878_v46  ;;  %v7434_v46 = vld [vmem:[%s9412_s1 + $0x738] sm:$0xff]  }
 0x199   : >> { %5068 = vmatpush1.bf16.msra.mxu1 %v7408_v63  ;;  %v6712_v59 = vpop.f32.mrb[73].mxu0  ;;  %6387 = vmatprep.mubr.msk.bf16.mxu1 %vm662_vm0, %v8746_v17  ;;  %v7430_v17 = vld [vmem:[%s9412_s1 + $0x6f0] sm:$0xff]  }
 0x19a   : >> { %5069 = vmatprep.subr.bf16.mxu1 %v7495_v2  ;;  %v6713_v60 = vadd.f32 %v6712_v59, %v6711_v26  ;;  %v6714_v45 = vpop.f32.mrb[74].mxu0 }
 0x19b   : >> { %v1831_v16 = vpop.f32.mrb[68].mxu1  ;;  %v6715_v4 = vpop.f32.mrb[75].mxu0  ;;  %6966 = vmatpush3.bf16.msra.mxu0 %v7423_v20 }
 0x19c   : >> { %v1832_v5 = vadd.f32 %v6691_v56, %v1831_v16  ;;  %v1833_v34 = vpop.f32.mrb[69].mxu1  ;;  %v6716_v36 = vadd.f32 %v6715_v4, %v6714_v45  ;;  %6967 = vmatprep.subr.bf16.mxu0 %v7428_v53  ;;  %v7436_v56 = vld [vmem:[%s9412_s1 + $0x6f8] sm:$0xff]   ;;  %v7440_v16 = vld [vmem:[%s7619_s21 + $0x184] ss:$16 sps:$4 sm:$0xff]  }
 0x19d   : >> { %v1834_v21 = vpop.f32.mrb[70].mxu1  ;;  %5070 = vmatpush1.bf16.msra.mxu1 %v7410_v15  ;;  %4488 = vmatmul.mubr.bf16.gmra.mrb[180].mxu0 %v6346_v31  ;;  %v6354_v31 = vcombine.low %v9077_v40, %v9080_v8 }
 0x19e   : >> { %v9073_v6 = vadd.f32 %v1832_v5, %v8864_v13  ;;  %v1835_v18 = vadd.f32 %v6694_v35, %v1834_v21  ;;  %v1836_v49 = vpop.f32.mrb[71].mxu1  ;;  %5071 = vmatprep.subr.bf16.mxu1 %v7495_v2  ;;  %4495 = vmatprep.mubr.bf16.mxu0 %v6351_v62  ;;  %v9123_v62 = vld [vmem:[%s7619_s21 + $0x1f8] sm:$0xff] }
 0x19f   : >> { %6968 = vmatpush3.bf16.msra.mxu0 %v7430_v17 }
 0x1a0   : >> { %v9086_v10 = vadd.f32 %v1835_v18, %v8874_v55  ;;  %4561 = vmatmul.mubr.bf16.gmra.mrb[176].mxu1 %v8771_v39  ;;  %v6717_v13 = vpop.f32.mrb[76].mxu0  ;;  %6969 = vmatprep.subr.bf16.mxu0 %v7434_v46  ;;  %v6355_v39 = vcombine.high %v9077_v40, %v9080_v8 }
 0x1a1   : >> { %5072 = vmatpush1.bf16.msra.mxu1 %v7414_v24  ;;  %v6718_v1 = vpop.f32.mrb[77].mxu0  ;;  %6388 = vmatprep.mubr.msk.bf16.mxu1 %vm662_vm0, %v6349_v25  ;;  %v7432_v24 = vld [vmem:[%s9412_s1 + $0x780] sm:$0xff]  }
 0x1a2   : >> { %5073 = vmatprep.subr.bf16.mxu1 %v7495_v2  ;;  %v6719_v48 = vadd.f32 %v6718_v1, %v6717_v13  ;;  %v6720_v55 = vpop.f32.mrb[78].mxu0 }
 0x1a3   : >> { %v2342_v28 = vpop.f32.mrb[72].mxu1  ;;  %v6721_v38 = vpop.f32.mrb[79].mxu0  ;;  %6970 = vmatpush3.bf16.msra.mxu0 %v7436_v56 }
 0x1a4   : >> { %v2343_v35 = vadd.f32 %v6713_v60, %v2342_v28  ;;  %v2344_v51 = vpop.f32.mrb[73].mxu1  ;;  %v6722_v63 = vadd.f32 %v6721_v38, %v6720_v55 }
 0x1a5   : >> { %v2345_v44 = vpop.f32.mrb[74].mxu1  ;;  %5074 = vmatpush1.bf16.msra.mxu1 %v7418_v9  ;;  %4496 = vmatmul.mubr.bf16.gmra.mrb[184].mxu0 %v6350_v12  ;;  %v7438_v12 = vld [vmem:[%s7619_s21 + $0x180] ss:$16 sps:$4 sm:$0xff]  }
 0x1a6   : >> { %v9109_v20 = vadd.f32 %v2343_v35, %v8912_v11  ;;  %v2346_v26 = vadd.f32 %v6716_v36, %v2345_v44  ;;  %v2347_v53 = vpop.f32.mrb[75].mxu1  ;;  %5075 = vmatprep.subr.bf16.mxu1 %v7495_v2  ;;  %4503 = vmatprep.mubr.bf16.mxu0 %v6355_v39  ;;  %v7427_v11 = vld [vmem:[%s9412_s1 + $0x778] sm:$0xff]   ;;  %v6352_v36 = vcombine.low %v8932_v29, %v9097_v23  ;;  %v6397_v29 = vld [vmem:[%s7619_s21 + $0x1a0] sm:$0xff]  ;;  %v7441_v44 = vld [vmem:[%s9412_s1 + $0x790] sm:$0xff]  }
 0x1a7   : >> { %v6476_v39 = vcombine.high %v6397_v29, %v8843_v52 }
 0x1a8   : >> { %v9113_v7 = vadd.f32 %v2346_v26, %v8917_v54  ;;  %4569 = vmatmul.mubr.bf16.gmra.mrb[180].mxu1 %v6348_v30  ;;  %v6723_v59 = vpop.f32.mrb[80].mxu0  ;;  %v9126_v54 = vld [vmem:[%s7619_s21 + $0x208] sm:$0xff] }
 0x1a9   : >> { %5076 = vmatpush1.bf16.msra.mxu1 %v7424_v58  ;;  %v6724_v15 = vpop.f32.mrb[81].mxu0  ;;  %6389 = vmatprep.mubr.msk.bf16.mxu1 %vm662_vm0, %v6353_v47  ;;  %v6357_v25 = vcombine.high %v9123_v62, %v9126_v54  ;;  %v6356_v51 = vcombine.low %v9123_v62, %v9126_v54  ;;  %v7444_v58 = vld [vmem:[%s7619_s21 + $0x18c] ss:$16 sps:$4 sm:$0xff]  }
 0x1aa   : >> { %v6725_v60 = vadd.f32 %v6724_v15, %v6723_v59  ;;  %5077 = vmatprep.subr.bf16.mxu1 %v7495_v2  ;;  %v6726_v45 = vpop.f32.mrb[82].mxu0 }
 0x1ab   : >> { %v2350_v4 = vpop.f32.mrb[76].mxu1  ;;  %v6727_v17 = vpop.f32.mrb[83].mxu0 }
 0x1ac   : >> { %v2351_v5 = vadd.f32 %v6719_v48, %v2350_v4  ;;  %v2352_v34 = vpop.f32.mrb[77].mxu1  ;;  %v6728_v46 = vadd.f32 %v6727_v17, %v6726_v45  ;;  %v6398_v45 = vld [vmem:[%s7619_s21 + $0x1a8] sm:$0xff] }
 0x1ad   : >> { %v2353_v21 = vpop.f32.mrb[78].mxu1  ;;  %5078 = vmatpush1.bf16.msra.mxu1 %v7427_v11  ;;  %4504 = vmatmul.mubr.bf16.gmra.mrb[188].mxu0 %v6354_v31  ;;  %v6475_v31 = vcombine.low %v6397_v29, %v8843_v52 }
 0x1ae   : >> { %v9137_v18 = vadd.f32 %v2351_v5, %v8946_v14  ;;  %v2354_v49 = vadd.f32 %v6722_v63, %v2353_v21  ;;  %v2355_v56 = vpop.f32.mrb[79].mxu1  ;;  %5079 = vmatprep.subr.bf16.mxu1 %v7495_v2  ;;  %5014 = vmatprep.mubr.bf16.mxu0 %v7440_v16  ;;  %v7437_v14 = vld [vmem:[%s9412_s1 + $0x788] sm:$0xff]  }
 0x1af   : >> { %v7442_v5 = vld [vmem:[%s7619_s21 + $0x188] ss:$16 sps:$4 sm:$0xff]  }
 0x1b0   : >> { %v9142_v13 = vadd.f32 %v2354_v49, %v8950_v27  ;;  %4577 = vmatmul.mubr.bf16.gmra.mrb[184].mxu1 %v6352_v36  ;;  %v6729_v1 = vpop.f32.mrb[84].mxu0 }
 0x1b1   : >> { %5080 = vmatpush1.bf16.msra.mxu1 %v7432_v24  ;;  %v6730_v9 = vpop.f32.mrb[85].mxu0  ;;  %6390 = vmatprep.mubr.msk.bf16.mxu1 %vm662_vm0, %v6357_v25 }
 0x1b2   : >> { %v6731_v48 = vadd.f32 %v6730_v9, %v6729_v1  ;;  %v6732_v55 = vpop.f32.mrb[86].mxu0  ;;  %5081 = vmatprep.subr.bf16.mxu1 %v7495_v2  ;;  %v6484_v1 = vcombine.high %v9040_v19, %v9077_v40 }
 0x1b3   : >> { %v2358_v27 = vpop.f32.mrb[80].mxu1  ;;  %v6733_v28 = vpop.f32.mrb[87].mxu0 }
 0x1b4   : >> { %v2359_v38 = vadd.f32 %v6725_v60, %v2358_v27  ;;  %v2360_v35 = vpop.f32.mrb[81].mxu1  ;;  %v6734_v30 = vadd.f32 %v6733_v28, %v6732_v55  ;;  %v6411_v28 = vld [vmem:[%s7619_s21 + $0x210] sm:$0xff] }
 0x1b5   : >> { %v2361_v63 = vpop.f32.mrb[82].mxu1  ;;  %5082 = vmatpush1.bf16.msra.mxu1 %v7437_v14  ;;  %5015 = vmatmul.mubr.bf16.vlgmr.msra.gmra.mrb[192].mxu0 %v7438_v12 }
 0x1b6   : >> { %v9158_v47 = vadd.f32 %v2359_v38, %v8976_v61  ;;  %v2362_v26 = vadd.f32 %v6728_v46, %v2361_v63  ;;  %v2363_v53 = vpop.f32.mrb[83].mxu1  ;;  %5083 = vmatprep.subr.bf16.mxu1 %v7495_v2  ;;  %5022 = vmatprep.mubr.bf16.mxu0 %v6476_v39 }
 0x1b8   : >> { %v9162_v59 = vadd.f32 %v2362_v26, %v8986_v42  ;;  %4585 = vmatmul.mubr.bf16.gmra.mrb[188].mxu1 %v6356_v51  ;;  %v6735_v15 = vpop.f32.mrb[88].mxu0  ;;  %v6478_v42 = vcombine.high %v6398_v45, %v8898_v50 }
 0x1b9   : >> { %5084 = vmatpush1.bf16.msra.mxu1 %v7441_v44  ;;  %v6736_v11 = vpop.f32.mrb[89].mxu0  ;;  %6522 = vmatprep.mubr.msk.bf16.mxu1 %vm662_vm0, %v7444_v58 }
 0x1ba   : >> { %v6737_v60 = vadd.f32 %v6736_v11, %v6735_v15  ;;  %v6738_v61 = vpop.f32.mrb[90].mxu0  ;;  %v6486_v15 = vcombine.high %v9097_v23, %v9123_v62 }
 0x1bb   : >> { %v2366_v16 = vpop.f32.mrb[84].mxu1  ;;  %v6739_v4 = vpop.f32.mrb[91].mxu0 }
 0x1bc   : >> { %v2367_v17 = vadd.f32 %v6731_v48, %v2366_v16  ;;  %v2368_v2 = vpop.f32.mrb[85].mxu1  ;;  %v6740_v34 = vadd.f32 %v6739_v4, %v6738_v61  ;;  %v6487_v61 = vcombine.low %v9080_v8, %v6411_v28  ;;  %v6412_v4 = vld [vmem:[%s7619_s21 + $0x218] sm:$0xff] }
 0x1bd   : >> { %v2369_v36 = vpop.f32.mrb[86].mxu1  ;;  %5023 = vmatmul.mubr.bf16.gmra.mrb[196].mxu0 %v6475_v31 }
 0x1be   : >> { %v9170_v46 = vadd.f32 %v2367_v17, %v9005_v3  ;;  %v2370_v21 = vadd.f32 %v6734_v30, %v2369_v36  ;;  %v2371_v24 = vpop.f32.mrb[87].mxu1  ;;  %5030 = vmatprep.mubr.bf16.mxu0 %v8902_v32  ;;  %v6477_v32 = vcombine.low %v6398_v45, %v8898_v50  ;;  %v6483_v50 = vcombine.low %v9040_v19, %v9077_v40  ;;  %v7457_v17 = vld [vmem:[%s7619_s21 + $0x224] ss:$16 sps:$4 sm:$0xff]  }
 0x1c0   : >> { %v9174_v52 = vadd.f32 %v2370_v21, %v9015_v41  ;;  %5096 = vmatmul.mubr.bf16.vlgmr.msra.gmra.mrb[192].mxu1 %v7442_v5  ;;  %v6741_v25 = vpop.f32.mrb[92].mxu0 }
 0x1c1   : >> { %v6742_v49 = vpop.f32.mrb[93].mxu0  ;;  %6523 = vmatprep.mubr.msk.bf16.mxu1 %vm662_vm0, %v6478_v42  ;;  %v6490_v42 = vcombine.high %v9126_v54, %v6412_v4 }
 0x1c2   : >> { %v6743_v56 = vadd.f32 %v6742_v49, %v6741_v25  ;;  %v6744_v29 = vpop.f32.mrb[94].mxu0 }
 0x1c3   : >> { %v2374_v3 = vpop.f32.mrb[88].mxu1  ;;  %v6745_v9 = vpop.f32.mrb[95].mxu0 }
 0x1c4   : >> { %v2375_v14 = vadd.f32 %v6737_v60, %v2374_v3  ;;  %v2376_v12 = vpop.f32.mrb[89].mxu1  ;;  %v6746_v48 = vadd.f32 %v6745_v9, %v6744_v29 }
 0x1c5   : >> { %v2377_v41 = vpop.f32.mrb[90].mxu1  ;;  %5031 = vmatmul.mubr.bf16.gmra.mrb[200].mxu0 %v8925_v33 }
 0x1c6   : >> { %v9182_v55 = vadd.f32 %v2375_v14, %v9036_v22  ;;  %v2378_v39 = vadd.f32 %v6740_v34, %v2377_v41  ;;  %v2379_v27 = vpop.f32.mrb[91].mxu1  ;;  %5038 = vmatprep.mubr.bf16.mxu0 %v6484_v1  ;;  %v6488_v22 = vcombine.high %v9080_v8, %v6411_v28  ;;  %v6489_v14 = vcombine.low %v9126_v54, %v6412_v4 }
 0x1c8   : >> { %v9186_v38 = vadd.f32 %v2378_v39, %v9046_v37  ;;  %5104 = vmatmul.mubr.bf16.gmra.mrb[196].mxu1 %v6477_v32  ;;  %v6763_v35 = vpop.f32.mrb[96].mxu0 }
 0x1c9   : >> { %v6764_v51 = vpop.f32.mrb[97].mxu0  ;;  %6524 = vmatprep.mubr.msk.bf16.mxu1 %vm662_vm0, %v8943_v57 }
 0x1ca   : >> { %v6765_v33 = vadd.f32 %v6764_v51, %v6763_v35  ;;  %v6766_v30 = vpop.f32.mrb[98].mxu0 }
 0x1cb   : >> { %v2382_v63 = vpop.f32.mrb[92].mxu1  ;;  %v6767_v44 = vpop.f32.mrb[99].mxu0 }
 0x1cc   : >> { %v2383_v58 = vadd.f32 %v6743_v56, %v2382_v63  ;;  %v2384_v26 = vpop.f32.mrb[93].mxu1  ;;  %v6768_v53 = vadd.f32 %v6767_v44, %v6766_v30  ;;  %v7462_v63 = vld [vmem:[%s7619_s21 + $0x228] ss:$16 sps:$4 sm:$0xff]  }
 0x1cd   : >> { %v2385_v37 = vpop.f32.mrb[94].mxu1  ;;  %5039 = vmatmul.mubr.bf16.gmra.mrb[204].mxu0 %v6483_v50 }
 0x1ce   : >> { %v9196_v57 = vadd.f32 %v2383_v58, %v9073_v6  ;;  %v2386_v19 = vadd.f32 %v6746_v48, %v2385_v37  ;;  %v2387_v40 = vpop.f32.mrb[95].mxu1  ;;  %5046 = vmatprep.mubr.bf16.mxu0 %v6488_v22 }
 0x1d0   : >> { %v9199_v11 = vadd.f32 %v2386_v19, %v9086_v10  ;;  %5112 = vmatmul.mubr.bf16.gmra.mrb[200].mxu1 %v8969_v43  ;;  %v6769_v31 = vpop.f32.mrb[100].mxu0  ;;  %v6485_v10 = vcombine.low %v9097_v23, %v9123_v62  ;;  %v7459_v23 = vld [vmem:[%s7619_s21 + $0x220] ss:$16 sps:$4 sm:$0xff]  }
 0x1d1   : >> { %v6770_v60 = vpop.f32.mrb[101].mxu0  ;;  %6525 = vmatprep.mubr.msk.bf16.mxu1 %vm662_vm0, %v6486_v15 }
 0x1d2   : >> { %v6771_v45 = vadd.f32 %v6770_v60, %v6769_v31  ;;  %v6772_v16 = vpop.f32.mrb[102].mxu0 }
 0x1d3   : >> { %v2893_v6 = vpop.f32.mrb[96].mxu1  ;;  %v6773_v2 = vpop.f32.mrb[103].mxu0 }
 0x1d4   : >> { %v2894_v5 = vadd.f32 %v6765_v33, %v2893_v6  ;;  %v2895_v34 = vpop.f32.mrb[97].mxu1  ;;  %v6774_v36 = vadd.f32 %v6773_v2, %v6772_v16 }
 0x1d5   : >> { %v2896_v43 = vpop.f32.mrb[98].mxu1  ;;  %5047 = vmatmul.mubr.bf16.gmra.mrb[208].mxu0 %v6487_v61 }
 0x1d6   : >> { %v9210_v21 = vadd.f32 %v2894_v5, %v9109_v20  ;;  %v2897_v8 = vadd.f32 %v6768_v53, %v2896_v43  ;;  %v2898_v24 = vpop.f32.mrb[99].mxu1  ;;  %5054 = vmatprep.mubr.bf16.mxu0 %v7457_v17 }
 0x1d8   : >> { %v9213_v25 = vadd.f32 %v2897_v8, %v9113_v7  ;;  %5120 = vmatmul.mubr.bf16.gmra.mrb[204].mxu1 %v6485_v10  ;;  %v6775_v49 = vpop.f32.mrb[104].mxu0  ;;  %v7460_v7 = vld [vmem:[%s7619_s21 + $0x22c] ss:$16 sps:$4 sm:$0xff]   ;;  %s5212_s21 = smul.u32 24, %s7493_s26  ;;  %s220_s26 = sadd.s32 1, %s7493_s26  }
 0x1d9   : >> { %v6776_v56 = vpop.f32.mrb[105].mxu0  ;;  %6526 = vmatprep.mubr.msk.bf16.mxu1 %vm662_vm0, %v6490_v42  ;;  %p217_p5 = scmp.ge.s32.totalorder %s220_s26, 6  }
 0x1da   : >> { %v6777_v62 = vadd.f32 %v6776_v56, %v6775_v49  ;;  %v6778_v29 = vpop.f32.mrb[106].mxu0  ;;  %s5226_s6 = sshra.s32 %s5212_s21, 3 }
 0x1db   : >> { %v2901_v1 = vpop.f32.mrb[100].mxu1  ;;  %v6779_v3 = vpop.f32.mrb[107].mxu0  ;;  %s6532_s7 = sshll.u32 %s5226_s6, 2 }
 0x1dc   : >> { %v2902_v9 = vadd.f32 %v6771_v45, %v2901_v1  ;;  %v2903_v20 = vpop.f32.mrb[101].mxu1  ;;  %v6780_v12 = vadd.f32 %v6779_v3, %v6778_v29  ;;  %s9379_s8 = scalar_lea.vmem %s7547_s25, %s6532_s7 }
 0x1dd   : >> { %v2904_v32 = vpop.f32.mrb[102].mxu1  ;;  %5055 = vmatmul.mubr.bf16.gmra.mrb[212].mxu0 %v7459_v23 }
 0x1de   : >> { %v9220_v48 = vadd.f32 %v2902_v9, %v9137_v18  ;;  %v2905_v41 = vadd.f32 %v6774_v36, %v2904_v32  ;;  %v2906_v39 = vpop.f32.mrb[103].mxu1 }
 0x1e0   : >> { %v9223_v27 = vadd.f32 %v2905_v41, %v9142_v13  ;;  %5128 = vmatmul.mubr.bf16.gmra.mrb[208].mxu1 %v6489_v14  ;;  %v6781_v28 = vpop.f32.mrb[108].mxu0 }
 0x1e1   : >> { %v6782_v35 = vpop.f32.mrb[109].mxu0  ;;  %6527 = vmatprep.mubr.msk.bf16.mxu1 %vm662_vm0, %v7460_v7 }
 0x1e2   : >> { %v6783_v51 = vadd.f32 %v6782_v35, %v6781_v28  ;;  %v6784_v54 = vpop.f32.mrb[110].mxu0 }
 0x1e3   : >> { %v2909_v50 = vpop.f32.mrb[104].mxu1  ;;  %v6785_v33 = vpop.f32.mrb[111].mxu0 }
 0x1e4   : >> { %v2910_v30 = vadd.f32 %v6777_v62, %v2909_v50  ;;  %v2911_v22 = vpop.f32.mrb[105].mxu1  ;;  %v6786_v44 = vadd.f32 %v6785_v33, %v6784_v54 }
 0x1e5   : >> { %v2912_v18 = vpop.f32.mrb[106].mxu1 }
 0x1e6   : >> { %v9228_v58 = vadd.f32 %v2910_v30, %v9158_v47  ;;  %v2913_v26 = vadd.f32 %v6780_v12, %v2912_v18  ;;  %v2914_v13 = vpop.f32.mrb[107].mxu1 }
 0x1e8   : >> { %v9231_v53 = vadd.f32 %v2913_v26, %v9162_v59  ;;  %5136 = vmatmul.mubr.bf16.gmra.mrb[212].mxu1 %v7462_v63  ;;  %v6787_v37 = vpop.f32.mrb[112].mxu0 }
 0x1e9   : >> { %v6788_v15 = vpop.f32.mrb[113].mxu0 }
 0x1ea   : >> { %v6789_v19 = vadd.f32 %v6788_v15, %v6787_v37  ;;  %v6790_v40 = vpop.f32.mrb[114].mxu0 }
 0x1eb   : >> { %v2917_v31 = vpop.f32.mrb[108].mxu1  ;;  %v6791_v60 = vpop.f32.mrb[115].mxu0 }
 0x1ec   : >> { %v2918_v61 = vadd.f32 %v6783_v51, %v2917_v31  ;;  %v2919_v45 = vpop.f32.mrb[109].mxu1  ;;  %v6792_v16 = vadd.f32 %v6791_v60, %v6790_v40 }
 0x1ed   : >> { %v2920_v4 = vpop.f32.mrb[110].mxu1 }
 0x1ee   : >> { %v9234_v17 = vadd.f32 %v2918_v61, %v9170_v46  ;;  %v2921_v47 = vadd.f32 %v6786_v44, %v2920_v4  ;;  %v2922_v6 = vpop.f32.mrb[111].mxu1 }
 0x1f0   : >> { %v9237_v2 = vadd.f32 %v2921_v47, %v9174_v52  ;;  %v6793_v59 = vpop.f32.mrb[116].mxu0 }
 0x1f1   : >> { %v6794_v5 = vpop.f32.mrb[117].mxu0 }
 0x1f2   : >> { %v6795_v34 = vadd.f32 %v6794_v5, %v6793_v59  ;;  %v6796_v10 = vpop.f32.mrb[118].mxu0 }
 0x1f3   : >> { %v2925_v36 = vpop.f32.mrb[112].mxu1  ;;  %v6797_v43 = vpop.f32.mrb[119].mxu0 }
 0x1f4   : >> { %v2926_v42 = vadd.f32 %v6789_v19, %v2925_v36  ;;  %v2927_v8 = vpop.f32.mrb[113].mxu1  ;;  %v6798_v24 = vadd.f32 %v6797_v43, %v6796_v10 }
 0x1f5   : >> { %v2928_v49 = vpop.f32.mrb[114].mxu1 }
 0x1f6   : >> { %v9240_v56 = vadd.f32 %v2926_v42, %v9182_v55  ;;  %v2929_v46 = vadd.f32 %v6792_v16, %v2928_v49  ;;  %v2930_v23 = vpop.f32.mrb[115].mxu1 }
 0x1f8   : >> { %v9243_v62 = vadd.f32 %v2929_v46, %v9186_v38  ;;  %v6815_v52 = vpop.f32.mrb[120].mxu0 }
 0x1f9   : >> { %v6816_v29 = vpop.f32.mrb[121].mxu0 }
 0x1fa   : >> { %v6817_v1 = vadd.f32 %v6816_v29, %v6815_v52  ;;  %v6818_v3 = vpop.f32.mrb[122].mxu0 }
 0x1fb   : >> { %v2933_v9 = vpop.f32.mrb[116].mxu1  ;;  %v6819_v20 = vpop.f32.mrb[123].mxu0 }
 0x1fc   : >> { %v2934_v14 = vadd.f32 %v6795_v34, %v2933_v9  ;;  %v2935_v12 = vpop.f32.mrb[117].mxu1  ;;  %v6820_v32 = vadd.f32 %v6819_v20, %v6818_v3 }
 0x1fd   : >> { %v2936_v7 = vpop.f32.mrb[118].mxu1 }
 0x1fe   : >> { %v9246_v41 = vadd.f32 %v2934_v14, %v9196_v57  ;;  %v2937_v55 = vadd.f32 %v6798_v24, %v2936_v7  ;;  %v2938_v39 = vpop.f32.mrb[119].mxu1 }
 0x200   : >> { %v9249_v28 = vadd.f32 %v2937_v55, %v9199_v11  ;;  %v6821_v38 = vpop.f32.mrb[124].mxu0 }
 0x201   : >> { %v6822_v35 = vpop.f32.mrb[125].mxu0 }
 0x202   : >> { %v6823_v51 = vadd.f32 %v6822_v35, %v6821_v38  ;;  %v6824_v54 = vpop.f32.mrb[126].mxu0 }
 0x203   : >> { %v3444_v50 = vpop.f32.mrb[120].mxu1  ;;  %v6825_v33 = vpop.f32.mrb[127].mxu0 }
 0x204   : >> { %v3445_v30 = vadd.f32 %v6817_v1, %v3444_v50  ;;  %v3446_v22 = vpop.f32.mrb[121].mxu1  ;;  %v6826_v63 = vadd.f32 %v6825_v33, %v6824_v54 }
 0x205   : >> { %v3447_v44 = vpop.f32.mrb[122].mxu1 }
 0x206   : >> { %v9252_v18 = vadd.f32 %v3445_v30, %v9210_v21  ;;  %v3448_v57 = vadd.f32 %v6820_v32, %v3447_v44  ;;  %v3449_v26 = vpop.f32.mrb[123].mxu1 }
 0x208   : >> { %v9255_v13 = vadd.f32 %v3448_v57, %v9213_v25  ;;  %v6827_v11 = vpop.f32.mrb[128].mxu0 }
 0x209   : >> { %v6828_v37 = vpop.f32.mrb[129].mxu0 }
 0x20a   : >> { %v6829_v15 = vadd.f32 %v6828_v37, %v6827_v11  ;;  %v6830_v19 = vpop.f32.mrb[130].mxu0 }
 0x20b   : >> { %v3452_v40 = vpop.f32.mrb[124].mxu1  ;;  %v6831_v31 = vpop.f32.mrb[131].mxu0 }
 0x20c   : >> { %v3453_v60 = vadd.f32 %v6823_v51, %v3452_v40  ;;  %v3454_v61 = vpop.f32.mrb[125].mxu1  ;;  %v6832_v45 = vadd.f32 %v6831_v31, %v6830_v19 }
 0x20d   : >> { %v3455_v16 = vpop.f32.mrb[126].mxu1 }
 0x20e   : >> { %v9258_v4 = vadd.f32 %v3453_v60, %v9220_v48  ;;  %v3456_v21 = vadd.f32 %v6826_v63, %v3455_v16  ;;  %v3457_v47 = vpop.f32.mrb[127].mxu1 }
 0x210   : >> { %v9261_v6 = vadd.f32 %v3456_v21, %v9223_v27  ;;  %v6833_v25 = vpop.f32.mrb[132].mxu0 }
 0x211   : >> { %v6834_v59 = vpop.f32.mrb[133].mxu0 }
 0x212   : >> { %v6835_v5 = vadd.f32 %v6834_v59, %v6833_v25  ;;  %v6836_v34 = vpop.f32.mrb[134].mxu0 }
 0x213   : >> { %v3460_v10 = vpop.f32.mrb[128].mxu1  ;;  %v6837_v36 = vpop.f32.mrb[135].mxu0 }
 0x214   : >> { %v3461_v43 = vadd.f32 %v6829_v15, %v3460_v10  ;;  %v3462_v42 = vpop.f32.mrb[129].mxu1  ;;  %v6838_v8 = vadd.f32 %v6837_v36, %v6836_v34 }
 0x215   : >> { %v3463_v24 = vpop.f32.mrb[130].mxu1 }
 0x216   : >> { %v9264_v49 = vadd.f32 %v3461_v43, %v9228_v58  ;;  %v3464_v48 = vadd.f32 %v6832_v45, %v3463_v24  ;;  %v3465_v46 = vpop.f32.mrb[131].mxu1 }
 0x218   : >> { %v9267_v23 = vadd.f32 %v3464_v48, %v9231_v53  ;;  %v6839_v27 = vpop.f32.mrb[136].mxu0 }
 0x219   : >> { %v6840_v52 = vpop.f32.mrb[137].mxu0 }
 0x21a   : >> { %v6841_v29 = vadd.f32 %v6840_v52, %v6839_v27  ;;  %v6842_v1 = vpop.f32.mrb[138].mxu0 }
 0x21b   : >> { %v3468_v3 = vpop.f32.mrb[132].mxu1  ;;  %v6843_v9 = vpop.f32.mrb[139].mxu0 }
 0x21c   : >> { %v3469_v20 = vadd.f32 %v6835_v5, %v3468_v3  ;;  %v3470_v14 = vpop.f32.mrb[133].mxu1  ;;  %v6844_v12 = vadd.f32 %v6843_v9, %v6842_v1 }
 0x21d   : >> { %v3471_v32 = vpop.f32.mrb[134].mxu1 }
 0x21e   : >> { %v9270_v7 = vadd.f32 %v3469_v20, %v9234_v17  ;;  %v3472_v58 = vadd.f32 %v6838_v8, %v3471_v32  ;;  %v3473_v55 = vpop.f32.mrb[135].mxu1 }
 0x220   : >> { %v9273_v39 = vadd.f32 %v3472_v58, %v9237_v2  ;;  %v6845_v53 = vpop.f32.mrb[140].mxu0 }
 0x221   : >> { %v6846_v38 = vpop.f32.mrb[141].mxu0 }
 0x222   : >> { %v6847_v35 = vadd.f32 %v6846_v38, %v6845_v53  ;;  %v6848_v51 = vpop.f32.mrb[142].mxu0 }
 0x223   : >> { %v3476_v54 = vpop.f32.mrb[136].mxu1  ;;  %v6849_v50 = vpop.f32.mrb[143].mxu0 }
 0x224   : >> { %v3477_v33 = vadd.f32 %v6841_v29, %v3476_v54  ;;  %v3478_v30 = vpop.f32.mrb[137].mxu1  ;;  %v6850_v22 = vadd.f32 %v6849_v50, %v6848_v51 }
 0x225   : >> { %v3479_v63 = vpop.f32.mrb[138].mxu1 }
 0x226   : >> { %v9276_v44 = vadd.f32 %v3477_v33, %v9240_v56  ;;  %v3480_v17 = vadd.f32 %v6844_v12, %v3479_v63  ;;  %v3481_v57 = vpop.f32.mrb[139].mxu1 }
 0x228   : >> { %v9279_v26 = vadd.f32 %v3480_v17, %v9243_v62  ;;  %v6867_v2 = vpop.f32.mrb[144].mxu0 }
 0x229   : >> { %v6868_v11 = vpop.f32.mrb[145].mxu0 }
 0x22a   : >> { %v6869_v37 = vadd.f32 %v6868_v11, %v6867_v2  ;;  %v6870_v15 = vpop.f32.mrb[146].mxu0 }
 0x22b   : >> { %v3484_v19 = vpop.f32.mrb[140].mxu1  ;;  %v6871_v40 = vpop.f32.mrb[147].mxu0 }
 0x22c   : >> { %v3485_v31 = vadd.f32 %v6847_v35, %v3484_v19  ;;  %v3486_v60 = vpop.f32.mrb[141].mxu1  ;;  %v6872_v61 = vadd.f32 %v6871_v40, %v6870_v15 }
 0x22d   : >> { %v3487_v45 = vpop.f32.mrb[142].mxu1 }
 0x22e   : >> { %v9282_v16 = vadd.f32 %v3485_v31, %v9246_v41  ;;  %v3488_v56 = vadd.f32 %v6850_v22, %v3487_v45  ;;  %v3489_v21 = vpop.f32.mrb[143].mxu1 }
 0x230   : >> { %v9285_v47 = vadd.f32 %v3488_v56, %v9249_v28  ;;  %v6873_v62 = vpop.f32.mrb[148].mxu0 }
 0x231   : >> { %v6874_v25 = vpop.f32.mrb[149].mxu0 }
 0x232   : >> { %v6875_v59 = vadd.f32 %v6874_v25, %v6873_v62  ;;  %v6876_v5 = vpop.f32.mrb[150].mxu0 }
 0x233   : >> { %v3995_v34 = vpop.f32.mrb[144].mxu1  ;;  %v6877_v10 = vpop.f32.mrb[151].mxu0 }
 0x234   : >> { %v3996_v36 = vadd.f32 %v6869_v37, %v3995_v34  ;;  %v3997_v43 = vpop.f32.mrb[145].mxu1  ;;  %v6878_v42 = vadd.f32 %v6877_v10, %v6876_v5 }
 0x235   : >> { %v3998_v8 = vpop.f32.mrb[146].mxu1 }
 0x236   : >> { %v9288_v24 = vadd.f32 %v3996_v36, %v9252_v18  ;;  %v3999_v41 = vadd.f32 %v6872_v61, %v3998_v8  ;;  %v4000_v48 = vpop.f32.mrb[147].mxu1 }
 0x238   : >> { %v9291_v46 = vadd.f32 %v3999_v41, %v9255_v13  ;;  %v6879_v28 = vpop.f32.mrb[152].mxu0 }
 0x239   : >> { %v6880_v27 = vpop.f32.mrb[153].mxu0 }
 0x23a   : >> { %v6881_v52 = vadd.f32 %v6880_v27, %v6879_v28  ;;  %v6882_v29 = vpop.f32.mrb[154].mxu0 }
 0x23b   : >> { %v4003_v1 = vpop.f32.mrb[148].mxu1  ;;  %v6883_v3 = vpop.f32.mrb[155].mxu0 }
 0x23c   : >> { %v4004_v9 = vadd.f32 %v6875_v59, %v4003_v1  ;;  %v4005_v20 = vpop.f32.mrb[149].mxu1  ;;  %v6884_v14 = vadd.f32 %v6883_v3, %v6882_v29 }
 0x23d   : >> { %v4006_v12 = vpop.f32.mrb[150].mxu1 }
 0x23e   : >> { %v9294_v32 = vadd.f32 %v4004_v9, %v9258_v4  ;;  %v4007_v18 = vadd.f32 %v6878_v42, %v4006_v12  ;;  %v4008_v58 = vpop.f32.mrb[151].mxu1 }
 0x240   : >> { %v9297_v55 = vadd.f32 %v4007_v18, %v9261_v6  ;;  %v6885_v13 = vpop.f32.mrb[156].mxu0 }
 0x241   : >> { %v6886_v53 = vpop.f32.mrb[157].mxu0 }
 0x242   : >> { %v6887_v38 = vadd.f32 %v6886_v53, %v6885_v13  ;;  %v6888_v35 = vpop.f32.mrb[158].mxu0 }
 0x243   : >> { %v4011_v51 = vpop.f32.mrb[152].mxu1  ;;  %v6889_v54 = vpop.f32.mrb[159].mxu0 }
 0x244   : >> { %v4012_v50 = vadd.f32 %v6881_v52, %v4011_v51  ;;  %v4013_v33 = vpop.f32.mrb[153].mxu1  ;;  %v6890_v30 = vadd.f32 %v6889_v54, %v6888_v35 }
 0x245   : >> { %v4014_v22 = vpop.f32.mrb[154].mxu1 }
 0x246   : >> { %v9300_v63 = vadd.f32 %v4012_v50, %v9264_v49  ;;  %v4015_v4 = vadd.f32 %v6884_v14, %v4014_v22  ;;  %v4016_v17 = vpop.f32.mrb[155].mxu1 }
 0x248   : >> { %v9303_v57 = vadd.f32 %v4015_v4, %v9267_v23  ;;  %v6891_v6 = vpop.f32.mrb[160].mxu0 }
 0x249   : >> { %v6892_v2 = vpop.f32.mrb[161].mxu0 }
 0x24a   : >> { %v6893_v11 = vadd.f32 %v6892_v2, %v6891_v6  ;;  %v6894_v37 = vpop.f32.mrb[162].mxu0 }
 0x24b   : >> { %v4019_v15 = vpop.f32.mrb[156].mxu1  ;;  %v6895_v19 = vpop.f32.mrb[163].mxu0 }
 0x24c   : >> { %v4020_v40 = vadd.f32 %v6887_v38, %v4019_v15  ;;  %v4021_v31 = vpop.f32.mrb[157].mxu1  ;;  %v6896_v60 = vadd.f32 %v6895_v19, %v6894_v37 }
 0x24d   : >> { %v4022_v61 = vpop.f32.mrb[158].mxu1 }
 0x24e   : >> { %v9306_v45 = vadd.f32 %v4020_v40, %v9270_v7  ;;  %v4023_v49 = vadd.f32 %v6890_v30, %v4022_v61  ;;  %v4024_v56 = vpop.f32.mrb[159].mxu1 }
 0x250   : >> { %v9309_v21 = vadd.f32 %v4023_v49, %v9273_v39  ;;  %v6897_v23 = vpop.f32.mrb[164].mxu0 }
 0x251   : >> { %v6898_v62 = vpop.f32.mrb[165].mxu0 }
 0x252   : >> { %v6899_v25 = vadd.f32 %v6898_v62, %v6897_v23  ;;  %v6900_v59 = vpop.f32.mrb[166].mxu0 }
 0x253   : >> { %v4027_v5 = vpop.f32.mrb[160].mxu1  ;;  %v6901_v34 = vpop.f32.mrb[167].mxu0 }
 0x254   : >> { %v4028_v10 = vadd.f32 %v6893_v11, %v4027_v5  ;;  %v4029_v36 = vpop.f32.mrb[161].mxu1  ;;  %v6902_v43 = vadd.f32 %v6901_v34, %v6900_v59 }
 0x255   : >> { %v4030_v42 = vpop.f32.mrb[162].mxu1 }
 0x256   : >> { %v9312_v8 = vadd.f32 %v4028_v10, %v9276_v44  ;;  %v4031_v7 = vadd.f32 %v6896_v60, %v4030_v42  ;;  %v4032_v41 = vpop.f32.mrb[163].mxu1 }
 0x258   : >> { %v9315_v48 = vadd.f32 %v4031_v7, %v9279_v26  ;;  %v6919_v39 = vpop.f32.mrb[168].mxu0 }
 0x259   : >> { %v6920_v28 = vpop.f32.mrb[169].mxu0 }
 0x25a   : >> { %v6921_v27 = vadd.f32 %v6920_v28, %v6919_v39  ;;  %v6922_v52 = vpop.f32.mrb[170].mxu0 }
 0x25b   : >> { %v4035_v29 = vpop.f32.mrb[164].mxu1  ;;  %v6923_v1 = vpop.f32.mrb[171].mxu0 }
 0x25c   : >> { %v4036_v3 = vadd.f32 %v6899_v25, %v4035_v29  ;;  %v4037_v9 = vpop.f32.mrb[165].mxu1  ;;  %v6924_v20 = vadd.f32 %v6923_v1, %v6922_v52 }
 0x25d   : >> { %v4038_v14 = vpop.f32.mrb[166].mxu1 }
 0x25e   : >> { %v9318_v12 = vadd.f32 %v4036_v3, %v9282_v16  ;;  %v4039_v44 = vadd.f32 %v6902_v43, %v4038_v14  ;;  %v4040_v18 = vpop.f32.mrb[167].mxu1 }
 0x260   : >> { %v9321_v58 = vadd.f32 %v4039_v44, %v9285_v47  ;;  %v6925_v26 = vpop.f32.mrb[172].mxu0 }
 0x261   : >> { %v6926_v13 = vpop.f32.mrb[173].mxu0 }
 0x262   : >> { %v6927_v53 = vadd.f32 %v6926_v13, %v6925_v26  ;;  %v6928_v38 = vpop.f32.mrb[174].mxu0 }
 0x263   : >> { %v4546_v35 = vpop.f32.mrb[168].mxu1  ;;  %v6929_v51 = vpop.f32.mrb[175].mxu0 }
 0x264   : >> { %v4547_v54 = vadd.f32 %v6921_v27, %v4546_v35  ;;  %v4548_v50 = vpop.f32.mrb[169].mxu1  ;;  %v6930_v33 = vadd.f32 %v6929_v51, %v6928_v38 }
 0x265   : >> { %v4549_v30 = vpop.f32.mrb[170].mxu1 }
 0x266   : >> { %v9324_v22 = vadd.f32 %v4547_v54, %v9288_v24  ;;  %v4550_v16 = vadd.f32 %v6924_v20, %v4549_v30  ;;  %v4551_v4 = vpop.f32.mrb[171].mxu1 }
 0x268   : >> { %v9327_v17 = vadd.f32 %v4550_v16, %v9291_v46  ;;  %v6931_v47 = vpop.f32.mrb[176].mxu0 }
 0x269   : >> { %v6932_v6 = vpop.f32.mrb[177].mxu0 }
 0x26a   : >> { %v6933_v2 = vadd.f32 %v6932_v6, %v6931_v47  ;;  %v6934_v11 = vpop.f32.mrb[178].mxu0 }
 0x26b   : >> { %v4554_v37 = vpop.f32.mrb[172].mxu1  ;;  %v6935_v15 = vpop.f32.mrb[179].mxu0 }
 0x26c   : >> { %v4555_v19 = vadd.f32 %v6927_v53, %v4554_v37  ;;  %v4556_v40 = vpop.f32.mrb[173].mxu1  ;;  %v6936_v31 = vadd.f32 %v6935_v15, %v6934_v11 }
 0x26d   : >> { %v4557_v60 = vpop.f32.mrb[174].mxu1 }
 0x26e   : >> { %v9330_v61 = vadd.f32 %v4555_v19, %v9294_v32  ;;  %v4558_v24 = vadd.f32 %v6930_v33, %v4557_v60  ;;  %v4559_v49 = vpop.f32.mrb[175].mxu1 }
 0x270   : >> { %v9333_v56 = vadd.f32 %v4558_v24, %v9297_v55  ;;  %v6937_v46 = vpop.f32.mrb[180].mxu0 }
 0x271   : >> { %v6938_v23 = vpop.f32.mrb[181].mxu0 }
 0x272   : >> { %v6939_v62 = vadd.f32 %v6938_v23, %v6937_v46  ;;  %v6940_v25 = vpop.f32.mrb[182].mxu0 }
 0x273   : >> { %v4562_v59 = vpop.f32.mrb[176].mxu1  ;;  %v6941_v5 = vpop.f32.mrb[183].mxu0 }
 0x274   : >> { %v4563_v34 = vadd.f32 %v6933_v2, %v4562_v59  ;;  %v4564_v10 = vpop.f32.mrb[177].mxu1  ;;  %v6942_v36 = vadd.f32 %v6941_v5, %v6940_v25 }
 0x275   : >> { %v4565_v43 = vpop.f32.mrb[178].mxu1 }
 0x276   : >> { %v9336_v42 = vadd.f32 %v4563_v34, %v9300_v63  ;;  %v4566_v32 = vadd.f32 %v6936_v31, %v4565_v43  ;;  %v4567_v7 = vpop.f32.mrb[179].mxu1 }
 0x278   : >> { %v9339_v41 = vadd.f32 %v4566_v32, %v9303_v57  ;;  %v6943_v55 = vpop.f32.mrb[184].mxu0 }
 0x279   : >> { %v6944_v39 = vpop.f32.mrb[185].mxu0 }
 0x27a   : >> { %v6945_v28 = vadd.f32 %v6944_v39, %v6943_v55  ;;  %v6946_v27 = vpop.f32.mrb[186].mxu0 }
 0x27b   : >> { %v4570_v52 = vpop.f32.mrb[180].mxu1  ;;  %v6947_v29 = vpop.f32.mrb[187].mxu0 }
 0x27c   : >> { %v4571_v1 = vadd.f32 %v6939_v62, %v4570_v52  ;;  %v4572_v3 = vpop.f32.mrb[181].mxu1  ;;  %v6948_v9 = vadd.f32 %v6947_v29, %v6946_v27 }
 0x27d   : >> { %v4573_v20 = vpop.f32.mrb[182].mxu1 }
 0x27e   : >> { %v9342_v14 = vadd.f32 %v4571_v1, %v9306_v45  ;;  %v4574_v63 = vadd.f32 %v6942_v36, %v4573_v20  ;;  %v4575_v44 = vpop.f32.mrb[183].mxu1 }
 0x280   : >> { %v9345_v18 = vadd.f32 %v4574_v63, %v9309_v21  ;;  %v6949_v57 = vpop.f32.mrb[188].mxu0 }
 0x281   : >> { %v6950_v26 = vpop.f32.mrb[189].mxu0 }
 0x282   : >> { %v6951_v13 = vadd.f32 %v6950_v26, %v6949_v57  ;;  %v6952_v53 = vpop.f32.mrb[190].mxu0 }
 0x283   : >> { %v4578_v38 = vpop.f32.mrb[184].mxu1  ;;  %v6953_v35 = vpop.f32.mrb[191].mxu0 }
 0x284   : >> { %v4579_v51 = vadd.f32 %v6945_v28, %v4578_v38  ;;  %v4580_v54 = vpop.f32.mrb[185].mxu1  ;;  %v6954_v50 = vadd.f32 %v6953_v35, %v6952_v53 }
 0x285   : >> { %v4581_v33 = vpop.f32.mrb[186].mxu1 }
 0x286   : >> { %v9348_v30 = vadd.f32 %v4579_v51, %v9312_v8  ;;  %v4582_v45 = vadd.f32 %v6948_v9, %v4581_v33  ;;  %v4583_v16 = vpop.f32.mrb[187].mxu1 }
 0x288   : >> { %v9351_v4 = vadd.f32 %v4582_v45, %v9315_v48  ;;  %v6971_v21 = vpop.f32.mrb[192].mxu0 }
 0x289   : >> { %v6972_v47 = vpop.f32.mrb[193].mxu0 }
 0x28a   : >> { %v6973_v6 = vadd.f32 %v6972_v47, %v6971_v21  ;;  %v6974_v2 = vpop.f32.mrb[194].mxu0 }
 0x28b   : >> { %v4586_v11 = vpop.f32.mrb[188].mxu1  ;;  %v6975_v37 = vpop.f32.mrb[195].mxu0 }
 0x28c   : >> { %v4587_v15 = vadd.f32 %v6951_v13, %v4586_v11  ;;  %v4588_v19 = vpop.f32.mrb[189].mxu1  ;;  %v6976_v40 = vadd.f32 %v6975_v37, %v6974_v2 }
 0x28d   : >> { %v4589_v31 = vpop.f32.mrb[190].mxu1 }
 0x28e   : >> { %v9354_v60 = vadd.f32 %v4587_v15, %v9318_v12  ;;  %v4590_v8 = vadd.f32 %v6954_v50, %v4589_v31  ;;  %v4591_v24 = vpop.f32.mrb[191].mxu1 }
 0x290   : >> { %v9357_v49 = vadd.f32 %v4590_v8, %v9321_v58  ;;  %v6977_v48 = vpop.f32.mrb[196].mxu0 }
 0x291   : >> { %v6978_v46 = vpop.f32.mrb[197].mxu0 }
 0x292   : >> { %v6979_v23 = vadd.f32 %v6978_v46, %v6977_v48  ;;  %v6980_v62 = vpop.f32.mrb[198].mxu0 }
 0x293   : >> { %v5097_v25 = vpop.f32.mrb[192].mxu1  ;;  %v6981_v59 = vpop.f32.mrb[199].mxu0 }
 0x294   : >> { %v5098_v5 = vadd.f32 %v6973_v6, %v5097_v25  ;;  %v5099_v34 = vpop.f32.mrb[193].mxu1  ;;  %v6982_v10 = vadd.f32 %v6981_v59, %v6980_v62 }
 0x295   : >> { %v5100_v36 = vpop.f32.mrb[194].mxu1 }
 0x296   : >> { %v5144_v43 = vadd.f32 %v5098_v5, %v9324_v22  ;;  %v5101_v32 = vadd.f32 %v6976_v40, %v5100_v36  ;;  %v5102_v12 = vpop.f32.mrb[195].mxu1 }
 0x298   : >> { %v5145_v7 = vadd.f32 %v5101_v32, %v9327_v17  ;;  %v6983_v55 = vpop.f32.mrb[200].mxu0  ;;  %v5162_v22 = vadd.f32 %v7537_v0, %v5144_v43 }
 0x299   : >> { %v6984_v39 = vpop.f32.mrb[201].mxu0 }
 0x29a   : >> { %v6985_v58 = vadd.f32 %v6984_v39, %v6983_v55  ;;  %v6986_v28 = vpop.f32.mrb[202].mxu0  ;;  %v5174_v54 = vmax.f32 %v5162_v22, 0.0  ;;  %v5163_v21 = vadd.f32 %v7537_v0, %v5145_v7 }
 0x29b   : >> { %v5105_v27 = vpop.f32.mrb[196].mxu1  ;;  %v6987_v52 = vpop.f32.mrb[203].mxu0 }
 0x29c   : >> { %v5106_v29 = vadd.f32 %v6979_v23, %v5105_v27  ;;  %v5107_v1 = vpop.f32.mrb[197].mxu1  ;;  %v6988_v3 = vadd.f32 %v6987_v52, %v6986_v28  ;;  %v5175_v31 = vmax.f32 %v5163_v21, 0.0 }
 0x29d   : >> { %v5108_v9 = vpop.f32.mrb[198].mxu1 }
 0x29e   : >> { %v5146_v20 = vadd.f32 %v5106_v29, %v9330_v61  ;;  %v5109_v63 = vadd.f32 %v6982_v10, %v5108_v9  ;;  %v5110_v44 = vpop.f32.mrb[199].mxu1 }
 0x2a0   : >> { %v5147_v57 = vadd.f32 %v5109_v63, %v9333_v56  ;;  %v6989_v26 = vpop.f32.mrb[204].mxu0  ;;  %v5164_v11 = vadd.f32 %v7537_v0, %v5146_v20 }
 0x2a1   : >> { %v6990_v17 = vpop.f32.mrb[205].mxu0 }
 0x2a2   : >> { %v5165_v13 = vadd.f32 %v7537_v0, %v5147_v57  ;;  %v6991_v53 = vadd.f32 %v6990_v17, %v6989_v26  ;;  %v6992_v38 = vpop.f32.mrb[206].mxu0 }
 0x2a3   : >> { %v5113_v35 = vpop.f32.mrb[200].mxu1  ;;  %v6993_v51 = vpop.f32.mrb[207].mxu0 }
 0x2a4   : >> { %v5177_v50 = vmax.f32 %v5165_v13, 0.0  ;;  %v5114_v33 = vadd.f32 %v6985_v58, %v5113_v35  ;;  %v5115_v45 = vpop.f32.mrb[201].mxu1  ;;  %v6994_v16 = vadd.f32 %v6993_v51, %v6992_v38 }
 0x2a5   : >> { %v5116_v61 = vpop.f32.mrb[202].mxu1 }
 0x2a6   : >> { %v5186_v47 = vmax.f32 %v5174_v54, %v5177_v50  ;;  %v5148_v6 = vadd.f32 %v5114_v33, %v9336_v42  ;;  %v5117_v56 = vadd.f32 %v6988_v3, %v5116_v61  ;;  %v5118_v2 = vpop.f32.mrb[203].mxu1  ;;  %v5176_v42 = vmax.f32 %v5164_v11, 0.0 }
 0x2a8   : >> { %5192 = vst.msk [vmem:[#allocation2] sm:$0xff] %vm662_vm0, %v5186_v47  ;;  %v5166_v37 = vadd.f32 %v7537_v0, %v5148_v6  ;;  %v5149_v15 = vadd.f32 %v5117_v56, %v9339_v41  ;;  %v6995_v19 = vpop.f32.mrb[208].mxu0 }
 0x2a9   : >> { %v6996_v40 = vpop.f32.mrb[209].mxu0 }
 0x2aa   : >> { %v5178_v8 = vmax.f32 %v5166_v37, 0.0  ;;  %v5167_v24 = vadd.f32 %v7537_v0, %v5149_v15  ;;  %v6997_v48 = vadd.f32 %v6996_v40, %v6995_v19  ;;  %v6998_v46 = vpop.f32.mrb[210].mxu0 }
 0x2ab   : >> { %v5121_v23 = vpop.f32.mrb[204].mxu1  ;;  %v6999_v62 = vpop.f32.mrb[211].mxu0 }
 0x2ac   : >> { %v5187_v25 = vmax.f32 %v5175_v31, %v5178_v8  ;;  %v5179_v59 = vmax.f32 %v5167_v24, 0.0  ;;  %v5122_v5 = vadd.f32 %v6991_v53, %v5121_v23  ;;  %v5123_v34 = vpop.f32.mrb[205].mxu1  ;;  %v7000_v10 = vadd.f32 %v6999_v62, %v6998_v46 }
 0x2ad   : >> { %v5124_v36 = vpop.f32.mrb[206].mxu1 }
 0x2ae   : >> { %5193 = vst.msk [vmem:[#allocation2 + $0x8] sm:$0xff] %vm662_vm0, %v5187_v25  ;;  %v5188_v41 = vmax.f32 %v5176_v42, %v5179_v59  ;;  %v5150_v43 = vadd.f32 %v5122_v5, %v9342_v14  ;;  %v5125_v32 = vadd.f32 %v6994_v16, %v5124_v36  ;;  %v5126_v12 = vpop.f32.mrb[207].mxu1 }
 0x2b0   : >> { %5194 = vst.msk [vmem:[#allocation2 + $0x10] sm:$0xff] %vm662_vm0, %v5188_v41  ;;  %v5151_v7 = vadd.f32 %v5125_v32, %v9345_v18  ;;  %v7001_v55 = vpop.f32.mrb[212].mxu0  ;;  %v5168_v26 = vadd.f32 %v7537_v0, %v5150_v43 }
 0x2b1   : >> { %v7002_v39 = vpop.f32.mrb[213].mxu0 }
 0x2b2   : >> { %v7003_v58 = vadd.f32 %v7002_v39, %v7001_v55  ;;  %v7004_v28 = vpop.f32.mrb[214].mxu0  ;;  %v5180_v38 = vmax.f32 %v5168_v26, 0.0  ;;  %v5169_v50 = vadd.f32 %v7537_v0, %v5151_v7 }
 0x2b3   : >> { %v5129_v27 = vpop.f32.mrb[208].mxu1  ;;  %v7005_v52 = vpop.f32.mrb[215].mxu0 }
 0x2b4   : >> { %v5130_v29 = vadd.f32 %v6997_v48, %v5129_v27  ;;  %v5131_v1 = vpop.f32.mrb[209].mxu1  ;;  %v7006_v3 = vadd.f32 %v7005_v52, %v7004_v28  ;;  %v5181_v6 = vmax.f32 %v5169_v50, 0.0 }
 0x2b5   : >> { %v5198_v9 = vld [vmem:[#allocation2] ss:$2 sm:$0xff]  ;;  %v5204_v14 = vld [vmem:[#allocation2 + $0x1] ss:$2 sm:$0xff]  ;;  %v5132_v20 = vpop.f32.mrb[210].mxu1 }
 0x2b6   : >> { %v5209_v63 = vmax.f32 %v5198_v9, %v5204_v14  ;;  %v5152_v44 = vadd.f32 %v5130_v29, %v9348_v30  ;;  %v5133_v22 = vadd.f32 %v7000_v10, %v5132_v20  ;;  %v5134_v18 = vpop.f32.mrb[211].mxu1 }
 0x2b8   : >> { %v6536_v57 = vpack.c.bf16 %v5209_v63, %v5209_v63  ;;  %v5153_v17 = vadd.f32 %v5133_v22, %v9351_v4  ;;  %v5170_v21 = vadd.f32 %v7537_v0, %v5152_v44 }
 0x2ba   : >> { %5231 = vst.msk [vmem:[%s9379_s8] sm:$0xf] %vm5230_vm1, %v6536_v57  ;;  %v5171_v13 = vadd.f32 %v7537_v0, %v5153_v17  ;;  %v5182_v11 = vmax.f32 %v5170_v21, 0.0 }
 0x2bb   : >> { %v5137_v53 = vpop.f32.mrb[212].mxu1 }
 0x2bc   : >> { %v5183_v35 = vmax.f32 %v5171_v13, 0.0  ;;  %v5138_v51 = vadd.f32 %v7003_v58, %v5137_v53  ;;  %v5139_v30 = vpop.f32.mrb[213].mxu1 }
 0x2bd   : >> { %v5140_v54 = vpop.f32.mrb[214].mxu1 }
 0x2be   : >> { %v5189_v33 = vmax.f32 %v5180_v38, %v5183_v35  ;;  %v5154_v45 = vadd.f32 %v5138_v51, %v9354_v60  ;;  %v5141_v16 = vadd.f32 %v7006_v3, %v5140_v54  ;;  %v5142_v61 = vpop.f32.mrb[215].mxu1 }
 0x2c0   : >> { %5195 = vst.msk [vmem:[#allocation2 + $0x18] sm:$0xff] %vm662_vm0, %v5189_v33  ;;  %v5172_v4 = vadd.f32 %v7537_v0, %v5154_v45  ;;  %v5155_v47 = vadd.f32 %v5141_v16, %v9357_v49 }
 0x2c2   : >> { %v5184_v56 = vmax.f32 %v5172_v4, 0.0  ;;  %v5173_v2 = vadd.f32 %v7537_v0, %v5155_v47 }
 0x2c4   : >> { %v5190_v37 = vmax.f32 %v5181_v6, %v5184_v56  ;;  %v5185_v15 = vmax.f32 %v5173_v2, 0.0 }
 0x2c6   : >> { %5196 = vst.msk [vmem:[#allocation2 + $0x20] sm:$0xff] %vm662_vm0, %v5190_v37  ;;  %v5191_v60 = vmax.f32 %v5182_v11, %v5185_v15 }
 0x2c7   : >> { %v5200_v19 = vld [vmem:[#allocation2 + $0x10] ss:$2 sm:$0xff]  ;;  %v5206_v40 = vld [vmem:[#allocation2 + $0x11] ss:$2 sm:$0xff] }
 0x2c8   : >> { %v5210_v31 = vmax.f32 %v5200_v19, %v5206_v40  ;;  %5197 = vst.msk [vmem:[#allocation2 + $0x28] sm:$0xff] %vm662_vm0, %v5191_v60 }
 0x2ca   : >> { %v6537_v8 = vpack.c.bf16 %v5210_v31, %v5210_v31 }
 0x2cc   : >> { %5232 = vst.msk [vmem:[%s9379_s8 + $0x4] sm:$0xf] %vm5230_vm1, %v6537_v8 }
 0x2ce   : > { %219 = sbr.rel (!%p217_p5) target bundleno = 19 (0x13), region = 92 }
 0x2cf   : >> { %v5202_v49 = vld [vmem:[#allocation2 + $0x20] ss:$2 sm:$0xff]  ;;  %v5208_v24 = vld [vmem:[#allocation2 + $0x21] ss:$2 sm:$0xff] }
 0x2d0   : >> { %v5211_v48 = vmax.f32 %v5202_v49, %v5208_v24 }
 0x2d2   : >> { %v6538_v46 = vpack.c.bf16 %v5211_v48, %v5211_v48 }
 0x2d4   : >> { %5233 = vst.msk [vmem:[%s9379_s8 + $0x8] sm:$0xf] %vm5230_vm1, %v6538_v46 }
 0x2d5 PF: > { %s13_s14 = sadd.s32 1, %s7489_s14   ;;  %s9415_s12 = smov %s7485_s13 }
 0x2d6   : > { %p10_p6 = scmp.ge.s32.totalorder %s13_s14, 4   ;;  %s9416_s13 = smov %s9418_s15 }
 0x2d8   :  { %12 = sbr.rel (!%p10_p6) target bundleno = 2 (0x2), region = 103 }

// kernel: forward.8
= control target key start
LH: loop header
LB: loop body
LE: loop exit
PB: predicated region body
PF: predicated region fallthrough
CT: control target
= control target key end

     0   :  { %s2095_s12 = smov 0   ;;  %s2097_s13 = smov 0   ;;  %s2572_s0 = inlined_call_operand.vmem [shape: bf16[2,12,8,240], index: 0, kind: input, shape index: {}]   ;;  %s2573_s1 = inlined_call_operand.vmem [shape: bf16[5,240,32], index: 1, kind: input, shape index: {}]   ;;  %s2574_s2 = inlined_call_operand.vmem [shape: f32[1,32], index: 2, kind: input, shape index: {}]   ;;  %s2575_s3 = inlined_call_operand.vmem [shape: bf16[2,16,32], index: 3, kind: output, shape index: {}]  }
   0x1   :  { %s2099_s14 = smov 0  }
   0x2 LB: > { %s25_s15 = sadd.s32 1, %s2068_s13  ;;  %p1598_p0 = scmp.ge.s32.totalorder %s2072_s14, 1  ;;  %s2072_s14 = sphi %s2099_s14, %s13_s14   ;;  %s2068_s13 = sphi %s2097_s13, %s2577_s13   ;;  %s2064_s12 = sphi %s2095_s12, %s2576_s12  }
   0x3   : > { %p27_p1 = scmp.ge.s32.totalorder %s25_s15, 2  ;;  %p159_p2 = scmp.lt.s32.totalorder %s2072_s14, 3 }
   0x5   : > { %s2579_s15 = smov (%p27_p1, %s25_s15), 0  ;;  %p160_p3 = pnand %p1598_p0, %p159_p2 }
   0x6   : > { %v1953_v0 = vld [vmem:[%s2573_s1 + $0x78] sm:$0xff] (!%p160_p3)   ;;  %v2074_v1 = vmov (!%p160_p3), 0   ;;  %v1954_v2 = vld [vmem:[%s2573_s1] sm:$0xff] (!%p160_p3)   ;;  %v1956_v4 = vld [vmem:[%s2573_s1 + $0x8] sm:$0xff] (!%p160_p3)   ;;  %p193_p4 = scmp.lt.s32.totalorder (!%p160_p3), %s2064_s12, 1  ;;  %vm419_vm0 = vcmask (!%p160_p3), 916480  }
   0x7   : > { %163 = sbr.rel (%p160_p3) target bundleno = 431 (0x1af), region = 32  ;;  %432 = vmatprep.subr.bf16.mxu0 (!%p160_p3), %v2074_v1  ;;  %635 = vmatprep.subr.bf16.mxu1 (!%p160_p3), %v2074_v1  ;;  %v1955_v3 = vld [vmem:[%s2573_s1 + $0x80] sm:$0xff] (!%p160_p3)   ;;  %v1957_v5 = vld [vmem:[%s2573_s1 + $0x88] sm:$0xff] (!%p160_p3)   ;;  %v1958_v6 = vld [vmem:[%s2573_s1 + $0x10] sm:$0xff] (!%p160_p3)   ;;  %vm1479_vm1 = vcmask (!%p160_p3), 261120   ;;  %vm1501_vm2 = vcmask (!%p160_p3), 257024  }
   0x8   : > { %433 = vmatpush1.bf16.msra.mxu0 (!%p160_p3), %v1953_v0  ;;  %636 = vmatpush1.bf16.msra.mxu1 (!%p160_p3), %v1954_v2  ;;  %v1959_v7 = vld [vmem:[%s2573_s1 + $0x90] sm:$0xff] (!%p160_p3)   ;;  %v1960_v8 = vld [vmem:[%s2573_s1 + $0x18] sm:$0xff] (!%p160_p3)   ;;  %v1962_v10 = vld [vmem:[%s2573_s1 + $0x20] sm:$0xff] (!%p160_p3)  }
   0x9   : > { %434 = vmatprep.subr.bf16.mxu0 (!%p160_p3), %v2074_v1  ;;  %637 = vmatprep.subr.bf16.mxu1 (!%p160_p3), %v2074_v1  ;;  %v1961_v9 = vld [vmem:[%s2573_s1 + $0x98] sm:$0xff] (!%p160_p3)   ;;  %v1963_v11 = vld [vmem:[%s2573_s1 + $0xa0] sm:$0xff] (!%p160_p3)   ;;  %v1964_v12 = vld [vmem:[%s2573_s1 + $0x28] sm:$0xff] (!%p160_p3)  }
   0xa   : > { %v1965_v13 = vld [vmem:[%s2573_s1 + $0xa8] sm:$0xff] (!%p160_p3)   ;;  %v1966_v14 = vld [vmem:[%s2573_s1 + $0x30] sm:$0xff] (!%p160_p3)   ;;  %v1968_v16 = vld [vmem:[%s2573_s1 + $0x38] sm:$0xff] (!%p160_p3)  }
   0xb   : > { %v1967_v15 = vld [vmem:[%s2573_s1 + $0xb0] sm:$0xff] (!%p160_p3)   ;;  %v1969_v17 = vld [vmem:[%s2573_s1 + $0xb8] sm:$0xff] (!%p160_p3)   ;;  %v1970_v21 = vld [vmem:[%s2573_s1 + $0x40] sm:$0xff] (!%p160_p3)  }
   0xc   : > { %435 = vmatpush1.bf16.msra.mxu0 (!%p160_p3), %v1955_v3  ;;  %638 = vmatpush1.bf16.msra.mxu1 (!%p160_p3), %v1956_v4  ;;  %v1971_v24 = vld [vmem:[%s2573_s1 + $0xc0] sm:$0xff] (!%p160_p3)   ;;  %v1972_v25 = vld [vmem:[%s2573_s1 + $0x48] sm:$0xff] (!%p160_p3)   ;;  %v1974_v27 = vld [vmem:[%s2573_s1 + $0x50] sm:$0xff] (!%p160_p3)  }
   0xd   : > { %436 = vmatprep.subr.bf16.mxu0 (!%p160_p3), %v2074_v1  ;;  %639 = vmatprep.subr.bf16.mxu1 (!%p160_p3), %v2074_v1  ;;  %v1973_v26 = vld [vmem:[%s2573_s1 + $0xc8] sm:$0xff] (!%p160_p3)   ;;  %v1975_v28 = vld [vmem:[%s2573_s1 + $0xd0] sm:$0xff] (!%p160_p3)   ;;  %v1976_v29 = vld [vmem:[%s2573_s1 + $0x58] sm:$0xff] (!%p160_p3)  }
   0xe   : > { %s2581_s12 = smov (!%p193_p4, %s2064_s12), 1  ;;  %v1977_v30 = vld [vmem:[%s2573_s1 + $0xd8] sm:$0xff]   ;;  %v1978_v31 = vld [vmem:[%s2573_s1 + $0x60] sm:$0xff]   ;;  %v1980_v33 = vld [vmem:[%s2573_s1 + $0x68] sm:$0xff]  }
   0xf   : > { %s1927_s21 = smul.u32 96, %s2581_s12  ;;  %v1979_v32 = vld [vmem:[%s2573_s1 + $0xe0] sm:$0xff]   ;;  %v1981_v34 = vld [vmem:[%s2573_s1 + $0xe8] sm:$0xff]   ;;  %v1982_v35 = vld [vmem:[%s2573_s1 + $0x70] sm:$0xff]   ;;  %s1894_s11 = sshll.u32 %s2581_s12, 3 }
  0x10   : > { %437 = vmatpush1.bf16.msra.mxu0 %v1957_v5  ;;  %640 = vmatpush1.bf16.msra.mxu1 %v1958_v6  ;;  %v1987_v40 = vld [vmem:[%s2573_s1 + $0xf0] sm:$0xff]   ;;  %v1988_v41 = vld [vmem:[%s2573_s1 + $0x168] sm:$0xff]   ;;  %v1989_v44 = vld [vmem:[%s2573_s1 + $0xf8] sm:$0xff]   ;;  %s211_s18 = scalar_lea.vmem %s2575_s3, %s1894_s11 }
  0x11   : > { %438 = vmatprep.subr.bf16.mxu0 %v2074_v1  ;;  %641 = vmatprep.subr.bf16.mxu1 %v2074_v1  ;;  %s2186_s28 = scalar_lea.vmem %s2572_s0, %s1927_s21  ;;  %v1990_v45 = vld [vmem:[%s2573_s1 + $0x170] sm:$0xff]   ;;  %v1991_v49 = vld [vmem:[%s2573_s1 + $0x100] sm:$0xff]   ;;  %v1992_v51 = vld [vmem:[%s2573_s1 + $0x178] sm:$0xff]  }
  0x12   : > { %v1602_v18 = vld [vmem:[%s2186_s28 + $0x8] sm:$0xff]  ;;  %v2194_v19 = vld [vmem:[%s2186_s28 + $0x10] sm:$0xff]  ;;  %v215_v20 = vld [vmem:[%s2186_s28] sm:$0xff] }
  0x13   : > { %v1641_v22 = vcombine.high %v1602_v18, %v2194_v19  ;;  %v1668_v23 = vcombine.high %v215_v20, %v1602_v18  ;;  %v1604_v36 = vld [vmem:[%s2186_s28 + $0x18] sm:$0xff]  ;;  %v1640_v37 = vcombine.low %v1602_v18, %v2194_v19  ;;  %v1605_v38 = vld [vmem:[%s2186_s28 + $0x20] sm:$0xff]  ;;  %v1667_v39 = vcombine.low %v215_v20, %v1602_v18  ;;  %v1606_v46 = vld [vmem:[%s2186_s28 + $0x28] sm:$0xff] }
  0x14   : > { %439 = vmatpush1.bf16.msra.mxu0 %v1959_v7  ;;  %642 = vmatpush1.bf16.msra.mxu1 %v1960_v8  ;;  %v2264_v42 = vcombine.high %v1604_v36, %v1605_v38  ;;  %v2267_v43 = vcombine.high %v2194_v19, %v1604_v36  ;;  %v2282_v47 = vcombine.low %v1604_v36, %v1605_v38  ;;  %v1607_v48 = vld [vmem:[%s2186_s28 + $0x30] sm:$0xff]  ;;  %v2302_v54 = vld [vmem:[%s2186_s28 + $0x40] sm:$0xff]  ;;  %v2305_v55 = vld [vmem:[%s2186_s28 + $0x48] sm:$0xff] }
  0x15   : > { %440 = vmatprep.subr.bf16.mxu0 %v2074_v1  ;;  %643 = vmatprep.subr.bf16.mxu1 %v2074_v1  ;;  %v2289_v50 = vcombine.low %v2194_v19, %v1604_v36  ;;  %v2296_v52 = vcombine.high %v1606_v46, %v1607_v48  ;;  %v2299_v53 = vcombine.high %v1605_v38, %v1606_v46  ;;  %v1993_v56 = vld [vmem:[%s2573_s1 + $0x108] sm:$0xff]   ;;  %v1994_v58 = vld [vmem:[%s2573_s1 + $0x180] sm:$0xff]   ;;  %v1608_v60 = vld [vmem:[%s2186_s28 + $0x38] sm:$0xff] }
  0x16   : > { %1663 = vmatprep.mubr.msk.bf16.mxu0 %vm419_vm0, %v1641_v22  ;;  %1690 = vmatprep.mubr.msk.bf16.mxu1 %vm419_vm0, %v1668_v23  ;;  %v2313_v57 = vcombine.low %v2302_v54, %v2305_v55  ;;  %v2324_v59 = vcombine.low %v1606_v46, %v1607_v48  ;;  %v1995_v61 = vld [vmem:[%s2573_s1 + $0x110] sm:$0xff]   ;;  %v2330_v62 = vcombine.low %v1605_v38, %v1606_v46  ;;  %v1996_v63 = vld [vmem:[%s2573_s1 + $0x188] sm:$0xff]   ;;  %v1997_v3 = vld [vmem:[%s2573_s1 + $0x118] sm:$0xff]  }
  0x17   : > { %v2338_v0 = vcombine.high %v1608_v60, %v2302_v54  ;;  %v2341_v2 = vcombine.high %v1607_v48, %v1608_v60  ;;  %v1998_v4 = vld [vmem:[%s2573_s1 + $0x190] sm:$0xff]   ;;  %v2357_v5 = vcombine.low %v1608_v60, %v2302_v54  ;;  %v1999_v6 = vld [vmem:[%s2573_s1 + $0x120] sm:$0xff]   ;;  %v2362_v7 = vcombine.low %v1607_v48, %v1608_v60  ;;  %v2000_v8 = vld [vmem:[%s2573_s1 + $0x198] sm:$0xff]  }
  0x18   : > { %441 = vmatpush1.bf16.msra.mxu0 %v1961_v9  ;;  %644 = vmatpush1.bf16.msra.mxu1 %v1962_v10  ;;  %v2001_v9 = vld [vmem:[%s2573_s1 + $0x128] sm:$0xff]   ;;  %v2002_v10 = vld [vmem:[%s2573_s1 + $0x1a0] sm:$0xff]   ;;  %v2021_v19 = vld [vmem:[%s2573_s1 + $0x150] sm:$0xff]  }
  0x19   : > { %442 = vmatprep.subr.bf16.mxu0 %v2074_v1  ;;  %645 = vmatprep.subr.bf16.mxu1 %v2074_v1  ;;  %v2018_v18 = vld [vmem:[%s2573_s1 + $0x1c0] sm:$0xff]   ;;  %v2022_v20 = vld [vmem:[%s2573_s1 + $0x1c8] sm:$0xff]   ;;  %v2026_v22 = vld [vmem:[%s2573_s1 + $0x1d0] sm:$0xff]  }
  0x1a   : > { %v2027_v23 = vld [vmem:[%s2573_s1 + $0x160] sm:$0xff]   ;;  %v2040_v36 = vld [vmem:[%s2573_s1 + $0x218] sm:$0xff]   ;;  %v2042_v38 = vld [vmem:[%s2573_s1 + $0x228] sm:$0xff]  }
  0x1c   : > { %443 = vmatpush1.bf16.msra.mxu0 %v1963_v11  ;;  %646 = vmatpush1.bf16.msra.mxu1 %v1964_v12  ;;  %v2005_v11 = vld [vmem:[%s2573_s1 + $0x130] sm:$0xff]   ;;  %v2006_v12 = vld [vmem:[%s2573_s1 + $0x1a8] sm:$0xff]  }
  0x1d   : > { %444 = vmatprep.subr.bf16.mxu0 %v2074_v1  ;;  %647 = vmatprep.subr.bf16.mxu1 %v2074_v1 }
  0x20   : > { %445 = vmatpush1.bf16.msra.mxu0 %v1965_v13  ;;  %648 = vmatpush1.bf16.msra.mxu1 %v1966_v14  ;;  %v2009_v13 = vld [vmem:[%s2573_s1 + $0x138] sm:$0xff]   ;;  %v2010_v14 = vld [vmem:[%s2573_s1 + $0x1b0] sm:$0xff]  }
  0x21   : > { %446 = vmatprep.subr.bf16.mxu0 %v2074_v1  ;;  %649 = vmatprep.subr.bf16.mxu1 %v2074_v1 }
  0x24   : > { %447 = vmatpush1.bf16.msra.mxu0 %v1967_v15  ;;  %650 = vmatpush1.bf16.msra.mxu1 %v1968_v16  ;;  %v2013_v15 = vld [vmem:[%s2573_s1 + $0x140] sm:$0xff]   ;;  %v2014_v16 = vld [vmem:[%s2573_s1 + $0x1b8] sm:$0xff]  }
  0x25   : > { %448 = vmatprep.subr.bf16.mxu0 %v2074_v1  ;;  %651 = vmatprep.subr.bf16.mxu1 %v2074_v1 }
  0x28   : > { %449 = vmatpush1.bf16.msra.mxu0 %v1969_v17  ;;  %652 = vmatpush1.bf16.msra.mxu1 %v1970_v21  ;;  %v2017_v17 = vld [vmem:[%s2573_s1 + $0x148] sm:$0xff]   ;;  %v2025_v21 = vld [vmem:[%s2573_s1 + $0x158] sm:$0xff]  }
  0x29   : > { %450 = vmatprep.subr.bf16.mxu0 %v2074_v1  ;;  %653 = vmatprep.subr.bf16.mxu1 %v2074_v1 }
  0x2c   : > { %451 = vmatpush1.bf16.msra.mxu0 %v1971_v24  ;;  %654 = vmatpush1.bf16.msra.mxu1 %v1972_v25  ;;  %v2028_v24 = vld [vmem:[%s2573_s1 + $0x1d8] sm:$0xff]   ;;  %v2029_v25 = vld [vmem:[%s2573_s1 + $0x1e0] sm:$0xff]  }
  0x2d   : > { %452 = vmatprep.subr.bf16.mxu0 %v2074_v1  ;;  %655 = vmatprep.subr.bf16.mxu1 %v2074_v1 }
  0x30   : > { %453 = vmatpush1.bf16.msra.mxu0 %v1973_v26  ;;  %656 = vmatpush1.bf16.msra.mxu1 %v1974_v27  ;;  %v2030_v26 = vld [vmem:[%s2573_s1 + $0x1e8] sm:$0xff]   ;;  %v2031_v27 = vld [vmem:[%s2573_s1 + $0x1f0] sm:$0xff]  }
  0x31   : > { %454 = vmatprep.subr.bf16.mxu0 %v2074_v1  ;;  %657 = vmatprep.subr.bf16.mxu1 %v2074_v1 }
  0x34   : > { %455 = vmatpush1.bf16.msra.mxu0 %v1975_v28  ;;  %658 = vmatpush1.bf16.msra.mxu1 %v1976_v29  ;;  %v2032_v28 = vld [vmem:[%s2573_s1 + $0x1f8] sm:$0xff]   ;;  %v2033_v29 = vld [vmem:[%s2573_s1 + $0x200] sm:$0xff]  }
  0x35   : > { %456 = vmatprep.subr.bf16.mxu0 %v2074_v1  ;;  %659 = vmatprep.subr.bf16.mxu1 %v2074_v1 }
  0x38   : > { %457 = vmatpush1.bf16.msra.mxu0 %v1977_v30  ;;  %660 = vmatpush1.bf16.msra.mxu1 %v1978_v31  ;;  %v2475_v30 = vld [vmem:[%s2186_s28 + $0x50] sm:$0xff]  ;;  %v1739_v31 = vcombine.high %v2302_v54, %v2305_v55 }
  0x39   : > { %458 = vmatprep.subr.bf16.mxu0 %v2074_v1  ;;  %661 = vmatprep.subr.bf16.mxu1 %v2074_v1 }
  0x3c   : > { %459 = vmatpush1.bf16.msra.mxu0 %v1979_v32  ;;  %662 = vmatpush1.bf16.msra.mxu1 %v1980_v33  ;;  %v1804_v32 = vcombine.high %v2305_v55, %v2475_v30  ;;  %v2034_v33 = vld [vmem:[%s2573_s1 + $0x208] sm:$0xff]  }
  0x3d   : > { %460 = vmatprep.subr.bf16.mxu0 %v2074_v1  ;;  %663 = vmatprep.subr.bf16.mxu1 %v2074_v1 }
  0x40   : > { %461 = vmatpush1.bf16.msra.mxu0 %v1981_v34  ;;  %664 = vmatpush1.bf16.msra.mxu1 %v1982_v35  ;;  %v2038_v34 = vld [vmem:[%s2573_s1 + $0x210] sm:$0xff]   ;;  %v1803_v35 = vcombine.low %v2305_v55, %v2475_v30 }
  0x41   : > { %878 = vmatprep.subr.bf16.mxu0 %v2074_v1  ;;  %1129 = vmatprep.subr.bf16.mxu1 %v2074_v1 }
  0x43   : > { %465 = vmatmul.mubr.bf16.vlgmr.msra.gmra.mrb[0].mxu0 %v1640_v37  ;;  %668 = vmatmul.mubr.bf16.vlgmr.msra.gmra.mrb[0].mxu1 %v1667_v39  ;;  %v2041_v37 = vld [vmem:[%s2573_s1 + $0x220] sm:$0xff]   ;;  %v2043_v39 = vld [vmem:[%s2573_s1 + $0x230] sm:$0xff]  }
  0x44   : > { %879 = vmatpush1.bf16.msra.mxu0 %v1987_v40  ;;  %1130 = vmatpush1.bf16.msra.mxu1 %v1988_v41  ;;  %v2044_v40 = vld [vmem:[%s2573_s1 + $0x238] sm:$0xff]   ;;  %v2045_v41 = vld [vmem:[%s2573_s1 + $0x240] sm:$0xff]  }
  0x45   : > { %880 = vmatprep.subr.bf16.mxu0 %v2074_v1  ;;  %1131 = vmatprep.subr.bf16.mxu1 %v2074_v1 }
  0x46   : > { %1664 = vmatprep.mubr.msk.bf16.mxu0 %vm419_vm0, %v2264_v42  ;;  %1691 = vmatprep.mubr.msk.bf16.mxu1 %vm419_vm0, %v2267_v43 }
  0x48   : > { %881 = vmatpush1.bf16.msra.mxu0 %v1989_v44  ;;  %1132 = vmatpush1.bf16.msra.mxu1 %v1990_v45  ;;  %v1831_v44 = vld [vmem:[%s2186_s28 + $0x58] sm:$0xff] }
  0x49   : > { %882 = vmatprep.subr.bf16.mxu0 %v2074_v1  ;;  %1133 = vmatprep.subr.bf16.mxu1 %v2074_v1  ;;  %v1869_v45 = vcombine.high %v2475_v30, %v1831_v44  ;;  %v1868_v46 = vcombine.low %v2475_v30, %v1831_v44 }
  0x4b   : > { %473 = vmatmul.mubr.bf16.gmra.mrb[4].mxu0 %v2282_v47  ;;  %676 = vmatmul.mubr.bf16.gmra.mrb[4].mxu1 %v2289_v50 }
  0x4c   : > { %883 = vmatpush1.bf16.msra.mxu0 %v1991_v49  ;;  %1134 = vmatpush1.bf16.msra.mxu1 %v1992_v51 }
  0x4d   : > { %884 = vmatprep.subr.bf16.mxu0 %v2074_v1  ;;  %1135 = vmatprep.subr.bf16.mxu1 %v2074_v1 }
  0x4e   : > { %1665 = vmatprep.mubr.msk.bf16.mxu0 %vm419_vm0, %v2296_v52  ;;  %1692 = vmatprep.mubr.msk.bf16.mxu1 %vm419_vm0, %v2299_v53 }
  0x50   : > { %885 = vmatpush1.bf16.msra.mxu0 %v1993_v56  ;;  %1136 = vmatpush1.bf16.msra.mxu1 %v1994_v58 }
  0x51   : > { %886 = vmatprep.subr.bf16.mxu0 %v2074_v1  ;;  %1137 = vmatprep.subr.bf16.mxu1 %v2074_v1 }
  0x53   : > { %481 = vmatmul.mubr.bf16.gmra.mrb[8].mxu0 %v2324_v59  ;;  %684 = vmatmul.mubr.bf16.gmra.mrb[8].mxu1 %v2330_v62 }
  0x54   : > { %887 = vmatpush1.bf16.msra.mxu0 %v1995_v61  ;;  %1138 = vmatpush1.bf16.msra.mxu1 %v1996_v63 }
  0x55   : > { %888 = vmatprep.subr.bf16.mxu0 %v2074_v1  ;;  %1139 = vmatprep.subr.bf16.mxu1 %v2074_v1 }
  0x56   : > { %1666 = vmatprep.mubr.msk.bf16.mxu0 %vm419_vm0, %v2338_v0  ;;  %1693 = vmatprep.mubr.msk.bf16.mxu1 %vm419_vm0, %v2341_v2 }
  0x58   : > { %889 = vmatpush1.bf16.msra.mxu0 %v1997_v3  ;;  %1140 = vmatpush1.bf16.msra.mxu1 %v1998_v4 }
  0x59   : > { %890 = vmatprep.subr.bf16.mxu0 %v2074_v1  ;;  %1141 = vmatprep.subr.bf16.mxu1 %v2074_v1 }
  0x5b   : > { %489 = vmatmul.mubr.bf16.gmra.mrb[12].mxu0 %v2357_v5  ;;  %692 = vmatmul.mubr.bf16.gmra.mrb[12].mxu1 %v2362_v7 }
  0x5c   : > { %891 = vmatpush1.bf16.msra.mxu0 %v1999_v6  ;;  %1142 = vmatpush1.bf16.msra.mxu1 %v2000_v8 }
  0x5d   : > { %892 = vmatprep.subr.bf16.mxu0 %v2074_v1  ;;  %1143 = vmatprep.subr.bf16.mxu1 %v2074_v1 }
  0x5e   : > { %1755 = vmatprep.mubr.msk.bf16.mxu0 %vm419_vm0, %v2267_v43  ;;  %1820 = vmatprep.mubr.msk.bf16.mxu1 %vm419_vm0, %v2264_v42  ;;  %v2046_v42 = vld [vmem:[%s2573_s1 + $0x248] sm:$0xff]   ;;  %v2047_v43 = vld [vmem:[%s2573_s1 + $0x250] sm:$0xff]  }
  0x60   : > { %893 = vmatpush1.bf16.msra.mxu0 %v2001_v9  ;;  %1144 = vmatpush1.bf16.msra.mxu1 %v2002_v10 }
  0x61   : > { %894 = vmatprep.subr.bf16.mxu0 %v2074_v1  ;;  %1145 = vmatprep.subr.bf16.mxu1 %v2074_v1 }
  0x64   : > { %895 = vmatpush1.bf16.msra.mxu0 %v2005_v11  ;;  %1146 = vmatpush1.bf16.msra.mxu1 %v2006_v12 }
  0x65   : > { %896 = vmatprep.subr.bf16.mxu0 %v2074_v1  ;;  %1147 = vmatprep.subr.bf16.mxu1 %v2074_v1 }
  0x68   : > { %897 = vmatpush1.bf16.msra.mxu0 %v2009_v13  ;;  %1148 = vmatpush1.bf16.msra.mxu1 %v2010_v14 }
  0x69   : > { %898 = vmatprep.subr.bf16.mxu0 %v2074_v1  ;;  %1149 = vmatprep.subr.bf16.mxu1 %v2074_v1 }
  0x6c   : > { %899 = vmatpush1.bf16.msra.mxu0 %v2013_v15  ;;  %1150 = vmatpush1.bf16.msra.mxu1 %v2014_v16 }
  0x6d   : > { %900 = vmatprep.subr.bf16.mxu0 %v2074_v1  ;;  %1151 = vmatprep.subr.bf16.mxu1 %v2074_v1 }
  0x70   : > { %901 = vmatpush1.bf16.msra.mxu0 %v2017_v17  ;;  %1152 = vmatpush1.bf16.msra.mxu1 %v2018_v18 }
  0x71   : > { %902 = vmatprep.subr.bf16.mxu0 %v2074_v1  ;;  %1153 = vmatprep.subr.bf16.mxu1 %v2074_v1 }
  0x74   : > { %903 = vmatpush1.bf16.msra.mxu0 %v2021_v19  ;;  %1154 = vmatpush1.bf16.msra.mxu1 %v2022_v20 }
  0x75   : > { %904 = vmatprep.subr.bf16.mxu0 %v2074_v1  ;;  %1155 = vmatprep.subr.bf16.mxu1 %v2074_v1 }
  0x78   : > { %905 = vmatpush1.bf16.msra.mxu0 %v2025_v21  ;;  %1156 = vmatpush1.bf16.msra.mxu1 %v2026_v22 }
  0x79   : > { %906 = vmatprep.subr.bf16.mxu0 %v2074_v1  ;;  %1157 = vmatprep.subr.bf16.mxu1 %v2074_v1 }
  0x7c   : > { %907 = vmatpush1.bf16.msra.mxu0 %v2027_v23  ;;  %1158 = vmatpush1.bf16.msra.mxu1 %v2028_v24 }
  0x7d   : > { %1380 = vmatprep.subr.bf16.mxu0 %v2074_v1  ;;  %1897 = vmatprep.subr.bf16.mxu1 %v2074_v1 }
  0x7f   : > { %911 = vmatmul.mubr.bf16.vlgmr.msra.gmra.mrb[16].mxu0 %v2289_v50  ;;  %1162 = vmatmul.mubr.bf16.vlgmr.msra.gmra.mrb[16].mxu1 %v2282_v47 }
  0x80   : > { %1381 = vmatpush1.bf16.msra.mxu0 %v2029_v25  ;;  %1912 = vmatpush1.bf16.msra.mxu1 %v2029_v25 }
  0x81   : > { %1382 = vmatprep.subr.bf16.mxu0 %v2074_v1  ;;  %1898 = vmatprep.subr.bf16.mxu1 %v2074_v1 }
  0x82   : > { %1756 = vmatprep.mubr.msk.bf16.mxu0 %vm419_vm0, %v2299_v53  ;;  %1821 = vmatprep.mubr.msk.bf16.mxu1 %vm419_vm0, %v2296_v52 }
  0x84   : > { %1383 = vmatpush1.bf16.msra.mxu0 %v2030_v26  ;;  %1913 = vmatpush1.bf16.msra.mxu1 %v2030_v26 }
  0x85   : > { %1384 = vmatprep.subr.bf16.mxu0 %v2074_v1  ;;  %1899 = vmatprep.subr.bf16.mxu1 %v2074_v1 }
  0x87   : > { %919 = vmatmul.mubr.bf16.gmra.mrb[20].mxu0 %v2330_v62  ;;  %1170 = vmatmul.mubr.bf16.gmra.mrb[20].mxu1 %v2324_v59 }
  0x88   : > { %1385 = vmatpush1.bf16.msra.mxu0 %v2031_v27  ;;  %1914 = vmatpush1.bf16.msra.mxu1 %v2031_v27 }
  0x89   : > { %1386 = vmatprep.subr.bf16.mxu0 %v2074_v1  ;;  %1900 = vmatprep.subr.bf16.mxu1 %v2074_v1 }
  0x8a   : > { %1757 = vmatprep.mubr.msk.bf16.mxu0 %vm419_vm0, %v2341_v2  ;;  %1822 = vmatprep.mubr.msk.bf16.mxu1 %vm419_vm0, %v2338_v0 }
  0x8c   : > { %1387 = vmatpush1.bf16.msra.mxu0 %v2032_v28  ;;  %1915 = vmatpush1.bf16.msra.mxu1 %v2032_v28 }
  0x8d   : > { %1388 = vmatprep.subr.bf16.mxu0 %v2074_v1  ;;  %1901 = vmatprep.subr.bf16.mxu1 %v2074_v1 }
  0x8f   : > { %927 = vmatmul.mubr.bf16.gmra.mrb[24].mxu0 %v2362_v7  ;;  %1178 = vmatmul.mubr.bf16.gmra.mrb[24].mxu1 %v2357_v5 }
  0x90   : > { %1389 = vmatpush1.bf16.msra.mxu0 %v2033_v29  ;;  %1916 = vmatpush1.bf16.msra.mxu1 %v2033_v29 }
  0x91   : > { %1390 = vmatprep.subr.bf16.mxu0 %v2074_v1  ;;  %1902 = vmatprep.subr.bf16.mxu1 %v2074_v1 }
  0x92   : > { %1758 = vmatprep.mubr.msk.bf16.mxu0 %vm419_vm0, %v1739_v31  ;;  %1823 = vmatprep.mubr.msk.bf16.mxu1 %vm419_vm0, %v1804_v32 }
  0x94   : > { %1391 = vmatpush1.bf16.msra.mxu0 %v2034_v33  ;;  %1917 = vmatpush1.bf16.msra.mxu1 %v2034_v33 }
  0x95   : > { %1392 = vmatprep.subr.bf16.mxu0 %v2074_v1  ;;  %1903 = vmatprep.subr.bf16.mxu1 %v2074_v1 }
  0x97   : > { %935 = vmatmul.mubr.bf16.gmra.mrb[28].mxu0 %v2313_v57  ;;  %1186 = vmatmul.mubr.bf16.gmra.mrb[28].mxu1 %v1803_v35 }
  0x98   : > { %1393 = vmatpush1.bf16.msra.mxu0 %v2038_v34  ;;  %1918 = vmatpush1.bf16.msra.mxu1 %v2038_v34 }
  0x99   : > { %1394 = vmatprep.subr.bf16.mxu0 %v2074_v1  ;;  %1904 = vmatprep.subr.bf16.mxu1 %v2074_v1 }
  0x9a   : > { %1885 = vmatprep.mubr.msk.bf16.mxu0 %vm419_vm0, %v2299_v53  ;;  %1887 = vmatprep.mubr.msk.bf16.mxu1 %vm419_vm0, %v1739_v31 }
  0x9c   : > { %1395 = vmatpush1.bf16.msra.mxu0 %v2040_v36  ;;  %1919 = vmatpush1.bf16.msra.mxu1 %v2040_v36 }
  0x9d   : > { %1396 = vmatprep.subr.bf16.mxu0 %v2074_v1  ;;  %1905 = vmatprep.subr.bf16.mxu1 %v2074_v1 }
  0xa0   : > { %1397 = vmatpush1.bf16.msra.mxu0 %v2041_v37  ;;  %1920 = vmatpush1.bf16.msra.mxu1 %v2041_v37 }
  0xa1   : > { %1398 = vmatprep.subr.bf16.mxu0 %v2074_v1  ;;  %1906 = vmatprep.subr.bf16.mxu1 %v2074_v1 }
  0xa4   : > { %1399 = vmatpush1.bf16.msra.mxu0 %v2042_v38  ;;  %1921 = vmatpush1.bf16.msra.mxu1 %v2042_v38 }
  0xa5   : > { %1400 = vmatprep.subr.bf16.mxu0 %v2074_v1  ;;  %1907 = vmatprep.subr.bf16.mxu1 %v2074_v1 }
  0xa8   : > { %1401 = vmatpush1.bf16.msra.mxu0 %v2043_v39  ;;  %1922 = vmatpush1.bf16.msra.mxu1 %v2043_v39 }
  0xa9   : > { %1402 = vmatprep.subr.bf16.mxu0 %v2074_v1  ;;  %1908 = vmatprep.subr.bf16.mxu1 %v2074_v1 }
  0xac   : > { %1403 = vmatpush1.bf16.msra.mxu0 %v2044_v40  ;;  %1923 = vmatpush1.bf16.msra.mxu1 %v2044_v40 }
  0xad   : > { %1404 = vmatprep.subr.bf16.mxu0 %v2074_v1  ;;  %1909 = vmatprep.subr.bf16.mxu1 %v2074_v1 }
  0xb0   : > { %1405 = vmatpush1.bf16.msra.mxu0 %v2045_v41  ;;  %1924 = vmatpush1.bf16.msra.mxu1 %v2045_v41 }
  0xb1   : > { %1406 = vmatprep.subr.bf16.mxu0 %v2074_v1  ;;  %1910 = vmatprep.subr.bf16.mxu1 %v2074_v1 }
  0xb4   : > { %1407 = vmatpush1.bf16.msra.mxu0 %v2046_v42  ;;  %1925 = vmatpush1.bf16.msra.mxu1 %v2046_v42 }
  0xb5   : > { %1408 = vmatprep.subr.bf16.mxu0 %v2074_v1  ;;  %1911 = vmatprep.subr.bf16.mxu1 %v2074_v1 }
  0xb8   : > { %1409 = vmatpush1.bf16.msra.mxu0 %v2047_v43  ;;  %1926 = vmatpush1.bf16.msra.mxu1 %v2047_v43 }
  0xbb   : > { %1413 = vmatmul.mubr.bf16.vlgmr.msra.gmra.mrb[32].mxu0 %v2330_v62  ;;  %1429 = vmatmul.mubr.bf16.vlgmr.msra.gmra.mrb[32].mxu1 %v2313_v57 }
  0xbc   : > { %1886 = vmatprep.mubr.msk.bf16.mxu0 %vm419_vm0, %v2341_v2  ;;  %1888 = vmatprep.mubr.msk.bf16.mxu1 %vm419_vm0, %v1869_v45 }
  0xc3   : > { %1421 = vmatmul.mubr.bf16.gmra.mrb[36].mxu0 %v2362_v7  ;;  %1437 = vmatmul.mubr.bf16.gmra.mrb[36].mxu1 %v1868_v46 }
 0x116   : > { %v466_v1 = vpop.f32.mrb[0].mxu0  ;;  %v669_v47 = vpop.f32.mrb[0].mxu1 }
 0x117   : > { %v468_v48 = vpop.f32.mrb[1].mxu0  ;;  %v670_v49 = vadd.f32 %v669_v47, %v466_v1  ;;  %v671_v50 = vpop.f32.mrb[1].mxu1 }
 0x118   : > { %v469_v51 = vpop.f32.mrb[2].mxu0  ;;  %v672_v52 = vpop.f32.mrb[2].mxu1 }
 0x119   : > { %v471_v53 = vpop.f32.mrb[3].mxu0  ;;  %v673_v54 = vadd.f32 %v672_v52, %v469_v51  ;;  %v674_v55 = vpop.f32.mrb[3].mxu1 }
 0x11e   : > { %v474_v56 = vpop.f32.mrb[4].mxu0  ;;  %v677_v57 = vpop.f32.mrb[4].mxu1 }
 0x11f   : > { %v476_v58 = vpop.f32.mrb[5].mxu0  ;;  %v678_v59 = vadd.f32 %v677_v57, %v474_v56  ;;  %v679_v60 = vpop.f32.mrb[5].mxu1 }
 0x120   : > { %v477_v61 = vpop.f32.mrb[6].mxu0  ;;  %v680_v62 = vpop.f32.mrb[6].mxu1 }
 0x121   : > { %v479_v63 = vpop.f32.mrb[7].mxu0  ;;  %v681_v0 = vadd.f32 %v680_v62, %v477_v61  ;;  %v682_v2 = vpop.f32.mrb[7].mxu1 }
 0x126   : > { %v482_v3 = vpop.f32.mrb[8].mxu0  ;;  %v685_v4 = vpop.f32.mrb[8].mxu1 }
 0x127   : > { %v484_v5 = vpop.f32.mrb[9].mxu0  ;;  %v686_v6 = vadd.f32 %v685_v4, %v482_v3  ;;  %v687_v7 = vpop.f32.mrb[9].mxu1 }
 0x128   : > { %v485_v8 = vpop.f32.mrb[10].mxu0  ;;  %v688_v9 = vpop.f32.mrb[10].mxu1  ;;  %v1889_v7 = vld [vmem:[%s2574_s2] ss:$0 sm:$0xff] }
 0x129   : > { %v487_v10 = vpop.f32.mrb[11].mxu0  ;;  %v689_v11 = vadd.f32 %v688_v9, %v485_v8  ;;  %v690_v12 = vpop.f32.mrb[11].mxu1 }
 0x12e   : > { %v490_v13 = vpop.f32.mrb[12].mxu0  ;;  %v693_v14 = vpop.f32.mrb[12].mxu1 }
 0x12f   : > { %v492_v15 = vpop.f32.mrb[13].mxu0  ;;  %v694_v16 = vadd.f32 %v693_v14, %v490_v13  ;;  %v695_v17 = vpop.f32.mrb[13].mxu1 }
 0x130   : > { %v493_v18 = vpop.f32.mrb[14].mxu0  ;;  %v696_v19 = vpop.f32.mrb[14].mxu1 }
 0x131   : > { %v495_v20 = vpop.f32.mrb[15].mxu0  ;;  %v697_v21 = vadd.f32 %v696_v19, %v493_v18  ;;  %v698_v22 = vpop.f32.mrb[15].mxu1 }
 0x152   : > { %v912_v23 = vpop.f32.mrb[16].mxu0  ;;  %v1163_v25 = vpop.f32.mrb[16].mxu1 }
 0x153   : > { %v943_v24 = vadd.f32 %v912_v23, %v670_v49  ;;  %v914_v26 = vpop.f32.mrb[17].mxu0  ;;  %v1165_v27 = vpop.f32.mrb[17].mxu1 }
 0x154   : > { %v915_v28 = vpop.f32.mrb[18].mxu0  ;;  %v1166_v31 = vpop.f32.mrb[18].mxu1 }
 0x155   : > { %v1194_v29 = vadd.f32 %v1163_v25, %v943_v24  ;;  %v944_v30 = vadd.f32 %v915_v28, %v673_v54  ;;  %v917_v32 = vpop.f32.mrb[19].mxu0  ;;  %v1168_v33 = vpop.f32.mrb[19].mxu1 }
 0x157   : > { %v1195_v34 = vadd.f32 %v1166_v31, %v944_v30 }
 0x15a   : > { %v920_v35 = vpop.f32.mrb[20].mxu0  ;;  %v1171_v38 = vpop.f32.mrb[20].mxu1 }
 0x15b   : > { %v945_v36 = vadd.f32 %v920_v35, %v678_v59  ;;  %v922_v37 = vpop.f32.mrb[21].mxu0  ;;  %v1173_v40 = vpop.f32.mrb[21].mxu1 }
 0x15c   : > { %v923_v39 = vpop.f32.mrb[22].mxu0  ;;  %v1174_v43 = vpop.f32.mrb[22].mxu1 }
 0x15d   : > { %v946_v41 = vadd.f32 %v923_v39, %v681_v0  ;;  %v1196_v42 = vadd.f32 %v1171_v38, %v945_v36  ;;  %v925_v44 = vpop.f32.mrb[23].mxu0  ;;  %v1176_v45 = vpop.f32.mrb[23].mxu1 }
 0x15f   : > { %v1197_v46 = vadd.f32 %v1174_v43, %v946_v41 }
 0x162   : > { %v928_v1 = vpop.f32.mrb[24].mxu0  ;;  %v1179_v49 = vpop.f32.mrb[24].mxu1 }
 0x163   : > { %v947_v47 = vadd.f32 %v928_v1, %v686_v6  ;;  %v930_v48 = vpop.f32.mrb[25].mxu0  ;;  %v1181_v51 = vpop.f32.mrb[25].mxu1 }
 0x164   : > { %v931_v50 = vpop.f32.mrb[26].mxu0  ;;  %v1182_v54 = vpop.f32.mrb[26].mxu1 }
 0x165   : > { %v948_v52 = vadd.f32 %v931_v50, %v689_v11  ;;  %v1198_v53 = vadd.f32 %v1179_v49, %v947_v47  ;;  %v933_v55 = vpop.f32.mrb[27].mxu0  ;;  %v1184_v56 = vpop.f32.mrb[27].mxu1 }
 0x167   : > { %v1199_v57 = vadd.f32 %v1182_v54, %v948_v52 }
 0x16a   : > { %v936_v58 = vpop.f32.mrb[28].mxu0  ;;  %v1187_v61 = vpop.f32.mrb[28].mxu1 }
 0x16b   : > { %v949_v59 = vadd.f32 %v936_v58, %v694_v16  ;;  %v938_v60 = vpop.f32.mrb[29].mxu0  ;;  %v1189_v63 = vpop.f32.mrb[29].mxu1 }
 0x16c   : > { %v939_v62 = vpop.f32.mrb[30].mxu0  ;;  %v1190_v3 = vpop.f32.mrb[30].mxu1 }
 0x16d   : > { %v950_v0 = vadd.f32 %v939_v62, %v697_v21  ;;  %v1200_v2 = vadd.f32 %v1187_v61, %v949_v59  ;;  %v941_v4 = vpop.f32.mrb[31].mxu0  ;;  %v1192_v5 = vpop.f32.mrb[31].mxu1 }
 0x16f   : > { %v1201_v6 = vadd.f32 %v1190_v3, %v950_v0 }
 0x18e   : > { %v1414_v8 = vpop.f32.mrb[32].mxu0  ;;  %v1430_v10 = vpop.f32.mrb[32].mxu1 }
 0x18f   : > { %v1445_v9 = vadd.f32 %v1414_v8, %v1194_v29  ;;  %v1416_v11 = vpop.f32.mrb[33].mxu0  ;;  %v1449_v12 = vadd.f32 %v1430_v10, %v1198_v53  ;;  %v1432_v13 = vpop.f32.mrb[33].mxu1 }
 0x190   : > { %v1417_v14 = vpop.f32.mrb[34].mxu0  ;;  %v1433_v17 = vpop.f32.mrb[34].mxu1 }
 0x191   : > { %v1459_v15 = vadd.f32 %v1889_v7, %v1445_v9  ;;  %v1446_v16 = vadd.f32 %v1417_v14, %v1195_v34  ;;  %v1419_v18 = vpop.f32.mrb[35].mxu0  ;;  %v1463_v19 = vadd.f32 %v1889_v7, %v1449_v12  ;;  %v1450_v20 = vadd.f32 %v1433_v17, %v1199_v57  ;;  %v1435_v21 = vpop.f32.mrb[35].mxu1 }
 0x193   : > { %v1460_v22 = vadd.f32 %v1889_v7, %v1446_v16  ;;  %v1464_v23 = vadd.f32 %v1889_v7, %v1450_v20  ;;  %v1467_v24 = vmax.f32 %v1459_v15, 0.0  ;;  %v1471_v26 = vmax.f32 %v1463_v19, 0.0 }
 0x195   : > { %v1468_v25 = vmax.f32 %v1460_v22, 0.0  ;;  %v1472_v27 = vmax.f32 %v1464_v23, 0.0 }
 0x196   : > { %v1422_v28 = vpop.f32.mrb[36].mxu0  ;;  %v1438_v31 = vpop.f32.mrb[36].mxu1 }
 0x197   : > { %v1475_v29 = vmax.f32 %v1467_v24, %v1468_v25  ;;  %v1447_v30 = vadd.f32 %v1422_v28, %v1196_v42  ;;  %v1424_v32 = vpop.f32.mrb[37].mxu0  ;;  %v1477_v33 = vmax.f32 %v1471_v26, %v1472_v27  ;;  %v1451_v35 = vadd.f32 %v1438_v31, %v1200_v2  ;;  %v1440_v34 = vpop.f32.mrb[37].mxu1 }
 0x198   : > { %v1425_v36 = vpop.f32.mrb[38].mxu0  ;;  %v1441_v39 = vpop.f32.mrb[38].mxu1 }
 0x199   : > { %1480 = vst.msk [vmem:[#allocation2] sm:$0xff] %vm1479_vm1, %v1475_v29  ;;  %v1461_v37 = vadd.f32 %v1889_v7, %v1447_v30  ;;  %v1448_v38 = vadd.f32 %v1425_v36, %v1197_v46  ;;  %v1427_v40 = vpop.f32.mrb[39].mxu0  ;;  %1482 = vst.msk [vmem:[#allocation2 + $0x10] sm:$0xff] %vm1479_vm1, %v1477_v33  ;;  %v1465_v41 = vadd.f32 %v1889_v7, %v1451_v35  ;;  %v1443_v44 = vpop.f32.mrb[39].mxu1 }
 0x19a   : > { %v1452_v43 = vadd.f32 %v1441_v39, %v1201_v6 }
 0x19b   : > { %v1462_v45 = vadd.f32 %v1889_v7, %v1448_v38  ;;  %v1469_v1 = vmax.f32 %v1461_v37, 0.0  ;;  %v1473_v48 = vmax.f32 %v1465_v41, 0.0 }
 0x19c   : > { %v1466_v42 = vadd.f32 %v1889_v7, %v1452_v43 }
 0x19d   : > { %v1470_v47 = vmax.f32 %v1462_v45, 0.0 }
 0x19e   : > { %v1474_v49 = vmax.f32 %v1466_v42, 0.0 }
 0x19f   : > { %v1476_v50 = vmax.f32 %v1469_v1, %v1470_v47 }
 0x1a0   : > { %v1478_v51 = vmax.f32 %v1473_v48, %v1474_v49 }
 0x1a1   : > { %1481 = vst.msk [vmem:[#allocation2 + $0x8] sm:$0xff] %vm1479_vm1, %v1476_v50 }
 0x1a2   : > { %1483 = vst.msk [vmem:[#allocation2 + $0x18] sm:$0xff] %vm1479_vm1, %v1478_v51 }
 0x1a8   : > { %v1484_v46 = vld [vmem:[#allocation2] ss:$2 sm:$0xff]  ;;  %v1488_v52 = vld [vmem:[#allocation2 + $0x1] ss:$2 sm:$0xff] }
 0x1a9   : > { %v1491_v53 = vmax.f32 %v1484_v46, %v1488_v52  ;;  %v1486_v54 = vld [vmem:[#allocation2 + $0x10] ss:$2 sm:$0xff]  ;;  %v1490_v55 = vld [vmem:[#allocation2 + $0x11] ss:$2 sm:$0xff] }
 0x1aa   : > { %v1492_v56 = vmax.f32 %v1486_v54, %v1490_v55 }
 0x1ab   : > { %v1895_v57 = vpack.c.bf16 %v1491_v53, %v1491_v53 }
 0x1ac   : > { %v1896_v58 = vpack.c.bf16 %v1492_v56, %v1492_v56 }
 0x1ad   : > { %1502 = vst.msk [vmem:[%s211_s18] sm:$0xf] %vm1501_vm2, %v1895_v57 }
 0x1ae   : > { %1503 = vst.msk [vmem:[%s211_s18 + $0x4] sm:$0xf] %vm1501_vm2, %v1896_v58 }
 0x1af PF: > { %s13_s14 = sadd.s32 1, %s2072_s14   ;;  %s2576_s12 = smov %s2068_s13 }
 0x1b0   : > { %p10_p5 = scmp.ge.s32.totalorder %s13_s14, 4   ;;  %s2577_s13 = smov %s2579_s15 }
 0x1b2   :  { %12 = sbr.rel (!%p10_p5) target bundleno = 2 (0x2), region = 73 }

// kernel: forward.9
= control target key start
LH: loop header
LB: loop body
LE: loop exit
PB: predicated region body
PF: predicated region fallthrough
CT: control target
= control target key end

     0   :  { %v546_v22 = vmov 1966171168   ;;  %v107_v24 = vlaneseq  ;;  %vm405_vm0 = vcmask 517120   ;;  %vm423_vm1 = vcmask 1024   ;;  %s688_s1 = inlined_call_operand.vmem [shape: bf16[512,64], index: 1, kind: input, shape index: {}]   ;;  %s689_s0 = inlined_call_operand.vmem [shape: bf16[2,512], index: 0, kind: input, shape index: {}]   ;;  %s690_s4 = inlined_call_operand.<no memory space> [shape: f32[1,1], index: 4, kind: input, shape index: {}]   ;;  %s691_s2 = inlined_call_operand.vmem [shape: f32[1,64], index: 2, kind: input, shape index: {}]   ;;  %s692_s3 = inlined_call_operand.vmem [shape: f32[1,64], index: 3, kind: input, shape index: {}]   ;;  %s693_s5 = inlined_call_operand.vmem [shape: f32[2,1], index: 5, kind: output, shape index: {}]  }
   0x1   :  { %v510_v0 = vld [vmem:[%s688_s1 + $0x40] sm:$0xff]   ;;  %v514_v4 = vld [vmem:[%s688_s1 + $0x48] sm:$0xff]   ;;  %v518_v8 = vld [vmem:[%s688_s1 + $0x50] sm:$0xff]   ;;  %v105_v23 = vunpack.c.l.s4 %v546_v22  ;;  %v10_v44 = vstv %s690_s4 }
   0x2   :  { %v511_v1 = vld [vmem:[%s688_s1 + $0xc0] sm:$0xff]   ;;  %465 = vmatprep.subr.bf16.mxu0 %v510_v0  ;;  %v515_v5 = vld [vmem:[%s688_s1 + $0xc8] sm:$0xff]   ;;  %v519_v9 = vld [vmem:[%s688_s1 + $0xd0] sm:$0xff]   ;;  %v108_v30 = vshrl.u32 %v107_v24, 7  ;;  %11 = vst [vmem:[#allocation2] sm:$0x1] %v10_v44 }
   0x3   :  { %v512_v2 = vld [vmem:[%s688_s1] sm:$0xff]   ;;  %487 = vmatprep.subr.bf16.mxu1 %v511_v1  ;;  %v516_v6 = vld [vmem:[%s688_s1 + $0x8] sm:$0xff]   ;;  %v520_v10 = vld [vmem:[%s688_s1 + $0x10] sm:$0xff]   ;;  %v106_v29 = vunpack.c.0.s8 %v105_v23 }
   0x4   :  { %v513_v3 = vld [vmem:[%s688_s1 + $0x80] sm:$0xff]   ;;  %466 = vmatpush3.bf16.msra.mxu0 %v512_v2  ;;  %v517_v7 = vld [vmem:[%s688_s1 + $0x88] sm:$0xff]   ;;  %v521_v11 = vld [vmem:[%s688_s1 + $0x90] sm:$0xff]  }
   0x5   :  { %488 = vmatpush3.bf16.msra.mxu1 %v513_v3  ;;  %467 = vmatprep.subr.bf16.mxu0 %v514_v4  ;;  %v522_v12 = vld [vmem:[%s688_s1 + $0x58] sm:$0xff]   ;;  %v526_v16 = vld [vmem:[%s688_s1 + $0x60] sm:$0xff]   ;;  %v530_v20 = vld [vmem:[%s688_s1 + $0x68] sm:$0xff]   ;;  %v109_v35 = vsub.s32 %v106_v29, %v108_v30 }
   0x6   :  { %489 = vmatprep.subr.bf16.mxu1 %v515_v5  ;;  %v523_v13 = vld [vmem:[%s688_s1 + $0xd8] sm:$0xff]   ;;  %v527_v17 = vld [vmem:[%s688_s1 + $0xe0] sm:$0xff]   ;;  %v531_v21 = vld [vmem:[%s688_s1 + $0xe8] sm:$0xff]  }
   0x7   :  { %v524_v14 = vld [vmem:[%s688_s1 + $0x18] sm:$0xff]   ;;  %v528_v18 = vld [vmem:[%s688_s1 + $0x20] sm:$0xff]   ;;  %v532_v25 = vld [vmem:[%s688_s1 + $0x28] sm:$0xff]  }
   0x8   :  { %468 = vmatpush3.bf16.msra.mxu0 %v516_v6  ;;  %v525_v15 = vld [vmem:[%s688_s1 + $0x98] sm:$0xff]   ;;  %v529_v19 = vld [vmem:[%s688_s1 + $0xa0] sm:$0xff]   ;;  %v533_v26 = vld [vmem:[%s688_s1 + $0xa8] sm:$0xff]  }
   0x9   :  { %490 = vmatpush3.bf16.msra.mxu1 %v517_v7  ;;  %469 = vmatprep.subr.bf16.mxu0 %v518_v8  ;;  %v534_v27 = vld [vmem:[%s688_s1 + $0x70] sm:$0xff]   ;;  %v538_v33 = vld [vmem:[%s688_s1 + $0x78] sm:$0xff]   ;;  %v430_v38 = vld.sshfl [vmem:[%s689_s0] sm:$0x33 pattern:$0x75316420] }
   0xa   :  { %491 = vmatprep.subr.bf16.mxu1 %v519_v9  ;;  %v535_v28 = vld [vmem:[%s688_s1 + $0xf0] sm:$0xff]   ;;  %v539_v34 = vld [vmem:[%s688_s1 + $0xf8] sm:$0xff]   ;;  %v103_v39 = vcombine.high %v430_v38, %v430_v38  ;;  %v110_v40 = vrot.slane %v430_v38, %v109_v35  ;;  %v429_v46 = vld [vmem:[%s691_s2] ss:$0 sm:$0xff] }
   0xb   :  { %v536_v31 = vld [vmem:[%s688_s1 + $0x30] sm:$0xff]   ;;  %v540_v36 = vld [vmem:[%s688_s1 + $0x38] sm:$0xff]   ;;  %v463_v58 = vld [vmem:[%s692_s3] ss:$0 sm:$0xff] }
   0xc   :  { %470 = vmatpush3.bf16.msra.mxu0 %v520_v10  ;;  %v537_v32 = vld [vmem:[%s688_s1 + $0xb0] sm:$0xff]   ;;  %v541_v37 = vld [vmem:[%s688_s1 + $0xb8] sm:$0xff]   ;;  %v117_v41 = vrot.slane %v103_v39, %v109_v35  ;;  %v118_v42 = vcombine.high %v110_v40, %v110_v40  ;;  %v464_v62 = vld [vmem:[#allocation2] ss:$0 sm:$0xff] }
   0xd   :  { %492 = vmatpush3.bf16.msra.mxu1 %v521_v11  ;;  %471 = vmatprep.subr.bf16.mxu0 %v522_v12 }
   0xe   :  { %493 = vmatprep.subr.bf16.mxu1 %v523_v13  ;;  %348 = vmatprep.mubr.bf16.mxu0 %v117_v41  ;;  %v119_v43 = vcombine.high %v117_v41, %v117_v41 }
  0x10   :  { %472 = vmatpush3.bf16.msra.mxu0 %v524_v14  ;;  %388 = vmatprep.mubr.bf16.mxu1 %v119_v43 }
  0x11   :  { %494 = vmatpush3.bf16.msra.mxu1 %v525_v15  ;;  %473 = vmatprep.subr.bf16.mxu0 %v526_v16 }
  0x12   :  { %495 = vmatprep.subr.bf16.mxu1 %v527_v17 }
  0x14   :  { %474 = vmatpush3.bf16.msra.mxu0 %v528_v18 }
  0x15   :  { %496 = vmatpush3.bf16.msra.mxu1 %v529_v19  ;;  %475 = vmatprep.subr.bf16.mxu0 %v530_v20 }
  0x16   :  { %497 = vmatprep.subr.bf16.mxu1 %v531_v21 }
  0x18   :  { %476 = vmatpush3.bf16.msra.mxu0 %v532_v25 }
  0x19   :  { %498 = vmatpush3.bf16.msra.mxu1 %v533_v26  ;;  %477 = vmatprep.subr.bf16.mxu0 %v534_v27 }
  0x1a   :  { %499 = vmatprep.subr.bf16.mxu1 %v535_v28 }
  0x1c   :  { %478 = vmatpush3.bf16.msra.mxu0 %v536_v31 }
  0x1d   :  { %500 = vmatpush3.bf16.msra.mxu1 %v537_v32  ;;  %479 = vmatprep.subr.bf16.mxu0 %v538_v33 }
  0x1e   :  { %501 = vmatprep.subr.bf16.mxu1 %v539_v34 }
  0x20   :  { %480 = vmatpush3.bf16.msra.mxu0 %v540_v36 }
  0x21   :  { %502 = vmatpush3.bf16.msra.mxu1 %v541_v37 }
  0x23   :  { %349 = vmatmul.mubr.bf16.vlgmr.msra.gmra.mrb[0].mxu0 %v110_v40 }
  0x24   :  { %389 = vmatmul.mubr.bf16.vlgmr.msra.gmra.mrb[0].mxu1 %v118_v42 }
  0xf6   :  { %v481_v45 = vpop.f32.mrb[0].mxu0 }
  0xf7   :  { %v482_v47 = vpop.f32.mrb[1].mxu0  ;;  %v503_v48 = vpop.f32.mrb[0].mxu1 }
  0xf8   :  { %v483_v49 = vadd.f32 %v482_v47, %v481_v45  ;;  %v484_v50 = vpop.f32.mrb[2].mxu0  ;;  %v504_v51 = vpop.f32.mrb[1].mxu1 }
  0xf9   :  { %v485_v52 = vpop.f32.mrb[3].mxu0  ;;  %v505_v54 = vadd.f32 %v504_v51, %v503_v48  ;;  %v506_v55 = vpop.f32.mrb[2].mxu1 }
  0xfa   :  { %v351_v53 = vadd.f32 %v483_v49, %v429_v46  ;;  %v507_v56 = vpop.f32.mrb[3].mxu1 }
  0xfc   :  { %v391_v57 = vadd.f32 %v505_v54, %v351_v53 }
  0xfe   :  { %v396_v59 = vmax.f32 %v391_v57, 0.0 }
 0x100   :  { %v404_v60 = vmul.f32 %v463_v58, %v396_v59 }
 0x102   :  { %v406_v61 = vsel %vm405_vm0, %v404_v60, 0.0 }
 0x103   :  { %407 = vadd.xlane.f32.xlu0 %v406_v61 }
 0x190   :  { %v408_v63 = vpop.xlane.xlu0 %407 }
 0x191   :  { %v416_v0 = vadd.f32 %v464_v62, %v408_v63 }
 0x193   :  { %v417_v1 = vsub.f32 0.0, %v416_v0 }
 0x195   :  { %v418_v2 = vmul.f32 1.442695, %v417_v1 }
 0x197   :  { %542 = vpow2.f32 %v418_v2 }
 0x1a1   :  { %v543_v3 = vpop.eup %542 }
 0x1a2   :  { %v420_v4 = vadd.f32 1.0, %v543_v3 }
 0x1a4   :  { %544 = vrcp.f32 %v420_v4 }
 0x1ae   :  { %v545_v5 = vpop.eup %544 }
 0x1af   :  { %424 = vst.msk [vmem:[%s693_s5] sm:$0x3] %vm423_vm1, %v545_v5 }

</bundles_post_ra>
